<compile_context>
chip_gen: v7x
topology: tpu7x:2x2x1
jax: 0.10.0
libtpu: 0.0.40
codegen_flags: <defaults>
</compile_context>

<pallas_src>
import math
import numpy as np
import jax
import jax.numpy as jnp
from jax import lax
from jax.experimental import pallas as pl
from jax.experimental.pallas import tpu as pltpu

# ---- static sizes (small, consistent with the module's forward) -------------
B = 2
CIMG = 3
H = W = 32            # input image spatial size (bilinear target)
PATCH = 4             # synthetic patch size (real DINOv2 uses 14)
HP, WP = H // PATCH, W // PATCH
CIN = 32              # synthetic embed_dim (real dinov2_vits14 = 384)
C1_ = 256             # conv_seg hidden channels (from the module)
C2_ = 64
M = B * HP * WP       # 128: batch folded into the matmul M dimension
K1 = 9 * CIN          # 288: fused conv1 contraction
K2 = 9 * C1_          # 2304: fused conv2 contraction
CLIP_MIN = 0.1        # config.uncertainty_clip_min
SOFTPLUS_SHIFT = math.log(math.e - 1.0)


def _softplus(x):
    # numerically-stable softplus usable both in and out of the kernel
    return jnp.maximum(x, 0.0) + jnp.log(1.0 + jnp.exp(-jnp.abs(x)))


# ---------------------------- Pallas kernel ----------------------------------
def uncertainty_head_kernel(feats_ref, bn_s_ref, bn_b_ref,
                            w1_ref, b1_ref, w2_ref, b2_ref,
                            w3_ref, b3_ref, wbi_ref,
                            out_ref, pad1, pad2, p1, p2):
    # eval-mode SyncBatchNorm folded to per-channel scale/shift
    xbn = feats_ref[...] * bn_s_ref[0] + bn_b_ref[0]         # (B, HP, WP, CIN)

    # Zero-fill padded scratches once (single grid step).  Only the 1-px halo
    # actually needs the zeros; the interiors are fully overwritten below.
    pad1[...] = jnp.zeros((B, HP + 2, WP + 2, CIN), jnp.float32)
    pad2[...] = jnp.zeros((B, HP + 2, WP + 2, C1_), jnp.float32)

    # ---- conv1: 3x3 CIN->256, pad=1, as ONE im2col matmul (M=128, K=288) ----
    for b in range(B):
        pad1[b:b + 1, 1:1 + HP, 1:1 + WP, :] = xbn[b:b + 1]
    for b in range(B):
        for k in range(9):
            ky, kx = k // 3, k % 3
            p1[b * HP * WP:(b + 1) * HP * WP, k * CIN:(k + 1) * CIN] = (
                pad1[b:b + 1, ky:ky + HP, kx:kx + WP, :].reshape(HP * WP, CIN))
    h1 = jnp.dot(p1[...], w1_ref[...], preferred_element_type=jnp.float32)
    h1 = jnp.maximum(h1 + b1_ref[...], 0.0)                  # (M, 256) ReLU

    # ---- conv2: 3x3 256->64, pad=1, as ONE im2col matmul (M=128, K=2304) ----
    h1r = h1.reshape(B, HP, WP, C1_)
    for b in range(B):
        pad2[b:b + 1, 1:1 + HP, 1:1 + WP, :] = h1r[b:b + 1]
    for b in range(B):
        for k in range(9):
            ky, kx = k // 3, k % 3
            p2[b * HP * WP:(b + 1) * HP * WP, k * C1_:(k + 1) * C1_] = (
                pad2[b:b + 1, ky:ky + HP, kx:kx + WP, :].reshape(HP * WP, C1_))
    h2 = jnp.dot(p2[...], w2_ref[...], preferred_element_type=jnp.float32)
    h2 = jnp.maximum(h2 + b2_ref[...], 0.0)                  # (M, 64) ReLU

    # ---- conv3 (1x1, 64->1) + (bias + log(e-1)) + softplus ------------------
    h2b = h2.reshape(B, HP * WP, C2_)                        # (B, 64, 64)
    logit = jnp.sum(h2b * w3_ref[...], axis=-1) + b3_ref[0, 0]   # (B, 64)
    logit = _softplus(logit)

    # ---- bilinear upsample (align_corners=False) as one Kronecker matmul ----
    up = jnp.dot(logit, wbi_ref[...], preferred_element_type=jnp.float32)  # (B, H*W)
    out_ref[...] = jnp.maximum(up, CLIP_MIN)                 # lane-dense store


def uncertainty_head(feats, bn_scale, bn_shift, w1_mat, b1, w2_mat, b2,
                     w3_row, b3_shifted, w_bi):
    in_specs = [
        pl.BlockSpec((B, HP, WP, CIN), lambda i: (0, 0, 0, 0)),   # feats (NHWC)
        pl.BlockSpec((1, CIN), lambda i: (0, 0)),                 # bn scale
        pl.BlockSpec((1, CIN), lambda i: (0, 0)),                 # bn shift
        pl.BlockSpec((K1, C1_), lambda i: (0, 0)),                # conv1 w (288,256)
        pl.BlockSpec((1, C1_), lambda i: (0, 0)),                 # conv1 b
        pl.BlockSpec((K2, C2_), lambda i: (0, 0)),                # conv2 w (2304,64)
        pl.BlockSpec((1, C2_), lambda i: (0, 0)),                 # conv2 b
        pl.BlockSpec((1, C2_), lambda i: (0, 0)),                 # conv3 w (1x1)
        pl.BlockSpec(memory_space=pltpu.MemorySpace.SMEM),        # conv3 bias + log(e-1)
        pl.BlockSpec((HP * WP, H * W), lambda i: (0, 0)),         # Kronecker bilinear
    ]
    out = pl.pallas_call(
        uncertainty_head_kernel,
        out_shape=jax.ShapeDtypeStruct((B, H * W), jnp.float32),
        grid_spec=pltpu.PrefetchScalarGridSpec(
            num_scalar_prefetch=0,
            grid=(1,),
            in_specs=in_specs,
            out_specs=pl.BlockSpec((B, H * W), lambda i: (0, 0)),
            scratch_shapes=[
                pltpu.VMEM((B, HP + 2, WP + 2, CIN), jnp.float32),   # padded BN out
                pltpu.VMEM((B, HP + 2, WP + 2, C1_), jnp.float32),   # padded h1
                pltpu.VMEM((M, K1), jnp.float32),                    # im2col conv1
                pltpu.VMEM((M, K2), jnp.float32),                    # im2col conv2
            ]),
        compiler_params=pltpu.CompilerParams(
            dimension_semantics=("arbitrary",)),
    )(feats, bn_scale, bn_shift, w1_mat, b1, w2_mat, b2, w3_row, b3_shifted, w_bi)
    return out.reshape(B, 1, H, W)      # (B, 1, H, W) like the PyTorch module


# ---------------------------- plain-JAX glue ----------------------------------
def bilinear_matrix(out_size, in_size):
    """PyTorch F.interpolate(mode='bilinear', align_corners=False) as a matrix."""
    A = np.zeros((out_size, in_size), np.float32)
    scale = in_size / out_size
    for i in range(out_size):
        src = max((i + 0.5) * scale - 0.5, 0.0)
        i0 = min(int(np.floor(src)), in_size - 1)
        i1 = min(i0 + 1, in_size - 1)
        w1 = src - i0
        A[i, i0] += 1.0 - w1
        A[i, i1] += w1
    return A


def reference_forward(feats, bn_scale, bn_shift, w1_hwio, b1, w2_hwio, b2,
                      w3_vec, b3, A_h, A_w_t):
    x = feats * bn_scale.reshape(1, 1, 1, CIN) + bn_shift.reshape(1, 1, 1, CIN)
    y = lax.conv_general_dilated(x, w1_hwio, (1, 1), 'SAME',
                                 dimension_numbers=('NHWC', 'HWIO', 'NHWC'))
    y = jnp.maximum(y + b1.reshape(1, 1, 1, C1_), 0.0)
    y = lax.conv_general_dilated(y, w2_hwio, (1, 1), 'SAME',
                                 dimension_numbers=('NHWC', 'HWIO', 'NHWC'))
    y = jnp.maximum(y + b2.reshape(1, 1, 1, C2_), 0.0)
    z = jnp.einsum('bhwc,c->bhw', y, w3_vec) + b3
    z = _softplus(z + SOFTPLUS_SHIFT)
    up = jnp.einsum('Hh,bhw,wW->bHW', A_h, z, A_w_t)
    return jnp.maximum(up, CLIP_MIN)[:, None]


if __name__ == "__main__":
    key = jax.random.PRNGKey(0)
    ks = jax.random.split(key, 12)

    # synthetic input image, NCHW like the PyTorch module
    image = jax.random.uniform(ks[0], (B, CIMG, H, W), jnp.float32)

    # synthetic stand-in for the frozen DINOv2 backbone: patchify + linear proj
    patches = image.reshape(B, CIMG, HP, PATCH, WP, PATCH).transpose(0, 2, 4, 1, 3, 5)
    patches = patches.reshape(B, HP, WP, CIMG * PATCH * PATCH)
    w_patch = 0.1 * jax.random.normal(ks[1], (CIMG * PATCH * PATCH, CIN), jnp.float32)
    feats = patches @ w_patch                                   # (B, HP, WP, CIN)

    # SyncBatchNorm (eval) parameters folded to per-channel scale/shift
    gamma = 1.0 + 0.1 * jax.random.normal(ks[2], (CIN,), jnp.float32)
    beta = 0.1 * jax.random.normal(ks[3], (CIN,), jnp.float32)
    rmean = 0.1 * jax.random.normal(ks[4], (CIN,), jnp.float32)
    rvar = jnp.abs(1.0 + 0.1 * jax.random.normal(ks[5], (CIN,), jnp.float32))
    scale = gamma / jnp.sqrt(rvar + 1e-5)
    shift = beta - rmean * scale
    bn_scale = scale.reshape(1, CIN)
    bn_shift = shift.reshape(1, CIN)

    # conv_seg weights (PyTorch OIHW), reshaped to fused im2col layouts
    w1_oihw = 0.05 * jax.random.normal(ks[6], (C1_, CIN, 3, 3), jnp.float32)
    b1 = 0.05 * jax.random.normal(ks[7], (1, C1_), jnp.float32)
    w2_oihw = 0.05 * jax.random.normal(ks[8], (C2_, C1_, 3, 3), jnp.float32)
    b2 = 0.05 * jax.random.normal(ks[9], (1, C2_), jnp.float32)
    w3_oihw = 0.05 * jax.random.normal(ks[10], (1, C2_, 1, 1), jnp.float32)
    b3 = 0.05 * jax.random.normal(ks[11], (1, 1), jnp.float32)

    w1_hwio = jnp.transpose(w1_oihw, (2, 3, 1, 0))              # (3,3,CIN,256)
    w2_hwio = jnp.transpose(w2_oihw, (2, 3, 1, 0))              # (3,3,256,64)
    w1_mat = w1_hwio.reshape(K1, C1_)                           # (288, 256)
    w2_mat = w2_hwio.reshape(K2, C2_)                           # (2304, 64)
    w3_row = w3_oihw.reshape(1, C2_)
    b3_shifted = b3 + SOFTPLUS_SHIFT                            # fold log(e-1)

    # bilinear upsample (align_corners=False) as a single Kronecker matrix
    A_h = bilinear_matrix(H, HP)                                # (H, HP)
    A_w = bilinear_matrix(W, WP)                                # (W, WP)
    w_bi = jnp.asarray(np.kron(A_h, A_w).T)                     # (HP*WP, H*W)

    out = uncertainty_head(feats, bn_scale, bn_shift, w1_mat, b1, w2_mat, b2,
                           w3_row, b3_shifted, w_bi)
    out = jax.block_until_ready(out)

    ref = reference_forward(feats, scale, shift, w1_hwio, b1, w2_hwio, b2,
                            w3_row[0], b3[0, 0], jnp.asarray(A_h),
                            jnp.asarray(A_w).T)
    ref = jax.block_until_ready(ref)

    assert out.shape == (B, 1, H, W), out.shape
    np.testing.assert_allclose(np.asarray(out), np.asarray(ref),
                               rtol=1e-4, atol=1e-4)
    print("KERNEL_OK")
</pallas_src>

<mosaic_0001>
module attributes {stable_mosaic.version = 11 : i64} {
  func.func @uncertainty_head_kernel(%arg0: i32, %arg1: memref<2x8x8x32xf32, #tpu.memory_space<vmem>>, %arg2: memref<1x32xf32, #tpu.memory_space<vmem>>, %arg3: memref<1x32xf32, #tpu.memory_space<vmem>>, %arg4: memref<288x256xf32, #tpu.memory_space<vmem>>, %arg5: memref<1x256xf32, #tpu.memory_space<vmem>>, %arg6: memref<2304x64xf32, #tpu.memory_space<vmem>>, %arg7: memref<1x64xf32, #tpu.memory_space<vmem>>, %arg8: memref<1x64xf32, #tpu.memory_space<vmem>>, %arg9: memref<1x1xf32, #tpu.memory_space<smem>>, %arg10: memref<64x1024xf32, #tpu.memory_space<vmem>>, %arg11: memref<2x1024xf32, #tpu.memory_space<vmem>>, %arg12: memref<2x10x10x32xf32, #tpu.memory_space<vmem>>, %arg13: memref<2x10x10x256xf32, #tpu.memory_space<vmem>>, %arg14: memref<128x288xf32, #tpu.memory_space<vmem>>, %arg15: memref<128x2304xf32, #tpu.memory_space<vmem>>) attributes {dimension_semantics = [#tpu.dimension_semantics<arbitrary>], iteration_bounds = array<i64: 1>, scalar_prefetch = 0 : i64, scratch_operands = 4 : i64, tpu.core_type = #tpu.core_type<tc>, window_params = [{pipeline_mode = #tpu.pipeline_mode<synchronous>, transform_indices = @transform_0, window_bounds = array<i64: 2, 8, 8, 32>}, {pipeline_mode = #tpu.pipeline_mode<synchronous>, transform_indices = @transform_1, window_bounds = array<i64: 1, 32>}, {pipeline_mode = #tpu.pipeline_mode<synchronous>, transform_indices = @transform_2, window_bounds = array<i64: 1, 32>}, {pipeline_mode = #tpu.pipeline_mode<synchronous>, transform_indices = @transform_3, window_bounds = array<i64: 288, 256>}, {pipeline_mode = #tpu.pipeline_mode<synchronous>, transform_indices = @transform_4, window_bounds = array<i64: 1, 256>}, {pipeline_mode = #tpu.pipeline_mode<synchronous>, transform_indices = @transform_5, window_bounds = array<i64: 2304, 64>}, {pipeline_mode = #tpu.pipeline_mode<synchronous>, transform_indices = @transform_6, window_bounds = array<i64: 1, 64>}, {pipeline_mode = #tpu.pipeline_mode<synchronous>, transform_indices = @transform_7, window_bounds = array<i64: 1, 64>}, {transform_indices = @transform_8, window_bounds = array<i64: 1, 1>}, {pipeline_mode = #tpu.pipeline_mode<synchronous>, transform_indices = @transform_9, window_bounds = array<i64: 64, 1024>}, {pipeline_mode = #tpu.pipeline_mode<synchronous>, transform_indices = @transform_10, window_bounds = array<i64: 2, 1024>}]} {
    %c0 = arith.constant 0 : index
    %c0_0 = arith.constant 0 : index
    %c0_1 = arith.constant 0 : index
    %c0_2 = arith.constant 0 : index
    %0 = vector.load %arg1[%c0, %c0_0, %c0_1, %c0_2] : memref<2x8x8x32xf32, #tpu.memory_space<vmem>>, vector<2x8x8x32xf32>
    %c0_3 = arith.constant 0 : index
    %c0_4 = arith.constant 0 : index
    %1 = vector.load %arg2[%c0_3, %c0_4] : memref<1x32xf32, #tpu.memory_space<vmem>>, vector<1x32xf32>
    %2 = vector.shape_cast %1 : vector<1x32xf32> to vector<32xf32>
    %3 = vector.shape_cast %2 : vector<32xf32> to vector<1x1x1x32xf32>
    %4 = vector.broadcast %3 : vector<1x1x1x32xf32> to vector<2x8x8x32xf32>
    %5 = arith.mulf %0, %4 : vector<2x8x8x32xf32>
    %c0_5 = arith.constant 0 : index
    %c0_6 = arith.constant 0 : index
    %6 = vector.load %arg3[%c0_5, %c0_6] : memref<1x32xf32, #tpu.memory_space<vmem>>, vector<1x32xf32>
    %7 = vector.shape_cast %6 : vector<1x32xf32> to vector<32xf32>
    %8 = vector.shape_cast %7 : vector<32xf32> to vector<1x1x1x32xf32>
    %9 = vector.broadcast %8 : vector<1x1x1x32xf32> to vector<2x8x8x32xf32>
    %10 = arith.addf %5, %9 : vector<2x8x8x32xf32>
    %cst = arith.constant 0.000000e+00 : f32
    %11 = vector.broadcast %cst : f32 to vector<2x10x10x32xf32>
    %c0_7 = arith.constant 0 : index
    %c0_8 = arith.constant 0 : index
    %c0_9 = arith.constant 0 : index
    %c0_10 = arith.constant 0 : index
    %12 = vector.load %arg12[%c0_7, %c0_8, %c0_9, %c0_10] : memref<2x10x10x32xf32, #tpu.memory_space<vmem>>, vector<2x10x10x32xf32>
    tpu.vector_store %arg12[%c0_7, %c0_8, %c0_9, %c0_10], %11 {strides = array<i32>} : memref<2x10x10x32xf32, #tpu.memory_space<vmem>>, vector<2x10x10x32xf32>,
    %cst_11 = arith.constant 0.000000e+00 : f32
    %13 = vector.broadcast %cst_11 : f32 to vector<2x10x10x256xf32>
    %c0_12 = arith.constant 0 : index
    %c0_13 = arith.constant 0 : index
    %c0_14 = arith.constant 0 : index
    %c0_15 = arith.constant 0 : index
    %14 = vector.load %arg13[%c0_12, %c0_13, %c0_14, %c0_15] : memref<2x10x10x256xf32, #tpu.memory_space<vmem>>, vector<2x10x10x256xf32>
    tpu.vector_store %arg13[%c0_12, %c0_13, %c0_14, %c0_15], %13 {strides = array<i32>} : memref<2x10x10x256xf32, #tpu.memory_space<vmem>>, vector<2x10x10x256xf32>,
    %15 = vector.extract_strided_slice %10 {offsets = [0, 0, 0, 0], sizes = [1, 8, 8, 32], strides = [1, 1, 1, 1]} : vector<2x8x8x32xf32> to vector<1x8x8x32xf32>
    %c0_16 = arith.constant 0 : index
    %c1 = arith.constant 1 : index
    %c1_17 = arith.constant 1 : index
    %c0_18 = arith.constant 0 : index
    %16 = vector.load %arg12[%c0_16, %c1, %c1_17, %c0_18] : memref<2x10x10x32xf32, #tpu.memory_space<vmem>>, vector<1x8x8x32xf32>
    tpu.vector_store %arg12[%c0_16, %c1, %c1_17, %c0_18], %15 {strides = array<i32>} : memref<2x10x10x32xf32, #tpu.memory_space<vmem>>, vector<1x8x8x32xf32>,
    %17 = vector.extract_strided_slice %10 {offsets = [1, 0, 0, 0], sizes = [1, 8, 8, 32], strides = [1, 1, 1, 1]} : vector<2x8x8x32xf32> to vector<1x8x8x32xf32>
    %c1_19 = arith.constant 1 : index
    %c1_20 = arith.constant 1 : index
    %c1_21 = arith.constant 1 : index
    %c0_22 = arith.constant 0 : index
    %18 = vector.load %arg12[%c1_19, %c1_20, %c1_21, %c0_22] : memref<2x10x10x32xf32, #tpu.memory_space<vmem>>, vector<1x8x8x32xf32>
    tpu.vector_store %arg12[%c1_19, %c1_20, %c1_21, %c0_22], %17 {strides = array<i32>} : memref<2x10x10x32xf32, #tpu.memory_space<vmem>>, vector<1x8x8x32xf32>,
    %c0_23 = arith.constant 0 : index
    %c0_24 = arith.constant 0 : index
    %c0_25 = arith.constant 0 : index
    %c0_26 = arith.constant 0 : index
    %19 = vector.load %arg12[%c0_23, %c0_24, %c0_25, %c0_26] : memref<2x10x10x32xf32, #tpu.memory_space<vmem>>, vector<1x8x8x32xf32>
    %20 = vector.shape_cast %19 : vector<1x8x8x32xf32> to vector<64x32xf32>
    %c0_27 = arith.constant 0 : index
    %c0_28 = arith.constant 0 : index
    %21 = vector.load %arg14[%c0_27, %c0_28] : memref<128x288xf32, #tpu.memory_space<vmem>>, vector<64x32xf32>
    tpu.vector_store %arg14[%c0_27, %c0_28], %20 {strides = array<i32>} : memref<128x288xf32, #tpu.memory_space<vmem>>, vector<64x32xf32>,
    %c0_29 = arith.constant 0 : index
    %c0_30 = arith.constant 0 : index
    %c1_31 = arith.constant 1 : index
    %c0_32 = arith.constant 0 : index
    %22 = vector.load %arg12[%c0_29, %c0_30, %c1_31, %c0_32] : memref<2x10x10x32xf32, #tpu.memory_space<vmem>>, vector<1x8x8x32xf32>
    %23 = vector.shape_cast %22 : vector<1x8x8x32xf32> to vector<64x32xf32>
    %c0_33 = arith.constant 0 : index
    %c32 = arith.constant 32 : index
    %24 = vector.load %arg14[%c0_33, %c32] : memref<128x288xf32, #tpu.memory_space<vmem>>, vector<64x32xf32>
    tpu.vector_store %arg14[%c0_33, %c32], %23 {strides = array<i32>} : memref<128x288xf32, #tpu.memory_space<vmem>>, vector<64x32xf32>,
    %c0_34 = arith.constant 0 : index
    %c0_35 = arith.constant 0 : index
    %c2 = arith.constant 2 : index
    %c0_36 = arith.constant 0 : index
    %25 = vector.load %arg12[%c0_34, %c0_35, %c2, %c0_36] : memref<2x10x10x32xf32, #tpu.memory_space<vmem>>, vector<1x8x8x32xf32>
    %26 = vector.shape_cast %25 : vector<1x8x8x32xf32> to vector<64x32xf32>
    %c0_37 = arith.constant 0 : index
    %c64 = arith.constant 64 : index
    %27 = vector.load %arg14[%c0_37, %c64] : memref<128x288xf32, #tpu.memory_space<vmem>>, vector<64x32xf32>
    tpu.vector_store %arg14[%c0_37, %c64], %26 {strides = array<i32>} : memref<128x288xf32, #tpu.memory_space<vmem>>, vector<64x32xf32>,
    %c0_38 = arith.constant 0 : index
    %c1_39 = arith.constant 1 : index
    %c0_40 = arith.constant 0 : index
    %c0_41 = arith.constant 0 : index
    %28 = vector.load %arg12[%c0_38, %c1_39, %c0_40, %c0_41] : memref<2x10x10x32xf32, #tpu.memory_space<vmem>>, vector<1x8x8x32xf32>
    %29 = vector.shape_cast %28 : vector<1x8x8x32xf32> to vector<64x32xf32>
    %c0_42 = arith.constant 0 : index
    %c96 = arith.constant 96 : index
    %30 = vector.load %arg14[%c0_42, %c96] : memref<128x288xf32, #tpu.memory_space<vmem>>, vector<64x32xf32>
    tpu.vector_store %arg14[%c0_42, %c96], %29 {strides = array<i32>} : memref<128x288xf32, #tpu.memory_space<vmem>>, vector<64x32xf32>,
    %c0_43 = arith.constant 0 : index
    %c1_44 = arith.constant 1 : index
    %c1_45 = arith.constant 1 : index
    %c0_46 = arith.constant 0 : index
    %31 = vector.load %arg12[%c0_43, %c1_44, %c1_45, %c0_46] : memref<2x10x10x32xf32, #tpu.memory_space<vmem>>, vector<1x8x8x32xf32>
    %32 = vector.shape_cast %31 : vector<1x8x8x32xf32> to vector<64x32xf32>
    %c0_47 = arith.constant 0 : index
    %c128 = arith.constant 128 : index
    %33 = vector.load %arg14[%c0_47, %c128] : memref<128x288xf32, #tpu.memory_space<vmem>>, vector<64x32xf32>
    tpu.vector_store %arg14[%c0_47, %c128], %32 {strides = array<i32>} : memref<128x288xf32, #tpu.memory_space<vmem>>, vector<64x32xf32>,
    %c0_48 = arith.constant 0 : index
    %c1_49 = arith.constant 1 : index
    %c2_50 = arith.constant 2 : index
    %c0_51 = arith.constant 0 : index
    %34 = vector.load %arg12[%c0_48, %c1_49, %c2_50, %c0_51] : memref<2x10x10x32xf32, #tpu.memory_space<vmem>>, vector<1x8x8x32xf32>
    %35 = vector.shape_cast %34 : vector<1x8x8x32xf32> to vector<64x32xf32>
    %c0_52 = arith.constant 0 : index
    %c160 = arith.constant 160 : index
    %36 = vector.load %arg14[%c0_52, %c160] : memref<128x288xf32, #tpu.memory_space<vmem>>, vector<64x32xf32>
    tpu.vector_store %arg14[%c0_52, %c160], %35 {strides = array<i32>} : memref<128x288xf32, #tpu.memory_space<vmem>>, vector<64x32xf32>,
    %c0_53 = arith.constant 0 : index
    %c2_54 = arith.constant 2 : index
    %c0_55 = arith.constant 0 : index
    %c0_56 = arith.constant 0 : index
    %37 = vector.load %arg12[%c0_53, %c2_54, %c0_55, %c0_56] : memref<2x10x10x32xf32, #tpu.memory_space<vmem>>, vector<1x8x8x32xf32>
    %38 = vector.shape_cast %37 : vector<1x8x8x32xf32> to vector<64x32xf32>
    %c0_57 = arith.constant 0 : index
    %c192 = arith.constant 192 : index
    %39 = vector.load %arg14[%c0_57, %c192] : memref<128x288xf32, #tpu.memory_space<vmem>>, vector<64x32xf32>
    tpu.vector_store %arg14[%c0_57, %c192], %38 {strides = array<i32>} : memref<128x288xf32, #tpu.memory_space<vmem>>, vector<64x32xf32>,
    %c0_58 = arith.constant 0 : index
    %c2_59 = arith.constant 2 : index
    %c1_60 = arith.constant 1 : index
    %c0_61 = arith.constant 0 : index
    %40 = vector.load %arg12[%c0_58, %c2_59, %c1_60, %c0_61] : memref<2x10x10x32xf32, #tpu.memory_space<vmem>>, vector<1x8x8x32xf32>
    %41 = vector.shape_cast %40 : vector<1x8x8x32xf32> to vector<64x32xf32>
    %c0_62 = arith.constant 0 : index
    %c224 = arith.constant 224 : index
    %42 = vector.load %arg14[%c0_62, %c224] : memref<128x288xf32, #tpu.memory_space<vmem>>, vector<64x32xf32>
    tpu.vector_store %arg14[%c0_62, %c224], %41 {strides = array<i32>} : memref<128x288xf32, #tpu.memory_space<vmem>>, vector<64x32xf32>,
    %c0_63 = arith.constant 0 : index
    %c2_64 = arith.constant 2 : index
    %c2_65 = arith.constant 2 : index
    %c0_66 = arith.constant 0 : index
    %43 = vector.load %arg12[%c0_63, %c2_64, %c2_65, %c0_66] : memref<2x10x10x32xf32, #tpu.memory_space<vmem>>, vector<1x8x8x32xf32>
    %44 = vector.shape_cast %43 : vector<1x8x8x32xf32> to vector<64x32xf32>
    %c0_67 = arith.constant 0 : index
    %c256 = arith.constant 256 : index
    %45 = vector.load %arg14[%c0_67, %c256] : memref<128x288xf32, #tpu.memory_space<vmem>>, vector<64x32xf32>
    tpu.vector_store %arg14[%c0_67, %c256], %44 {strides = array<i32>} : memref<128x288xf32, #tpu.memory_space<vmem>>, vector<64x32xf32>,
    %c1_68 = arith.constant 1 : index
    %c0_69 = arith.constant 0 : index
    %c0_70 = arith.constant 0 : index
    %c0_71 = arith.constant 0 : index
    %46 = vector.load %arg12[%c1_68, %c0_69, %c0_70, %c0_71] : memref<2x10x10x32xf32, #tpu.memory_space<vmem>>, vector<1x8x8x32xf32>
    %47 = vector.shape_cast %46 : vector<1x8x8x32xf32> to vector<64x32xf32>
    %c64_72 = arith.constant 64 : index
    %c0_73 = arith.constant 0 : index
    %48 = vector.load %arg14[%c64_72, %c0_73] : memref<128x288xf32, #tpu.memory_space<vmem>>, vector<64x32xf32>
    tpu.vector_store %arg14[%c64_72, %c0_73], %47 {strides = array<i32>} : memref<128x288xf32, #tpu.memory_space<vmem>>, vector<64x32xf32>,
    %c1_74 = arith.constant 1 : index
    %c0_75 = arith.constant 0 : index
    %c1_76 = arith.constant 1 : index
    %c0_77 = arith.constant 0 : index
    %49 = vector.load %arg12[%c1_74, %c0_75, %c1_76, %c0_77] : memref<2x10x10x32xf32, #tpu.memory_space<vmem>>, vector<1x8x8x32xf32>
    %50 = vector.shape_cast %49 : vector<1x8x8x32xf32> to vector<64x32xf32>
    %c64_78 = arith.constant 64 : index
    %c32_79 = arith.constant 32 : index
    %51 = vector.load %arg14[%c64_78, %c32_79] : memref<128x288xf32, #tpu.memory_space<vmem>>, vector<64x32xf32>
    tpu.vector_store %arg14[%c64_78, %c32_79], %50 {strides = array<i32>} : memref<128x288xf32, #tpu.memory_space<vmem>>, vector<64x32xf32>,
    %c1_80 = arith.constant 1 : index
    %c0_81 = arith.constant 0 : index
    %c2_82 = arith.constant 2 : index
    %c0_83 = arith.constant 0 : index
    %52 = vector.load %arg12[%c1_80, %c0_81, %c2_82, %c0_83] : memref<2x10x10x32xf32, #tpu.memory_space<vmem>>, vector<1x8x8x32xf32>
    %53 = vector.shape_cast %52 : vector<1x8x8x32xf32> to vector<64x32xf32>
    %c64_84 = arith.constant 64 : index
    %c64_85 = arith.constant 64 : index
    %54 = vector.load %arg14[%c64_84, %c64_85] : memref<128x288xf32, #tpu.memory_space<vmem>>, vector<64x32xf32>
    tpu.vector_store %arg14[%c64_84, %c64_85], %53 {strides = array<i32>} : memref<128x288xf32, #tpu.memory_space<vmem>>, vector<64x32xf32>,
    %c1_86 = arith.constant 1 : index
    %c1_87 = arith.constant 1 : index
    %c0_88 = arith.constant 0 : index
    %c0_89 = arith.constant 0 : index
    %55 = vector.load %arg12[%c1_86, %c1_87, %c0_88, %c0_89] : memref<2x10x10x32xf32, #tpu.memory_space<vmem>>, vector<1x8x8x32xf32>
    %56 = vector.shape_cast %55 : vector<1x8x8x32xf32> to vector<64x32xf32>
    %c64_90 = arith.constant 64 : index
    %c96_91 = arith.constant 96 : index
    %57 = vector.load %arg14[%c64_90, %c96_91] : memref<128x288xf32, #tpu.memory_space<vmem>>, vector<64x32xf32>
    tpu.vector_store %arg14[%c64_90, %c96_91], %56 {strides = array<i32>} : memref<128x288xf32, #tpu.memory_space<vmem>>, vector<64x32xf32>,
    %c1_92 = arith.constant 1 : index
    %c1_93 = arith.constant 1 : index
    %c1_94 = arith.constant 1 : index
    %c0_95 = arith.constant 0 : index
    %58 = vector.load %arg12[%c1_92, %c1_93, %c1_94, %c0_95] : memref<2x10x10x32xf32, #tpu.memory_space<vmem>>, vector<1x8x8x32xf32>
    %59 = vector.shape_cast %58 : vector<1x8x8x32xf32> to vector<64x32xf32>
    %c64_96 = arith.constant 64 : index
    %c128_97 = arith.constant 128 : index
    %60 = vector.load %arg14[%c64_96, %c128_97] : memref<128x288xf32, #tpu.memory_space<vmem>>, vector<64x32xf32>
    tpu.vector_store %arg14[%c64_96, %c128_97], %59 {strides = array<i32>} : memref<128x288xf32, #tpu.memory_space<vmem>>, vector<64x32xf32>,
    %c1_98 = arith.constant 1 : index
    %c1_99 = arith.constant 1 : index
    %c2_100 = arith.constant 2 : index
    %c0_101 = arith.constant 0 : index
    %61 = vector.load %arg12[%c1_98, %c1_99, %c2_100, %c0_101] : memref<2x10x10x32xf32, #tpu.memory_space<vmem>>, vector<1x8x8x32xf32>
    %62 = vector.shape_cast %61 : vector<1x8x8x32xf32> to vector<64x32xf32>
    %c64_102 = arith.constant 64 : index
    %c160_103 = arith.constant 160 : index
    %63 = vector.load %arg14[%c64_102, %c160_103] : memref<128x288xf32, #tpu.memory_space<vmem>>, vector<64x32xf32>
    tpu.vector_store %arg14[%c64_102, %c160_103], %62 {strides = array<i32>} : memref<128x288xf32, #tpu.memory_space<vmem>>, vector<64x32xf32>,
    %c1_104 = arith.constant 1 : index
    %c2_105 = arith.constant 2 : index
    %c0_106 = arith.constant 0 : index
    %c0_107 = arith.constant 0 : index
    %64 = vector.load %arg12[%c1_104, %c2_105, %c0_106, %c0_107] : memref<2x10x10x32xf32, #tpu.memory_space<vmem>>, vector<1x8x8x32xf32>
    %65 = vector.shape_cast %64 : vector<1x8x8x32xf32> to vector<64x32xf32>
    %c64_108 = arith.constant 64 : index
    %c192_109 = arith.constant 192 : index
    %66 = vector.load %arg14[%c64_108, %c192_109] : memref<128x288xf32, #tpu.memory_space<vmem>>, vector<64x32xf32>
    tpu.vector_store %arg14[%c64_108, %c192_109], %65 {strides = array<i32>} : memref<128x288xf32, #tpu.memory_space<vmem>>, vector<64x32xf32>,
    %c1_110 = arith.constant 1 : index
    %c2_111 = arith.constant 2 : index
    %c1_112 = arith.constant 1 : index
    %c0_113 = arith.constant 0 : index
    %67 = vector.load %arg12[%c1_110, %c2_111, %c1_112, %c0_113] : memref<2x10x10x32xf32, #tpu.memory_space<vmem>>, vector<1x8x8x32xf32>
    %68 = vector.shape_cast %67 : vector<1x8x8x32xf32> to vector<64x32xf32>
    %c64_114 = arith.constant 64 : index
    %c224_115 = arith.constant 224 : index
    %69 = vector.load %arg14[%c64_114, %c224_115] : memref<128x288xf32, #tpu.memory_space<vmem>>, vector<64x32xf32>
    tpu.vector_store %arg14[%c64_114, %c224_115], %68 {strides = array<i32>} : memref<128x288xf32, #tpu.memory_space<vmem>>, vector<64x32xf32>,
    %c1_116 = arith.constant 1 : index
    %c2_117 = arith.constant 2 : index
    %c2_118 = arith.constant 2 : index
    %c0_119 = arith.constant 0 : index
    %70 = vector.load %arg12[%c1_116, %c2_117, %c2_118, %c0_119] : memref<2x10x10x32xf32, #tpu.memory_space<vmem>>, vector<1x8x8x32xf32>
    %71 = vector.shape_cast %70 : vector<1x8x8x32xf32> to vector<64x32xf32>
    %c64_120 = arith.constant 64 : index
    %c256_121 = arith.constant 256 : index
    %72 = vector.load %arg14[%c64_120, %c256_121] : memref<128x288xf32, #tpu.memory_space<vmem>>, vector<64x32xf32>
    tpu.vector_store %arg14[%c64_120, %c256_121], %71 {strides = array<i32>} : memref<128x288xf32, #tpu.memory_space<vmem>>, vector<64x32xf32>,
    %c0_122 = arith.constant 0 : index
    %c0_123 = arith.constant 0 : index
    %73 = vector.load %arg14[%c0_122, %c0_123] : memref<128x288xf32, #tpu.memory_space<vmem>>, vector<128x288xf32>
    %c0_124 = arith.constant 0 : index
    %c0_125 = arith.constant 0 : index
    %74 = vector.load %arg4[%c0_124, %c0_125] : memref<288x256xf32, #tpu.memory_space<vmem>>, vector<288x256xf32>
    %cst_126 = arith.constant dense<0.000000e+00> : vector<128x256xf32>
    %75 = tpu.matmul %73, %74, %cst_126 {dimension_numbers = #tpu.dot_dimension_numbers<[1], [0], [0], [1], [0, 0, 1, 1], [], []>} : vector<128x288xf32>, vector<288x256xf32>, vector<128x256xf32> -> vector<128x256xf32>
    %c0_127 = arith.constant 0 : index
    %c0_128 = arith.constant 0 : index
    %76 = vector.load %arg5[%c0_127, %c0_128] : memref<1x256xf32, #tpu.memory_space<vmem>>, vector<1x256xf32>
    %77 = vector.broadcast %76 : vector<1x256xf32> to vector<128x256xf32>
    %78 = arith.addf %75, %77 : vector<128x256xf32>
    %cst_129 = arith.constant 0.000000e+00 : f32
    %79 = vector.broadcast %cst_129 : f32 to vector<128x256xf32>
    %80 = arith.maximumf %78, %79 : vector<128x256xf32>
    %81 = vector.shape_cast %80 : vector<128x256xf32> to vector<2x8x8x256xf32>
    %82 = vector.extract_strided_slice %81 {offsets = [0, 0, 0, 0], sizes = [1, 8, 8, 256], strides = [1, 1, 1, 1]} : vector<2x8x8x256xf32> to vector<1x8x8x256xf32>
    %c0_130 = arith.constant 0 : index
    %c1_131 = arith.constant 1 : index
    %c1_132 = arith.constant 1 : index
    %c0_133 = arith.constant 0 : index
    %83 = vector.load %arg13[%c0_130, %c1_131, %c1_132, %c0_133] : memref<2x10x10x256xf32, #tpu.memory_space<vmem>>, vector<1x8x8x256xf32>
    tpu.vector_store %arg13[%c0_130, %c1_131, %c1_132, %c0_133], %82 {strides = array<i32>} : memref<2x10x10x256xf32, #tpu.memory_space<vmem>>, vector<1x8x8x256xf32>,
    %84 = vector.extract_strided_slice %81 {offsets = [1, 0, 0, 0], sizes = [1, 8, 8, 256], strides = [1, 1, 1, 1]} : vector<2x8x8x256xf32> to vector<1x8x8x256xf32>
    %c1_134 = arith.constant 1 : index
    %c1_135 = arith.constant 1 : index
    %c1_136 = arith.constant 1 : index
    %c0_137 = arith.constant 0 : index
    %85 = vector.load %arg13[%c1_134, %c1_135, %c1_136, %c0_137] : memref<2x10x10x256xf32, #tpu.memory_space<vmem>>, vector<1x8x8x256xf32>
    tpu.vector_store %arg13[%c1_134, %c1_135, %c1_136, %c0_137], %84 {strides = array<i32>} : memref<2x10x10x256xf32, #tpu.memory_space<vmem>>, vector<1x8x8x256xf32>,
    %c0_138 = arith.constant 0 : index
    %c0_139 = arith.constant 0 : index
    %c0_140 = arith.constant 0 : index
    %c0_141 = arith.constant 0 : index
    %86 = vector.load %arg13[%c0_138, %c0_139, %c0_140, %c0_141] : memref<2x10x10x256xf32, #tpu.memory_space<vmem>>, vector<1x8x8x256xf32>
    %87 = vector.shape_cast %86 : vector<1x8x8x256xf32> to vector<64x256xf32>
    %c0_142 = arith.constant 0 : index
    %c0_143 = arith.constant 0 : index
    %88 = vector.load %arg15[%c0_142, %c0_143] : memref<128x2304xf32, #tpu.memory_space<vmem>>, vector<64x256xf32>
    tpu.vector_store %arg15[%c0_142, %c0_143], %87 {strides = array<i32>} : memref<128x2304xf32, #tpu.memory_space<vmem>>, vector<64x256xf32>,
    %c0_144 = arith.constant 0 : index
    %c0_145 = arith.constant 0 : index
    %c1_146 = arith.constant 1 : index
    %c0_147 = arith.constant 0 : index
    %89 = vector.load %arg13[%c0_144, %c0_145, %c1_146, %c0_147] : memref<2x10x10x256xf32, #tpu.memory_space<vmem>>, vector<1x8x8x256xf32>
    %90 = vector.shape_cast %89 : vector<1x8x8x256xf32> to vector<64x256xf32>
    %c0_148 = arith.constant 0 : index
    %c256_149 = arith.constant 256 : index
    %91 = vector.load %arg15[%c0_148, %c256_149] : memref<128x2304xf32, #tpu.memory_space<vmem>>, vector<64x256xf32>
    tpu.vector_store %arg15[%c0_148, %c256_149], %90 {strides = array<i32>} : memref<128x2304xf32, #tpu.memory_space<vmem>>, vector<64x256xf32>,
    %c0_150 = arith.constant 0 : index
    %c0_151 = arith.constant 0 : index
    %c2_152 = arith.constant 2 : index
    %c0_153 = arith.constant 0 : index
    %92 = vector.load %arg13[%c0_150, %c0_151, %c2_152, %c0_153] : memref<2x10x10x256xf32, #tpu.memory_space<vmem>>, vector<1x8x8x256xf32>
    %93 = vector.shape_cast %92 : vector<1x8x8x256xf32> to vector<64x256xf32>
    %c0_154 = arith.constant 0 : index
    %c512 = arith.constant 512 : index
    %94 = vector.load %arg15[%c0_154, %c512] : memref<128x2304xf32, #tpu.memory_space<vmem>>, vector<64x256xf32>
    tpu.vector_store %arg15[%c0_154, %c512], %93 {strides = array<i32>} : memref<128x2304xf32, #tpu.memory_space<vmem>>, vector<64x256xf32>,
    %c0_155 = arith.constant 0 : index
    %c1_156 = arith.constant 1 : index
    %c0_157 = arith.constant 0 : index
    %c0_158 = arith.constant 0 : index
    %95 = vector.load %arg13[%c0_155, %c1_156, %c0_157, %c0_158] : memref<2x10x10x256xf32, #tpu.memory_space<vmem>>, vector<1x8x8x256xf32>
    %96 = vector.shape_cast %95 : vector<1x8x8x256xf32> to vector<64x256xf32>
    %c0_159 = arith.constant 0 : index
    %c768 = arith.constant 768 : index
    %97 = vector.load %arg15[%c0_159, %c768] : memref<128x2304xf32, #tpu.memory_space<vmem>>, vector<64x256xf32>
    tpu.vector_store %arg15[%c0_159, %c768], %96 {strides = array<i32>} : memref<128x2304xf32, #tpu.memory_space<vmem>>, vector<64x256xf32>,
    %c0_160 = arith.constant 0 : index
    %c1_161 = arith.constant 1 : index
    %c1_162 = arith.constant 1 : index
    %c0_163 = arith.constant 0 : index
    %98 = vector.load %arg13[%c0_160, %c1_161, %c1_162, %c0_163] : memref<2x10x10x256xf32, #tpu.memory_space<vmem>>, vector<1x8x8x256xf32>
    %99 = vector.shape_cast %98 : vector<1x8x8x256xf32> to vector<64x256xf32>
    %c0_164 = arith.constant 0 : index
    %c1024 = arith.constant 1024 : index
    %100 = vector.load %arg15[%c0_164, %c1024] : memref<128x2304xf32, #tpu.memory_space<vmem>>, vector<64x256xf32>
    tpu.vector_store %arg15[%c0_164, %c1024], %99 {strides = array<i32>} : memref<128x2304xf32, #tpu.memory_space<vmem>>, vector<64x256xf32>,
    %c0_165 = arith.constant 0 : index
    %c1_166 = arith.constant 1 : index
    %c2_167 = arith.constant 2 : index
    %c0_168 = arith.constant 0 : index
    %101 = vector.load %arg13[%c0_165, %c1_166, %c2_167, %c0_168] : memref<2x10x10x256xf32, #tpu.memory_space<vmem>>, vector<1x8x8x256xf32>
    %102 = vector.shape_cast %101 : vector<1x8x8x256xf32> to vector<64x256xf32>
    %c0_169 = arith.constant 0 : index
    %c1280 = arith.constant 1280 : index
    %103 = vector.load %arg15[%c0_169, %c1280] : memref<128x2304xf32, #tpu.memory_space<vmem>>, vector<64x256xf32>
    tpu.vector_store %arg15[%c0_169, %c1280], %102 {strides = array<i32>} : memref<128x2304xf32, #tpu.memory_space<vmem>>, vector<64x256xf32>,
    %c0_170 = arith.constant 0 : index
    %c2_171 = arith.constant 2 : index
    %c0_172 = arith.constant 0 : index
    %c0_173 = arith.constant 0 : index
    %104 = vector.load %arg13[%c0_170, %c2_171, %c0_172, %c0_173] : memref<2x10x10x256xf32, #tpu.memory_space<vmem>>, vector<1x8x8x256xf32>
    %105 = vector.shape_cast %104 : vector<1x8x8x256xf32> to vector<64x256xf32>
    %c0_174 = arith.constant 0 : index
    %c1536 = arith.constant 1536 : index
    %106 = vector.load %arg15[%c0_174, %c1536] : memref<128x2304xf32, #tpu.memory_space<vmem>>, vector<64x256xf32>
    tpu.vector_store %arg15[%c0_174, %c1536], %105 {strides = array<i32>} : memref<128x2304xf32, #tpu.memory_space<vmem>>, vector<64x256xf32>,
    %c0_175 = arith.constant 0 : index
    %c2_176 = arith.constant 2 : index
    %c1_177 = arith.constant 1 : index
    %c0_178 = arith.constant 0 : index
    %107 = vector.load %arg13[%c0_175, %c2_176, %c1_177, %c0_178] : memref<2x10x10x256xf32, #tpu.memory_space<vmem>>, vector<1x8x8x256xf32>
    %108 = vector.shape_cast %107 : vector<1x8x8x256xf32> to vector<64x256xf32>
    %c0_179 = arith.constant 0 : index
    %c1792 = arith.constant 1792 : index
    %109 = vector.load %arg15[%c0_179, %c1792] : memref<128x2304xf32, #tpu.memory_space<vmem>>, vector<64x256xf32>
    tpu.vector_store %arg15[%c0_179, %c1792], %108 {strides = array<i32>} : memref<128x2304xf32, #tpu.memory_space<vmem>>, vector<64x256xf32>,
    %c0_180 = arith.constant 0 : index
    %c2_181 = arith.constant 2 : index
    %c2_182 = arith.constant 2 : index
    %c0_183 = arith.constant 0 : index
    %110 = vector.load %arg13[%c0_180, %c2_181, %c2_182, %c0_183] : memref<2x10x10x256xf32, #tpu.memory_space<vmem>>, vector<1x8x8x256xf32>
    %111 = vector.shape_cast %110 : vector<1x8x8x256xf32> to vector<64x256xf32>
    %c0_184 = arith.constant 0 : index
    %c2048 = arith.constant 2048 : index
    %112 = vector.load %arg15[%c0_184, %c2048] : memref<128x2304xf32, #tpu.memory_space<vmem>>, vector<64x256xf32>
    tpu.vector_store %arg15[%c0_184, %c2048], %111 {strides = array<i32>} : memref<128x2304xf32, #tpu.memory_space<vmem>>, vector<64x256xf32>,
    %c1_185 = arith.constant 1 : index
    %c0_186 = arith.constant 0 : index
    %c0_187 = arith.constant 0 : index
    %c0_188 = arith.constant 0 : index
    %113 = vector.load %arg13[%c1_185, %c0_186, %c0_187, %c0_188] : memref<2x10x10x256xf32, #tpu.memory_space<vmem>>, vector<1x8x8x256xf32>
    %114 = vector.shape_cast %113 : vector<1x8x8x256xf32> to vector<64x256xf32>
    %c64_189 = arith.constant 64 : index
    %c0_190 = arith.constant 0 : index
    %115 = vector.load %arg15[%c64_189, %c0_190] : memref<128x2304xf32, #tpu.memory_space<vmem>>, vector<64x256xf32>
    tpu.vector_store %arg15[%c64_189, %c0_190], %114 {strides = array<i32>} : memref<128x2304xf32, #tpu.memory_space<vmem>>, vector<64x256xf32>,
    %c1_191 = arith.constant 1 : index
    %c0_192 = arith.constant 0 : index
    %c1_193 = arith.constant 1 : index
    %c0_194 = arith.constant 0 : index
    %116 = vector.load %arg13[%c1_191, %c0_192, %c1_193, %c0_194] : memref<2x10x10x256xf32, #tpu.memory_space<vmem>>, vector<1x8x8x256xf32>
    %117 = vector.shape_cast %116 : vector<1x8x8x256xf32> to vector<64x256xf32>
    %c64_195 = arith.constant 64 : index
    %c256_196 = arith.constant 256 : index
    %118 = vector.load %arg15[%c64_195, %c256_196] : memref<128x2304xf32, #tpu.memory_space<vmem>>, vector<64x256xf32>
    tpu.vector_store %arg15[%c64_195, %c256_196], %117 {strides = array<i32>} : memref<128x2304xf32, #tpu.memory_space<vmem>>, vector<64x256xf32>,
    %c1_197 = arith.constant 1 : index
    %c0_198 = arith.constant 0 : index
    %c2_199 = arith.constant 2 : index
    %c0_200 = arith.constant 0 : index
    %119 = vector.load %arg13[%c1_197, %c0_198, %c2_199, %c0_200] : memref<2x10x10x256xf32, #tpu.memory_space<vmem>>, vector<1x8x8x256xf32>
    %120 = vector.shape_cast %119 : vector<1x8x8x256xf32> to vector<64x256xf32>
    %c64_201 = arith.constant 64 : index
    %c512_202 = arith.constant 512 : index
    %121 = vector.load %arg15[%c64_201, %c512_202] : memref<128x2304xf32, #tpu.memory_space<vmem>>, vector<64x256xf32>
    tpu.vector_store %arg15[%c64_201, %c512_202], %120 {strides = array<i32>} : memref<128x2304xf32, #tpu.memory_space<vmem>>, vector<64x256xf32>,
    %c1_203 = arith.constant 1 : index
    %c1_204 = arith.constant 1 : index
    %c0_205 = arith.constant 0 : index
    %c0_206 = arith.constant 0 : index
    %122 = vector.load %arg13[%c1_203, %c1_204, %c0_205, %c0_206] : memref<2x10x10x256xf32, #tpu.memory_space<vmem>>, vector<1x8x8x256xf32>
    %123 = vector.shape_cast %122 : vector<1x8x8x256xf32> to vector<64x256xf32>
    %c64_207 = arith.constant 64 : index
    %c768_208 = arith.constant 768 : index
    %124 = vector.load %arg15[%c64_207, %c768_208] : memref<128x2304xf32, #tpu.memory_space<vmem>>, vector<64x256xf32>
    tpu.vector_store %arg15[%c64_207, %c768_208], %123 {strides = array<i32>} : memref<128x2304xf32, #tpu.memory_space<vmem>>, vector<64x256xf32>,
    %c1_209 = arith.constant 1 : index
    %c1_210 = arith.constant 1 : index
    %c1_211 = arith.constant 1 : index
    %c0_212 = arith.constant 0 : index
    %125 = vector.load %arg13[%c1_209, %c1_210, %c1_211, %c0_212] : memref<2x10x10x256xf32, #tpu.memory_space<vmem>>, vector<1x8x8x256xf32>
    %126 = vector.shape_cast %125 : vector<1x8x8x256xf32> to vector<64x256xf32>
    %c64_213 = arith.constant 64 : index
    %c1024_214 = arith.constant 1024 : index
    %127 = vector.load %arg15[%c64_213, %c1024_214] : memref<128x2304xf32, #tpu.memory_space<vmem>>, vector<64x256xf32>
    tpu.vector_store %arg15[%c64_213, %c1024_214], %126 {strides = array<i32>} : memref<128x2304xf32, #tpu.memory_space<vmem>>, vector<64x256xf32>,
    %c1_215 = arith.constant 1 : index
    %c1_216 = arith.constant 1 : index
    %c2_217 = arith.constant 2 : index
    %c0_218 = arith.constant 0 : index
    %128 = vector.load %arg13[%c1_215, %c1_216, %c2_217, %c0_218] : memref<2x10x10x256xf32, #tpu.memory_space<vmem>>, vector<1x8x8x256xf32>
    %129 = vector.shape_cast %128 : vector<1x8x8x256xf32> to vector<64x256xf32>
    %c64_219 = arith.constant 64 : index
    %c1280_220 = arith.constant 1280 : index
    %130 = vector.load %arg15[%c64_219, %c1280_220] : memref<128x2304xf32, #tpu.memory_space<vmem>>, vector<64x256xf32>
    tpu.vector_store %arg15[%c64_219, %c1280_220], %129 {strides = array<i32>} : memref<128x2304xf32, #tpu.memory_space<vmem>>, vector<64x256xf32>,
    %c1_221 = arith.constant 1 : index
    %c2_222 = arith.constant 2 : index
    %c0_223 = arith.constant 0 : index
    %c0_224 = arith.constant 0 : index
    %131 = vector.load %arg13[%c1_221, %c2_222, %c0_223, %c0_224] : memref<2x10x10x256xf32, #tpu.memory_space<vmem>>, vector<1x8x8x256xf32>
    %132 = vector.shape_cast %131 : vector<1x8x8x256xf32> to vector<64x256xf32>
    %c64_225 = arith.constant 64 : index
    %c1536_226 = arith.constant 1536 : index
    %133 = vector.load %arg15[%c64_225, %c1536_226] : memref<128x2304xf32, #tpu.memory_space<vmem>>, vector<64x256xf32>
    tpu.vector_store %arg15[%c64_225, %c1536_226], %132 {strides = array<i32>} : memref<128x2304xf32, #tpu.memory_space<vmem>>, vector<64x256xf32>,
    %c1_227 = arith.constant 1 : index
    %c2_228 = arith.constant 2 : index
    %c1_229 = arith.constant 1 : index
    %c0_230 = arith.constant 0 : index
    %134 = vector.load %arg13[%c1_227, %c2_228, %c1_229, %c0_230] : memref<2x10x10x256xf32, #tpu.memory_space<vmem>>, vector<1x8x8x256xf32>
    %135 = vector.shape_cast %134 : vector<1x8x8x256xf32> to vector<64x256xf32>
    %c64_231 = arith.constant 64 : index
    %c1792_232 = arith.constant 1792 : index
    %136 = vector.load %arg15[%c64_231, %c1792_232] : memref<128x2304xf32, #tpu.memory_space<vmem>>, vector<64x256xf32>
    tpu.vector_store %arg15[%c64_231, %c1792_232], %135 {strides = array<i32>} : memref<128x2304xf32, #tpu.memory_space<vmem>>, vector<64x256xf32>,
    %c1_233 = arith.constant 1 : index
    %c2_234 = arith.constant 2 : index
    %c2_235 = arith.constant 2 : index
    %c0_236 = arith.constant 0 : index
    %137 = vector.load %arg13[%c1_233, %c2_234, %c2_235, %c0_236] : memref<2x10x10x256xf32, #tpu.memory_space<vmem>>, vector<1x8x8x256xf32>
    %138 = vector.shape_cast %137 : vector<1x8x8x256xf32> to vector<64x256xf32>
    %c64_237 = arith.constant 64 : index
    %c2048_238 = arith.constant 2048 : index
    %139 = vector.load %arg15[%c64_237, %c2048_238] : memref<128x2304xf32, #tpu.memory_space<vmem>>, vector<64x256xf32>
    tpu.vector_store %arg15[%c64_237, %c2048_238], %138 {strides = array<i32>} : memref<128x2304xf32, #tpu.memory_space<vmem>>, vector<64x256xf32>,
    %c0_239 = arith.constant 0 : index
    %c0_240 = arith.constant 0 : index
    %140 = vector.load %arg15[%c0_239, %c0_240] : memref<128x2304xf32, #tpu.memory_space<vmem>>, vector<128x2304xf32>
    %c0_241 = arith.constant 0 : index
    %c0_242 = arith.constant 0 : index
    %141 = vector.load %arg6[%c0_241, %c0_242] : memref<2304x64xf32, #tpu.memory_space<vmem>>, vector<2304x64xf32>
    %cst_243 = arith.constant dense<0.000000e+00> : vector<128x64xf32>
    %142 = tpu.matmul %140, %141, %cst_243 {dimension_numbers = #tpu.dot_dimension_numbers<[1], [0], [0], [1], [0, 0, 1, 1], [], []>} : vector<128x2304xf32>, vector<2304x64xf32>, vector<128x64xf32> -> vector<128x64xf32>
    %c0_244 = arith.constant 0 : index
    %c0_245 = arith.constant 0 : index
    %143 = vector.load %arg7[%c0_244, %c0_245] : memref<1x64xf32, #tpu.memory_space<vmem>>, vector<1x64xf32>
    %144 = vector.broadcast %143 : vector<1x64xf32> to vector<128x64xf32>
    %145 = arith.addf %142, %144 : vector<128x64xf32>
    %cst_246 = arith.constant 0.000000e+00 : f32
    %146 = vector.broadcast %cst_246 : f32 to vector<128x64xf32>
    %147 = arith.maximumf %145, %146 : vector<128x64xf32>
    %148 = vector.shape_cast %147 : vector<128x64xf32> to vector<2x64x64xf32>
    %c0_247 = arith.constant 0 : index
    %c0_248 = arith.constant 0 : index
    %149 = vector.load %arg8[%c0_247, %c0_248] : memref<1x64xf32, #tpu.memory_space<vmem>>, vector<1x64xf32>
    %150 = vector.shape_cast %149 : vector<1x64xf32> to vector<1x1x64xf32>
    %151 = vector.broadcast %150 : vector<1x1x64xf32> to vector<2x64x64xf32>
    %152 = arith.mulf %148, %151 : vector<2x64x64xf32>
    %cst_249 = arith.constant dense<0.000000e+00> : vector<2x64xf32>
    %153 = vector.multi_reduction <add>, %152, %cst_249 [2] : vector<2x64x64xf32> to vector<2x64xf32>
    %c0_250 = arith.constant 0 : index
    %c0_251 = arith.constant 0 : index
    %154 = memref.load %arg9[%c0_250, %c0_251] : memref<1x1xf32, #tpu.memory_space<smem>>
    %155 = vector.broadcast %154 : f32 to vector<2x64xf32>
    %156 = arith.addf %153, %155 : vector<2x64xf32>
    %cst_252 = arith.constant 0.000000e+00 : f32
    %157 = vector.broadcast %cst_252 : f32 to vector<2x64xf32>
    %158 = arith.maximumf %156, %157 : vector<2x64xf32>
    %159 = math.absf %156 : vector<2x64xf32>
    %cst_253 = arith.constant 0.000000e+00 : f32
    %160 = vector.broadcast %cst_253 : f32 to vector<2x64xf32>
    %161 = arith.subf %160, %159 : vector<2x64xf32>
    %162 = math.exp %161 : vector<2x64xf32>
    %cst_254 = arith.constant 1.000000e+00 : f32
    %163 = vector.broadcast %cst_254 : f32 to vector<2x64xf32>
    %164 = arith.addf %163, %162 : vector<2x64xf32>
    %165 = math.log %164 : vector<2x64xf32>
    %166 = arith.addf %158, %165 : vector<2x64xf32>
    %c0_255 = arith.constant 0 : index
    %c0_256 = arith.constant 0 : index
    %167 = vector.load %arg10[%c0_255, %c0_256] : memref<64x1024xf32, #tpu.memory_space<vmem>>, vector<64x1024xf32>
    %cst_257 = arith.constant dense<0.000000e+00> : vector<2x1024xf32>
    %168 = tpu.matmul %166, %167, %cst_257 {dimension_numbers = #tpu.dot_dimension_numbers<[1], [0], [0], [1], [0, 0, 1, 1], [], []>} : vector<2x64xf32>, vector<64x1024xf32>, vector<2x1024xf32> -> vector<2x1024xf32>
    %cst_258 = arith.constant 1.000000e-01 : f32
    %169 = vector.broadcast %cst_258 : f32 to vector<2x1024xf32>
    %170 = arith.maximumf %168, %169 : vector<2x1024xf32>
    %c0_259 = arith.constant 0 : index
    %c0_260 = arith.constant 0 : index
    %171 = vector.load %arg11[%c0_259, %c0_260] : memref<2x1024xf32, #tpu.memory_space<vmem>>, vector<2x1024xf32>
    tpu.vector_store %arg11[%c0_259, %c0_260], %170 {strides = array<i32>} : memref<2x1024xf32, #tpu.memory_space<vmem>>, vector<2x1024xf32>,
    return
  }
  func.func @transform_0(%arg0: i32) -> (i32, i32, i32, i32) {
    %c0_i32 = arith.constant 0 : i32
    %c0_i32_0 = arith.constant 0 : i32
    %c0_i32_1 = arith.constant 0 : i32
    %c0_i32_2 = arith.constant 0 : i32
    %c0_i32_3 = arith.constant 0 : i32
    return %c0_i32, %c0_i32_0, %c0_i32_1, %c0_i32_2 : i32, i32, i32, i32
  }
  func.func @transform_1(%arg0: i32) -> (i32, i32) {
    %c0_i32 = arith.constant 0 : i32
    %c0_i32_0 = arith.constant 0 : i32
    %c0_i32_1 = arith.constant 0 : i32
    return %c0_i32, %c0_i32_0 : i32, i32
  }
  func.func @transform_2(%arg0: i32) -> (i32, i32) {
    %c0_i32 = arith.constant 0 : i32
    %c0_i32_0 = arith.constant 0 : i32
    %c0_i32_1 = arith.constant 0 : i32
    return %c0_i32, %c0_i32_0 : i32, i32
  }
  func.func @transform_3(%arg0: i32) -> (i32, i32) {
    %c0_i32 = arith.constant 0 : i32
    %c0_i32_0 = arith.constant 0 : i32
    %c0_i32_1 = arith.constant 0 : i32
    return %c0_i32, %c0_i32_0 : i32, i32
  }
  func.func @transform_4(%arg0: i32) -> (i32, i32) {
    %c0_i32 = arith.constant 0 : i32
    %c0_i32_0 = arith.constant 0 : i32
    %c0_i32_1 = arith.constant 0 : i32
    return %c0_i32, %c0_i32_0 : i32, i32
  }
  func.func @transform_5(%arg0: i32) -> (i32, i32) {
    %c0_i32 = arith.constant 0 : i32
    %c0_i32_0 = arith.constant 0 : i32
    %c0_i32_1 = arith.constant 0 : i32
    return %c0_i32, %c0_i32_0 : i32, i32
  }
  func.func @transform_6(%arg0: i32) -> (i32, i32) {
    %c0_i32 = arith.constant 0 : i32
    %c0_i32_0 = arith.constant 0 : i32
    %c0_i32_1 = arith.constant 0 : i32
    return %c0_i32, %c0_i32_0 : i32, i32
  }
  func.func @transform_7(%arg0: i32) -> (i32, i32) {
    %c0_i32 = arith.constant 0 : i32
    %c0_i32_0 = arith.constant 0 : i32
    %c0_i32_1 = arith.constant 0 : i32
    return %c0_i32, %c0_i32_0 : i32, i32
  }
  func.func @transform_8(%arg0: i32) -> (i32, i32) {
    %c0_i32 = arith.constant 0 : i32
    %c0_i32_0 = arith.constant 0 : i32
    %c0_i32_1 = arith.constant 0 : i32
    return %c0_i32, %c0_i32_0 : i32, i32
  }
  func.func @transform_9(%arg0: i32) -> (i32, i32) {
    %c0_i32 = arith.constant 0 : i32
    %c0_i32_0 = arith.constant 0 : i32
    %c0_i32_1 = arith.constant 0 : i32
    return %c0_i32, %c0_i32_0 : i32, i32
  }
  func.func @transform_10(%arg0: i32) -> (i32, i32) {
    %c0_i32 = arith.constant 0 : i32
    %c0_i32_0 = arith.constant 0 : i32
    %c0_i32_1 = arith.constant 0 : i32
    return %c0_i32, %c0_i32_0 : i32, i32
  }
}

</mosaic_0001>

<bundles_post_ra>
// kernel: tpu_custom_call.1
= control target key start
LH: loop header
LB: loop body
LE: loop exit
PB: predicated region body
PF: predicated region fallthrough
CT: control target
= control target key end

     0   :  { %vm99_vm0 = vcmask 261120   ;;  %vm101_vm1 = vcmask 254976   ;;  %v7536_v1 = vmov 0.0   ;;  %s7537_s29 = smov 32   ;;  %s7538_s30 = smov 64   ;;  %s11707_s0 = inlined_call_operand.vmem [shape: f32[2,8,8,32], index: 0, kind: input, shape index: {}]   ;;  %s11708_s1 = inlined_call_operand.vmem [shape: f32[1,32], index: 1, kind: input, shape index: {}]   ;;  %s11709_s2 = inlined_call_operand.vmem [shape: f32[1,32], index: 2, kind: input, shape index: {}]   ;;  %s11710_s3 = inlined_call_operand.vmem [shape: f32[288,256], index: 3, kind: input, shape index: {}]   ;;  %s11711_s4 = inlined_call_operand.vmem [shape: f32[1,256], index: 4, kind: input, shape index: {}]   ;;  %s11712_s5 = inlined_call_operand.vmem [shape: f32[2304,64], index: 5, kind: input, shape index: {}]   ;;  %s11713_s6 = inlined_call_operand.vmem [shape: f32[1,64], index: 6, kind: input, shape index: {}]   ;;  %s11714_s7 = inlined_call_operand.vmem [shape: f32[1,64], index: 7, kind: input, shape index: {}]   ;;  %s11715_s8 = inlined_call_operand.<no memory space> [shape: f32[1,1], index: 8, kind: input, shape index: {}]   ;;  %s11716_s9 = inlined_call_operand.vmem [shape: f32[64,1024], index: 9, kind: input, shape index: {}]   ;;  %s11717_s10 = inlined_call_operand.hbm [shape: f32[2,1024], index: 10, kind: output, shape index: {}]  }
   0x1   :  { %v7600_v0 = vld [vmem:[%s11707_s0] sm:$0xff]  ;;  %100 = vst.msk [vmem:[#allocation2] sm:$0xff] %vm99_vm0, %v7536_v1  ;;  %103 = vst.msk [vmem:[#allocation2 + $0x10] sm:$0xff] %vm99_vm0, %v7536_v1  ;;  %v38_v4 = vld [vmem:[%s11707_s0 + $0x8] sm:$0xff]  ;;  %4185 = vmatprep.mubr.f32.mxu1 %v7536_v1  ;;  %s7539_s13 = smov 96  }
   0x2   :  { %102 = vst.msk [vmem:[#allocation2 + $0x8] sm:$0x3] %vm101_vm1, %v7536_v1  ;;  %104 = vst.msk [vmem:[#allocation2 + $0x18] sm:$0x3] %vm101_vm1, %v7536_v1  ;;  %v7765_v2 = vld [vmem:[%s11708_s1] ss:$0 sm:$0xff] }
   0x3   :  { %105 = vst.msk [vmem:[#allocation2 + $0x20] sm:$0xff] %vm99_vm0, %v7536_v1  ;;  %107 = vst.msk [vmem:[#allocation2 + $0x30] sm:$0xff] %vm99_vm0, %v7536_v1  ;;  %v7770_v3 = vld [vmem:[%s11709_s2] ss:$0 sm:$0xff]  ;;  %v60_v5 = vmul.f32 %v7765_v2, %v7600_v0  ;;  %v61_v6 = vmul.f32 %v7765_v2, %v38_v4  ;;  %v39_v7 = vld [vmem:[%s11707_s0 + $0x10] sm:$0xff] }
   0x4   :  { %106 = vst.msk [vmem:[#allocation2 + $0x28] sm:$0x3] %vm101_vm1, %v7536_v1  ;;  %108 = vst.msk [vmem:[#allocation2 + $0x38] sm:$0x3] %vm101_vm1, %v7536_v1  ;;  %v40_v8 = vld [vmem:[%s11707_s0 + $0x18] sm:$0xff]  ;;  %v41_v9 = vld [vmem:[%s11707_s0 + $0x20] sm:$0xff]  ;;  %v62_v10 = vmul.f32 %v7765_v2, %v39_v7 }
   0x5   :  { %109 = vst.msk [vmem:[#allocation2 + $0x40] sm:$0xff] %vm99_vm0, %v7536_v1  ;;  %111 = vst.msk [vmem:[#allocation2 + $0x50] sm:$0xff] %vm99_vm0, %v7536_v1  ;;  %v63_v11 = vmul.f32 %v7765_v2, %v40_v8  ;;  %v64_v12 = vmul.f32 %v7765_v2, %v41_v9  ;;  %v42_v13 = vld [vmem:[%s11707_s0 + $0x28] sm:$0xff]  ;;  %v43_v14 = vld [vmem:[%s11707_s0 + $0x30] sm:$0xff]  ;;  %v83_v16 = vadd.f32 %v7770_v3, %v60_v5 }
   0x6   :  { %110 = vst.msk [vmem:[#allocation2 + $0x48] sm:$0x3] %vm101_vm1, %v7536_v1  ;;  %112 = vst.msk [vmem:[#allocation2 + $0x58] sm:$0x3] %vm101_vm1, %v7536_v1  ;;  %v966_v15 = vld [vmem:[%s11710_s3 + $0x8] sm:$0xff]  ;;  %v84_v17 = vadd.f32 %v7770_v3, %v61_v6  ;;  %v65_v18 = vmul.f32 %v7765_v2, %v42_v13  ;;  %v66_v19 = vmul.f32 %v7765_v2, %v43_v14  ;;  %v968_v20 = vld [vmem:[%s11710_s3 + $0x18] sm:$0xff] }
   0x7   :  { %113 = vst.msk [vmem:[#allocation2 + $0x60] sm:$0xff] %vm99_vm0, %v7536_v1  ;;  %115 = vst.msk [vmem:[#allocation2 + $0x70] sm:$0xff] %vm99_vm0, %v7536_v1  ;;  %v965_v21 = vld [vmem:[%s11710_s3] sm:$0xff]  ;;  %v967_v22 = vld [vmem:[%s11710_s3 + $0x10] sm:$0xff]  ;;  %v85_v23 = vadd.f32 %v7770_v3, %v62_v10  ;;  %v86_v24 = vadd.f32 %v7770_v3, %v63_v11  ;;  %v87_v25 = vadd.f32 %v7770_v3, %v64_v12 }
   0x8   :  { %114 = vst.msk [vmem:[#allocation2 + $0x68] sm:$0x3] %vm101_vm1, %v7536_v1  ;;  %116 = vst.msk [vmem:[#allocation2 + $0x78] sm:$0x3] %vm101_vm1, %v7536_v1  ;;  %v6950_v26 = vpack.c.bf16 %v968_v20, %v966_v15  ;;  %v970_v27 = vld [vmem:[%s11710_s3 + $0x28] sm:$0xff]  ;;  %v972_v28 = vld [vmem:[%s11710_s3 + $0x38] sm:$0xff]  ;;  %v88_v30 = vadd.f32 %v7770_v3, %v65_v18  ;;  %v89_v31 = vadd.f32 %v7770_v3, %v66_v19 }
   0x9   :  { %117 = vst.msk [vmem:[#allocation2 + $0x80] sm:$0xff] %vm99_vm0, %v7536_v1  ;;  %119 = vst.msk [vmem:[#allocation2 + $0x90] sm:$0xff] %vm99_vm0, %v7536_v1  ;;  %v969_v29 = vld [vmem:[%s11710_s3 + $0x20] sm:$0xff]  ;;  %v6952_v32 = vpack.c.bf16 %v967_v22, %v965_v21  ;;  %v6954_v33 = vpack.c.bf16 %v972_v28, %v970_v27  ;;  %v971_v34 = vld [vmem:[%s11710_s3 + $0x30] sm:$0xff] }
   0xa   :  { %118 = vst.msk [vmem:[#allocation2 + $0x88] sm:$0x3] %vm101_vm1, %v7536_v1  ;;  %120 = vst.msk [vmem:[#allocation2 + $0x98] sm:$0x3] %vm101_vm1, %v7536_v1  ;;  %v974_v35 = vld [vmem:[%s11710_s3 + $0x48] sm:$0xff]  ;;  %v976_v36 = vld [vmem:[%s11710_s3 + $0x58] sm:$0xff]  ;;  %6951 = vmatprep.subr.bf16.mxu0 %v6950_v26  ;;  %v6956_v40 = vpack.c.bf16 %v971_v34, %v969_v29 }
   0xb   :  { %121 = vst.msk [vmem:[#allocation2 + $0xa0] sm:$0xff] %vm99_vm0, %v7536_v1  ;;  %123 = vst.msk [vmem:[#allocation2 + $0xb0] sm:$0xff] %vm99_vm0, %v7536_v1  ;;  %v44_v37 = vld [vmem:[%s11707_s0 + $0x38] sm:$0xff]  ;;  %v255_v38 = vld [vmem:[#allocation2 + $0x1] sm:$0xff]  ;;  %6953 = vmatpush1.bf16.msra.mxu0 %v6952_v32  ;;  %v6958_v42 = vpack.c.bf16 %v976_v36, %v974_v35 }
   0xc   :  { %122 = vst.msk [vmem:[#allocation2 + $0xa8] sm:$0x3] %vm101_vm1, %v7536_v1  ;;  %124 = vst.msk [vmem:[#allocation2 + $0xb8] sm:$0x3] %vm101_vm1, %v7536_v1  ;;  %v304_v39 = vld [vmem:[#allocation2 + $0x2] sm:$0xff]  ;;  %v67_v41 = vmul.f32 %v7765_v2, %v44_v37  ;;  %271 = vrot.lane.b32.xlu0 %v255_v38, %s7537_s29  ;;  %v975_v44 = vld [vmem:[%s11710_s3 + $0x50] sm:$0xff]  ;;  %6955 = vmatprep.subr.bf16.mxu0 %v6954_v33 }
   0xd   :  { %125 = vst.msk [vmem:[#allocation2 + $0xc0] sm:$0xff] %vm99_vm0, %v7536_v1  ;;  %127 = vst.msk [vmem:[#allocation2 + $0xd0] sm:$0xff] %vm99_vm0, %v7536_v1  ;;  %320 = vrot.lane.b32.xlu1 %v304_v39, %s7538_s30  ;;  %v973_v43 = vld [vmem:[%s11710_s3 + $0x40] sm:$0xff]  ;;  %v978_v46 = vld [vmem:[%s11710_s3 + $0x68] sm:$0xff] }
   0xe   :  { %126 = vst.msk [vmem:[#allocation2 + $0xc8] sm:$0x3] %vm101_vm1, %v7536_v1  ;;  %128 = vst.msk [vmem:[#allocation2 + $0xd8] sm:$0x3] %vm101_vm1, %v7536_v1  ;;  %v90_v45 = vadd.f32 %v7770_v3, %v67_v41  ;;  %v980_v47 = vld [vmem:[%s11710_s3 + $0x78] sm:$0xff]  ;;  %v6960_v48 = vpack.c.bf16 %v975_v44, %v973_v43  ;;  %v977_v49 = vld [vmem:[%s11710_s3 + $0x60] sm:$0xff] }
   0xf   :  { %129 = vst.msk [vmem:[#allocation2 + $0xe0] sm:$0xff] %vm99_vm0, %v7536_v1  ;;  %131 = vst.msk [vmem:[#allocation2 + $0xf0] sm:$0xff] %vm99_vm0, %v7536_v1  ;;  %6957 = vmatpush1.bf16.msra.mxu0 %v6956_v40  ;;  %v979_v50 = vld [vmem:[%s11710_s3 + $0x70] sm:$0xff]  ;;  %v982_v51 = vld [vmem:[%s11710_s3 + $0x88] sm:$0xff]  ;;  %v6962_v55 = vpack.c.bf16 %v980_v47, %v978_v46 }
  0x10   :  { %130 = vst.msk [vmem:[#allocation2 + $0xe8] sm:$0x3] %vm101_vm1, %v7536_v1  ;;  %132 = vst.msk [vmem:[#allocation2 + $0xf8] sm:$0x3] %vm101_vm1, %v7536_v1  ;;  %6959 = vmatprep.subr.bf16.mxu0 %v6958_v42  ;;  %v984_v58 = vld [vmem:[%s11710_s3 + $0x98] sm:$0xff]  ;;  %v981_v61 = vld [vmem:[%s11710_s3 + $0x80] sm:$0xff]  ;;  %v6964_v0 = vpack.c.bf16 %v979_v50, %v977_v49 }
  0x11   :  { %133 = vst.msk [vmem:[#allocation2 + $0x100] sm:$0xff] %vm99_vm0, %v7536_v1  ;;  %135 = vst.msk [vmem:[#allocation2 + $0x110] sm:$0xff] %vm99_vm0, %v7536_v1  ;;  %v6966_v6 = vpack.c.bf16 %v984_v58, %v982_v51  ;;  %v986_v7 = vld [vmem:[%s11710_s3 + $0xa8] sm:$0xff]  ;;  %v988_v10 = vld [vmem:[%s11710_s3 + $0xb8] sm:$0xff] }
  0x12   :  { %134 = vst.msk [vmem:[#allocation2 + $0x108] sm:$0x3] %vm101_vm1, %v7536_v1  ;;  %136 = vst.msk [vmem:[#allocation2 + $0x118] sm:$0x3] %vm101_vm1, %v7536_v1  ;;  %v987_v18 = vld [vmem:[%s11710_s3 + $0xb0] sm:$0xff]  ;;  %v990_v19 = vld [vmem:[%s11710_s3 + $0xc8] sm:$0xff] }
  0x13   :  { %137 = vst.msk [vmem:[#allocation2 + $0x120] sm:$0xff] %vm99_vm0, %v7536_v1  ;;  %139 = vst.msk [vmem:[#allocation2 + $0x130] sm:$0xff] %vm99_vm0, %v7536_v1  ;;  %6961 = vmatpush1.bf16.msra.mxu0 %v6960_v48  ;;  %v992_v20 = vld [vmem:[%s11710_s3 + $0xd8] sm:$0xff]  ;;  %v45_v21 = vld [vmem:[%s11707_s0 + $0x40] sm:$0xff] }
  0x14   :  { %138 = vst.msk [vmem:[#allocation2 + $0x128] sm:$0x3] %vm101_vm1, %v7536_v1  ;;  %140 = vst.msk [vmem:[#allocation2 + $0x138] sm:$0x3] %vm101_vm1, %v7536_v1  ;;  %6963 = vmatprep.subr.bf16.mxu0 %v6962_v55  ;;  %v991_v26 = vld [vmem:[%s11710_s3 + $0xd0] sm:$0xff]  ;;  %v46_v27 = vld [vmem:[%s11707_s0 + $0x48] sm:$0xff] }
  0x15   :  { %141 = vst [vmem:[#allocation3] sm:$0xff] %v7536_v1  ;;  %142 = vst [vmem:[#allocation3 + $0x8] sm:$0xff] %v7536_v1  ;;  %v994_v28 = vld [vmem:[%s11710_s3 + $0xe8] sm:$0xff]  ;;  %v996_v29 = vld [vmem:[%s11710_s3 + $0xf8] sm:$0xff] }
  0x16   :  { %143 = vst [vmem:[#allocation3 + $0x10] sm:$0x3] %v7536_v1  ;;  %144 = vst [vmem:[#allocation3 + $0x18] sm:$0x3] %v7536_v1  ;;  %v6978_v34 = vpack.c.bf16 %v996_v29, %v994_v28  ;;  %v993_v35 = vld [vmem:[%s11710_s3 + $0xe0] sm:$0xff]  ;;  %v995_v36 = vld [vmem:[%s11710_s3 + $0xf0] sm:$0xff] }
  0x17   :  { %145 = vst [vmem:[#allocation3 + $0x20] sm:$0xff] %v7536_v1  ;;  %146 = vst [vmem:[#allocation3 + $0x28] sm:$0xff] %v7536_v1  ;;  %6965 = vmatpush1.bf16.msra.mxu0 %v6964_v0  ;;  %v998_v37 = vld [vmem:[%s11710_s3 + $0x108] sm:$0xff]  ;;  %v1000_v38 = vld [vmem:[%s11710_s3 + $0x118] sm:$0xff]  ;;  %v6980_v43 = vpack.c.bf16 %v995_v36, %v993_v35 }
  0x18   :  { %147 = vst [vmem:[#allocation3 + $0x30] sm:$0x3] %v7536_v1  ;;  %148 = vst [vmem:[#allocation3 + $0x38] sm:$0x3] %v7536_v1  ;;  %6967 = vmatprep.subr.bf16.mxu0 %v6966_v6  ;;  %v47_v39 = vld [vmem:[%s11707_s0 + $0x50] sm:$0xff]  ;;  %v239_v40 = vld [vmem:[#allocation2] sm:$0xff]  ;;  %v6982_v44 = vpack.c.bf16 %v1000_v38, %v998_v37 }
  0x19   :  { %149 = vst [vmem:[#allocation3 + $0x40] sm:$0xff] %v7536_v1  ;;  %150 = vst [vmem:[#allocation3 + $0x48] sm:$0xff] %v7536_v1  ;;  %v70_v42 = vmul.f32 %v7765_v2, %v47_v39  ;;  %v999_v46 = vld [vmem:[%s11710_s3 + $0x110] sm:$0xff]  ;;  %v1002_v48 = vld [vmem:[%s11710_s3 + $0x128] sm:$0xff] }
  0x1a   :  { %151 = vst [vmem:[#allocation3 + $0x50] sm:$0x3] %v7536_v1  ;;  %152 = vst [vmem:[#allocation3 + $0x58] sm:$0x3] %v7536_v1  ;;  %v1004_v49 = vld [vmem:[%s11710_s3 + $0x138] sm:$0xff]  ;;  %v1003_v58 = vld [vmem:[%s11710_s3 + $0x130] sm:$0xff] }
  0x1b   :  { %153 = vst [vmem:[#allocation3 + $0x60] sm:$0xff] %v7536_v1  ;;  %154 = vst [vmem:[#allocation3 + $0x68] sm:$0xff] %v7536_v1  ;;  %v93_v47 = vadd.f32 %v7770_v3, %v70_v42  ;;  %v1006_v0 = vld [vmem:[%s11710_s3 + $0x148] sm:$0xff]  ;;  %v1005_v6 = vld [vmem:[%s11710_s3 + $0x140] sm:$0xff] }
  0x1c   :  { %155 = vst [vmem:[#allocation3 + $0x70] sm:$0x3] %v7536_v1  ;;  %156 = vst [vmem:[#allocation3 + $0x78] sm:$0x3] %v7536_v1 }
  0x1d   :  { %157 = vst [vmem:[#allocation3 + $0x80] sm:$0xff] %v7536_v1  ;;  %158 = vst [vmem:[#allocation3 + $0x88] sm:$0xff] %v7536_v1 }
  0x1e   :  { %159 = vst [vmem:[#allocation3 + $0x90] sm:$0x3] %v7536_v1  ;;  %160 = vst [vmem:[#allocation3 + $0x98] sm:$0x3] %v7536_v1 }
  0x1f   :  { %161 = vst [vmem:[#allocation3 + $0xa0] sm:$0xff] %v7536_v1  ;;  %162 = vst [vmem:[#allocation3 + $0xa8] sm:$0xff] %v7536_v1 }
  0x20   :  { %163 = vst [vmem:[#allocation3 + $0xb0] sm:$0x3] %v7536_v1  ;;  %164 = vst [vmem:[#allocation3 + $0xb8] sm:$0x3] %v7536_v1 }
  0x21   :  { %165 = vst [vmem:[#allocation3 + $0xc0] sm:$0xff] %v7536_v1  ;;  %166 = vst [vmem:[#allocation3 + $0xc8] sm:$0xff] %v7536_v1 }
  0x22   :  { %167 = vst [vmem:[#allocation3 + $0xd0] sm:$0x3] %v7536_v1  ;;  %168 = vst [vmem:[#allocation3 + $0xd8] sm:$0x3] %v7536_v1 }
  0x23   :  { %169 = vst [vmem:[#allocation3 + $0xe0] sm:$0xff] %v7536_v1  ;;  %170 = vst [vmem:[#allocation3 + $0xe8] sm:$0xff] %v7536_v1 }
  0x24   :  { %171 = vst [vmem:[#allocation3 + $0xf0] sm:$0x3] %v7536_v1  ;;  %172 = vst [vmem:[#allocation3 + $0xf8] sm:$0x3] %v7536_v1 }
  0x25   :  { %173 = vst [vmem:[#allocation3 + $0x100] sm:$0xff] %v7536_v1  ;;  %174 = vst [vmem:[#allocation3 + $0x108] sm:$0xff] %v7536_v1 }
  0x26   :  { %175 = vst [vmem:[#allocation3 + $0x110] sm:$0x3] %v7536_v1  ;;  %176 = vst [vmem:[#allocation3 + $0x118] sm:$0x3] %v7536_v1 }
  0x27   :  { %177 = vst [vmem:[#allocation3 + $0x120] sm:$0xff] %v7536_v1  ;;  %178 = vst [vmem:[#allocation3 + $0x128] sm:$0xff] %v7536_v1 }
  0x28   :  { %179 = vst [vmem:[#allocation3 + $0x130] sm:$0x3] %v7536_v1  ;;  %180 = vst [vmem:[#allocation3 + $0x138] sm:$0x3] %v7536_v1 }
  0x29   :  { %181 = vst [vmem:[#allocation3 + $0x140] sm:$0xff] %v7536_v1  ;;  %182 = vst [vmem:[#allocation3 + $0x148] sm:$0xff] %v7536_v1 }
  0x2a   :  { %183 = vst [vmem:[#allocation3 + $0x150] sm:$0x3] %v7536_v1  ;;  %184 = vst [vmem:[#allocation3 + $0x158] sm:$0x3] %v7536_v1 }
  0x2b   :  { %185 = vst [vmem:[#allocation3 + $0x160] sm:$0xff] %v7536_v1  ;;  %186 = vst [vmem:[#allocation3 + $0x168] sm:$0xff] %v7536_v1 }
  0x2c   :  { %187 = vst [vmem:[#allocation3 + $0x170] sm:$0x3] %v7536_v1  ;;  %188 = vst [vmem:[#allocation3 + $0x178] sm:$0x3] %v7536_v1 }
  0x2d   :  { %189 = vst [vmem:[#allocation3 + $0x180] sm:$0xff] %v7536_v1  ;;  %190 = vst [vmem:[#allocation3 + $0x188] sm:$0xff] %v7536_v1 }
  0x2e   :  { %191 = vst [vmem:[#allocation3 + $0x190] sm:$0x3] %v7536_v1  ;;  %192 = vst [vmem:[#allocation3 + $0x198] sm:$0x3] %v7536_v1 }
  0x2f   :  { %193 = vst [vmem:[#allocation3 + $0x1a0] sm:$0xff] %v7536_v1  ;;  %194 = vst [vmem:[#allocation3 + $0x1a8] sm:$0xff] %v7536_v1 }
  0x30   :  { %195 = vst [vmem:[#allocation3 + $0x1b0] sm:$0x3] %v7536_v1  ;;  %196 = vst [vmem:[#allocation3 + $0x1b8] sm:$0x3] %v7536_v1 }
  0x31   :  { %197 = vst [vmem:[#allocation3 + $0x1c0] sm:$0xff] %v7536_v1  ;;  %198 = vst [vmem:[#allocation3 + $0x1c8] sm:$0xff] %v7536_v1 }
  0x32   :  { %199 = vst [vmem:[#allocation3 + $0x1d0] sm:$0x3] %v7536_v1  ;;  %200 = vst [vmem:[#allocation3 + $0x1d8] sm:$0x3] %v7536_v1 }
  0x33   :  { %201 = vst [vmem:[#allocation3 + $0x1e0] sm:$0xff] %v7536_v1  ;;  %202 = vst [vmem:[#allocation3 + $0x1e8] sm:$0xff] %v7536_v1 }
  0x34   :  { %203 = vst [vmem:[#allocation3 + $0x1f0] sm:$0x3] %v7536_v1  ;;  %204 = vst [vmem:[#allocation3 + $0x1f8] sm:$0x3] %v7536_v1 }
  0x35   :  { %205 = vst [vmem:[#allocation3 + $0x200] sm:$0xff] %v7536_v1  ;;  %206 = vst [vmem:[#allocation3 + $0x208] sm:$0xff] %v7536_v1 }
  0x36   :  { %207 = vst [vmem:[#allocation3 + $0x210] sm:$0x3] %v7536_v1  ;;  %208 = vst [vmem:[#allocation3 + $0x218] sm:$0x3] %v7536_v1 }
  0x37   :  { %209 = vst [vmem:[#allocation3 + $0x220] sm:$0xff] %v7536_v1  ;;  %210 = vst [vmem:[#allocation3 + $0x228] sm:$0xff] %v7536_v1 }
  0x38   :  { %211 = vst [vmem:[#allocation3 + $0x230] sm:$0x3] %v7536_v1  ;;  %212 = vst [vmem:[#allocation3 + $0x238] sm:$0x3] %v7536_v1 }
  0x39   :  { %213 = vst [vmem:[#allocation3 + $0x240] sm:$0xff] %v7536_v1  ;;  %214 = vst [vmem:[#allocation3 + $0x248] sm:$0xff] %v7536_v1 }
  0x3a   :  { %215 = vst [vmem:[#allocation3 + $0x250] sm:$0x3] %v7536_v1  ;;  %216 = vst [vmem:[#allocation3 + $0x258] sm:$0x3] %v7536_v1 }
  0x3b   :  { %217 = vst [vmem:[#allocation3 + $0x260] sm:$0xff] %v7536_v1  ;;  %218 = vst [vmem:[#allocation3 + $0x268] sm:$0xff] %v7536_v1 }
  0x3c   :  { %219 = vst [vmem:[#allocation3 + $0x270] sm:$0x3] %v7536_v1  ;;  %220 = vst [vmem:[#allocation3 + $0x278] sm:$0x3] %v7536_v1  ;;  %v983_v1 = vld [vmem:[%s11710_s3 + $0x90] sm:$0xff] }
  0x3d   :  { %222 = vst.msk [vmem:[#allocation2 + $0x11] sm:$0xff] %vm99_vm0, %v83_v16  ;;  %223 = vst.msk [vmem:[#allocation2 + $0x21] sm:$0xff] %vm99_vm0, %v84_v17  ;;  %v6968_v15 = vpack.c.bf16 %v983_v1, %v981_v61  ;;  %v6970_v16 = vpack.c.bf16 %v988_v10, %v986_v7  ;;  %v985_v17 = vld [vmem:[%s11710_s3 + $0xa0] sm:$0xff]  ;;  %v1008_v1 = vld [vmem:[%s11710_s3 + $0x158] sm:$0xff] }
  0x3e   :  { %224 = vst.msk [vmem:[#allocation2 + $0x31] sm:$0xff] %vm99_vm0, %v85_v23  ;;  %225 = vst.msk [vmem:[#allocation2 + $0x41] sm:$0xff] %vm99_vm0, %v86_v24  ;;  %v6972_v22 = vpack.c.bf16 %v987_v18, %v985_v17  ;;  %v68_v23 = vmul.f32 %v7765_v2, %v45_v21  ;;  %v6974_v24 = vpack.c.bf16 %v992_v20, %v990_v19  ;;  %v1007_v7 = vld [vmem:[%s11710_s3 + $0x150] sm:$0xff]  ;;  %v50_v17 = vld [vmem:[%s11707_s0 + $0x68] sm:$0xff] }
  0x3f   :  { %226 = vst.msk [vmem:[#allocation2 + $0x51] sm:$0xff] %vm99_vm0, %v87_v25  ;;  %227 = vst.msk [vmem:[#allocation2 + $0x61] sm:$0xff] %vm99_vm0, %v88_v30  ;;  %6969 = vmatpush1.bf16.msra.mxu0 %v6968_v15  ;;  %v989_v25 = vld [vmem:[%s11710_s3 + $0xc0] sm:$0xff]  ;;  %v51_v18 = vld [vmem:[%s11707_s0 + $0x70] sm:$0xff] }
  0x40   :  { %228 = vst.msk [vmem:[#allocation2 + $0x71] sm:$0xff] %vm99_vm0, %v89_v31  ;;  %229 = vst.msk [vmem:[#allocation2 + $0x81] sm:$0xff] %vm99_vm0, %v90_v45  ;;  %6971 = vmatprep.subr.bf16.mxu0 %v6970_v16  ;;  %v91_v30 = vadd.f32 %v7770_v3, %v68_v23  ;;  %v69_v31 = vmul.f32 %v7765_v2, %v46_v27  ;;  %v6976_v32 = vpack.c.bf16 %v991_v26, %v989_v25  ;;  %v997_v45 = vld [vmem:[%s11710_s3 + $0x100] sm:$0xff] }
  0x41   :  { %247 = vst.msk [vmem:[#allocation4] sm:$0xff] %vm99_vm0, %v239_v40  ;;  %233 = vst.msk [vmem:[#allocation2 + $0xd1] sm:$0xff] %vm99_vm0, %v93_v47 }
  0x42   :  { %231 = vst.msk [vmem:[#allocation2 + $0xb1] sm:$0xff] %vm99_vm0, %v91_v30  ;;  %v92_v33 = vadd.f32 %v7770_v3, %v69_v31 }
  0x43   :  { %6973 = vmatpush1.bf16.msra.mxu0 %v6972_v22 }
  0x44   :  { %v7872_v52 = vld [vmem:[#allocation2 + $0x12] sm:$0xff]  ;;  %v7874_v53 = vld [vmem:[#allocation2 + $0x20] sm:$0xff]  ;;  %6975 = vmatprep.subr.bf16.mxu0 %v6974_v24  ;;  %232 = vst.msk [vmem:[#allocation2 + $0xc1] sm:$0xff] %vm99_vm0, %v92_v33 }
  0x45   :  { %v7876_v54 = vld [vmem:[#allocation2 + $0x21] sm:$0xff]  ;;  %434 = vrot.lane.b32.xlu0 %v7872_v52, %s7537_s29  ;;  %483 = vrot.lane.b32.xlu1 %v7874_v53, %s7538_s30  ;;  %v353_v56 = vld [vmem:[#allocation2 + $0x10] sm:$0xff]  ;;  %249 = vst.msk [vmem:[#allocation4 + $0x30] sm:$0xff] %vm99_vm0, %v7874_v53 }
  0x46   :  { %v256_v57 = vld [vmem:[#allocation2 + $0x11] sm:$0xff]  ;;  %411 = vst.msk [vmem:[#allocation4 + $0x20] sm:$0xff] %vm99_vm0, %v7876_v54  ;;  %248 = vst.msk [vmem:[#allocation4 + $0x18] sm:$0xff] %vm99_vm0, %v353_v56  ;;  %v7898_v62 = vld [vmem:[#allocation2 + $0x40] sm:$0xff] }
  0x47   :  { %v7889_v59 = vld [vmem:[#allocation2 + $0x30] sm:$0xff]  ;;  %410 = vst.msk [vmem:[#allocation4 + $0x8] sm:$0xff] %vm99_vm0, %v256_v57  ;;  %v7900_v63 = vld [vmem:[#allocation2 + $0x41] sm:$0xff]  ;;  %251 = vst.msk [vmem:[#allocation4 + $0x60] sm:$0xff] %vm99_vm0, %v7898_v62  ;;  %6977 = vmatpush1.bf16.msra.mxu0 %v6976_v32 }
  0x48   :  { %v7891_v60 = vld [vmem:[#allocation2 + $0x31] sm:$0xff]  ;;  %250 = vst.msk [vmem:[#allocation4 + $0x48] sm:$0xff] %vm99_vm0, %v7889_v59  ;;  %413 = vst.msk [vmem:[#allocation4 + $0x50] sm:$0xff] %vm99_vm0, %v7900_v63  ;;  %v7923_v8 = vld [vmem:[#allocation2 + $0x60] sm:$0xff]  ;;  %6979 = vmatprep.subr.bf16.mxu0 %v6978_v34 }
  0x49   :  { %412 = vst.msk [vmem:[#allocation4 + $0x38] sm:$0xff] %vm99_vm0, %v7891_v60  ;;  %v7909_v4 = vld [vmem:[#allocation2 + $0x50] sm:$0xff]  ;;  %531 = vrot.lane.b32.xlu0 %v7876_v54, %s7539_s13  ;;  %369 = vrot.lane.b32.xlu1 %v353_v56, %s7539_s13  ;;  %v7925_v9 = vld [vmem:[#allocation2 + $0x61] sm:$0xff]  ;;  %253 = vst.msk [vmem:[#allocation4 + $0x90] sm:$0xff] %vm99_vm0, %v7923_v8  ;;  %v6986_v56 = vpack.c.bf16 %v1004_v49, %v1002_v48 }
  0x4a   :  { %v7911_v5 = vld [vmem:[#allocation2 + $0x51] sm:$0xff]  ;;  %252 = vst.msk [vmem:[#allocation4 + $0x78] sm:$0xff] %vm99_vm0, %v7909_v4  ;;  %v7934_v11 = vld [vmem:[#allocation2 + $0x22] sm:$0xff]  ;;  %415 = vst.msk [vmem:[#allocation4 + $0x80] sm:$0xff] %vm99_vm0, %v7925_v9 }
  0x4b   :  { %414 = vst.msk [vmem:[#allocation4 + $0x68] sm:$0xff] %vm99_vm0, %v7911_v5  ;;  %v7936_v12 = vld [vmem:[#allocation2 + $0x70] sm:$0xff]  ;;  %v7944_v14 = vld [vmem:[#allocation2 + $0x81] sm:$0xff]  ;;  %6981 = vmatpush1.bf16.msra.mxu0 %v6980_v43 }
  0x4c   :  { %v7938_v13 = vld [vmem:[#allocation2 + $0x71] sm:$0xff]  ;;  %254 = vst.msk [vmem:[#allocation4 + $0xa8] sm:$0xff] %vm99_vm0, %v7936_v12  ;;  %417 = vst.msk [vmem:[#allocation4 + $0xb0] sm:$0xff] %vm99_vm0, %v7944_v14  ;;  %6983 = vmatprep.subr.bf16.mxu0 %v6982_v44  ;;  %v8050_v55 = vld [vmem:[#allocation2 + $0xc0] sm:$0xff] }
  0x4d   :  { %416 = vst.msk [vmem:[#allocation4 + $0x98] sm:$0xff] %vm99_vm0, %v7938_v13  ;;  %436 = vrot.lane.b32.xlu0 %v7934_v11, %s7537_s29  ;;  %273 = vrot.lane.b32.xlu1 %v256_v57, %s7537_s29  ;;  %v8014_v41 = vld [vmem:[#allocation2 + $0x32] sm:$0xff]  ;;  %v8052_v57 = vld [vmem:[#allocation2 + $0xc1] sm:$0xff]  ;;  %590 = vst.msk [vmem:[#allocation4 + $0xf0] sm:$0xff] %vm99_vm0, %v8050_v55 }
  0x4e   :  { %v8035_v50 = vld [vmem:[#allocation2 + $0xb0] sm:$0xff]  ;;  %749 = vst.msk [vmem:[#allocation4 + $0xe0] sm:$0xff] %vm99_vm0, %v8052_v57 }
  0x4f   :  { %v8037_v51 = vld [vmem:[#allocation2 + $0xb1] sm:$0xff]  ;;  %589 = vst.msk [vmem:[#allocation4 + $0xd8] sm:$0xff] %vm99_vm0, %v8035_v50 }
  0x50   :  { %748 = vst.msk [vmem:[#allocation4 + $0xc8] sm:$0xff] %vm99_vm0, %v8037_v51 }
  0x51   :  { %485 = vrot.lane.b32.xlu0 %v7889_v59, %s7538_s30  ;;  %322 = vrot.lane.b32.xlu1 %v7872_v52, %s7538_s30  ;;  %v6984_v52 = vpack.c.bf16 %v999_v46, %v997_v45 }
  0x53   :  { %6985 = vmatpush1.bf16.msra.mxu0 %v6984_v52 }
  0x55   :  { %533 = vrot.lane.b32.xlu0 %v7891_v60, %s7539_s13  ;;  %371 = vrot.lane.b32.xlu1 %v7874_v53, %s7539_s13  ;;  %v1001_v53 = vld [vmem:[%s11710_s3 + $0x120] sm:$0xff] }
  0x56   :  { %v6988_v15 = vpack.c.bf16 %v1003_v58, %v1001_v53 }
  0x59   :  { %438 = vrot.lane.b32.xlu0 %v8014_v41, %s7537_s29  ;;  %275 = vrot.lane.b32.xlu1 %v7876_v54, %s7537_s29  ;;  %v48_v54 = vld [vmem:[%s11707_s0 + $0x58] sm:$0xff] }
  0x5a   :  { %v71_v61 = vmul.f32 %v7765_v2, %v48_v54 }
  0x5c   :  { %v94_v10 = vadd.f32 %v7770_v3, %v71_v61 }
  0x5d   :  { %487 = vrot.lane.b32.xlu0 %v7898_v62, %s7538_s30  ;;  %324 = vrot.lane.b32.xlu1 %v7934_v11, %s7538_s30  ;;  %v49_v11 = vld [vmem:[%s11707_s0 + $0x60] sm:$0xff] }
  0x5e   :  { %v72_v16 = vmul.f32 %v7765_v2, %v49_v11 }
  0x5f   :  { %16 = vsyncpa [#allocation8], 0  ;;  %6987 = vmatprep.subr.bf16.mxu0 %v6986_v56  ;;  %v6990_v19 = vpack.c.bf16 %v1008_v1, %v1006_v0  ;;  %v1010_v20 = vld [vmem:[%s11710_s3 + $0x168] sm:$0xff]  ;;  %v1012_v21 = vld [vmem:[%s11710_s3 + $0x178] sm:$0xff]  ;;  %234 = vst.msk [vmem:[#allocation2 + $0xe1] sm:$0xff] %vm99_vm0, %v94_v10  ;;  %v73_v22 = vmul.f32 %v7765_v2, %v50_v17  ;;  %v74_v23 = vmul.f32 %v7765_v2, %v51_v18  ;;  %vm295_vm2 = vcmask 523520  }
  0x60   :  { %v52_v24 = vld [vmem:[%s11707_s0 + $0x78] sm:$0xff]  ;;  %v8105_v25 = vld [vmem:[#allocation2 + $0xd0] sm:$0xff]  ;;  %v95_v28 = vadd.f32 %v7770_v3, %v72_v16  ;;  %v8113_v30 = vld [vmem:[#allocation2 + $0x42] sm:$0xff]  ;;  %6989 = vmatpush1.bf16.msra.mxu0 %v6988_v15  ;;  %v6994_v33 = vpack.c.bf16 %v1012_v21, %v1010_v20  ;;  %vm344_vm3 = vcmask 785920   ;;  %vm393_vm4 = vcmask 1048320  }
  0x61   :  { %535 = vrot.lane.b32.xlu0 %v7900_v63, %s7539_s13  ;;  %373 = vrot.lane.b32.xlu1 %v7889_v59, %s7539_s13  ;;  %v8107_v26 = vld [vmem:[#allocation2 + $0xd1] sm:$0xff]  ;;  %v75_v29 = vmul.f32 %v7765_v2, %v52_v24  ;;  %v96_v31 = vadd.f32 %v7770_v3, %v73_v22  ;;  %v97_v32 = vadd.f32 %v7770_v3, %v74_v23  ;;  %v1009_v34 = vld [vmem:[%s11710_s3 + $0x160] sm:$0xff]  ;;  %v1018_v44 = vld [vmem:[%s11710_s3 + $0x1a8] sm:$0xff]  ;;  %vm1709_vm5 = vcmask 1046528  }
  0x62   :  { %v8109_v27 = vld [vmem:[#allocation2 + $0xd2] sm:$0xff]  ;;  %750 = vst.msk [vmem:[#allocation4 + $0xf8] sm:$0xff] %vm99_vm0, %v8107_v26  ;;  %591 = vst.msk [vmem:[#allocation4 + $0x108] sm:$0xff] %vm99_vm0, %v8105_v25  ;;  %v6992_v59 = vpack.c.bf16 %v1007_v7, %v1005_v6  ;;  %6991 = vmatprep.subr.bf16.mxu0 %v6990_v19  ;;  %v1013_v42 = vld [vmem:[%s11710_s3 + $0x180] sm:$0xff]  ;;  %vm1854_vm6 = vcmask 1045504   ;;  %vm5465_vm7 = vcmask 523264  }
  0x63   :  { %910 = vst.msk [vmem:[#allocation4 + $0xe8] sm:$0xff] %vm99_vm0, %v8109_v27  ;;  %235 = vst.msk [vmem:[#allocation2 + $0xf1] sm:$0xff] %vm99_vm0, %v95_v28  ;;  %v98_v2 = vadd.f32 %v7770_v3, %v75_v29  ;;  %v1011_v35 = vld [vmem:[%s11710_s3 + $0x170] sm:$0xff]  ;;  %v1014_v3 = vld [vmem:[%s11710_s3 + $0x188] sm:$0xff]  ;;  %vm5767_vm8 = vcmask 130112   ;;  %vm5774_vm9 = vcmask 195712  }
  0x64   :  { %236 = vst.msk [vmem:[#allocation2 + $0x101] sm:$0xff] %vm99_vm0, %v96_v31  ;;  %237 = vst.msk [vmem:[#allocation2 + $0x111] sm:$0xff] %vm99_vm0, %v97_v32  ;;  %v1016_v36 = vld [vmem:[%s11710_s3 + $0x198] sm:$0xff]  ;;  %6993 = vmatpush1.bf16.msra.mxu0 %v6992_v59  ;;  %v6996_v37 = vpack.c.bf16 %v1011_v35, %v1009_v34  ;;  %v1015_v43 = vld [vmem:[%s11710_s3 + $0x190] sm:$0xff]  ;;  %vm5781_vm10 = vcmask 261312   ;;  %vm5788_vm11 = vcmask 326912  }
  0x65   :  { %440 = vrot.lane.b32.xlu0 %v8113_v30, %s7537_s29  ;;  %277 = vrot.lane.b32.xlu1 %v7891_v60, %s7537_s29  ;;  %238 = vst.msk [vmem:[#allocation2 + $0x121] sm:$0xff] %vm99_vm0, %v98_v2  ;;  %v6998_v60 = vpack.c.bf16 %v1016_v36, %v1014_v3  ;;  %v1020_v45 = vld [vmem:[%s11710_s3 + $0x1b8] sm:$0xff]  ;;  %v1017_v46 = vld [vmem:[%s11710_s3 + $0x1a0] sm:$0xff]  ;;  %v7000_v52 = vpack.c.bf16 %v1015_v43, %v1013_v42  ;;  %vm5795_vm12 = vcmask 392512   ;;  %vm5802_vm13 = vcmask 458112  }
  0x66   :  { %v8144_v38 = vld [vmem:[#allocation2 + $0xe0] sm:$0xff]  ;;  %6995 = vmatprep.subr.bf16.mxu0 %v6994_v33  ;;  %v1019_v47 = vld [vmem:[%s11710_s3 + $0x1b0] sm:$0xff]  ;;  %v7002_v58 = vpack.c.bf16 %v1020_v45, %v1018_v44  ;;  %v1022_v6 = vld [vmem:[%s11710_s3 + $0x1c8] sm:$0xff]  ;;  %vm5809_vm14 = vcmask 523712   ;;  %vm5850_vm15 = vcmask 1041409  }
  0x67   :  { %v8146_v39 = vld [vmem:[#allocation2 + $0xe1] sm:$0xff]  ;;  %592 = vst.msk [vmem:[#allocation4 + $0x120] sm:$0xff] %vm99_vm0, %v8144_v38  ;;  %v1024_v7 = vld [vmem:[%s11710_s3 + $0x1d8] sm:$0xff]  ;;  %v1023_v16 = vld [vmem:[%s11710_s3 + $0x1d0] sm:$0xff] }
  0x68   :  { %v8148_v40 = vld [vmem:[#allocation2 + $0xe2] sm:$0xff]  ;;  %751 = vst.msk [vmem:[#allocation4 + $0x110] sm:$0xff] %vm99_vm0, %v8146_v39  ;;  %6997 = vmatpush1.bf16.msra.mxu0 %v6996_v37  ;;  %v422_v10 = vld [vmem:[#allocation2 + $0x52] sm:$0xff]  ;;  %v7006_v11 = vpack.c.bf16 %v1024_v7, %v1022_v6 }
  0x69   :  { %911 = vst.msk [vmem:[#allocation4 + $0x100] sm:$0xff] %vm99_vm0, %v8148_v40  ;;  %489 = vrot.lane.b32.xlu0 %v7909_v4, %s7538_s30  ;;  %326 = vrot.lane.b32.xlu1 %v8014_v41, %s7538_s30  ;;  %v1021_v15 = vld [vmem:[%s11710_s3 + $0x1c0] sm:$0xff]  ;;  %v1026_v18 = vld [vmem:[%s11710_s3 + $0x1e8] sm:$0xff]  ;;  %v424_v29 = vld [vmem:[#allocation2 + $0x72] sm:$0xff] }
  0x6a   :  { %v8178_v48 = vld [vmem:[#allocation2 + $0xf0] sm:$0xff]  ;;  %6999 = vmatprep.subr.bf16.mxu0 %v6998_v60  ;;  %v1028_v19 = vld [vmem:[%s11710_s3 + $0x1f8] sm:$0xff]  ;;  %v7008_v20 = vpack.c.bf16 %v1023_v16, %v1021_v15  ;;  %v1025_v22 = vld [vmem:[%s11710_s3 + $0x1e0] sm:$0xff] }
  0x6b   :  { %v8180_v49 = vld [vmem:[#allocation2 + $0xf1] sm:$0xff]  ;;  %v8184_v53 = vld [vmem:[#allocation2 + $0x100] sm:$0xff]  ;;  %593 = vst.msk [vmem:[#allocation4 + $0x138] sm:$0xff] %vm99_vm0, %v8178_v48  ;;  %v7010_v21 = vpack.c.bf16 %v1028_v19, %v1026_v18 }
  0x6c   :  { %v8182_v41 = vld [vmem:[#allocation2 + $0xf2] sm:$0xff]  ;;  %v8186_v54 = vld [vmem:[#allocation2 + $0x101] sm:$0xff]  ;;  %752 = vst.msk [vmem:[#allocation4 + $0x128] sm:$0xff] %vm99_vm0, %v8180_v49  ;;  %594 = vst.msk [vmem:[#allocation4 + $0x150] sm:$0xff] %vm99_vm0, %v8184_v53  ;;  %7001 = vmatpush1.bf16.msra.mxu0 %v7000_v52 }
  0x6d   :  { %v8188_v56 = vld [vmem:[#allocation2 + $0x102] sm:$0xff]  ;;  %912 = vst.msk [vmem:[#allocation4 + $0x118] sm:$0xff] %vm99_vm0, %v8182_v41  ;;  %v8196_v61 = vld [vmem:[#allocation2 + $0x110] sm:$0xff]  ;;  %753 = vst.msk [vmem:[#allocation4 + $0x140] sm:$0xff] %vm99_vm0, %v8186_v54  ;;  %537 = vrot.lane.b32.xlu0 %v7911_v5, %s7539_s13  ;;  %375 = vrot.lane.b32.xlu1 %v7898_v62, %s7539_s13  ;;  %v7004_v62 = vpack.c.bf16 %v1019_v47, %v1017_v46 }
  0x6e   :  { %v8198_v0 = vld [vmem:[#allocation2 + $0x111] sm:$0xff]  ;;  %913 = vst.msk [vmem:[#allocation4 + $0x130] sm:$0xff] %vm99_vm0, %v8188_v56  ;;  %595 = vst.msk [vmem:[#allocation4 + $0x168] sm:$0xff] %vm99_vm0, %v8196_v61  ;;  %7003 = vmatprep.subr.bf16.mxu0 %v7002_v58  ;;  %v8230_v17 = vld [vmem:[#allocation2 + $0x121] sm:$0xff] }
  0x6f   :  { %v8200_v1 = vld [vmem:[#allocation2 + $0x112] sm:$0xff]  ;;  %754 = vst.msk [vmem:[#allocation4 + $0x158] sm:$0xff] %vm99_vm0, %v8198_v0  ;;  %755 = vst.msk [vmem:[#allocation4 + $0x170] sm:$0xff] %vm99_vm0, %v8230_v17  ;;  %v8249_v23 = vld [vmem:[#allocation2 + $0x122] sm:$0xff] }
  0x70   :  { %914 = vst.msk [vmem:[#allocation4 + $0x148] sm:$0xff] %vm99_vm0, %v8200_v1  ;;  %7005 = vmatpush1.bf16.msra.mxu0 %v7004_v62  ;;  %915 = vst.msk [vmem:[#allocation4 + $0x160] sm:$0xff] %vm99_vm0, %v8249_v23  ;;  %v423_v28 = vld [vmem:[#allocation2 + $0x62] sm:$0xff]  ;;  %v1032_v34 = vld [vmem:[%s11710_s3 + $0x218] sm:$0xff] }
  0x71   :  { %442 = vrot.lane.b32.xlu0 %v422_v10, %s7537_s29  ;;  %279 = vrot.lane.b32.xlu1 %v7900_v63, %s7537_s29  ;;  %v1027_v63 = vld [vmem:[%s11710_s3 + $0x1f0] sm:$0xff]  ;;  %v644_v31 = vld [vmem:[#allocation2 + $0xa2] sm:$0xff]  ;;  %v1036_v18 = vld [vmem:[%s11710_s3 + $0x238] sm:$0xff] }
  0x72   :  { %7007 = vmatprep.subr.bf16.mxu0 %v7006_v11  ;;  %v7012_v24 = vpack.c.bf16 %v1027_v63, %v1025_v22  ;;  %v1029_v36 = vld [vmem:[%s11710_s3 + $0x200] sm:$0xff]  ;;  %v1031_v37 = vld [vmem:[%s11710_s3 + $0x210] sm:$0xff] }
  0x73   :  { %v7016_v60 = vpack.c.bf16 %v1031_v37, %v1029_v36  ;;  %v1033_v19 = vld [vmem:[%s11710_s3 + $0x220] sm:$0xff]  ;;  %v568_v37 = vld [vmem:[#allocation2 + $0x72] sm:$0xff] }
  0x74   :  { %7009 = vmatpush1.bf16.msra.mxu0 %v7008_v20  ;;  %v1035_v20 = vld [vmem:[%s11710_s3 + $0x230] sm:$0xff]  ;;  %576 = vst.msk [vmem:[#allocation4 + $0x88] sm:$0xff] %vm99_vm0, %v568_v37  ;;  %v3849_v37 = vld [vmem:[%s11712_s5 + $0xb8] sm:$0xff] }
  0x75   :  { %491 = vrot.lane.b32.xlu0 %v7923_v8, %s7538_s30  ;;  %328 = vrot.lane.b32.xlu1 %v8113_v30, %s7538_s30  ;;  %v580_v30 = vld [vmem:[#allocation2 + $0xa0] sm:$0xff] }
  0x76   :  { %7011 = vmatprep.subr.bf16.mxu0 %v7010_v21  ;;  %588 = vst.msk [vmem:[#allocation4 + $0xc0] sm:$0xff] %vm99_vm0, %v580_v30  ;;  %v7020_v21 = vpack.c.bf16 %v1035_v20, %v1033_v19 }
  0x78   :  { %7013 = vmatpush1.bf16.msra.mxu0 %v7012_v24 }
  0x79   :  { %539 = vrot.lane.b32.xlu0 %v7925_v9, %s7539_s13  ;;  %377 = vrot.lane.b32.xlu1 %v7909_v4, %s7539_s13  ;;  %v473_v4 = vld [vmem:[#allocation2 + $0x80] sm:$0xff] }
  0x7d   :  { %444 = vrot.lane.b32.xlu0 %v423_v28, %s7537_s29  ;;  %281 = vrot.lane.b32.xlu1 %v7911_v5, %s7537_s29  ;;  %v425_v5 = vld [vmem:[#allocation2 + $0x82] sm:$0xff] }
  0x7e   :  { %v272_v32 = vpop.permute.xlu0 %271 }
  0x7f   :  { %v321_v59 = vpop.permute.xlu1 %320  ;;  %296 = vst.msk [vmem:[#allocation4] sm:$0xff] %vm295_vm2, %v272_v32  ;;  %v564_v32 = vld [vmem:[#allocation2 + $0x32] sm:$0xff] }
  0x80   :  { %345 = vst.msk [vmem:[#allocation4] sm:$0xff] %vm344_vm3, %v321_v59 }
  0x81   :  { %493 = vrot.lane.b32.xlu0 %v7936_v12, %s7538_s30  ;;  %330 = vrot.lane.b32.xlu1 %v422_v10, %s7538_s30  ;;  %572 = vst.msk [vmem:[#allocation4 + $0x28] sm:$0xff] %vm99_vm0, %v564_v32  ;;  %v3828_v32 = vld [vmem:[%s11712_s5 + $0x10] sm:$0xff] }
  0x85   :  { %541 = vrot.lane.b32.xlu0 %v7938_v13, %s7539_s13  ;;  %379 = vrot.lane.b32.xlu1 %v7923_v8, %s7539_s13  ;;  %v474_v8 = vld [vmem:[#allocation2 + $0x90] sm:$0xff] }
  0x89   :  { %446 = vrot.lane.b32.xlu0 %v424_v29, %s7537_s29  ;;  %283 = vrot.lane.b32.xlu1 %v7925_v9, %s7537_s29  ;;  %v522_v9 = vld [vmem:[#allocation2 + $0x91] sm:$0xff] }
  0x8d   :  { %495 = vrot.lane.b32.xlu0 %v473_v4, %s7538_s30  ;;  %332 = vrot.lane.b32.xlu1 %v423_v28, %s7538_s30 }
  0x91   :  { %543 = vrot.lane.b32.xlu0 %v7944_v14, %s7539_s13  ;;  %381 = vrot.lane.b32.xlu1 %v7936_v12, %s7539_s13  ;;  %v756_v12 = vld [vmem:[#allocation2 + $0xb2] sm:$0xff]  ;;  %v596_v14 = vld [vmem:[#allocation2 + $0xa1] sm:$0xff] }
  0x95   :  { %448 = vrot.lane.b32.xlu0 %v425_v5, %s7537_s29  ;;  %285 = vrot.lane.b32.xlu1 %v7938_v13, %s7537_s29  ;;  %v757_v13 = vld [vmem:[#allocation2 + $0xc2] sm:$0xff] }
  0x99   :  { %497 = vrot.lane.b32.xlu0 %v474_v8, %s7538_s30  ;;  %334 = vrot.lane.b32.xlu1 %v424_v29, %s7538_s30 }
  0x9d   :  { %545 = vrot.lane.b32.xlu0 %v522_v9, %s7539_s13  ;;  %383 = vrot.lane.b32.xlu1 %v473_v4, %s7539_s13 }
  0xa1   :  { %772 = vrot.lane.b32.xlu0 %v756_v12, %s7537_s29  ;;  %612 = vrot.lane.b32.xlu1 %v596_v14, %s7537_s29 }
  0xa5   :  { %821 = vrot.lane.b32.xlu0 %v8050_v55, %s7538_s30  ;;  %660 = vrot.lane.b32.xlu1 %v644_v31, %s7538_s30 }
  0xa9   :  { %869 = vrot.lane.b32.xlu0 %v8052_v57, %s7539_s13  ;;  %708 = vrot.lane.b32.xlu1 %v8035_v50, %s7539_s13 }
  0xad   :  { %774 = vrot.lane.b32.xlu0 %v757_v13, %s7537_s29  ;;  %614 = vrot.lane.b32.xlu1 %v8037_v51, %s7537_s29 }
  0xb1   :  { %823 = vrot.lane.b32.xlu0 %v8105_v25, %s7538_s30  ;;  %662 = vrot.lane.b32.xlu1 %v756_v12, %s7538_s30 }
  0xb5   :  { %871 = vrot.lane.b32.xlu0 %v8107_v26, %s7539_s13  ;;  %710 = vrot.lane.b32.xlu1 %v8050_v55, %s7539_s13  ;;  %v1030_v55 = vld [vmem:[%s11710_s3 + $0x208] sm:$0xff] }
  0xb7   :  { %v435_v50 = vpop.permute.xlu0 %434  ;;  %v484_v51 = vpop.permute.xlu1 %483 }
  0xb8   :  { %458 = vst.msk [vmem:[#allocation4 + $0x8] sm:$0xff] %vm295_vm2, %v435_v50 }
  0xb9   :  { %507 = vst.msk [vmem:[#allocation4 + $0x8] sm:$0xff] %vm344_vm3, %v484_v51  ;;  %776 = vrot.lane.b32.xlu0 %v8109_v27, %s7537_s29  ;;  %616 = vrot.lane.b32.xlu1 %v8052_v57, %s7537_s29  ;;  %v7014_v57 = vpack.c.bf16 %v1032_v34, %v1030_v55 }
  0xbb   :  { %v532_v2 = vpop.permute.xlu0 %531  ;;  %v370_v33 = vpop.permute.xlu1 %369  ;;  %7015 = vmatprep.subr.bf16.mxu0 %v7014_v57 }
  0xbc   :  { %555 = vst.msk [vmem:[#allocation4 + $0x8] sm:$0xff] %vm393_vm4, %v532_v2  ;;  %394 = vst.msk [vmem:[#allocation4] sm:$0xff] %vm393_vm4, %v370_v33 }
  0xbd   :  { %825 = vrot.lane.b32.xlu0 %v8144_v38, %s7538_s30  ;;  %664 = vrot.lane.b32.xlu1 %v757_v13, %s7538_s30 }
  0xbf   :  { %v437_v35 = vpop.permute.xlu0 %436  ;;  %v274_v3 = vpop.permute.xlu1 %273 }
  0xc0   :  { %459 = vst.msk [vmem:[#allocation4 + $0x20] sm:$0xff] %vm295_vm2, %v437_v35  ;;  %297 = vst.msk [vmem:[#allocation4 + $0x18] sm:$0xff] %vm295_vm2, %v274_v3  ;;  %v567_v35 = vld [vmem:[#allocation2 + $0x62] sm:$0xff] }
  0xc1   :  { %873 = vrot.lane.b32.xlu0 %v8146_v39, %s7539_s13  ;;  %712 = vrot.lane.b32.xlu1 %v8105_v25, %s7539_s13  ;;  %575 = vst.msk [vmem:[#allocation4 + $0x70] sm:$0xff] %vm99_vm0, %v567_v35 }
  0xc3   :  { %v486_v42 = vpop.permute.xlu0 %485  ;;  %v918_v43 = vld [vmem:[#allocation4 + $0x8] sm:$0xff]  ;;  %v323_v44 = vpop.permute.xlu1 %322  ;;  %v917_v45 = vld [vmem:[#allocation4] sm:$0xff] }
  0xc4   :  { %508 = vst.msk [vmem:[#allocation4 + $0x20] sm:$0xff] %vm344_vm3, %v486_v42  ;;  %1161 = vmatprep.mubr.f32.mxu0 %v918_v43  ;;  %346 = vst.msk [vmem:[#allocation4 + $0x18] sm:$0xff] %vm344_vm3, %v323_v44 }
  0xc5   :  { %778 = vrot.lane.b32.xlu0 %v8148_v40, %s7537_s29  ;;  %1162 = vmatmul.mubr.f32.vlgmr.msra.gmra.mrb[0].mxu0 %v917_v45  ;;  %v569_v45 = vld [vmem:[#allocation2 + $0x82] sm:$0xff] }
  0xc6   :  { %618 = vrot.lane.b32.xlu1 %v8107_v26, %s7537_s29  ;;  %7017 = vmatpush1.bf16.msra.mxu0 %v7016_v60  ;;  %577 = vst.msk [vmem:[#allocation4 + $0xa0] sm:$0xff] %vm99_vm0, %v569_v45 }
  0xc7   :  { %v534_v46 = vpop.permute.xlu0 %533  ;;  %v372_v25 = vpop.permute.xlu1 %371 }
  0xc8   :  { %556 = vst.msk [vmem:[#allocation4 + $0x20] sm:$0xff] %vm393_vm4, %v534_v46  ;;  %395 = vst.msk [vmem:[#allocation4 + $0x18] sm:$0xff] %vm393_vm4, %v372_v25 }
  0xc9   :  { %827 = vrot.lane.b32.xlu0 %v8178_v48, %s7538_s30 }
  0xca   :  { %666 = vrot.lane.b32.xlu1 %v8109_v27, %s7538_s30 }
  0xcb   :  { %v439_v47 = vpop.permute.xlu0 %438  ;;  %v276_v52 = vpop.permute.xlu1 %275 }
  0xcc   :  { %460 = vst.msk [vmem:[#allocation4 + $0x38] sm:$0xff] %vm295_vm2, %v439_v47  ;;  %298 = vst.msk [vmem:[#allocation4 + $0x30] sm:$0xff] %vm295_vm2, %v276_v52  ;;  %v570_v47 = vld [vmem:[#allocation2 + $0x92] sm:$0xff] }
  0xcd   :  { %875 = vrot.lane.b32.xlu0 %v8180_v49, %s7539_s13  ;;  %578 = vst.msk [vmem:[#allocation4 + $0xb8] sm:$0xff] %vm99_vm0, %v570_v47 }
  0xce   :  { %714 = vrot.lane.b32.xlu1 %v8144_v38, %s7539_s13 }
  0xcf   :  { %v488_v26 = vpop.permute.xlu0 %487  ;;  %v921_v58 = vld [vmem:[#allocation4 + $0x20] sm:$0xff]  ;;  %v325_v6 = vpop.permute.xlu1 %324  ;;  %v920_v7 = vld [vmem:[#allocation4 + $0x18] sm:$0xff] }
  0xd0   :  { %509 = vst.msk [vmem:[#allocation4 + $0x38] sm:$0xff] %vm344_vm3, %v488_v26  ;;  %1167 = vmatprep.mubr.f32.mxu0 %v921_v58  ;;  %347 = vst.msk [vmem:[#allocation4 + $0x30] sm:$0xff] %vm344_vm3, %v325_v6  ;;  %v901_v58 = vld [vmem:[#allocation2 + $0xc2] sm:$0xff] }
  0xd1   :  { %780 = vrot.lane.b32.xlu0 %v8182_v41, %s7537_s29  ;;  %1168 = vmatmul.mubr.f32.gmra.mrb[2].mxu0 %v920_v7  ;;  %909 = vst.msk [vmem:[#allocation4 + $0xd0] sm:$0xff] %vm99_vm0, %v901_v58  ;;  %v3834_v58 = vld [vmem:[%s11712_s5 + $0x40] sm:$0xff] }
  0xd2   :  { %620 = vrot.lane.b32.xlu1 %v8146_v39, %s7537_s29 }
  0xd3   :  { %v536_v27 = vpop.permute.xlu0 %535  ;;  %v374_v10 = vpop.permute.xlu1 %373 }
  0xd4   :  { %557 = vst.msk [vmem:[#allocation4 + $0x38] sm:$0xff] %vm393_vm4, %v536_v27  ;;  %396 = vst.msk [vmem:[#allocation4 + $0x30] sm:$0xff] %vm393_vm4, %v374_v10 }
  0xd5   :  { %829 = vrot.lane.b32.xlu0 %v8184_v53, %s7538_s30 }
  0xd6   :  { %668 = vrot.lane.b32.xlu1 %v8148_v40, %s7538_s30  ;;  %v1034_v40 = vld [vmem:[%s11710_s3 + $0x228] sm:$0xff] }
  0xd7   :  { %v441_v38 = vpop.permute.xlu0 %440  ;;  %v278_v62 = vpop.permute.xlu1 %277 }
  0xd8   :  { %461 = vst.msk [vmem:[#allocation4 + $0x50] sm:$0xff] %vm295_vm2, %v441_v38  ;;  %299 = vst.msk [vmem:[#allocation4 + $0x48] sm:$0xff] %vm295_vm2, %v278_v62 }
  0xd9   :  { %877 = vrot.lane.b32.xlu0 %v8186_v54, %s7539_s13 }
  0xda   :  { %716 = vrot.lane.b32.xlu1 %v8178_v48, %s7539_s13  ;;  %v7018_v48 = vpack.c.bf16 %v1036_v18, %v1034_v40 }
  0xdb   :  { %v490_v39 = vpop.permute.xlu0 %489  ;;  %v327_v11 = vpop.permute.xlu1 %326  ;;  %v924_v15 = vld [vmem:[#allocation4 + $0x38] sm:$0xff]  ;;  %v923_v16 = vld [vmem:[#allocation4 + $0x30] sm:$0xff] }
  0xdc   :  { %510 = vst.msk [vmem:[#allocation4 + $0x50] sm:$0xff] %vm344_vm3, %v490_v39  ;;  %348 = vst.msk [vmem:[#allocation4 + $0x48] sm:$0xff] %vm344_vm3, %v327_v11  ;;  %1173 = vmatprep.mubr.f32.mxu0 %v924_v15  ;;  %7019 = vmatprep.subr.bf16.mxu0 %v7018_v48 }
  0xdd   :  { %782 = vrot.lane.b32.xlu0 %v8188_v56, %s7537_s29  ;;  %1174 = vmatmul.mubr.f32.gmra.mrb[4].mxu0 %v923_v16 }
  0xde   :  { %622 = vrot.lane.b32.xlu1 %v8180_v49, %s7537_s29  ;;  %7021 = vmatpush1.bf16.msra.mxu0 %v7020_v21 }
  0xdf   :  { %v538_v22 = vpop.permute.xlu0 %537  ;;  %v376_v63 = vpop.permute.xlu1 %375 }
  0xe0   :  { %558 = vst.msk [vmem:[#allocation4 + $0x50] sm:$0xff] %vm393_vm4, %v538_v22  ;;  %397 = vst.msk [vmem:[#allocation4 + $0x48] sm:$0xff] %vm393_vm4, %v376_v63 }
  0xe1   :  { %831 = vrot.lane.b32.xlu0 %v8196_v61, %s7538_s30 }
  0xe2   :  { %670 = vrot.lane.b32.xlu1 %v8182_v41, %s7538_s30  ;;  %v811_v41 = vld [vmem:[#allocation2 + $0x120] sm:$0xff] }
  0xe3   :  { %v443_v24 = vpop.permute.xlu0 %442  ;;  %v280_v28 = vpop.permute.xlu1 %279 }
  0xe4   :  { %462 = vst.msk [vmem:[#allocation4 + $0x68] sm:$0xff] %vm295_vm2, %v443_v24  ;;  %300 = vst.msk [vmem:[#allocation4 + $0x60] sm:$0xff] %vm295_vm2, %v280_v28 }
  0xe5   :  { %879 = vrot.lane.b32.xlu0 %v8198_v0, %s7539_s13 }
  0xe6   :  { %718 = vrot.lane.b32.xlu1 %v8184_v53, %s7539_s13 }
  0xe7   :  { %v492_v49 = vpop.permute.xlu0 %491  ;;  %v329_v29 = vpop.permute.xlu1 %328  ;;  %v927_v4 = vld [vmem:[#allocation4 + $0x50] sm:$0xff]  ;;  %v926_v5 = vld [vmem:[#allocation4 + $0x48] sm:$0xff] }
  0xe8   :  { %511 = vst.msk [vmem:[#allocation4 + $0x68] sm:$0xff] %vm344_vm3, %v492_v49  ;;  %349 = vst.msk [vmem:[#allocation4 + $0x60] sm:$0xff] %vm344_vm3, %v329_v29  ;;  %1179 = vmatprep.mubr.f32.mxu0 %v927_v4  ;;  %v908_v49 = vld [vmem:[#allocation2 + $0x132] sm:$0xff] }
  0xe9   :  { %784 = vrot.lane.b32.xlu0 %v8200_v1, %s7537_s29  ;;  %1180 = vmatmul.mubr.f32.gmra.mrb[6].mxu0 %v926_v5  ;;  %916 = vst.msk [vmem:[#allocation4 + $0x178] sm:$0xff] %vm99_vm0, %v908_v49 }
  0xea   :  { %624 = vrot.lane.b32.xlu1 %v8186_v54, %s7537_s29 }
  0xeb   :  { %v540_v30 = vpop.permute.xlu0 %539  ;;  %v378_v8 = vpop.permute.xlu1 %377 }
  0xec   :  { %559 = vst.msk [vmem:[#allocation4 + $0x68] sm:$0xff] %vm393_vm4, %v540_v30  ;;  %398 = vst.msk [vmem:[#allocation4 + $0x60] sm:$0xff] %vm393_vm4, %v378_v8  ;;  %v3842_v30 = vld [vmem:[%s11712_s5 + $0x80] sm:$0xff]  ;;  %v3843_v8 = vld [vmem:[%s11712_s5 + $0x88] sm:$0xff] }
  0xed   :  { %833 = vrot.lane.b32.xlu0 %v811_v41, %s7538_s30 }
  0xee   :  { %672 = vrot.lane.b32.xlu1 %v8188_v56, %s7538_s30  ;;  %v563_v56 = vld [vmem:[#allocation2 + $0x22] sm:$0xff] }
  0xef   :  { %v445_v53 = vpop.permute.xlu0 %444  ;;  %v282_v9 = vpop.permute.xlu1 %281  ;;  %571 = vst.msk [vmem:[#allocation4 + $0x10] sm:$0xff] %vm99_vm0, %v563_v56 }
  0xf0   :  { %463 = vst.msk [vmem:[#allocation4 + $0x80] sm:$0xff] %vm295_vm2, %v445_v53  ;;  %301 = vst.msk [vmem:[#allocation4 + $0x78] sm:$0xff] %vm295_vm2, %v282_v9  ;;  %v3826_v53 = vld [vmem:[%s11712_s5] sm:$0xff]  ;;  %v7022_v9 = vpack.c.bf16 %v3843_v8, %v3842_v30 }
  0xf1   :  { %881 = vrot.lane.b32.xlu0 %v8230_v17, %s7539_s13 }
  0xf2   :  { %720 = vrot.lane.b32.xlu1 %v8196_v61, %s7539_s13  ;;  %v812_v61 = vld [vmem:[#allocation2 + $0x130] sm:$0xff]  ;;  %7023 = vmatprep.subr.bf16.mxu1 %v7022_v9 }
  0xf3   :  { %v494_v54 = vpop.permute.xlu0 %493  ;;  %v331_v12 = vpop.permute.xlu1 %330  ;;  %v930_v14 = vld [vmem:[#allocation4 + $0x68] sm:$0xff]  ;;  %v929_v31 = vld [vmem:[#allocation4 + $0x60] sm:$0xff] }
  0xf4   :  { %512 = vst.msk [vmem:[#allocation4 + $0x80] sm:$0xff] %vm344_vm3, %v494_v54  ;;  %350 = vst.msk [vmem:[#allocation4 + $0x78] sm:$0xff] %vm344_vm3, %v331_v12  ;;  %1185 = vmatprep.mubr.f32.mxu0 %v930_v14  ;;  %v3827_v54 = vld [vmem:[%s11712_s5 + $0x8] sm:$0xff]  ;;  %v3844_v12 = vld [vmem:[%s11712_s5 + $0x90] sm:$0xff] }
  0xf5   :  { %786 = vrot.lane.b32.xlu0 %v8249_v23, %s7537_s29  ;;  %1186 = vmatmul.mubr.f32.gmra.mrb[8].mxu0 %v929_v31  ;;  %v860_v23 = vld [vmem:[#allocation2 + $0x131] sm:$0xff] }
  0xf6   :  { %626 = vrot.lane.b32.xlu1 %v8198_v0, %s7537_s29  ;;  %v565_v0 = vld [vmem:[#allocation2 + $0x42] sm:$0xff]  ;;  %v3845_v14 = vld [vmem:[%s11712_s5 + $0x98] sm:$0xff] }
  0xf7   :  { %v542_v17 = vpop.permute.xlu0 %541  ;;  %v380_v13 = vpop.permute.xlu1 %379  ;;  %573 = vst.msk [vmem:[#allocation4 + $0x40] sm:$0xff] %vm99_vm0, %v565_v0  ;;  %v3939_v0 = vld [vmem:[%s11712_s5 + $0x388] sm:$0xff] }
  0xf8   :  { %560 = vst.msk [vmem:[#allocation4 + $0x80] sm:$0xff] %vm393_vm4, %v542_v17  ;;  %399 = vst.msk [vmem:[#allocation4 + $0x78] sm:$0xff] %vm393_vm4, %v380_v13  ;;  %v7024_v17 = vpack.c.bf16 %v3827_v54, %v3826_v53  ;;  %v7026_v13 = vpack.c.bf16 %v3845_v14, %v3844_v12 }
  0xf9   :  { %835 = vrot.lane.b32.xlu0 %v812_v61, %s7538_s30 }
  0xfa   :  { %674 = vrot.lane.b32.xlu1 %v8200_v1, %s7538_s30  ;;  %v566_v1 = vld [vmem:[#allocation2 + $0x52] sm:$0xff]  ;;  %7025 = vmatpush3.bf16.msra.mxu1 %v7024_v17 }
  0xfb   :  { %v447_v59 = vpop.permute.xlu0 %446  ;;  %v284_v50 = vpop.permute.xlu1 %283  ;;  %574 = vst.msk [vmem:[#allocation4 + $0x58] sm:$0xff] %vm99_vm0, %v566_v1  ;;  %7027 = vmatprep.subr.bf16.mxu1 %v7026_v13  ;;  %v3830_v1 = vld [vmem:[%s11712_s5 + $0x20] sm:$0xff]  ;;  %v3940_v13 = vld [vmem:[%s11712_s5 + $0x390] sm:$0xff] }
  0xfc   :  { %464 = vst.msk [vmem:[#allocation4 + $0x98] sm:$0xff] %vm295_vm2, %v447_v59  ;;  %302 = vst.msk [vmem:[#allocation4 + $0x90] sm:$0xff] %vm295_vm2, %v284_v50  ;;  %v3829_v59 = vld [vmem:[%s11712_s5 + $0x18] sm:$0xff]  ;;  %v3938_v50 = vld [vmem:[%s11712_s5 + $0x380] sm:$0xff] }
  0xfd   :  { %883 = vrot.lane.b32.xlu0 %v860_v23, %s7539_s13 }
  0xfe   :  { %722 = vrot.lane.b32.xlu1 %v811_v41, %s7539_s13 }
  0xff   :  { %v496_v51 = vpop.permute.xlu0 %495  ;;  %v333_v2 = vpop.permute.xlu1 %332  ;;  %v933_v33 = vld [vmem:[#allocation4 + $0x80] sm:$0xff]  ;;  %v932_v55 = vld [vmem:[#allocation4 + $0x78] sm:$0xff] }
 0x100   :  { %513 = vst.msk [vmem:[#allocation4 + $0x98] sm:$0xff] %vm344_vm3, %v496_v51  ;;  %351 = vst.msk [vmem:[#allocation4 + $0x90] sm:$0xff] %vm344_vm3, %v333_v2  ;;  %1191 = vmatprep.mubr.f32.mxu0 %v933_v33  ;;  %v7028_v51 = vpack.c.bf16 %v3829_v59, %v3828_v32  ;;  %v7118_v2 = vpack.c.bf16 %v3939_v0, %v3938_v50  ;;  %v3846_v33 = vld [vmem:[%s11712_s5 + $0xa0] sm:$0xff]  ;;  %v3941_v32 = vld [vmem:[%s11712_s5 + $0x398] sm:$0xff] }
 0x101   :  { %1192 = vmatmul.mubr.f32.gmra.mrb[10].mxu0 %v932_v55  ;;  %v3847_v55 = vld [vmem:[%s11712_s5 + $0xa8] sm:$0xff]  ;;  %v919_v59 = vld [vmem:[#allocation4 + $0x10] sm:$0xff]  ;;  %v7122_v0 = vpack.c.bf16 %v3941_v32, %v3940_v13  ;;  %v3841_v13 = vld [vmem:[%s11712_s5 + $0x78] sm:$0xff] }
 0x102   :  { %7119 = vmatprep.subr.bf16.mxu0 %v7118_v2  ;;  %v7030_v35 = vpack.c.bf16 %v3847_v55, %v3846_v33  ;;  %7029 = vmatpush3.bf16.msra.mxu1 %v7028_v51  ;;  %v3924_v51 = vld [vmem:[%s11712_s5 + $0x310] sm:$0xff]  ;;  %v3925_v2 = vld [vmem:[%s11712_s5 + $0x318] sm:$0xff]  ;;  %v3942_v33 = vld [vmem:[%s11712_s5 + $0x3a0] sm:$0xff] }
 0x103   :  { %v544_v34 = vpop.permute.xlu0 %543  ;;  %v382_v57 = vpop.permute.xlu1 %381  ;;  %v3943_v55 = vld [vmem:[%s11712_s5 + $0x3a8] sm:$0xff]  ;;  %v3950_v32 = vld [vmem:[%s11712_s5 + $0x3e0] sm:$0xff] }
 0x104   :  { %561 = vst.msk [vmem:[#allocation4 + $0x98] sm:$0xff] %vm393_vm4, %v544_v34  ;;  %400 = vst.msk [vmem:[#allocation4 + $0x90] sm:$0xff] %vm393_vm4, %v382_v57  ;;  %v3831_v34 = vld [vmem:[%s11712_s5 + $0x28] sm:$0xff]  ;;  %7031 = vmatprep.subr.bf16.mxu1 %v7030_v35  ;;  %v3926_v35 = vld [vmem:[%s11712_s5 + $0x320] sm:$0xff] }
 0x107   :  { %v449_v3 = vpop.permute.xlu0 %448  ;;  %v286_v36 = vpop.permute.xlu1 %285 }
 0x108   :  { %465 = vst.msk [vmem:[#allocation4 + $0xb0] sm:$0xff] %vm295_vm2, %v449_v3  ;;  %303 = vst.msk [vmem:[#allocation4 + $0xa8] sm:$0xff] %vm295_vm2, %v286_v36  ;;  %v3848_v36 = vld [vmem:[%s11712_s5 + $0xb0] sm:$0xff] }
 0x10b   :  { %v498_v60 = vpop.permute.xlu0 %497  ;;  %v335_v42 = vpop.permute.xlu1 %334  ;;  %v936_v43 = vld [vmem:[#allocation4 + $0x98] sm:$0xff]  ;;  %v935_v44 = vld [vmem:[#allocation4 + $0x90] sm:$0xff] }
 0x10c   :  { %514 = vst.msk [vmem:[#allocation4 + $0xb0] sm:$0xff] %vm344_vm3, %v498_v60  ;;  %352 = vst.msk [vmem:[#allocation4 + $0xa8] sm:$0xff] %vm344_vm3, %v335_v42  ;;  %1197 = vmatprep.mubr.f32.mxu0 %v936_v43  ;;  %v7032_v60 = vpack.c.bf16 %v3831_v34, %v3830_v1  ;;  %v7034_v42 = vpack.c.bf16 %v3849_v37, %v3848_v36  ;;  %v3832_v43 = vld [vmem:[%s11712_s5 + $0x30] sm:$0xff]  ;;  %v922_v1 = vld [vmem:[#allocation4 + $0x28] sm:$0xff]  ;;  %v7124_v34 = vpack.c.bf16 %v3925_v2, %v3924_v51 }
 0x10d   :  { %1198 = vmatmul.mubr.f32.gmra.mrb[12].mxu0 %v935_v44  ;;  %v3833_v44 = vld [vmem:[%s11712_s5 + $0x38] sm:$0xff]  ;;  %v3944_v36 = vld [vmem:[%s11712_s5 + $0x3b0] sm:$0xff]  ;;  %v3935_v51 = vld [vmem:[%s11712_s5 + $0x368] sm:$0xff] }
 0x10e   :  { %7033 = vmatpush3.bf16.msra.mxu1 %v7032_v60  ;;  %v3945_v37 = vld [vmem:[%s11712_s5 + $0x3b8] sm:$0xff]  ;;  %v925_v60 = vld [vmem:[#allocation4 + $0x40] sm:$0xff] }
 0x10f   :  { %v546_v46 = vpop.permute.xlu0 %545  ;;  %v384_v25 = vpop.permute.xlu1 %383  ;;  %7035 = vmatprep.subr.bf16.mxu1 %v7034_v42 }
 0x110   :  { %562 = vst.msk [vmem:[#allocation4 + $0xb0] sm:$0xff] %vm393_vm4, %v546_v46  ;;  %401 = vst.msk [vmem:[#allocation4 + $0xa8] sm:$0xff] %vm393_vm4, %v384_v25  ;;  %v3850_v46 = vld [vmem:[%s11712_s5 + $0xc0] sm:$0xff]  ;;  %v3851_v25 = vld [vmem:[%s11712_s5 + $0xc8] sm:$0xff] }
 0x113   :  { %v773_v52 = vpop.permute.xlu0 %772  ;;  %v613_v26 = vpop.permute.xlu1 %612 }
 0x114   :  { %796 = vst.msk [vmem:[#allocation4 + $0xc8] sm:$0xff] %vm295_vm2, %v773_v52  ;;  %636 = vst.msk [vmem:[#allocation4 + $0xc0] sm:$0xff] %vm295_vm2, %v613_v26  ;;  %v7036_v52 = vpack.c.bf16 %v3833_v44, %v3832_v43  ;;  %v7038_v26 = vpack.c.bf16 %v3851_v25, %v3850_v46  ;;  %v7130_v43 = vpack.c.bf16 %v3945_v37, %v3944_v36  ;;  %v3928_v44 = vld [vmem:[%s11712_s5 + $0x330] sm:$0xff]  ;;  %v928_v46 = vld [vmem:[#allocation4 + $0x58] sm:$0xff] }
 0x115   :  { %v3874_v36 = vld [vmem:[%s11712_s5 + $0x180] sm:$0xff]  ;;  %v3875_v37 = vld [vmem:[%s11712_s5 + $0x188] sm:$0xff] }
 0x116   :  { %7037 = vmatpush3.bf16.msra.mxu1 %v7036_v52  ;;  %v934_v52 = vld [vmem:[#allocation4 + $0x88] sm:$0xff] }
 0x117   :  { %v822_v6 = vpop.permute.xlu0 %821  ;;  %v661_v7 = vpop.permute.xlu1 %660  ;;  %v939_v27 = vld [vmem:[#allocation4 + $0xb0] sm:$0xff]  ;;  %v938_v10 = vld [vmem:[#allocation4 + $0xa8] sm:$0xff]  ;;  %7039 = vmatprep.subr.bf16.mxu1 %v7038_v26  ;;  %v937_v26 = vld [vmem:[#allocation4 + $0xa0] sm:$0xff] }
 0x118   :  { %845 = vst.msk [vmem:[#allocation4 + $0xc8] sm:$0xff] %vm344_vm3, %v822_v6  ;;  %684 = vst.msk [vmem:[#allocation4 + $0xc0] sm:$0xff] %vm344_vm3, %v661_v7  ;;  %1203 = vmatprep.mubr.f32.mxu0 %v939_v27  ;;  %v3835_v6 = vld [vmem:[%s11712_s5 + $0x48] sm:$0xff] }
 0x119   :  { %1204 = vmatmul.mubr.f32.gmra.mrb[14].mxu0 %v938_v10 }
 0x11b   :  { %v870_v38 = vpop.permute.xlu0 %869  ;;  %v709_v62 = vpop.permute.xlu1 %708 }
 0x11c   :  { %893 = vst.msk [vmem:[#allocation4 + $0xc8] sm:$0xff] %vm393_vm4, %v870_v38  ;;  %732 = vst.msk [vmem:[#allocation4 + $0xc0] sm:$0xff] %vm393_vm4, %v709_v62  ;;  %v7040_v62 = vpack.c.bf16 %v3835_v6, %v3834_v58  ;;  %v940_v58 = vld [vmem:[#allocation4 + $0xb8] sm:$0xff]  ;;  %v943_v6 = vld [vmem:[#allocation4 + $0xd0] sm:$0xff] }
 0x11e   :  { %7041 = vmatpush3.bf16.msra.mxu1 %v7040_v62  ;;  %v958_v62 = vld [vmem:[#allocation4 + $0x148] sm:$0xff] }
 0x11f   :  { %v775_v39 = vpop.permute.xlu0 %774  ;;  %v615_v11 = vpop.permute.xlu1 %614 }
 0x120   :  { %797 = vst.msk [vmem:[#allocation4 + $0xe0] sm:$0xff] %vm295_vm2, %v775_v39  ;;  %637 = vst.msk [vmem:[#allocation4 + $0xd8] sm:$0xff] %vm295_vm2, %v615_v11 }
 0x123   :  { %v824_v15 = vpop.permute.xlu0 %823  ;;  %v663_v16 = vpop.permute.xlu1 %662  ;;  %v942_v40 = vld [vmem:[#allocation4 + $0xc8] sm:$0xff]  ;;  %v941_v18 = vld [vmem:[#allocation4 + $0xc0] sm:$0xff] }
 0x124   :  { %846 = vst.msk [vmem:[#allocation4 + $0xe0] sm:$0xff] %vm344_vm3, %v824_v15  ;;  %685 = vst.msk [vmem:[#allocation4 + $0xd8] sm:$0xff] %vm344_vm3, %v663_v16  ;;  %1209 = vmatprep.mubr.f32.mxu0 %v942_v40 }
 0x125   :  { %1210 = vmatmul.mubr.f32.gmra.mrb[16].mxu0 %v941_v18 }
 0x127   :  { %v872_v48 = vpop.permute.xlu0 %871  ;;  %v711_v19 = vpop.permute.xlu1 %710 }
 0x128   :  { %894 = vst.msk [vmem:[#allocation4 + $0xe0] sm:$0xff] %vm393_vm4, %v872_v48  ;;  %733 = vst.msk [vmem:[#allocation4 + $0xd8] sm:$0xff] %vm393_vm4, %v711_v19 }
 0x12b   :  { %v777_v20 = vpop.permute.xlu0 %776  ;;  %v617_v21 = vpop.permute.xlu1 %616 }
 0x12c   :  { %798 = vst.msk [vmem:[#allocation4 + $0xf8] sm:$0xff] %vm295_vm2, %v777_v20  ;;  %638 = vst.msk [vmem:[#allocation4 + $0xf0] sm:$0xff] %vm295_vm2, %v617_v21 }
 0x12f   :  { %v826_v22 = vpop.permute.xlu0 %825  ;;  %v665_v63 = vpop.permute.xlu1 %664  ;;  %v945_v24 = vld [vmem:[#allocation4 + $0xe0] sm:$0xff]  ;;  %v944_v28 = vld [vmem:[#allocation4 + $0xd8] sm:$0xff] }
 0x130   :  { %847 = vst.msk [vmem:[#allocation4 + $0xf8] sm:$0xff] %vm344_vm3, %v826_v22  ;;  %686 = vst.msk [vmem:[#allocation4 + $0xf0] sm:$0xff] %vm344_vm3, %v665_v63  ;;  %1215 = vmatprep.mubr.f32.mxu0 %v945_v24 }
 0x131   :  { %1216 = vmatmul.mubr.f32.gmra.mrb[18].mxu0 %v944_v28 }
 0x133   :  { %v874_v29 = vpop.permute.xlu0 %873  ;;  %v713_v4 = vpop.permute.xlu1 %712 }
 0x134   :  { %895 = vst.msk [vmem:[#allocation4 + $0xf8] sm:$0xff] %vm393_vm4, %v874_v29  ;;  %734 = vst.msk [vmem:[#allocation4 + $0xf0] sm:$0xff] %vm393_vm4, %v713_v4 }
 0x137   :  { %v779_v5 = vpop.permute.xlu0 %778 }
 0x138   :  { %799 = vst.msk [vmem:[#allocation4 + $0x110] sm:$0xff] %vm295_vm2, %v779_v5  ;;  %v619_v41 = vpop.permute.xlu1 %618 }
 0x139   :  { %639 = vst.msk [vmem:[#allocation4 + $0x108] sm:$0xff] %vm295_vm2, %v619_v41 }
 0x13b   :  { %v828_v31 = vpop.permute.xlu0 %827  ;;  %v948_v56 = vld [vmem:[#allocation4 + $0xf8] sm:$0xff]  ;;  %v947_v61 = vld [vmem:[#allocation4 + $0xf0] sm:$0xff] }
 0x13c   :  { %848 = vst.msk [vmem:[#allocation4 + $0x110] sm:$0xff] %vm344_vm3, %v828_v31  ;;  %v667_v23 = vpop.permute.xlu1 %666  ;;  %1221 = vmatprep.mubr.f32.mxu0 %v948_v56  ;;  %v3922_v56 = vld [vmem:[%s11712_s5 + $0x300] sm:$0xff] }
 0x13d   :  { %687 = vst.msk [vmem:[#allocation4 + $0x108] sm:$0xff] %vm344_vm3, %v667_v23  ;;  %1222 = vmatmul.mubr.f32.gmra.mrb[20].mxu0 %v947_v61  ;;  %v3923_v61 = vld [vmem:[%s11712_s5 + $0x308] sm:$0xff]  ;;  %v8582_v23 = vld [vmem:[#allocation3] sm:$0xff] }
 0x13e   :  { %v7120_v50 = vpack.c.bf16 %v3923_v61, %v3922_v56  ;;  %v3857_v56 = vld [vmem:[%s11712_s5 + $0xf8] sm:$0xff] }
 0x13f   :  { %v876_v57 = vpop.permute.xlu0 %875 }
 0x140   :  { %896 = vst.msk [vmem:[#allocation4 + $0x110] sm:$0xff] %vm393_vm4, %v876_v57  ;;  %v715_v3 = vpop.permute.xlu1 %714  ;;  %v7126_v57 = vpack.c.bf16 %v3943_v55, %v3942_v33  ;;  %v3952_v55 = vld [vmem:[%s11712_s5 + $0x3f0] sm:$0xff] }
 0x141   :  { %735 = vst.msk [vmem:[#allocation4 + $0x108] sm:$0xff] %vm393_vm4, %v715_v3  ;;  %v3927_v3 = vld [vmem:[%s11712_s5 + $0x328] sm:$0xff] }
 0x142   :  { %v7128_v42 = vpack.c.bf16 %v3927_v3, %v3926_v35  ;;  %v3937_v35 = vld [vmem:[%s11712_s5 + $0x378] sm:$0xff] }
 0x143   :  { %v781_v45 = vpop.permute.xlu0 %780 }
 0x144   :  { %800 = vst.msk [vmem:[#allocation4 + $0x128] sm:$0xff] %vm295_vm2, %v781_v45  ;;  %v621_v47 = vpop.permute.xlu1 %620  ;;  %v3929_v45 = vld [vmem:[%s11712_s5 + $0x338] sm:$0xff] }
 0x145   :  { %640 = vst.msk [vmem:[#allocation4 + $0x120] sm:$0xff] %vm295_vm2, %v621_v47  ;;  %v7132_v25 = vpack.c.bf16 %v3929_v45, %v3928_v44  ;;  %v931_v47 = vld [vmem:[#allocation4 + $0x70] sm:$0xff] }
 0x146   :  { %v3876_v45 = vld [vmem:[%s11712_s5 + $0x190] sm:$0xff] }
 0x147   :  { %v830_v7 = vpop.permute.xlu0 %829  ;;  %v951_v27 = vld [vmem:[#allocation4 + $0x110] sm:$0xff] }
 0x148   :  { %849 = vst.msk [vmem:[#allocation4 + $0x128] sm:$0xff] %vm344_vm3, %v830_v7  ;;  %v669_v10 = vpop.permute.xlu1 %668  ;;  %1227 = vmatprep.mubr.f32.mxu0 %v951_v27  ;;  %v950_v38 = vld [vmem:[#allocation4 + $0x108] sm:$0xff]  ;;  %v949_v27 = vld [vmem:[#allocation4 + $0x100] sm:$0xff] }
 0x149   :  { %688 = vst.msk [vmem:[#allocation4 + $0x120] sm:$0xff] %vm344_vm3, %v669_v10  ;;  %1228 = vmatmul.mubr.f32.gmra.mrb[22].mxu0 %v950_v38  ;;  %v946_v7 = vld [vmem:[#allocation4 + $0xe8] sm:$0xff]  ;;  %v952_v10 = vld [vmem:[#allocation4 + $0x118] sm:$0xff]  ;;  %v955_v38 = vld [vmem:[#allocation4 + $0x130] sm:$0xff] }
 0x14b   :  { %v878_v39 = vpop.permute.xlu0 %877 }
 0x14c   :  { %897 = vst.msk [vmem:[#allocation4 + $0x128] sm:$0xff] %vm393_vm4, %v878_v39  ;;  %v717_v11 = vpop.permute.xlu1 %716  ;;  %v961_v39 = vld [vmem:[#allocation4 + $0x160] sm:$0xff] }
 0x14d   :  { %736 = vst.msk [vmem:[#allocation4 + $0x120] sm:$0xff] %vm393_vm4, %v717_v11  ;;  %v964_v11 = vld [vmem:[#allocation4 + $0x178] sm:$0xff] }
 0x14f   :  { %v783_v15 = vpop.permute.xlu0 %782 }
 0x150   :  { %801 = vst.msk [vmem:[#allocation4 + $0x140] sm:$0xff] %vm295_vm2, %v783_v15  ;;  %v623_v16 = vpop.permute.xlu1 %622  ;;  %v3852_v15 = vld [vmem:[%s11712_s5 + $0xd0] sm:$0xff] }
 0x151   :  { %641 = vst.msk [vmem:[#allocation4 + $0x138] sm:$0xff] %vm295_vm2, %v623_v16  ;;  %v3853_v16 = vld [vmem:[%s11712_s5 + $0xd8] sm:$0xff] }
 0x153   :  { %v832_v40 = vpop.permute.xlu0 %831  ;;  %v954_v18 = vld [vmem:[#allocation4 + $0x128] sm:$0xff] }
 0x154   :  { %850 = vst.msk [vmem:[#allocation4 + $0x140] sm:$0xff] %vm344_vm3, %v832_v40  ;;  %v671_v48 = vpop.permute.xlu1 %670  ;;  %1233 = vmatprep.mubr.f32.mxu0 %v954_v18  ;;  %v953_v19 = vld [vmem:[#allocation4 + $0x120] sm:$0xff]  ;;  %v7042_v40 = vpack.c.bf16 %v3853_v16, %v3852_v15  ;;  %v3836_v18 = vld [vmem:[%s11712_s5 + $0x50] sm:$0xff]  ;;  %v3865_v16 = vld [vmem:[%s11712_s5 + $0x138] sm:$0xff] }
 0x155   :  { %689 = vst.msk [vmem:[#allocation4 + $0x138] sm:$0xff] %vm344_vm3, %v671_v48  ;;  %1234 = vmatmul.mubr.f32.gmra.mrb[24].mxu0 %v953_v19  ;;  %v3837_v48 = vld [vmem:[%s11712_s5 + $0x58] sm:$0xff]  ;;  %v3946_v19 = vld [vmem:[%s11712_s5 + $0x3c0] sm:$0xff]  ;;  %v3864_v15 = vld [vmem:[%s11712_s5 + $0x130] sm:$0xff] }
 0x156   :  { %7043 = vmatprep.subr.bf16.mxu1 %v7042_v40  ;;  %v7068_v40 = vpack.c.bf16 %v3865_v16, %v3864_v15 }
 0x157   :  { %v880_v20 = vpop.permute.xlu0 %879 }
 0x158   :  { %898 = vst.msk [vmem:[#allocation4 + $0x140] sm:$0xff] %vm393_vm4, %v880_v20  ;;  %v719_v21 = vpop.permute.xlu1 %718  ;;  %v7044_v20 = vpack.c.bf16 %v3837_v48, %v3836_v18  ;;  %v4002_v18 = vld [vmem:[%s11712_s5 + $0x580] sm:$0xff]  ;;  %v4003_v48 = vld [vmem:[%s11712_s5 + $0x588] sm:$0xff] }
 0x159   :  { %737 = vst.msk [vmem:[#allocation4 + $0x138] sm:$0xff] %vm393_vm4, %v719_v21  ;;  %v3947_v21 = vld [vmem:[%s11712_s5 + $0x3c8] sm:$0xff] }
 0x15a   :  { %7045 = vmatpush3.bf16.msra.mxu1 %v7044_v20  ;;  %v3882_v20 = vld [vmem:[%s11712_s5 + $0x1c0] sm:$0xff] }
 0x15b   :  { %v785_v22 = vpop.permute.xlu0 %784 }
 0x15c   :  { %802 = vst.msk [vmem:[#allocation4 + $0x158] sm:$0xff] %vm295_vm2, %v785_v22  ;;  %v625_v63 = vpop.permute.xlu1 %624  ;;  %v3930_v22 = vld [vmem:[%s11712_s5 + $0x340] sm:$0xff] }
 0x15d   :  { %642 = vst.msk [vmem:[#allocation4 + $0x150] sm:$0xff] %vm295_vm2, %v625_v63  ;;  %v3931_v63 = vld [vmem:[%s11712_s5 + $0x348] sm:$0xff] }
 0x15f   :  { %v834_v24 = vpop.permute.xlu0 %833  ;;  %v957_v28 = vld [vmem:[#allocation4 + $0x140] sm:$0xff] }
 0x160   :  { %851 = vst.msk [vmem:[#allocation4 + $0x158] sm:$0xff] %vm344_vm3, %v834_v24  ;;  %v673_v49 = vpop.permute.xlu1 %672  ;;  %1239 = vmatprep.mubr.f32.mxu0 %v957_v28  ;;  %v956_v29 = vld [vmem:[#allocation4 + $0x138] sm:$0xff]  ;;  %v7134_v24 = vpack.c.bf16 %v3947_v21, %v3946_v19  ;;  %v7136_v28 = vpack.c.bf16 %v3931_v63, %v3930_v22  ;;  %v7182_v19 = vpack.c.bf16 %v4003_v48, %v4002_v18  ;;  %v3883_v21 = vld [vmem:[%s11712_s5 + $0x1c8] sm:$0xff]  ;;  %v3866_v63 = vld [vmem:[%s11712_s5 + $0x140] sm:$0xff] }
 0x161   :  { %690 = vst.msk [vmem:[#allocation4 + $0x150] sm:$0xff] %vm344_vm3, %v673_v49  ;;  %1240 = vmatmul.mubr.f32.gmra.mrb[26].mxu0 %v956_v29  ;;  %v3854_v49 = vld [vmem:[%s11712_s5 + $0xe0] sm:$0xff]  ;;  %v3855_v29 = vld [vmem:[%s11712_s5 + $0xe8] sm:$0xff]  ;;  %v7070_v22 = vpack.c.bf16 %v3883_v21, %v3882_v20  ;;  %v4005_v18 = vld [vmem:[%s11712_s5 + $0x598] sm:$0xff] }
 0x163   :  { %v882_v4 = vpop.permute.xlu0 %881 }
 0x164   :  { %899 = vst.msk [vmem:[#allocation4 + $0x158] sm:$0xff] %vm393_vm4, %v882_v4  ;;  %v721_v5 = vpop.permute.xlu1 %720  ;;  %v7046_v4 = vpack.c.bf16 %v3855_v29, %v3854_v49  ;;  %v3884_v49 = vld [vmem:[%s11712_s5 + $0x1d0] sm:$0xff]  ;;  %v3885_v29 = vld [vmem:[%s11712_s5 + $0x1d8] sm:$0xff] }
 0x165   :  { %738 = vst.msk [vmem:[#allocation4 + $0x150] sm:$0xff] %vm393_vm4, %v721_v5  ;;  %v3838_v5 = vld [vmem:[%s11712_s5 + $0x60] sm:$0xff] }
 0x166   :  { %7047 = vmatprep.subr.bf16.mxu1 %v7046_v4  ;;  %v7074_v4 = vpack.c.bf16 %v3885_v29, %v3884_v49  ;;  %v3988_v29 = vld [vmem:[%s11712_s5 + $0x510] sm:$0xff] }
 0x167   :  { %v787_v41 = vpop.permute.xlu0 %786 }
 0x168   :  { %803 = vst.msk [vmem:[#allocation4 + $0x170] sm:$0xff] %vm295_vm2, %v787_v41  ;;  %v627_v30 = vpop.permute.xlu1 %626  ;;  %v3839_v41 = vld [vmem:[%s11712_s5 + $0x68] sm:$0xff] }
 0x169   :  { %643 = vst.msk [vmem:[#allocation4 + $0x168] sm:$0xff] %vm295_vm2, %v627_v30  ;;  %v3948_v30 = vld [vmem:[%s11712_s5 + $0x3d0] sm:$0xff] }
 0x16b   :  { %v836_v8 = vpop.permute.xlu0 %835  ;;  %v960_v53 = vld [vmem:[#allocation4 + $0x158] sm:$0xff] }
 0x16c   :  { %852 = vst.msk [vmem:[#allocation4 + $0x170] sm:$0xff] %vm344_vm3, %v836_v8  ;;  %v675_v9 = vpop.permute.xlu1 %674  ;;  %1245 = vmatprep.mubr.f32.mxu0 %v960_v53  ;;  %v959_v54 = vld [vmem:[#allocation4 + $0x150] sm:$0xff]  ;;  %v7048_v8 = vpack.c.bf16 %v3839_v41, %v3838_v5  ;;  %v3949_v53 = vld [vmem:[%s11712_s5 + $0x3d8] sm:$0xff] }
 0x16d   :  { %691 = vst.msk [vmem:[#allocation4 + $0x168] sm:$0xff] %vm344_vm3, %v675_v9  ;;  %1246 = vmatmul.mubr.f32.gmra.mrb[28].mxu0 %v959_v54  ;;  %v3932_v9 = vld [vmem:[%s11712_s5 + $0x350] sm:$0xff]  ;;  %v3933_v54 = vld [vmem:[%s11712_s5 + $0x358] sm:$0xff] }
 0x16e   :  { %7049 = vmatpush3.bf16.msra.mxu1 %v7048_v8  ;;  %v3868_v5 = vld [vmem:[%s11712_s5 + $0x150] sm:$0xff]  ;;  %v3869_v41 = vld [vmem:[%s11712_s5 + $0x158] sm:$0xff]  ;;  %v3886_v8 = vld [vmem:[%s11712_s5 + $0x1e0] sm:$0xff] }
 0x16f   :  { %v884_v12 = vpop.permute.xlu0 %883 }
 0x170   :  { %900 = vst.msk [vmem:[#allocation4 + $0x170] sm:$0xff] %vm393_vm4, %v884_v12  ;;  %v723_v14 = vpop.permute.xlu1 %722  ;;  %v7138_v12 = vpack.c.bf16 %v3949_v53, %v3948_v30  ;;  %v7076_v30 = vpack.c.bf16 %v3869_v41, %v3868_v5  ;;  %v3887_v53 = vld [vmem:[%s11712_s5 + $0x1e8] sm:$0xff] }
 0x171   :  { %739 = vst.msk [vmem:[#allocation4 + $0x168] sm:$0xff] %vm393_vm4, %v723_v14  ;;  %v7140_v14 = vpack.c.bf16 %v3933_v54, %v3932_v9  ;;  %v7078_v9 = vpack.c.bf16 %v3887_v53, %v3886_v8  ;;  %v3870_v54 = vld [vmem:[%s11712_s5 + $0x160] sm:$0xff]  ;;  %v4007_v53 = vld [vmem:[%s11712_s5 + $0x5a8] sm:$0xff] }
 0x172   :  { %v4006_v8 = vld [vmem:[%s11712_s5 + $0x5a0] sm:$0xff] }
 0x177   :  { %v963_v31 = vld [vmem:[#allocation4 + $0x170] sm:$0xff] }
 0x178   :  { %1251 = vmatprep.mubr.f32.mxu0 %v963_v31  ;;  %v962_v17 = vld [vmem:[#allocation4 + $0x168] sm:$0xff]  ;;  %v3856_v31 = vld [vmem:[%s11712_s5 + $0xf0] sm:$0xff] }
 0x179   :  { %1252 = vmatmul.mubr.f32.gmra.mrb[30].mxu0 %v962_v17  ;;  %v7050_v61 = vpack.c.bf16 %v3857_v56, %v3856_v31  ;;  %v3840_v17 = vld [vmem:[%s11712_s5 + $0x70] sm:$0xff]  ;;  %v3889_v56 = vld [vmem:[%s11712_s5 + $0x1f8] sm:$0xff] }
 0x17a   :  { %1322 = vmatprep.mubr.f32.mxu0 %v8582_v23  ;;  %v3888_v31 = vld [vmem:[%s11712_s5 + $0x1f0] sm:$0xff] }
 0x17b   :  { %7051 = vmatprep.subr.bf16.mxu1 %v7050_v61  ;;  %v7082_v61 = vpack.c.bf16 %v3889_v56, %v3888_v31 }
 0x17d   :  { %6208 = vmatmul.mubr.msk.f32.vlgmr.msra.gmra.mrb[0].mxu0 %vm99_vm0, %v919_v59  ;;  %v7052_v59 = vpack.c.bf16 %v3841_v13, %v3840_v17  ;;  %v3872_v17 = vld [vmem:[%s11712_s5 + $0x170] sm:$0xff]  ;;  %v3873_v13 = vld [vmem:[%s11712_s5 + $0x178] sm:$0xff] }
 0x17e   :  { %1328 = vmatprep.mubr.f32.mxu0 %v8582_v23  ;;  %7121 = vmatpush3.bf16.msra.mxu0 %v7120_v50  ;;  %v3951_v50 = vld [vmem:[%s11712_s5 + $0x3e8] sm:$0xff] }
 0x17f   :  { %7123 = vmatprep.subr.bf16.mxu0 %v7122_v0  ;;  %v3934_v0 = vld [vmem:[%s11712_s5 + $0x360] sm:$0xff]  ;;  %v7142_v2 = vpack.c.bf16 %v3951_v50, %v3950_v32  ;;  %7053 = vmatpush3.bf16.msra.mxu1 %v7052_v59  ;;  %v7084_v32 = vpack.c.bf16 %v3873_v13, %v3872_v17  ;;  %v3907_v50 = vld [vmem:[%s11712_s5 + $0x288] sm:$0xff]  ;;  %v7190_v13 = vpack.c.bf16 %v4007_v53, %v4006_v8  ;;  %v3996_v8 = vld [vmem:[%s11712_s5 + $0x550] sm:$0xff] }
 0x180   :  { %v7144_v33 = vpack.c.bf16 %v3935_v51, %v3934_v0  ;;  %v3906_v59 = vld [vmem:[%s11712_s5 + $0x280] sm:$0xff]  ;;  %v11718_v51 = vlaneseq  ;;  %v3997_v53 = vld [vmem:[%s11712_s5 + $0x558] sm:$0xff] }
 0x181   :  { %6209 = vmatmul.mubr.msk.f32.gmra.mrb[2].mxu0 %vm99_vm0, %v922_v1  ;;  %v3953_v1 = vld [vmem:[%s11712_s5 + $0x3f8] sm:$0xff]  ;;  %v7086_v0 = vpack.c.bf16 %v3907_v50, %v3906_v59  ;;  %v3991_v59 = vld [vmem:[%s11712_s5 + $0x528] sm:$0xff] }
 0x182   :  { %1334 = vmatprep.mubr.f32.mxu0 %v8582_v23  ;;  %7125 = vmatpush3.bf16.msra.mxu0 %v7124_v34  ;;  %v7146_v34 = vpack.c.bf16 %v3953_v1, %v3952_v55  ;;  %v1037_v55 = vld [vmem:[%s11711_s4] sm:$0x3] }
 0x183   :  { %7127 = vmatprep.subr.bf16.mxu0 %v7126_v57  ;;  %v3936_v57 = vld [vmem:[%s11712_s5 + $0x370] sm:$0xff]  ;;  %4186 = vmatmul.mubr.f32.vlgmr.msra.gmra.mrb[0].mxu1 %v8582_v23 }
 0x184   :  { %v7148_v3 = vpack.c.bf16 %v3937_v35, %v3936_v57 }
 0x185   :  { %6210 = vmatmul.mubr.msk.f32.gmra.mrb[4].mxu0 %vm99_vm0, %v925_v60  ;;  %v7054_v60 = vpack.c.bf16 %v3875_v37, %v3874_v36 }
 0x186   :  { %1340 = vmatprep.mubr.f32.mxu0 %v8582_v23  ;;  %7129 = vmatpush3.bf16.msra.mxu0 %v7128_v42  ;;  %v3858_v42 = vld [vmem:[%s11712_s5 + $0x100] sm:$0xff] }
 0x187   :  { %7131 = vmatprep.subr.bf16.mxu0 %v7130_v43  ;;  %v3859_v43 = vld [vmem:[%s11712_s5 + $0x108] sm:$0xff]  ;;  %7055 = vmatprep.subr.bf16.mxu1 %v7054_v60 }
 0x188   :  { %v7056_v44 = vpack.c.bf16 %v3859_v43, %v3858_v42 }
 0x189   :  { %6211 = vmatmul.mubr.msk.f32.gmra.mrb[6].mxu0 %vm99_vm0, %v928_v46  ;;  %v3877_v46 = vld [vmem:[%s11712_s5 + $0x198] sm:$0xff] }
 0x18a   :  { %1346 = vmatprep.mubr.f32.mxu0 %v8582_v23  ;;  %7133 = vmatpush3.bf16.msra.mxu0 %v7132_v25  ;;  %v7058_v25 = vpack.c.bf16 %v3877_v46, %v3876_v45 }
 0x18b   :  { %7135 = vmatprep.subr.bf16.mxu0 %v7134_v24  ;;  %7057 = vmatpush3.bf16.msra.mxu1 %v7056_v44  ;;  %v3867_v24 = vld [vmem:[%s11712_s5 + $0x148] sm:$0xff] }
 0x18c   :  { %7059 = vmatprep.subr.bf16.mxu1 %v7058_v25 }
 0x18d   :  { %6212 = vmatmul.mubr.msk.f32.gmra.mrb[8].mxu0 %vm99_vm0, %v931_v47  ;;  %v3860_v47 = vld [vmem:[%s11712_s5 + $0x110] sm:$0xff] }
 0x18e   :  { %1352 = vmatprep.mubr.f32.mxu0 %v8582_v23  ;;  %7137 = vmatpush3.bf16.msra.mxu0 %v7136_v28  ;;  %v7072_v28 = vpack.c.bf16 %v3867_v24, %v3866_v63 }
 0x18f   :  { %7139 = vmatprep.subr.bf16.mxu0 %v7138_v12  ;;  %v3871_v12 = vld [vmem:[%s11712_s5 + $0x168] sm:$0xff] }
 0x191   :  { %6213 = vmatmul.mubr.msk.f32.gmra.mrb[10].mxu0 %vm99_vm0, %v934_v52  ;;  %v3861_v52 = vld [vmem:[%s11712_s5 + $0x118] sm:$0xff] }
 0x192   :  { %1358 = vmatprep.mubr.f32.mxu0 %v8582_v23  ;;  %7141 = vmatpush3.bf16.msra.mxu0 %v7140_v14  ;;  %v7080_v14 = vpack.c.bf16 %v3871_v12, %v3870_v54 }
 0x193   :  { %7143 = vmatprep.subr.bf16.mxu0 %v7142_v2  ;;  %v8840_v2 = vshrl.u32 %v11718_v51, 7 }
 0x195   :  { %6214 = vmatmul.mubr.msk.f32.gmra.mrb[12].mxu0 %vm99_vm0, %v937_v26  ;;  %v7060_v26 = vpack.c.bf16 %v3861_v52, %v3860_v47  ;;  %11744 = vst [vmem:[#allocation10_spill] sm:$0xff] %v8840_v2  ;;  %v1045_v1 = vsub.s32 1, %v8840_v2 }
 0x196   :  { %1364 = vmatprep.mubr.f32.mxu0 %v8582_v23  ;;  %7145 = vmatpush3.bf16.msra.mxu0 %v7144_v33  ;;  %v1041_v33 = vsub.s32 0, %v8840_v2 }
 0x197   :  { %7147 = vmatprep.subr.bf16.mxu0 %v7146_v34  ;;  %7061 = vmatpush3.bf16.msra.mxu1 %v7060_v26  ;;  %v8849_v57 = vrot.slane %v1037_v55, %v1045_v1  ;;  %v4009_v1 = vld [vmem:[%s11712_s5 + $0x5b8] sm:$0xff] }
 0x198   :  { %v8847_v34 = vrot.slane %v1037_v55, %v1041_v33  ;;  %v4008_v55 = vld [vmem:[%s11712_s5 + $0x5b0] sm:$0xff] }
 0x199   :  { %6215 = vmatmul.mubr.msk.f32.gmra.mrb[14].mxu0 %vm99_vm0, %v940_v58  ;;  %v3878_v58 = vld [vmem:[%s11712_s5 + $0x1a0] sm:$0xff] }
 0x19a   :  { %1370 = vmatprep.mubr.f32.mxu0 %v8582_v23  ;;  %7149 = vmatpush3.bf16.msra.mxu0 %v7148_v3 }
 0x19b   :  { %7183 = vmatprep.subr.bf16.mxu0 %v7182_v19 }
 0x19d   :  { %6216 = vmatmul.mubr.msk.f32.gmra.mrb[16].mxu0 %vm99_vm0, %v943_v6  ;;  %v3879_v6 = vld [vmem:[%s11712_s5 + $0x1a8] sm:$0xff] }
 0x19e   :  { %1376 = vmatprep.mubr.f32.mxu0 %v8582_v23 }
 0x1a1   :  { %6217 = vmatmul.mubr.msk.f32.gmra.mrb[18].mxu0 %vm99_vm0, %v946_v7  ;;  %v7062_v7 = vpack.c.bf16 %v3879_v6, %v3878_v58 }
 0x1a2   :  { %1382 = vmatprep.mubr.f32.mxu0 %v8582_v23 }
 0x1a3   :  { %7063 = vmatprep.subr.bf16.mxu1 %v7062_v7 }
 0x1a5   :  { %6218 = vmatmul.mubr.msk.f32.gmra.mrb[20].mxu0 %vm99_vm0, %v949_v27  ;;  %v3862_v27 = vld [vmem:[%s11712_s5 + $0x120] sm:$0xff] }
 0x1a6   :  { %1388 = vmatprep.mubr.f32.mxu0 %v8582_v23 }
 0x1a9   :  { %6219 = vmatmul.mubr.msk.f32.gmra.mrb[22].mxu0 %vm99_vm0, %v952_v10  ;;  %v3863_v10 = vld [vmem:[%s11712_s5 + $0x128] sm:$0xff] }
 0x1aa   :  { %1394 = vmatprep.mubr.f32.mxu0 %v8582_v23 }
 0x1ad   :  { %6220 = vmatmul.mubr.msk.f32.gmra.mrb[24].mxu0 %vm99_vm0, %v955_v38  ;;  %v7064_v38 = vpack.c.bf16 %v3863_v10, %v3862_v27 }
 0x1ae   :  { %1400 = vmatprep.mubr.f32.mxu0 %v8582_v23 }
 0x1af   :  { %7065 = vmatpush3.bf16.msra.mxu1 %v7064_v38 }
 0x1b1   :  { %6221 = vmatmul.mubr.msk.f32.gmra.mrb[26].mxu0 %vm99_vm0, %v958_v62  ;;  %v3880_v62 = vld [vmem:[%s11712_s5 + $0x1b0] sm:$0xff] }
 0x1b2   :  { %1406 = vmatprep.mubr.f32.mxu0 %v8582_v23 }
 0x1b5   :  { %6222 = vmatmul.mubr.msk.f32.gmra.mrb[28].mxu0 %vm99_vm0, %v961_v39  ;;  %v3881_v39 = vld [vmem:[%s11712_s5 + $0x1b8] sm:$0xff] }
 0x1b6   :  { %1412 = vmatprep.mubr.f32.mxu0 %v8582_v23 }
 0x1b9   :  { %6223 = vmatmul.mubr.msk.f32.gmra.mrb[30].mxu0 %vm99_vm0, %v964_v11  ;;  %v7066_v11 = vpack.c.bf16 %v3881_v39, %v3880_v62  ;;  %v3986_v39 = vld [vmem:[%s11712_s5 + $0x500] sm:$0xff] }
 0x1bb   :  { %7067 = vmatprep.subr.bf16.mxu1 %v7066_v11  ;;  %v3987_v11 = vld [vmem:[%s11712_s5 + $0x508] sm:$0xff] }
 0x1bc   :  { %7069 = vmatpush3.bf16.msra.mxu1 %v7068_v40  ;;  %v4004_v40 = vld [vmem:[%s11712_s5 + $0x590] sm:$0xff]  ;;  %v7184_v63 = vpack.c.bf16 %v3987_v11, %v3986_v39 }
 0x1bd   :  { %7071 = vmatprep.subr.bf16.mxu1 %v7070_v22  ;;  %v7186_v49 = vpack.c.bf16 %v4005_v18, %v4004_v40  ;;  %v3994_v40 = vld [vmem:[%s11712_s5 + $0x540] sm:$0xff]  ;;  %v3995_v18 = vld [vmem:[%s11712_s5 + $0x548] sm:$0xff] }
 0x1c0   :  { %7073 = vmatpush3.bf16.msra.mxu1 %v7072_v28 }
 0x1c1   :  { %7075 = vmatprep.subr.bf16.mxu1 %v7074_v4  ;;  %v3989_v4 = vld [vmem:[%s11712_s5 + $0x518] sm:$0xff] }
 0x1c2   :  { %v7188_v56 = vpack.c.bf16 %v3989_v4, %v3988_v29  ;;  %v7200_v4 = vpack.c.bf16 %v3995_v18, %v3994_v40 }
 0x1c4   :  { %7077 = vmatpush3.bf16.msra.mxu1 %v7076_v30 }
 0x1c5   :  { %7079 = vmatprep.subr.bf16.mxu1 %v7078_v9 }
 0x1c8   :  { %7081 = vmatpush3.bf16.msra.mxu1 %v7080_v14 }
 0x1c9   :  { %7083 = vmatprep.subr.bf16.mxu1 %v7082_v61 }
 0x1cc   :  { %7085 = vmatpush3.bf16.msra.mxu1 %v7084_v32  ;;  %v3990_v32 = vld [vmem:[%s11712_s5 + $0x520] sm:$0xff] }
 0x1cd   :  { %7087 = vmatprep.subr.bf16.mxu1 %v7086_v0 }
 0x250   :  { %v1324_v35 = vpop.f32.mrb[0].mxu0 }
 0x251   :  { %v7374_v3 = vadd.f32 %v1324_v35, %v8847_v34  ;;  %v1326_v36 = vpop.f32.mrb[1].mxu0 }
 0x252   :  { %v7375_v37 = vadd.f32 %v1326_v36, %v8849_v57 }
 0x253   :  { %v1419_v60 = vmax.f32 %v7374_v3, 0.0 }
 0x254   :  { %v1420_v42 = vmax.f32 %v7375_v37, 0.0  ;;  %v1330_v43 = vpop.f32.mrb[2].mxu0 }
 0x255   :  { %v1467_v44 = vrot.slane %v1419_v60, 7  ;;  %v7376_v45 = vadd.f32 %v1330_v43, %v8847_v34  ;;  %v1332_v46 = vpop.f32.mrb[3].mxu0 }
 0x256   :  { %v1468_v25 = vrot.slane %v1420_v42, 7  ;;  %v7377_v47 = vadd.f32 %v1332_v46, %v8849_v57  ;;  %v7192_v42 = vpack.c.bf16 %v3991_v59, %v3990_v32  ;;  %v3992_v46 = vld [vmem:[%s11712_s5 + $0x530] sm:$0xff]  ;;  %v7204_v59 = vpack.c.bf16 %v3997_v53, %v3996_v8  ;;  %v8983_v53 = vld [vmem:[#allocation3 + $0x158] sm:$0x1] }
 0x257   :  { %1500 = vst [vmem:[#allocation3 + $0x20] sm:$0xfe] %v1467_v44  ;;  %1502 = vst [vmem:[#allocation3 + $0x30] sm:$0x1] %v1467_v44  ;;  %v1421_v52 = vmax.f32 %v7376_v45, 0.0  ;;  %v7194_v45 = vpack.c.bf16 %v4009_v1, %v4008_v55  ;;  %v3998_v55 = vld [vmem:[%s11712_s5 + $0x560] sm:$0xff] }
 0x258   :  { %1501 = vst [vmem:[#allocation3 + $0x28] sm:$0xfe] %v1468_v25  ;;  %1503 = vst [vmem:[#allocation3 + $0x38] sm:$0x1] %v1468_v25  ;;  %v1422_v26 = vmax.f32 %v7377_v47, 0.0  ;;  %v1336_v58 = vpop.f32.mrb[4].mxu0 }
 0x259   :  { %v1469_v6 = vrot.slane %v1421_v52, 7  ;;  %v7378_v7 = vadd.f32 %v1336_v58, %v8847_v34  ;;  %v1338_v27 = vpop.f32.mrb[5].mxu0  ;;  %v3993_v25 = vld [vmem:[%s11712_s5 + $0x538] sm:$0xff]  ;;  %v4010_v58 = vld [vmem:[%s11712_s5 + $0x5c0] sm:$0xff]  ;;  %v3999_v1 = vld [vmem:[%s11712_s5 + $0x568] sm:$0xff] }
 0x25a   :  { %v1470_v10 = vrot.slane %v1422_v26, 7  ;;  %v7379_v38 = vadd.f32 %v1338_v27, %v8849_v57  ;;  %v7196_v39 = vpack.c.bf16 %v3993_v25, %v3992_v46  ;;  %v7208_v25 = vpack.c.bf16 %v3999_v1, %v3998_v55  ;;  %v9094_v1 = vld [vmem:[%s11712_s5 + $0x298] sm:$0xff] }
 0x25b   :  { %1504 = vst [vmem:[#allocation3 + $0x40] sm:$0xfe] %v1469_v6  ;;  %1506 = vst [vmem:[#allocation3 + $0x50] sm:$0x1] %v1469_v6  ;;  %v1423_v62 = vmax.f32 %v7378_v7, 0.0  ;;  %v4011_v6 = vld [vmem:[%s11712_s5 + $0x5c8] sm:$0xff] }
 0x25c   :  { %1505 = vst [vmem:[#allocation3 + $0x48] sm:$0xfe] %v1470_v10  ;;  %1507 = vst [vmem:[#allocation3 + $0x58] sm:$0x1] %v1470_v10  ;;  %v1424_v15 = vmax.f32 %v7379_v38, 0.0  ;;  %v1342_v16 = vpop.f32.mrb[6].mxu0 }
 0x25d   :  { %v1471_v48 = vrot.slane %v1423_v62, 7  ;;  %v7380_v19 = vadd.f32 %v1342_v16, %v8847_v34  ;;  %v1344_v20 = vpop.f32.mrb[7].mxu0  ;;  %v7198_v16 = vpack.c.bf16 %v4011_v6, %v4010_v58  ;;  %v4000_v58 = vld [vmem:[%s11712_s5 + $0x570] sm:$0xff]  ;;  %v4001_v6 = vld [vmem:[%s11712_s5 + $0x578] sm:$0xff] }
 0x25e   :  { %v1472_v21 = vrot.slane %v1424_v15, 7  ;;  %v7381_v22 = vadd.f32 %v1344_v20, %v8849_v57  ;;  %v1615_v30 = vld [vmem:[#allocation3 + $0x20] sm:$0xff] }
 0x25f   :  { %1508 = vst [vmem:[#allocation3 + $0x60] sm:$0xfe] %v1471_v48  ;;  %1510 = vst [vmem:[#allocation3 + $0x70] sm:$0x1] %v1471_v48  ;;  %v1425_v24 = vmax.f32 %v7380_v19, 0.0  ;;  %v1616_v28 = vld [vmem:[#allocation3 + $0x28] sm:$0xff] }
 0x260   :  { %1509 = vst [vmem:[#allocation3 + $0x68] sm:$0xfe] %v1472_v21  ;;  %1511 = vst [vmem:[#allocation3 + $0x78] sm:$0x1] %v1472_v21  ;;  %v1426_v5 = vmax.f32 %v7381_v22, 0.0  ;;  %v1348_v41 = vpop.f32.mrb[8].mxu0  ;;  %4190 = vmatprep.mubr.f32.mxu1 %v1616_v28  ;;  %4620 = vmatprep.mubr.f32.mxu0 %v1616_v28 }
 0x261   :  { %v1473_v9 = vrot.slane %v1425_v24, 7  ;;  %v7382_v54 = vadd.f32 %v1348_v41, %v8847_v34  ;;  %v1350_v12 = vpop.f32.mrb[9].mxu0  ;;  %4191 = vmatmul.mubr.f32.gmra.mrb[2].mxu1 %v1615_v30  ;;  %4621 = vmatmul.mubr.f32.vlgmr.msra.gmra.mrb[32].mxu0 %v1615_v30  ;;  %v4012_v21 = vld [vmem:[%s11712_s5 + $0x5d0] sm:$0xff]  ;;  %v4013_v22 = vld [vmem:[%s11712_s5 + $0x5d8] sm:$0xff] }
 0x262   :  { %v1474_v14 = vrot.slane %v1426_v5, 7  ;;  %v7383_v31 = vadd.f32 %v1350_v12, %v8849_v57  ;;  %7185 = vmatpush3.bf16.msra.mxu0 %v7184_v63  ;;  %v1617_v33 = vld [vmem:[#allocation3 + $0x40] sm:$0xff]  ;;  %v7202_v30 = vpack.c.bf16 %v4013_v22, %v4012_v21  ;;  %v9059_v51 = vld [vmem:[#allocation3 + $0x50] sm:$0x3] }
 0x263   :  { %1512 = vst [vmem:[#allocation3 + $0x80] sm:$0xfe] %v1473_v9  ;;  %1514 = vst [vmem:[#allocation3 + $0x90] sm:$0x1] %v1473_v9  ;;  %v1427_v61 = vmax.f32 %v7382_v54, 0.0  ;;  %v1618_v17 = vld [vmem:[#allocation3 + $0x48] sm:$0xff]  ;;  %7187 = vmatprep.subr.bf16.mxu0 %v7186_v49 }
 0x264   :  { %1513 = vst [vmem:[#allocation3 + $0x88] sm:$0xfe] %v1474_v14  ;;  %1515 = vst [vmem:[#allocation3 + $0x98] sm:$0x1] %v1474_v14  ;;  %v1428_v50 = vmax.f32 %v7383_v31, 0.0  ;;  %v1354_v0 = vpop.f32.mrb[10].mxu0  ;;  %4195 = vmatprep.mubr.f32.mxu1 %v1618_v17  ;;  %4625 = vmatprep.mubr.f32.mxu0 %v1618_v17 }
 0x265   :  { %v1475_v35 = vrot.slane %v1427_v61, 7  ;;  %v7384_v3 = vadd.f32 %v1354_v0, %v8847_v34  ;;  %v1356_v36 = vpop.f32.mrb[11].mxu0  ;;  %4196 = vmatmul.mubr.f32.gmra.mrb[4].mxu1 %v1617_v33  ;;  %4626 = vmatmul.mubr.f32.gmra.mrb[34].mxu0 %v1617_v33  ;;  %v4014_v14 = vld [vmem:[%s11712_s5 + $0x5e0] sm:$0xff]  ;;  %v4015_v31 = vld [vmem:[%s11712_s5 + $0x5e8] sm:$0xff] }
 0x266   :  { %v1476_v37 = vrot.slane %v1428_v50, 7  ;;  %v7385_v60 = vadd.f32 %v1356_v36, %v8849_v57  ;;  %7189 = vmatpush3.bf16.msra.mxu0 %v7188_v56  ;;  %v1619_v26 = vld [vmem:[#allocation3 + $0x60] sm:$0xff]  ;;  %v7206_v33 = vpack.c.bf16 %v4015_v31, %v4014_v14  ;;  %v8989_v31 = vld [vmem:[#allocation3 + $0x150] sm:$0x1] }
 0x267   :  { %1516 = vst [vmem:[#allocation3 + $0xa0] sm:$0xfe] %v1475_v35  ;;  %1518 = vst [vmem:[#allocation3 + $0xb0] sm:$0x1] %v1475_v35  ;;  %v1429_v43 = vmax.f32 %v7384_v3, 0.0  ;;  %v1620_v44 = vld [vmem:[#allocation3 + $0x68] sm:$0xff]  ;;  %7191 = vmatprep.subr.bf16.mxu0 %v7190_v13 }
 0x268   :  { %1517 = vst [vmem:[#allocation3 + $0xa8] sm:$0xfe] %v1476_v37  ;;  %1519 = vst [vmem:[#allocation3 + $0xb8] sm:$0x1] %v1476_v37  ;;  %v1430_v47 = vmax.f32 %v7385_v60, 0.0  ;;  %v1360_v52 = vpop.f32.mrb[12].mxu0  ;;  %4200 = vmatprep.mubr.f32.mxu1 %v1620_v44  ;;  %4630 = vmatprep.mubr.f32.mxu0 %v1620_v44 }
 0x269   :  { %v1477_v7 = vrot.slane %v1429_v43, 7  ;;  %v7386_v27 = vadd.f32 %v1360_v52, %v8847_v34  ;;  %v1362_v10 = vpop.f32.mrb[13].mxu0  ;;  %4201 = vmatmul.mubr.f32.gmra.mrb[6].mxu1 %v1619_v26  ;;  %4631 = vmatmul.mubr.f32.gmra.mrb[36].mxu0 %v1619_v26  ;;  %v4016_v37 = vld [vmem:[%s11712_s5 + $0x5f0] sm:$0xff]  ;;  %v4017_v60 = vld [vmem:[%s11712_s5 + $0x5f8] sm:$0xff]  ;;  %v8974_v22 = vld [vmem:[#allocation3] sm:$0xfe] }
 0x26a   :  { %v1478_v38 = vrot.slane %v1430_v47, 7  ;;  %v7387_v62 = vadd.f32 %v1362_v10, %v8849_v57  ;;  %7193 = vmatpush3.bf16.msra.mxu0 %v7192_v42  ;;  %v1621_v20 = vld [vmem:[#allocation3 + $0x80] sm:$0xff]  ;;  %v7210_v26 = vpack.c.bf16 %v4017_v60, %v4016_v37  ;;  %11746 = vst [vmem:[#allocation12_spill] sm:$0xff] %v8989_v31  ;;  %v9099_v37 = vld [vmem:[%s11712_s5 + $0x210] sm:$0xff]  ;;  %v9253_v31 = vld [vmem:[%s11712_s5 + $0x258] sm:$0xff] }
 0x26b   :  { %1520 = vst [vmem:[#allocation3 + $0xc0] sm:$0xfe] %v1477_v7  ;;  %1522 = vst [vmem:[#allocation3 + $0xd0] sm:$0x1] %v1477_v7  ;;  %v1431_v11 = vmax.f32 %v7386_v27, 0.0  ;;  %v1622_v15 = vld [vmem:[#allocation3 + $0x88] sm:$0xff]  ;;  %7195 = vmatprep.subr.bf16.mxu0 %v7194_v45 }
 0x26c   :  { %1521 = vst [vmem:[#allocation3 + $0xc8] sm:$0xfe] %v1478_v38  ;;  %1523 = vst [vmem:[#allocation3 + $0xd8] sm:$0x1] %v1478_v38  ;;  %v1432_v48 = vmax.f32 %v7387_v62, 0.0  ;;  %v1366_v19 = vpop.f32.mrb[14].mxu0  ;;  %4205 = vmatprep.mubr.f32.mxu1 %v1622_v15  ;;  %4635 = vmatprep.mubr.f32.mxu0 %v1622_v15 }
 0x26d   :  { %v1479_v63 = vrot.slane %v1431_v11, 7  ;;  %v7388_v24 = vadd.f32 %v1366_v19, %v8847_v34  ;;  %v1368_v28 = vpop.f32.mrb[15].mxu0  ;;  %4206 = vmatmul.mubr.f32.gmra.mrb[8].mxu1 %v1621_v20  ;;  %4636 = vmatmul.mubr.f32.gmra.mrb[38].mxu0 %v1621_v20  ;;  %v4066_v38 = vld [vmem:[%s11712_s5 + $0x780] sm:$0xff]  ;;  %v4067_v62 = vld [vmem:[%s11712_s5 + $0x788] sm:$0xff]  ;;  %v7212_v19 = vpack.c.bf16 %v4001_v6, %v4000_v58  ;;  %v9179_v55 = vld [vmem:[#allocation3 + $0x90] sm:$0x1] }
 0x26e   :  { %v1480_v49 = vrot.slane %v1432_v48, 7  ;;  %v7389_v29 = vadd.f32 %v1368_v28, %v8849_v57  ;;  %7197 = vmatpush3.bf16.msra.mxu0 %v7196_v39  ;;  %v1623_v12 = vld [vmem:[#allocation3 + $0xa0] sm:$0xff]  ;;  %v8972_v48 = vld [vmem:[#allocation3 + $0x18] sm:$0x1] }
 0x26f   :  { %1524 = vst [vmem:[#allocation3 + $0xe0] sm:$0xfe] %v1479_v63  ;;  %1526 = vst [vmem:[#allocation3 + $0xf0] sm:$0x1] %v1479_v63  ;;  %v1433_v5 = vmax.f32 %v7388_v24, 0.0  ;;  %v1624_v41 = vld [vmem:[#allocation3 + $0xa8] sm:$0xff]  ;;  %7199 = vmatprep.subr.bf16.mxu0 %v7198_v16  ;;  %v7246_v24 = vpack.c.bf16 %v4067_v62, %v4066_v38 }
 0x270   :  { %1525 = vst [vmem:[#allocation3 + $0xe8] sm:$0xfe] %v1480_v49  ;;  %1527 = vst [vmem:[#allocation3 + $0xf8] sm:$0x1] %v1480_v49  ;;  %v1434_v9 = vmax.f32 %v7389_v29, 0.0  ;;  %v1372_v54 = vpop.f32.mrb[16].mxu0  ;;  %4210 = vmatprep.mubr.f32.mxu1 %v1624_v41  ;;  %4640 = vmatprep.mubr.f32.mxu0 %v1624_v41 }
 0x271   :  { %v1481_v56 = vrot.slane %v1433_v5, 7  ;;  %v7390_v61 = vadd.f32 %v1372_v54, %v8847_v34  ;;  %v1374_v17 = vpop.f32.mrb[17].mxu0  ;;  %4211 = vmatmul.mubr.f32.gmra.mrb[10].mxu1 %v1623_v12  ;;  %4641 = vmatmul.mubr.f32.gmra.mrb[40].mxu0 %v1623_v12  ;;  %v8968_v16 = vld [vmem:[#allocation3 + $0x8] sm:$0xfe]  ;;  %v8976_v63 = vld [vmem:[#allocation3 + $0x10] sm:$0x1] }
 0x272   :  { %v1482_v13 = vrot.slane %v1434_v9, 7  ;;  %v7391_v32 = vadd.f32 %v1374_v17, %v8849_v57  ;;  %7201 = vmatpush3.bf16.msra.mxu0 %v7200_v4  ;;  %v1625_v36 = vld [vmem:[#allocation3 + $0xc0] sm:$0xff]  ;;  %v1713_v4 = vrot.slane %v8968_v16, 1  ;;  %v8979_v5 = vld [vmem:[#allocation3 + $0x148] sm:$0xfe]  ;;  %v1714_v14 = vrot.slane %v8972_v48, 1 }
 0x273   :  { %1528 = vst [vmem:[#allocation3 + $0x100] sm:$0xfe] %v1481_v56  ;;  %1530 = vst [vmem:[#allocation3 + $0x110] sm:$0x1] %v1481_v56  ;;  %v1435_v50 = vmax.f32 %v7390_v61, 0.0  ;;  %v1626_v0 = vld [vmem:[#allocation3 + $0xc8] sm:$0xff]  ;;  %7203 = vmatprep.subr.bf16.mxu0 %v7202_v30 }
 0x274   :  { %1529 = vst [vmem:[#allocation3 + $0x108] sm:$0xfe] %v1482_v13  ;;  %1531 = vst [vmem:[#allocation3 + $0x118] sm:$0x1] %v1482_v13  ;;  %v1436_v35 = vmax.f32 %v7391_v32, 0.0  ;;  %v1378_v3 = vpop.f32.mrb[18].mxu0  ;;  %4215 = vmatprep.mubr.f32.mxu1 %v1626_v0  ;;  %4645 = vmatprep.mubr.f32.mxu0 %v1626_v0 }
 0x275   :  { %v1548_v42 = vrot.slane %v1435_v50, 7  ;;  %v7392_v43 = vadd.f32 %v1378_v3, %v8847_v34  ;;  %v1380_v44 = vpop.f32.mrb[19].mxu0  ;;  %4216 = vmatmul.mubr.f32.gmra.mrb[12].mxu1 %v1625_v36  ;;  %4646 = vmatmul.mubr.f32.gmra.mrb[42].mxu0 %v1625_v36  ;;  %v8985_v9 = vld [vmem:[#allocation3 + $0x140] sm:$0xfe]  ;;  %v8991_v56 = vld [vmem:[#allocation3 + $0x8] sm:$0xfc] }
 0x276   :  { %v1549_v45 = vrot.slane %v1436_v35, 7  ;;  %v7393_v46 = vadd.f32 %v1380_v44, %v8849_v57  ;;  %7205 = vmatpush3.bf16.msra.mxu0 %v7204_v59  ;;  %v1627_v10 = vld [vmem:[#allocation3 + $0xe0] sm:$0xff]  ;;  %11745 = vst [vmem:[#allocation11_spill] sm:$0xff] %v8985_v9  ;;  %11747 = vst [vmem:[#allocation13_spill] sm:$0xff] %v8991_v56  ;;  %v1711_v13 = vrot.slane %v8976_v63, 1  ;;  %v9191_v48 = vld [vmem:[%s11712_s5 + $0x2c8] sm:$0xff] }
 0x277   :  { %1581 = vst [vmem:[#allocation3 + $0x160] sm:$0xfe] %v1548_v42  ;;  %1583 = vst [vmem:[#allocation3 + $0x170] sm:$0x1] %v1548_v42  ;;  %v1437_v47 = vmax.f32 %v7392_v43, 0.0  ;;  %v1628_v52 = vld [vmem:[#allocation3 + $0xe8] sm:$0xff]  ;;  %7207 = vmatprep.subr.bf16.mxu0 %v7206_v33 }
 0x278   :  { %1582 = vst [vmem:[#allocation3 + $0x168] sm:$0xfe] %v1549_v45  ;;  %1584 = vst [vmem:[#allocation3 + $0x178] sm:$0x1] %v1549_v45  ;;  %v1438_v7 = vmax.f32 %v7393_v46, 0.0  ;;  %v1384_v27 = vpop.f32.mrb[20].mxu0  ;;  %4220 = vmatprep.mubr.f32.mxu1 %v1628_v52  ;;  %4650 = vmatprep.mubr.f32.mxu0 %v1628_v52 }
 0x279   :  { %v1550_v39 = vrot.slane %v1437_v47, 7  ;;  %v7394_v11 = vadd.f32 %v1384_v27, %v8847_v34  ;;  %v1386_v15 = vpop.f32.mrb[21].mxu0  ;;  %4221 = vmatmul.mubr.f32.gmra.mrb[14].mxu1 %v1627_v10  ;;  %4651 = vmatmul.mubr.f32.gmra.mrb[44].mxu0 %v1627_v10  ;;  %v8995_v32 = vld [vmem:[#allocation3 + $0x18] sm:$0x3]  ;;  %v9003_v42 = vld [vmem:[#allocation3] sm:$0xfc] }
 0x27a   :  { %v1551_v40 = vrot.slane %v1438_v7, 7  ;;  %v7395_v18 = vadd.f32 %v1386_v15, %v8849_v57  ;;  %4225 = vmatprep.mubr.f32.mxu1 %v8582_v23  ;;  %7209 = vmatpush3.bf16.msra.mxu0 %v7208_v25  ;;  %v1949_v29 = vld [vmem:[#allocation3 + $0x100] sm:$0xff]  ;;  %11748 = vst [vmem:[#allocation14_spill] sm:$0xff] %v8995_v32  ;;  %11749 = vst [vmem:[#allocation15_spill] sm:$0xff] %v9003_v42  ;;  %v9006_v45 = vld [vmem:[#allocation3 + $0x28] sm:$0xfe] }
 0x27b   :  { %1585 = vst [vmem:[#allocation3 + $0x180] sm:$0xfe] %v1550_v39  ;;  %1587 = vst [vmem:[#allocation3 + $0x190] sm:$0x1] %v1550_v39  ;;  %v1439_v20 = vmax.f32 %v7394_v11, 0.0  ;;  %v1950_v21 = vld [vmem:[#allocation3 + $0x108] sm:$0xff]  ;;  %7211 = vmatprep.subr.bf16.mxu0 %v7210_v26 }
 0x27c   :  { %1586 = vst [vmem:[#allocation3 + $0x188] sm:$0xfe] %v1551_v40  ;;  %1588 = vst [vmem:[#allocation3 + $0x198] sm:$0x1] %v1551_v40  ;;  %v1440_v28 = vmax.f32 %v7395_v18, 0.0  ;;  %v1390_v49 = vpop.f32.mrb[22].mxu0  ;;  %4655 = vmatprep.mubr.f32.mxu0 %v1950_v21 }
 0x27d   :  { %v1552_v41 = vrot.slane %v1439_v20, 7  ;;  %v7396_v30 = vadd.f32 %v1390_v49, %v8847_v34  ;;  %v1392_v8 = vpop.f32.mrb[23].mxu0  ;;  %4226 = vmatmul.mubr.f32.gmra.mrb[16].mxu1 %v8582_v23  ;;  %4656 = vmatmul.mubr.f32.gmra.mrb[46].mxu0 %v1949_v29  ;;  %v1710_v23 = vrot.slane %v8974_v22, 1  ;;  %v9008_v46 = vld [vmem:[#allocation3 + $0x38] sm:$0x1]  ;;  %v9186_v16 = vld [vmem:[%s11712_s5 + $0x2c0] sm:$0xff] }
 0x27e   :  { %v1553_v54 = vrot.slane %v1440_v28, 7  ;;  %v7397_v12 = vadd.f32 %v1392_v8, %v8849_v57  ;;  %7213 = vmatpush3.bf16.msra.mxu0 %v7212_v19  ;;  %v2579_v0 = vld [vmem:[#allocation3 + $0x160] sm:$0xff]  ;;  %v9011_v26 = vld [vmem:[#allocation3 + $0x28] sm:$0xfc]  ;;  %v9015_v10 = vld [vmem:[#allocation3 + $0x30] sm:$0x1] }
 0x27f   :  { %1589 = vst [vmem:[#allocation3 + $0x1a0] sm:$0xfe] %v1552_v41  ;;  %1591 = vst [vmem:[#allocation3 + $0x1b0] sm:$0x1] %v1552_v41  ;;  %v1441_v61 = vmax.f32 %v7396_v30, 0.0  ;;  %v2580_v17 = vld [vmem:[#allocation3 + $0x168] sm:$0xff]  ;;  %7247 = vmatprep.subr.bf16.mxu0 %v7246_v24 }
 0x280   :  { %1590 = vst [vmem:[#allocation3 + $0x1a8] sm:$0xfe] %v1553_v54  ;;  %1592 = vst [vmem:[#allocation3 + $0x1b8] sm:$0x1] %v1553_v54  ;;  %v1442_v59 = vmax.f32 %v7397_v12, 0.0  ;;  %v1396_v50 = vpop.f32.mrb[24].mxu0  ;;  %4230 = vmatprep.mubr.f32.mxu1 %v2580_v17  ;;  %4660 = vmatprep.mubr.f32.mxu0 %v2580_v17 }
 0x281   :  { %v1554_v35 = vrot.slane %v1441_v61, 7  ;;  %v7398_v3 = vadd.f32 %v1396_v50, %v8847_v34  ;;  %v1398_v36 = vpop.f32.mrb[25].mxu0  ;;  %4231 = vmatmul.mubr.f32.gmra.mrb[18].mxu1 %v2579_v0  ;;  %4661 = vmatmul.mubr.f32.gmra.mrb[48].mxu0 %v2579_v0  ;;  %v9013_v58 = vld [vmem:[#allocation3 + $0x20] sm:$0xfe]  ;;  %v9021_v18 = vld [vmem:[#allocation3 + $0x38] sm:$0x3] }
 0x282   :  { %v1555_v43 = vrot.slane %v1442_v59, 7  ;;  %v7399_v44 = vadd.f32 %v1398_v36, %v8849_v57  ;;  %v2581_v27 = vld [vmem:[#allocation3 + $0x180] sm:$0xff]  ;;  %v9023_v19 = vld [vmem:[#allocation3 + $0x10] sm:$0x3]  ;;  %v9032_v8 = vld [vmem:[#allocation3 + $0x48] sm:$0xfe] }
 0x283   :  { %1593 = vst [vmem:[#allocation3 + $0x1c0] sm:$0xfe] %v1554_v35  ;;  %1595 = vst [vmem:[#allocation3 + $0x1d0] sm:$0x1] %v1554_v35  ;;  %v1443_v47 = vmax.f32 %v7398_v3, 0.0  ;;  %v2582_v52 = vld [vmem:[#allocation3 + $0x188] sm:$0xff] }
 0x284   :  { %1594 = vst [vmem:[#allocation3 + $0x1c8] sm:$0xfe] %v1555_v43  ;;  %1596 = vst [vmem:[#allocation3 + $0x1d8] sm:$0x1] %v1555_v43  ;;  %v1444_v6 = vmax.f32 %v7399_v44, 0.0  ;;  %v1402_v7 = vpop.f32.mrb[26].mxu0  ;;  %4235 = vmatprep.mubr.f32.mxu1 %v2582_v52  ;;  %4665 = vmatprep.mubr.f32.mxu0 %v2582_v52 }
 0x285   :  { %v1556_v62 = vrot.slane %v1443_v47, 7  ;;  %v7400_v39 = vadd.f32 %v1402_v7, %v8847_v34  ;;  %v1404_v11 = vpop.f32.mrb[27].mxu0  ;;  %4236 = vmatmul.mubr.f32.gmra.mrb[20].mxu1 %v2581_v27  ;;  %4666 = vmatmul.mubr.f32.gmra.mrb[50].mxu0 %v2581_v27  ;;  %11750 = vst [vmem:[#allocation16_spill] sm:$0xff] %v9023_v19  ;;  %v9028_v49 = vld [vmem:[#allocation3 + $0x20] sm:$0xfc]  ;;  %v9132_v52 = vld [vmem:[%s11712_s5 + $0x228] sm:$0xff] }
 0x286   :  { %v1557_v20 = vrot.slane %v1444_v6, 7  ;;  %v7401_v21 = vadd.f32 %v1404_v11, %v8849_v57  ;;  %v9030_v30 = vld [vmem:[#allocation3 + $0x30] sm:$0x3]  ;;  %v2583_v61 = vld [vmem:[#allocation3 + $0x1a0] sm:$0xff]  ;;  %v9035_v59 = vld [vmem:[#allocation3 + $0x58] sm:$0x1] }
 0x287   :  { %1597 = vst [vmem:[#allocation3 + $0x1e0] sm:$0xfe] %v1556_v62  ;;  %1599 = vst [vmem:[#allocation3 + $0x1f0] sm:$0x1] %v1556_v62  ;;  %v1445_v29 = vmax.f32 %v7400_v39, 0.0  ;;  %v2584_v41 = vld [vmem:[#allocation3 + $0x1a8] sm:$0xff] }
 0x288   :  { %1598 = vst [vmem:[#allocation3 + $0x1e8] sm:$0xfe] %v1557_v20  ;;  %1600 = vst [vmem:[#allocation3 + $0x1f8] sm:$0x1] %v1557_v20  ;;  %v1446_v54 = vmax.f32 %v7401_v21, 0.0  ;;  %v1408_v12 = vpop.f32.mrb[28].mxu0  ;;  %4240 = vmatprep.mubr.f32.mxu1 %v2584_v41  ;;  %4670 = vmatprep.mubr.f32.mxu0 %v2584_v41 }
 0x289   :  { %v1558_v50 = vrot.slane %v1445_v29, 7  ;;  %v7402_v0 = vadd.f32 %v1408_v12, %v8847_v34  ;;  %v1410_v35 = vpop.f32.mrb[29].mxu0  ;;  %4241 = vmatmul.mubr.f32.gmra.mrb[22].mxu1 %v2583_v61  ;;  %4671 = vmatmul.mubr.f32.gmra.mrb[52].mxu0 %v2583_v61  ;;  %v9040_v43 = vld [vmem:[#allocation3 + $0x48] sm:$0xfc]  ;;  %v9047_v11 = vld [vmem:[#allocation3 + $0x58] sm:$0x3] }
 0x28a   :  { %v1559_v44 = vrot.slane %v1446_v54, 7  ;;  %v7403_v47 = vadd.f32 %v1410_v35, %v8849_v57  ;;  %v2585_v29 = vld [vmem:[#allocation3 + $0x1c0] sm:$0xff]  ;;  %v9061_v38 = vld [vmem:[#allocation3 + $0x68] sm:$0xfe]  ;;  %v9084_v25 = vld [vmem:[#allocation3 + $0x70] sm:$0x1] }
 0x28b   :  { %1601 = vst [vmem:[#allocation3 + $0x200] sm:$0xfe] %v1558_v50  ;;  %1603 = vst [vmem:[#allocation3 + $0x210] sm:$0x1] %v1558_v50  ;;  %v1447_v7 = vmax.f32 %v7402_v0, 0.0  ;;  %v2586_v27 = vld [vmem:[#allocation3 + $0x1c8] sm:$0xff] }
 0x28c   :  { %1602 = vst [vmem:[#allocation3 + $0x208] sm:$0xfe] %v1559_v44  ;;  %1604 = vst [vmem:[#allocation3 + $0x218] sm:$0x1] %v1559_v44  ;;  %v1448_v20 = vmax.f32 %v7403_v47, 0.0  ;;  %v1414_v21 = vpop.f32.mrb[30].mxu0  ;;  %4245 = vmatprep.mubr.f32.mxu1 %v2586_v27  ;;  %4675 = vmatprep.mubr.f32.mxu0 %v2586_v27 }
 0x28d   :  { %v9050_v54 = vld [vmem:[#allocation3 + $0x40] sm:$0xfe]  ;;  %v1560_v12 = vrot.slane %v1447_v7, 7  ;;  %v7404_v61 = vadd.f32 %v1414_v21, %v8847_v34  ;;  %v1416_v50 = vpop.f32.mrb[31].mxu0  ;;  %4246 = vmatmul.mubr.f32.gmra.mrb[24].mxu1 %v2585_v29  ;;  %4676 = vmatmul.mubr.f32.gmra.mrb[54].mxu0 %v2585_v29  ;;  %v9053_v0 = vld [vmem:[#allocation3 + $0x50] sm:$0x1] }
 0x28e   :  { %v9055_v35 = vld [vmem:[#allocation3 + $0x40] sm:$0xfc]  ;;  %v1561_v44 = vrot.slane %v1448_v20, 7  ;;  %v7405_v47 = vadd.f32 %v1416_v50, %v8849_v57  ;;  %v9063_v21 = vld [vmem:[#allocation3 + $0x78] sm:$0x1]  ;;  %v9117_v27 = vld [vmem:[%s11712_s5 + $0x2a8] sm:$0xff] }
 0x28f   :  { %1605 = vst [vmem:[#allocation3 + $0x220] sm:$0xfe] %v1560_v12  ;;  %1607 = vst [vmem:[#allocation3 + $0x230] sm:$0x1] %v1560_v12  ;;  %v1449_v34 = vmax.f32 %v7404_v61, 0.0  ;;  %v2588_v7 = vld [vmem:[#allocation3 + $0x1e8] sm:$0xff] }
 0x290   :  { %v9065_v29 = vld [vmem:[#allocation3 + $0x68] sm:$0xfc]  ;;  %1606 = vst [vmem:[#allocation3 + $0x228] sm:$0xfe] %v1561_v44  ;;  %1608 = vst [vmem:[#allocation3 + $0x238] sm:$0x1] %v1561_v44  ;;  %4250 = vmatprep.mubr.f32.mxu1 %v2588_v7  ;;  %4680 = vmatprep.mubr.f32.mxu0 %v2588_v7 }
 0x291   :  { %v1450_v6 = vmax.f32 %v7405_v47, 0.0  ;;  %v2587_v57 = vld [vmem:[#allocation3 + $0x1e0] sm:$0xff]  ;;  %v9067_v20 = vld [vmem:[#allocation3 + $0x78] sm:$0x3]  ;;  %v1562_v60 = vrot.slane %v1449_v34, 7  ;;  %v9079_v61 = vld [vmem:[%s11712_s5 + $0x208] sm:$0xff] }
 0x292   :  { %v9069_v50 = vld [vmem:[#allocation3 + $0x60] sm:$0xfe]  ;;  %4251 = vmatmul.mubr.f32.gmra.mrb[26].mxu1 %v2587_v57  ;;  %4681 = vmatmul.mubr.f32.gmra.mrb[56].mxu0 %v2587_v57  ;;  %v9089_v57 = vld [vmem:[%s11712_s5 + $0x290] sm:$0xff]  ;;  %v9104_v7 = vld [vmem:[%s11712_s5 + $0x218] sm:$0xff]  ;;  %11754 = vst [vmem:[#allocation20_spill] sm:$0xff] %v9132_v52 }
 0x293   :  { %11751 = vst [vmem:[#allocation17_spill] sm:$0xff] %v9069_v50  ;;  %v9074_v12 = vld [vmem:[%s11712_s5 + $0x200] sm:$0xff]  ;;  %v1563_v34 = vrot.slane %v1450_v6, 7  ;;  %1609 = vst [vmem:[#allocation3 + $0x240] sm:$0xfe] %v1562_v60  ;;  %v2590_v62 = vld [vmem:[#allocation3 + $0x208] sm:$0xff] }
 0x294   :  { %v9112_v41 = vld [vmem:[%s11712_s5 + $0x2a0] sm:$0xff]  ;;  %1611 = vst [vmem:[#allocation3 + $0x250] sm:$0x1] %v1562_v60  ;;  %v9137_v60 = vld [vmem:[%s11712_s5 + $0x2b0] sm:$0xff]  ;;  %v9142_v47 = vld [vmem:[%s11712_s5 + $0x2b8] sm:$0xff]  ;;  %4255 = vmatprep.mubr.f32.mxu1 %v2590_v62  ;;  %4685 = vmatprep.mubr.f32.mxu0 %v2590_v62  ;;  %v1715_v62 = vsel %vm1709_vm5, %v1713_v4, %v1714_v14  ;;  %v11768_v50 = vrot.slane %v9006_v45, 1 }
 0x295   :  { %v9122_v39 = vld [vmem:[#allocation3 + $0x60] sm:$0xfc]  ;;  %11755 = vst [vmem:[#allocation21_spill] sm:$0xff] %v9137_v60  ;;  %11756 = vst [vmem:[#allocation22_spill] sm:$0xff] %v9142_v47  ;;  %v9147_v6 = vld [vmem:[%s11712_s5 + $0x230] sm:$0xff]  ;;  %v11770_v45 = vrot.slane %v9021_v18, 2 }
 0x296   :  { %11752 = vst [vmem:[#allocation18_spill] sm:$0xff] %v9122_v39  ;;  %v9127_v36 = vld [vmem:[%s11712_s5 + $0x220] sm:$0xff]  ;;  %11757 = vst [vmem:[#allocation23_spill] sm:$0xff] %v9147_v6  ;;  %v9152_v44 = vld [vmem:[%s11712_s5 + $0x238] sm:$0xff]  ;;  %v11767_v6 = vrot.slane %v9008_v46, 1  ;;  %v11771_v46 = vrot.slane %v9011_v26, 2 }
 0x297   :  { %11753 = vst [vmem:[#allocation19_spill] sm:$0xff] %v9127_v36  ;;  %11758 = vst [vmem:[#allocation24_spill] sm:$0xff] %v9152_v44  ;;  %v2589_v28 = vld [vmem:[#allocation3 + $0x200] sm:$0xff]  ;;  %v9155_v24 = vld [vmem:[#allocation3 + $0x70] sm:$0x3] }
 0x298   :  { %1610 = vst [vmem:[#allocation3 + $0x248] sm:$0xfe] %v1563_v34  ;;  %1612 = vst [vmem:[#allocation3 + $0x258] sm:$0x1] %v1563_v34  ;;  %v9157_v17 = vld [vmem:[#allocation3 + $0x88] sm:$0xfe]  ;;  %4256 = vmatmul.mubr.f32.gmra.mrb[28].mxu1 %v2589_v28  ;;  %4686 = vmatmul.mubr.f32.gmra.mrb[58].mxu0 %v2589_v28  ;;  %v1712_v34 = vsel %vm1709_vm5, %v1710_v23, %v1711_v13 }
 0x299   :  { %11759 = vst [vmem:[#allocation25_spill] sm:$0xff] %v9155_v24  ;;  %v9159_v15 = vld [vmem:[#allocation3 + $0x98] sm:$0x1]  ;;  %v9161_v40 = vld [vmem:[#allocation3 + $0x88] sm:$0xfc]  ;;  %v9207_v42 = vld [vmem:[%s11712_s5 + $0x240] sm:$0xff] }
 0x29a   :  { %v9163_v33 = vld [vmem:[#allocation3 + $0x98] sm:$0x3]  ;;  %v9177_v3 = vld [vmem:[#allocation3 + $0x80] sm:$0xfe]  ;;  %v2592_v22 = vld [vmem:[#allocation3 + $0x228] sm:$0xff] }
 0x29b   :  { %11760 = vst [vmem:[#allocation26_spill] sm:$0xff] %v9177_v3  ;;  %v9181_v2 = vld [vmem:[#allocation3 + $0x80] sm:$0xfc]  ;;  %v9200_v13 = vld [vmem:[#allocation3 + $0x90] sm:$0x3]  ;;  %v9212_v63 = vld [vmem:[%s11712_s5 + $0x248] sm:$0xff]  ;;  %4260 = vmatprep.mubr.f32.mxu1 %v2592_v22  ;;  %4690 = vmatprep.mubr.f32.mxu0 %v2592_v22 }
 0x29c   :  { %11761 = vst [vmem:[#allocation27_spill] sm:$0xff] %v9181_v2  ;;  %11762 = vst [vmem:[#allocation28_spill] sm:$0xff] %v9200_v13  ;;  %v9202_v28 = vld [vmem:[#allocation3 + $0xa8] sm:$0xfe]  ;;  %v9217_v14 = vld [vmem:[%s11712_s5 + $0x700] sm:$0xff]  ;;  %v11764_v3 = vrot.slane %v8983_v53, 1 }
 0x29d   :  { %v9222_v23 = vld [vmem:[%s11712_s5 + $0x708] sm:$0xff]  ;;  %v2591_v4 = vld [vmem:[#allocation3 + $0x220] sm:$0xff]  ;;  %v9227_v32 = vld [vmem:[#allocation3 + $0xb8] sm:$0x1] }
 0x29e   :  { %v9229_v9 = vld [vmem:[#allocation3 + $0xa8] sm:$0xfc]  ;;  %v9238_v22 = vld [vmem:[%s11712_s5 + $0x2d0] sm:$0xff]  ;;  %v9243_v19 = vld [vmem:[%s11712_s5 + $0x2d8] sm:$0xff]  ;;  %4261 = vmatmul.mubr.f32.gmra.mrb[30].mxu1 %v2591_v4  ;;  %4691 = vmatmul.mubr.f32.gmra.mrb[60].mxu0 %v2591_v4 }
 0x29f   :  { %11763 = vst [vmem:[#allocation29_spill] sm:$0xff] %v9229_v9  ;;  %v9248_v56 = vld [vmem:[%s11712_s5 + $0x250] sm:$0xff]  ;;  %v9259_v47 = vld [vmem:[#allocation3 + $0xb8] sm:$0x3]  ;;  %4330 = vmatprep.mubr.f32.mxu1 %v1715_v62  ;;  %v2912_v60 = vld [vmem:[#allocation3 + $0x248] sm:$0xff]  ;;  %v11765_v62 = vrot.slane %v8979_v5, 1  ;;  %v1721_v9 = vsel %vm1709_vm5, %v11768_v50, %v11767_v6  ;;  %v2180_v50 = vsel %vm1854_vm6, %v11771_v46, %v11770_v45 }
 0x2a0   :  { %v9268_v4 = vld [vmem:[%s11712_s5 + $0x790] sm:$0xff]  ;;  %v9273_v44 = vld [vmem:[%s11712_s5 + $0x798] sm:$0xff]  ;;  %v9278_v24 = vld [vmem:[#allocation3 + $0xa0] sm:$0xfe]  ;;  %4695 = vmatprep.mubr.f32.mxu0 %v2912_v60  ;;  %v7248_v60 = vpack.c.bf16 %v9222_v23, %v9217_v14  ;;  %v11772_v6 = vrot.slane %v9015_v10, 1  ;;  %v11778_v46 = vrot.slane %v9047_v11, 2 }
 0x2a1   :  { %v2911_v39 = vld [vmem:[#allocation3 + $0x240] sm:$0xff]  ;;  %v9283_v2 = vld [vmem:[#allocation3 + $0xb0] sm:$0x1]  ;;  %v9292_v36 = vsel %vm1709_vm5, %v11765_v62, %v11764_v3  ;;  %v9305_v5 = vld [vmem:[#allocation3 + $0xc8] sm:$0xfe] }
 0x2a2   :  { %v9285_v13 = vld [vmem:[#allocation3 + $0xa0] sm:$0xfc]  ;;  %11766 = vst [vmem:[#allocation30_spill] sm:$0xff] %v9292_v36  ;;  %4331 = vmatmul.mubr.f32.vlgmr.msra.gmra.mrb[32].mxu1 %v1712_v34  ;;  %4696 = vmatmul.mubr.f32.gmra.mrb[62].mxu0 %v2911_v39  ;;  %v9303_v53 = vld [vmem:[#allocation3 + $0xb0] sm:$0x3]  ;;  %v11769_v39 = vpack.c.bf16 %v9079_v61, %v9074_v12  ;;  %v11773_v34 = vrot.slane %v9013_v58, 1 }
 0x2a3   :  { %v9307_v3 = vld [vmem:[#allocation3 + $0xd8] sm:$0x1]  ;;  %4335 = vmatprep.mubr.f32.mxu1 %v1721_v9  ;;  %v9326_v62 = vld [vmem:[#allocation3 + $0xc8] sm:$0xfc]  ;;  %v9330_v52 = vld [vmem:[#allocation3 + $0xc0] sm:$0xfe]  ;;  %v7250_v9 = vpack.c.bf16 %v9273_v44, %v9268_v4  ;;  %4910 = vmatprep.mubr.f32.mxu0 %v2180_v50  ;;  %v11780_v50 = vpack.c.bf16 %v9094_v1, %v9089_v57  ;;  %v11781_v57 = vpack.c.bf16 %v9104_v7, %v9099_v37 }
 0x2a4   :  { %7089 = vmatpush3.bf16.msra.mxu1 %v11769_v39  ;;  %v1718_v23 = vsel %vm1709_vm5, %v11773_v34, %v11772_v6  ;;  %v9328_v14 = vld [vmem:[#allocation3 + $0xd8] sm:$0x3]  ;;  %v9337_v26 = vld [vmem:[%s11712_s5 + $0x710] sm:$0xff]  ;;  %v9347_v10 = vld [vmem:[%s11712_s5 + $0x7a0] sm:$0xff]  ;;  %v11774_v12 = vrot.slane %v9030_v30, 2  ;;  %v11775_v61 = vrot.slane %v9028_v49, 2 }
 0x2a5   :  { %v9342_v58 = vld [vmem:[%s11712_s5 + $0x718] sm:$0xff]  ;;  %v9352_v18 = vld [vmem:[%s11712_s5 + $0x7a8] sm:$0xff]  ;;  %v11776_v4 = vrot.slane %v9035_v59, 1  ;;  %v11777_v39 = vrot.slane %v9032_v8, 1  ;;  %v11779_v6 = vrot.slane %v9040_v43, 2  ;;  %7091 = vmatprep.subr.bf16.mxu1 %v11780_v50  ;;  %v11783_v37 = vrot.slane %v9050_v54, 1 }
 0x2a6   :  { %v2177_v44 = vsel %vm1854_vm6, %v11775_v61, %v11774_v12  ;;  %v9372_v30 = vld [vmem:[#allocation3 + $0xd0] sm:$0x1]  ;;  %v9374_v49 = vld [vmem:[#allocation3 + $0xc0] sm:$0xfc]  ;;  %v9390_v1 = vld [vmem:[%s11712_s5 + $0x728] sm:$0xff]  ;;  %4336 = vmatmul.mubr.f32.gmra.mrb[34].mxu1 %v1718_v23  ;;  %v11785_v23 = vrot.slane %v9055_v35, 2 }
 0x2a7   :  { %v1727_v45 = vsel %vm1709_vm5, %v11777_v39, %v11776_v4  ;;  %v2186_v34 = vsel %vm1854_vm6, %v11779_v6, %v11778_v46  ;;  %v9376_v12 = vld [vmem:[#allocation3 + $0xd0] sm:$0x3]  ;;  %v9385_v61 = vld [vmem:[%s11712_s5 + $0x720] sm:$0xff]  ;;  %4911 = vmatmul.mubr.f32.vlgmr.msra.gmra.mrb[64].mxu0 %v2177_v44  ;;  %v9404_v50 = vld [vmem:[%s11712_s5 + $0x7b8] sm:$0xff]  ;;  %v11782_v46 = vrot.slane %v9053_v0, 1  ;;  %v11788_v0 = vrot.slane %v9061_v38, 1 }
 0x2a8   :  { %v9399_v6 = vld [vmem:[%s11712_s5 + $0x7b0] sm:$0xff]  ;;  %4340 = vmatprep.mubr.f32.mxu1 %v1727_v45  ;;  %4915 = vmatprep.mubr.f32.mxu0 %v2186_v34  ;;  %v9413_v4 = vld [vmem:[#allocation3 + $0xe8] sm:$0xfe]  ;;  %v9415_v11 = vld [vmem:[#allocation3 + $0xf8] sm:$0x1]  ;;  %v7252_v45 = vpack.c.bf16 %v9342_v58, %v9337_v26  ;;  %v7254_v34 = vpack.c.bf16 %v9352_v18, %v9347_v10  ;;  %v11786_v26 = vpack.c.bf16 %v9117_v27, %v9112_v41  ;;  %v11789_v41 = vrot.slane %v9067_v20, 2 }
 0x2a9   :  { %7093 = vmatpush3.bf16.msra.mxu1 %v11781_v57  ;;  %v9417_v43 = vld [vmem:[#allocation3 + $0xe8] sm:$0xfc]  ;;  %7249 = vmatpush3.bf16.msra.mxu0 %v7248_v60  ;;  %v1724_v7 = vsel %vm1709_vm5, %v11783_v37, %v11782_v46  ;;  %v11784_v57 = vrot.slane %v9059_v51, 2  ;;  %v9438_v58 = vld [vmem:[#allocation3 + $0xf8] sm:$0x3]  ;;  %v11787_v51 = vrot.slane %v9063_v21, 1 }
 0x2aa   :  { %7095 = vmatprep.subr.bf16.mxu1 %v11786_v26  ;;  %v9440_v10 = vld [vmem:[#allocation3 + $0xe0] sm:$0xfe]  ;;  %v9442_v18 = vld [vmem:[#allocation3 + $0xf0] sm:$0x1]  ;;  %7251 = vmatprep.subr.bf16.mxu0 %v7250_v9  ;;  %v11790_v27 = vrot.slane %v9065_v29, 2  ;;  %v11792_v9 = vld [vmem:[#allocation17_spill] sm:$0xff] }
 0x2ab   :  { %v2183_v60 = vsel %vm1854_vm6, %v11785_v23, %v11784_v57  ;;  %4341 = vmatmul.mubr.f32.gmra.mrb[36].mxu1 %v1724_v7  ;;  %v1733_v35 = vsel %vm1709_vm5, %v11788_v0, %v11787_v51  ;;  %v11791_v23 = vrot.slane %v9084_v25, 1  ;;  %v11793_v37 = vrot.slane %v11792_v9, 1  ;;  %v9461_v7 = vld [vmem:[#allocation3 + $0xe0] sm:$0xfc]  ;;  %v9465_v21 = vld [vmem:[#allocation3 + $0x108] sm:$0xfc] }
 0x2ac   :  { %4916 = vmatmul.mubr.f32.gmra.mrb[66].mxu0 %v2183_v60  ;;  %v2192_v46 = vsel %vm1854_vm6, %v11790_v27, %v11789_v41  ;;  %v9463_v60 = vld [vmem:[#allocation3 + $0xf0] sm:$0x3]  ;;  %11794 = vst [vmem:[#allocation17_spill] sm:$0xff] %v9465_v21  ;;  %v9470_v38 = vld [vmem:[%s11712_s5 + $0x2e0] sm:$0xff]  ;;  %v9475_v29 = vld [vmem:[%s11712_s5 + $0x2e8] sm:$0xff]  ;;  %4345 = vmatprep.mubr.f32.mxu1 %v1733_v35  ;;  %v11800_v44 = vrot.slane %v9157_v17, 1 }
 0x2ad   :  { %v1730_v57 = vsel %vm1709_vm5, %v11793_v37, %v11791_v23  ;;  %v9480_v25 = vld [vmem:[%s11712_s5 + $0x260] sm:$0xff]  ;;  %v9485_v20 = vld [vmem:[%s11712_s5 + $0x268] sm:$0xff]  ;;  %v9490_v26 = vld [vmem:[%s11712_s5 + $0x730] sm:$0xff]  ;;  %4920 = vmatprep.mubr.f32.mxu0 %v2192_v46  ;;  %v11799_v37 = vrot.slane %v9159_v15, 1  ;;  %v11801_v59 = vrot.slane %v9163_v33, 2  ;;  %v11802_v54 = vrot.slane %v9161_v40, 2  ;;  %7253 = vmatpush3.bf16.msra.mxu0 %v7252_v45 }
 0x2ae   :  { %v9495_v51 = vld [vmem:[%s11712_s5 + $0x738] sm:$0xff]  ;;  %v11795_v0 = vld [vmem:[#allocation25_spill] sm:$0xff]  ;;  %v11797_v27 = vld [vmem:[#allocation18_spill] sm:$0xff]  ;;  %7255 = vmatprep.subr.bf16.mxu0 %v7254_v34 }
 0x2af   :  { %v11796_v41 = vrot.slane %v11795_v0, 2  ;;  %v11798_v23 = vrot.slane %v11797_v27, 2  ;;  %v1739_v8 = vsel %vm1709_vm5, %v11800_v44, %v11799_v37  ;;  %v2198_v39 = vsel %vm1854_vm6, %v11802_v54, %v11801_v59  ;;  %v9512_v35 = vld [vmem:[#allocation3 + $0x118] sm:$0x3]  ;;  %v9514_v46 = vld [vmem:[#allocation3 + $0x100] sm:$0xfc]  ;;  %4346 = vmatmul.mubr.f32.gmra.mrb[38].mxu1 %v1730_v57 }
 0x2b0   :  { %11803 = vst [vmem:[#allocation25_spill] sm:$0xff] %v9512_v35  ;;  %11804 = vst [vmem:[#allocation18_spill] sm:$0xff] %v9514_v46  ;;  %v9516_v0 = vld [vmem:[#allocation3 + $0x110] sm:$0x3]  ;;  %v9521_v15 = vld [vmem:[%s11712_s5 + $0x7c0] sm:$0xff]  ;;  %4350 = vmatprep.mubr.f32.mxu1 %v1739_v8  ;;  %v11815_v46 = vpack.c.bf16 %v9390_v1, %v9385_v61 }
 0x2b1   :  { %v2189_v9 = vsel %vm1854_vm6, %v11798_v23, %v11796_v41  ;;  %11805 = vst [vmem:[#allocation31_spill] sm:$0xff] %v9516_v0  ;;  %v9526_v17 = vld [vmem:[%s11712_s5 + $0x7c8] sm:$0xff]  ;;  %v11806_v33 = vld [vmem:[#allocation20_spill] sm:$0xff]  ;;  %v11807_v40 = vld [vmem:[#allocation19_spill] sm:$0xff] }
 0x2b2   :  { %v11808_v44 = vpack.c.bf16 %v11806_v33, %v11807_v40  ;;  %v9538_v23 = vld [vmem:[%s11712_s5 + $0x740] sm:$0xff]  ;;  %v9543_v37 = vld [vmem:[%s11712_s5 + $0x748] sm:$0xff]  ;;  %v11809_v33 = vld [vmem:[#allocation22_spill] sm:$0xff]  ;;  %4921 = vmatmul.mubr.f32.gmra.mrb[68].mxu0 %v2189_v9  ;;  %v7262_v9 = vpack.c.bf16 %v9526_v17, %v9521_v15  ;;  %v11824_v15 = vrot.slane %v9202_v28, 1 }
 0x2b3   :  { %v11810_v40 = vld [vmem:[#allocation21_spill] sm:$0xff]  ;;  %v9555_v54 = vld [vmem:[%s11712_s5 + $0x7d0] sm:$0xff]  ;;  %v9560_v36 = vld [vmem:[%s11712_s5 + $0x7d8] sm:$0xff]  ;;  %4925 = vmatprep.mubr.f32.mxu0 %v2198_v39  ;;  %7257 = vmatpush3.bf16.msra.mxu0 %v11815_v46  ;;  %v11823_v46 = vrot.slane %v9227_v32, 1 }
 0x2b4   :  { %7097 = vmatpush3.bf16.msra.mxu1 %v11808_v44  ;;  %v11811_v44 = vpack.c.bf16 %v11809_v33, %v11810_v40  ;;  %v9566_v45 = vld [vmem:[#allocation3 + $0x168] sm:$0xfe]  ;;  %v9568_v27 = vld [vmem:[#allocation3 + $0x178] sm:$0x1]  ;;  %v7260_v33 = vpack.c.bf16 %v9495_v51, %v9490_v26  ;;  %v9583_v39 = vld [vmem:[#allocation3 + $0x160] sm:$0xfe]  ;;  %v7264_v26 = vpack.c.bf16 %v9543_v37, %v9538_v23  ;;  %v11825_v51 = vpack.c.bf16 %v9191_v48, %v9186_v16 }
 0x2b5   :  { %v9570_v59 = vld [vmem:[#allocation3 + $0x168] sm:$0xfc]  ;;  %v11813_v40 = vld [vmem:[#allocation23_spill] sm:$0xff]  ;;  %v9585_v41 = vld [vmem:[#allocation3 + $0x170] sm:$0x1]  ;;  %v1745_v17 = vsel %vm1709_vm5, %v11824_v15, %v11823_v46  ;;  %v11827_v16 = vrot.slane %v9259_v47, 2 }
 0x2b6   :  { %7099 = vmatprep.subr.bf16.mxu1 %v11811_v44  ;;  %v11812_v44 = vld [vmem:[#allocation24_spill] sm:$0xff]  ;;  %v9581_v8 = vld [vmem:[#allocation3 + $0x178] sm:$0x3]  ;;  %v9626_v32 = vld [vmem:[%s11712_s5 + $0x2f0] sm:$0xff]  ;;  %v2682_v15 = vrot.slane %v9566_v45, 1  ;;  %v11847_v23 = vrot.slane %v9438_v58, 2 }
 0x2b7   :  { %v11814_v34 = vpack.c.bf16 %v11812_v44, %v11813_v40  ;;  %v11816_v40 = vrot.slane %v9179_v55, 1  ;;  %v11817_v44 = vld [vmem:[#allocation26_spill] sm:$0xff]  ;;  %v11819_v0 = vld [vmem:[#allocation28_spill] sm:$0xff]  ;;  %v11821_v35 = vld [vmem:[#allocation27_spill] sm:$0xff]  ;;  %v11848_v37 = vrot.slane %v9417_v43, 2 }
 0x2b8   :  { %v11820_v21 = vrot.slane %v11819_v0, 2  ;;  %v11822_v61 = vrot.slane %v11821_v35, 2  ;;  %v9614_v55 = vld [vmem:[#allocation3 + $0x160] sm:$0xfc]  ;;  %v11826_v35 = vpack.c.bf16 %v9404_v50, %v9399_v6  ;;  %v9631_v28 = vld [vmem:[%s11712_s5 + $0x2f8] sm:$0xff]  ;;  %v11828_v48 = vld [vmem:[#allocation29_spill] sm:$0xff] }
 0x2b9   :  { %7101 = vmatpush3.bf16.msra.mxu1 %v11814_v34  ;;  %v11818_v34 = vrot.slane %v11817_v44, 1  ;;  %v9616_v44 = vld [vmem:[#allocation3 + $0x170] sm:$0x3]  ;;  %v11830_v6 = vrot.slane %v9283_v2, 1  ;;  %v11831_v50 = vrot.slane %v9278_v24, 1  ;;  %v9662_v24 = vld [vmem:[%s11712_s5 + $0x278] sm:$0xff] }
 0x2ba   :  { %v2195_v1 = vsel %vm1854_vm6, %v11822_v61, %v11820_v21  ;;  %7103 = vmatprep.subr.bf16.mxu1 %v11825_v51  ;;  %7259 = vmatprep.subr.bf16.mxu0 %v11826_v35  ;;  %v11829_v21 = vrot.slane %v11828_v48, 2  ;;  %v11833_v61 = vrot.slane %v9285_v13, 2  ;;  %v9652_v47 = vld [vmem:[#allocation3 + $0x198] sm:$0x3]  ;;  %v9657_v2 = vld [vmem:[%s11712_s5 + $0x270] sm:$0xff]  ;;  %v2683_v35 = vrot.slane %v9568_v27, 1 }
 0x2bb   :  { %v1736_v57 = vsel %vm1709_vm5, %v11818_v34, %v11816_v40  ;;  %v9618_v40 = vld [vmem:[#allocation3 + $0x188] sm:$0xfe]  ;;  %4926 = vmatmul.mubr.f32.gmra.mrb[70].mxu0 %v2195_v1  ;;  %v1742_v51 = vsel %vm1709_vm5, %v11831_v50, %v11830_v6  ;;  %v11832_v34 = vrot.slane %v9303_v53, 2  ;;  %v9667_v13 = vld [vmem:[%s11712_s5 + $0x750] sm:$0xff]  ;;  %v9672_v53 = vld [vmem:[%s11712_s5 + $0x758] sm:$0xff] }
 0x2bc   :  { %4351 = vmatmul.mubr.f32.gmra.mrb[40].mxu1 %v1736_v57  ;;  %v2204_v0 = vsel %vm1854_vm6, %v11829_v21, %v11827_v16  ;;  %v9648_v57 = vld [vmem:[#allocation3 + $0x198] sm:$0x1]  ;;  %v9650_v1 = vld [vmem:[#allocation3 + $0x188] sm:$0xfc]  ;;  %v9681_v21 = vld [vmem:[%s11712_s5 + $0x7e0] sm:$0xff]  ;;  %7261 = vmatpush3.bf16.msra.mxu0 %v7260_v33  ;;  %v11835_v33 = vpack.c.bf16 %v9243_v19, %v9238_v22  ;;  %v11838_v22 = vrot.slane %v9328_v14, 2 }
 0x2bd   :  { %v2201_v46 = vsel %vm1854_vm6, %v11833_v61, %v11832_v34  ;;  %4355 = vmatprep.mubr.f32.mxu1 %v1745_v17  ;;  %4930 = vmatprep.mubr.f32.mxu0 %v2204_v0  ;;  %v9686_v6 = vld [vmem:[%s11712_s5 + $0x7e8] sm:$0xff]  ;;  %v11834_v17 = vpack.c.bf16 %v9212_v63, %v9207_v42  ;;  %v9698_v16 = vld [vmem:[%s11712_s5 + $0x760] sm:$0xff]  ;;  %v11837_v34 = vrot.slane %v9305_v5, 1  ;;  %v9734_v0 = vld [vmem:[#allocation3 + $0x190] sm:$0x1] }
 0x2be   :  { %v9703_v48 = vld [vmem:[%s11712_s5 + $0x768] sm:$0xff]  ;;  %7263 = vmatprep.subr.bf16.mxu0 %v7262_v9  ;;  %v9715_v61 = vld [vmem:[%s11712_s5 + $0x480] sm:$0xff]  ;;  %v11839_v9 = vrot.slane %v9326_v62, 2  ;;  %v9740_v5 = vld [vmem:[#allocation3 + $0x190] sm:$0x3]  ;;  %v7116_v62 = vpack.c.bf16 %v9662_v24, %v9657_v2 }
 0x2bf   :  { %7105 = vmatpush3.bf16.msra.mxu1 %v11834_v17  ;;  %v9720_v42 = vld [vmem:[%s11712_s5 + $0x488] sm:$0xff]  ;;  %4931 = vmatmul.mubr.f32.gmra.mrb[72].mxu0 %v2201_v46  ;;  %v11836_v17 = vrot.slane %v9307_v3, 1  ;;  %v9732_v63 = vld [vmem:[#allocation3 + $0x180] sm:$0xfe]  ;;  %v9744_v14 = vld [vmem:[#allocation3 + $0x1b8] sm:$0x1]  ;;  %v7268_v46 = vpack.c.bf16 %v9672_v53, %v9667_v13 }
 0x2c0   :  { %7107 = vmatprep.subr.bf16.mxu1 %v11835_v33  ;;  %4356 = vmatmul.mubr.f32.gmra.mrb[42].mxu1 %v1742_v51  ;;  %v2210_v33 = vsel %vm1854_vm6, %v11839_v9, %v11838_v22  ;;  %v9736_v50 = vld [vmem:[#allocation3 + $0x180] sm:$0xfc]  ;;  %v7114_v51 = vpack.c.bf16 %v9631_v28, %v9626_v32  ;;  %v9742_v3 = vld [vmem:[#allocation3 + $0x1a8] sm:$0xfe]  ;;  %v11841_v32 = vrot.slane %v9330_v52, 1  ;;  %v7150_v52 = vpack.c.bf16 %v9720_v42, %v9715_v61 }
 0x2c1   :  { %v1751_v19 = vsel %vm1709_vm5, %v11837_v34, %v11836_v17  ;;  %4935 = vmatprep.mubr.f32.mxu0 %v2210_v33  ;;  %v7270_v34 = vpack.c.bf16 %v9686_v6, %v9681_v21  ;;  %v11840_v17 = vrot.slane %v9372_v30, 1  ;;  %v9760_v22 = vld [vmem:[#allocation3 + $0x1a8] sm:$0xfc]  ;;  %v9762_v9 = vld [vmem:[#allocation3 + $0x1b8] sm:$0x3]  ;;  %7265 = vmatpush3.bf16.msra.mxu0 %v7264_v26  ;;  %v7272_v30 = vpack.c.bf16 %v9703_v48, %v9698_v16 }
 0x2c2   :  { %4360 = vmatprep.mubr.f32.mxu1 %v1751_v19  ;;  %v11842_v19 = vpack.c.bf16 %v9253_v31, %v9248_v56  ;;  %v9764_v33 = vld [vmem:[#allocation3 + $0x1a0] sm:$0xfe]  ;;  %v11843_v13 = vrot.slane %v9376_v12, 2  ;;  %v11844_v31 = vrot.slane %v9374_v49, 2  ;;  %v11845_v53 = vrot.slane %v9415_v11, 1 }
 0x2c3   :  { %v1748_v28 = vsel %vm1709_vm5, %v11841_v32, %v11840_v17  ;;  %v11846_v21 = vrot.slane %v9413_v4, 1  ;;  %v2216_v26 = vsel %vm1854_vm6, %v11848_v37, %v11847_v23  ;;  %v9788_v16 = vld [vmem:[#allocation3 + $0x1b0] sm:$0x1]  ;;  %v9790_v48 = vld [vmem:[#allocation3 + $0x1a0] sm:$0xfc]  ;;  %v11849_v49 = vpack.c.bf16 %v9475_v29, %v9470_v38  ;;  %v4081_v38 = vld [vmem:[%s11712_s5 + $0x7f8] sm:$0xff] }
 0x2c4   :  { %7109 = vmatpush3.bf16.msra.mxu1 %v11842_v19  ;;  %v2207_v56 = vsel %vm1854_vm6, %v11844_v31, %v11843_v13  ;;  %v9792_v12 = vld [vmem:[#allocation3 + $0x1b0] sm:$0x3]  ;;  %v11850_v11 = vpack.c.bf16 %v9560_v36, %v9555_v54  ;;  %v2685_v43 = vrot.slane %v9732_v63, 1  ;;  %v2686_v4 = vrot.slane %v9734_v0, 1 }
 0x2c5   :  { %v1757_v6 = vsel %vm1709_vm5, %v11846_v21, %v11845_v53  ;;  %7111 = vmatprep.subr.bf16.mxu1 %v11849_v49  ;;  %4361 = vmatmul.mubr.f32.gmra.mrb[44].mxu1 %v1748_v28  ;;  %v3143_v58 = vrot.slane %v9736_v50, 2  ;;  %v3144_v17 = vrot.slane %v9740_v5, 2  ;;  %v4080_v32 = vld [vmem:[%s11712_s5 + $0x7f0] sm:$0xff]  ;;  %v2694_v36 = vrot.slane %v9742_v3, 1 }
 0x2c6   :  { %7267 = vmatprep.subr.bf16.mxu0 %v11850_v11  ;;  %4936 = vmatmul.mubr.f32.gmra.mrb[74].mxu0 %v2207_v56  ;;  %v2695_v29 = vrot.slane %v9744_v14, 1  ;;  %v3153_v28 = vrot.slane %v9762_v9, 2  ;;  %v11851_v53 = vpack.c.bf16 %v9485_v20, %v9480_v25  ;;  %v4064_v21 = vld [vmem:[%s11712_s5 + $0x770] sm:$0xff]  ;;  %v11852_v23 = vrot.slane %v9442_v18, 1  ;;  %v9839_v11 = vld [vmem:[#allocation3 + $0x1d8] sm:$0x1] }
 0x2c7   :  { %4365 = vmatprep.mubr.f32.mxu1 %v1757_v6  ;;  %4940 = vmatprep.mubr.f32.mxu0 %v2216_v26  ;;  %v4065_v6 = vld [vmem:[%s11712_s5 + $0x778] sm:$0xff]  ;;  %v11853_v37 = vrot.slane %v9440_v10, 1  ;;  %v11854_v49 = vrot.slane %v9463_v60, 2  ;;  %v11855_v25 = vrot.slane %v9461_v7, 2  ;;  %v7274_v31 = vpack.c.bf16 %v4081_v38, %v4080_v32  ;;  %v11856_v10 = vld [vmem:[#allocation25_spill] sm:$0xff]  ;;  %v11860_v56 = vld [vmem:[#allocation30_spill] sm:$0xff] }
 0x2c8   :  { %7113 = vmatpush3.bf16.msra.mxu1 %v11851_v53  ;;  %7269 = vmatpush3.bf16.msra.mxu0 %v7268_v46  ;;  %v9837_v46 = vld [vmem:[#allocation3 + $0x1c8] sm:$0xfe]  ;;  %v11857_v18 = vrot.slane %v11856_v10, 2  ;;  %v9848_v7 = vld [vmem:[#allocation3 + $0x1d8] sm:$0x3]  ;;  %v11867_v13 = vld [vmem:[#allocation18_spill] sm:$0xff] }
 0x2c9   :  { %v1754_v26 = vsel %vm1709_vm5, %v11853_v37, %v11852_v23  ;;  %v2213_v20 = vsel %vm1854_vm6, %v11855_v25, %v11854_v49  ;;  %v9841_v53 = vld [vmem:[#allocation3 + $0x1c8] sm:$0xfc]  ;;  %7115 = vmatprep.subr.bf16.mxu1 %v7114_v51  ;;  %7271 = vmatprep.subr.bf16.mxu0 %v7270_v34  ;;  %v9850_v49 = vld [vmem:[#allocation3 + $0x1c0] sm:$0xfe]  ;;  %v9852_v25 = vld [vmem:[#allocation3 + $0x1d0] sm:$0x1] }
 0x2ca   :  { %4366 = vmatmul.mubr.f32.gmra.mrb[46].mxu1 %v1754_v26  ;;  %4941 = vmatmul.mubr.f32.gmra.mrb[76].mxu0 %v2213_v20  ;;  %v11858_v23 = vld [vmem:[#allocation17_spill] sm:$0xff]  ;;  %v11861_v51 = vld [vmem:[#allocation12_spill] sm:$0xff]  ;;  %v11863_v32 = vld [vmem:[#allocation11_spill] sm:$0xff]  ;;  %v11868_v54 = vrot.slane %v11867_v13, 2  ;;  %v2700_v27 = vrot.slane %v9837_v46, 1  ;;  %v2701_v45 = vrot.slane %v9839_v11, 1 }
 0x2cb   :  { %v11859_v37 = vrot.slane %v11858_v23, 2  ;;  %4370 = vmatprep.mubr.f32.mxu1 %v11860_v56  ;;  %v11862_v34 = vrot.slane %v11861_v51, 1  ;;  %v11864_v38 = vrot.slane %v11863_v32, 1  ;;  %v9860_v20 = vld [vmem:[#allocation3 + $0x1c0] sm:$0xfc]  ;;  %v7276_v23 = vpack.c.bf16 %v4065_v6, %v4064_v21 }
 0x2cc   :  { %v9862_v10 = vld [vmem:[#allocation3 + $0x1d0] sm:$0x3]  ;;  %v2684_v56 = vsel %vm1709_vm5, %v2682_v15, %v2683_v35  ;;  %v11869_v51 = vrot.slane %v9581_v8, 2  ;;  %v9883_v21 = vld [vmem:[#allocation3 + $0x1e8] sm:$0xfc]  ;;  %7117 = vmatpush3.bf16.msra.mxu1 %v7116_v62  ;;  %7273 = vmatpush3.bf16.msra.mxu0 %v7272_v30  ;;  %v3158_v8 = vrot.slane %v9841_v53, 2 }
 0x2cd   :  { %v2222_v60 = vsel %vm1854_vm6, %v11859_v37, %v11857_v18  ;;  %v2675_v26 = vsel %vm1709_vm5, %v11864_v38, %v11862_v34  ;;  %v9864_v18 = vld [vmem:[#allocation3 + $0x1e8] sm:$0xfe]  ;;  %v11865_v37 = vld [vmem:[#allocation31_spill] sm:$0xff]  ;;  %v11870_v34 = vrot.slane %v9570_v59, 2  ;;  %v3159_v59 = vrot.slane %v9848_v7, 2  ;;  %7151 = vmatprep.subr.bf16.mxu1 %v7150_v52  ;;  %7275 = vmatprep.subr.bf16.mxu0 %v7274_v31 }
 0x2ce   :  { %4945 = vmatprep.mubr.f32.mxu0 %v2222_v60  ;;  %v11866_v19 = vrot.slane %v11865_v37, 2  ;;  %v9881_v38 = vld [vmem:[#allocation3 + $0x1f8] sm:$0x1]  ;;  %4371 = vmatmul.mubr.f32.gmra.mrb[48].mxu1 %v2675_v26  ;;  %v2697_v15 = vrot.slane %v9850_v49, 1  ;;  %v2698_v2 = vrot.slane %v9852_v25, 1  ;;  %v3155_v24 = vrot.slane %v9860_v20, 2 }
 0x2cf   :  { %v3142_v32 = vsel %vm1854_vm6, %v11870_v34, %v11869_v51  ;;  %v9885_v6 = vld [vmem:[#allocation3 + $0x1f8] sm:$0x3]  ;;  %v3156_v35 = vrot.slane %v9862_v10, 2  ;;  %4375 = vmatprep.mubr.f32.mxu1 %v2684_v56  ;;  %v2706_v62 = vrot.slane %v9864_v18, 1  ;;  %v2707_v30 = vrot.slane %v9881_v38, 1 }
 0x2d0   :  { %v2219_v60 = vsel %vm1854_vm6, %v11868_v54, %v11866_v19  ;;  %v3164_v61 = vrot.slane %v9883_v21, 2  ;;  %v3165_v42 = vrot.slane %v9885_v6, 2  ;;  %v9905_v52 = vld [vmem:[#allocation3 + $0x1e0] sm:$0xfe]  ;;  %v9907_v54 = vld [vmem:[#allocation3 + $0x1f0] sm:$0x1]  ;;  %7277 = vmatpush3.bf16.msra.mxu0 %v7276_v23 }
 0x2d1   :  { %4946 = vmatmul.mubr.f32.gmra.mrb[78].mxu0 %v2219_v60  ;;  %v9909_v19 = vld [vmem:[#allocation3 + $0x1e0] sm:$0xfc]  ;;  %v11871_v13 = vrot.slane %v9585_v41, 1  ;;  %v11872_v31 = vrot.slane %v9583_v39, 1  ;;  %v11873_v37 = vrot.slane %v9616_v44, 2  ;;  %v11874_v60 = vrot.slane %v9614_v55, 2 }
 0x2d2   :  { %4950 = vmatprep.mubr.f32.mxu0 %v3142_v32  ;;  %v9921_v51 = vld [vmem:[#allocation3 + $0x1f0] sm:$0x3]  ;;  %v9923_v34 = vld [vmem:[#allocation3 + $0x208] sm:$0xfe]  ;;  %v9925_v32 = vld [vmem:[#allocation3 + $0x218] sm:$0x1] }
 0x2d3   :  { %v2681_v26 = vsel %vm1709_vm5, %v11872_v31, %v11871_v13  ;;  %v3139_v56 = vsel %vm1854_vm6, %v11874_v60, %v11873_v37  ;;  %v11875_v41 = vrot.slane %v9648_v57, 1  ;;  %v11876_v39 = vrot.slane %v9618_v40, 1  ;;  %v9944_v37 = vld [vmem:[#allocation3 + $0x218] sm:$0x3]  ;;  %v9946_v57 = vld [vmem:[#allocation3 + $0x200] sm:$0xfe] }
 0x2d4   :  { %4376 = vmatmul.mubr.f32.gmra.mrb[50].mxu1 %v2681_v26  ;;  %v11877_v44 = vrot.slane %v9652_v47, 2  ;;  %v11878_v55 = vrot.slane %v9650_v1, 2  ;;  %v2687_v31 = vsel %vm1709_vm5, %v2685_v43, %v2686_v4  ;;  %v9942_v26 = vld [vmem:[#allocation3 + $0x208] sm:$0xfc]  ;;  %v3145_v40 = vsel %vm1854_vm6, %v3143_v58, %v3144_v17  ;;  %v9963_v63 = vld [vmem:[#allocation3 + $0x210] sm:$0x1] }
 0x2d5   :  { %4951 = vmatmul.mubr.f32.gmra.mrb[80].mxu0 %v3139_v56  ;;  %v2690_v23 = vsel %vm1709_vm5, %v11876_v39, %v11875_v41  ;;  %v2696_v1 = vsel %vm1709_vm5, %v2694_v36, %v2695_v29  ;;  %v11879_v47 = vrot.slane %v9760_v22, 2  ;;  %v9965_v43 = vld [vmem:[#allocation3 + $0x200] sm:$0xfc]  ;;  %v9967_v5 = vld [vmem:[#allocation3 + $0x210] sm:$0x3]  ;;  %v2703_v50 = vrot.slane %v9905_v52, 1 }
 0x2d6   :  { %v3148_v13 = vsel %vm1854_vm6, %v11878_v55, %v11877_v44  ;;  %4380 = vmatprep.mubr.f32.mxu1 %v2690_v23  ;;  %v2704_v14 = vrot.slane %v9907_v54, 1  ;;  %v3161_v3 = vrot.slane %v9909_v19, 2  ;;  %v3162_v4 = vrot.slane %v9921_v51, 2  ;;  %v9981_v56 = vld [vmem:[#allocation3 + $0x228] sm:$0xfe] }
 0x2d7   :  { %4955 = vmatprep.mubr.f32.mxu0 %v3148_v13  ;;  %v3154_v0 = vsel %vm1854_vm6, %v11879_v47, %v3153_v28  ;;  %v2712_v9 = vrot.slane %v9923_v34, 1  ;;  %v2713_v22 = vrot.slane %v9925_v32, 1  ;;  %v3170_v58 = vrot.slane %v9942_v26, 2  ;;  %v9983_v41 = vld [vmem:[#allocation3 + $0x238] sm:$0x1] }
 0x2d8   :  { %v3171_v17 = vrot.slane %v9944_v37, 2  ;;  %4381 = vmatmul.mubr.f32.gmra.mrb[52].mxu1 %v2687_v31  ;;  %v2709_v36 = vrot.slane %v9946_v57, 1  ;;  %v2710_v29 = vrot.slane %v9963_v63, 1  ;;  %v9985_v39 = vld [vmem:[#allocation3 + $0x228] sm:$0xfc]  ;;  %v11880_v13 = vrot.slane %v9788_v16, 1 }
 0x2d9   :  { %4956 = vmatmul.mubr.f32.gmra.mrb[82].mxu0 %v3145_v40  ;;  %4385 = vmatprep.mubr.f32.mxu1 %v2696_v1  ;;  %v9987_v23 = vld [vmem:[#allocation3 + $0x238] sm:$0x3]  ;;  %v9989_v44 = vld [vmem:[#allocation3 + $0x220] sm:$0xfe]  ;;  %v9991_v55 = vld [vmem:[#allocation3 + $0x230] sm:$0x1] }
 0x2da   :  { %4960 = vmatprep.mubr.f32.mxu0 %v3154_v0  ;;  %v11881_v31 = vrot.slane %v9764_v33, 1  ;;  %v11882_v40 = vrot.slane %v9792_v12, 2  ;;  %v11883_v1 = vrot.slane %v9790_v48, 2  ;;  %v2702_v0 = vsel %vm1709_vm5, %v2700_v27, %v2701_v45  ;;  %v10008_v28 = vld [vmem:[#allocation3 + $0x220] sm:$0xfc] }
 0x2db   :  { %v10010_v60 = vld [vmem:[#allocation3 + $0x230] sm:$0x3]  ;;  %v10012_v16 = vld [vmem:[#allocation3 + $0x248] sm:$0xfc]  ;;  %v3160_v33 = vsel %vm1854_vm6, %v3158_v8, %v3159_v59  ;;  %v2699_v48 = vsel %vm1709_vm5, %v2697_v15, %v2698_v2  ;;  %v3157_v12 = vsel %vm1854_vm6, %v3155_v24, %v3156_v35  ;;  %v10029_v46 = vld [vmem:[#allocation3 + $0x258] sm:$0x3]  ;;  %v2708_v35 = vsel %vm1709_vm5, %v2706_v62, %v2707_v30 }
 0x2dc   :  { %v2693_v37 = vsel %vm1709_vm5, %v11881_v31, %v11880_v13  ;;  %v3151_v47 = vsel %vm1854_vm6, %v11883_v1, %v11882_v40  ;;  %v10031_v11 = vld [vmem:[#allocation3 + $0x240] sm:$0xfc]  ;;  %v10033_v7 = vld [vmem:[#allocation3 + $0x250] sm:$0x3]  ;;  %v2718_v53 = vrot.slane %v9981_v56, 1  ;;  %v2719_v49 = vrot.slane %v9983_v41, 1 }
 0x2dd   :  { %4386 = vmatmul.mubr.f32.gmra.mrb[54].mxu1 %v2693_v37  ;;  %4961 = vmatmul.mubr.f32.gmra.mrb[84].mxu0 %v3151_v47  ;;  %v3176_v25 = vrot.slane %v9985_v39, 2  ;;  %v3177_v10 = vrot.slane %v9987_v23, 2  ;;  %v2715_v20 = vrot.slane %v9989_v44, 1  ;;  %v2716_v27 = vrot.slane %v9991_v55, 1  ;;  %v10057_v41 = vld [vmem:[#allocation3 + $0x28] sm:$0xfc] }
 0x2de   :  { %4390 = vmatprep.mubr.f32.mxu1 %v2702_v0  ;;  %4965 = vmatprep.mubr.f32.mxu0 %v3160_v33  ;;  %v3173_v45 = vrot.slane %v10008_v28, 2  ;;  %v3174_v8 = vrot.slane %v10010_v60, 2  ;;  %v3182_v59 = vrot.slane %v10012_v16, 2  ;;  %v3183_v15 = vrot.slane %v10029_v46, 2  ;;  %v10059_v39 = vld [vmem:[#allocation3 + $0x38] sm:$0x3] }
 0x2df   :  { %v3179_v2 = vrot.slane %v10031_v11, 2  ;;  %v3180_v24 = vrot.slane %v10033_v7, 2  ;;  %v3166_v56 = vsel %vm1854_vm6, %v3164_v61, %v3165_v42  ;;  %v10061_v23 = vld [vmem:[#allocation3 + $0x48] sm:$0xfe]  ;;  %v10063_v13 = vld [vmem:[#allocation3 + $0x58] sm:$0x1]  ;;  %v2705_v30 = vsel %vm1709_vm5, %v2703_v50, %v2704_v14 }
 0x2e0   :  { %v10065_v38 = vld [vmem:[#allocation3 + $0x20] sm:$0xfc]  ;;  %v10067_v18 = vld [vmem:[#allocation3 + $0x30] sm:$0x3]  ;;  %v10073_v21 = vld [vmem:[#allocation3 + $0x48] sm:$0xfc]  ;;  %v3163_v61 = vsel %vm1854_vm6, %v3161_v3, %v3162_v4  ;;  %v2714_v42 = vsel %vm1709_vm5, %v2712_v9, %v2713_v22  ;;  %v3172_v54 = vsel %vm1854_vm6, %v3170_v58, %v3171_v17  ;;  %v2711_v1 = vsel %vm1709_vm5, %v2709_v36, %v2710_v29 }
 0x2e1   :  { %4391 = vmatmul.mubr.f32.gmra.mrb[56].mxu1 %v2699_v48  ;;  %4966 = vmatmul.mubr.f32.gmra.mrb[86].mxu0 %v3157_v12  ;;  %v10069_v62 = vld [vmem:[#allocation3 + $0x40] sm:$0xfe]  ;;  %v10071_v6 = vld [vmem:[#allocation3 + $0x50] sm:$0x1]  ;;  %v10093_v31 = vld [vmem:[#allocation3 + $0x58] sm:$0x3]  ;;  %v2720_v63 = vsel %vm1709_vm5, %v2718_v53, %v2719_v49  ;;  %v3178_v57 = vsel %vm1854_vm6, %v3176_v25, %v3177_v10 }
 0x2e2   :  { %4395 = vmatprep.mubr.f32.mxu1 %v2708_v35  ;;  %4970 = vmatprep.mubr.f32.mxu0 %v3166_v56  ;;  %v10095_v52 = vld [vmem:[#allocation3 + $0x68] sm:$0xfe]  ;;  %v10097_v50 = vld [vmem:[#allocation3 + $0x78] sm:$0x1]  ;;  %v1864_v19 = vrot.slane %v10057_v41, 2  ;;  %v1865_v51 = vrot.slane %v10059_v39, 2 }
 0x2e3   :  { %v2355_v34 = vrot.slane %v10061_v23, 1  ;;  %v2356_v32 = vrot.slane %v10063_v13, 1  ;;  %v1861_v26 = vrot.slane %v10065_v38, 2  ;;  %v1862_v14 = vrot.slane %v10067_v18, 2  ;;  %v10110_v9 = vld [vmem:[%s11712_s5 + $0x400] sm:$0xff]  ;;  %v10115_v22 = vld [vmem:[%s11712_s5 + $0x408] sm:$0xff] }
 0x2e4   :  { %v2352_v3 = vrot.slane %v10069_v62, 1  ;;  %v2353_v4 = vrot.slane %v10071_v6, 1  ;;  %v1870_v58 = vrot.slane %v10073_v21, 2  ;;  %v1871_v17 = vrot.slane %v10093_v31, 2  ;;  %v10131_v48 = vld [vmem:[#allocation3 + $0x40] sm:$0xfc] }
 0x2e5   :  { %4396 = vmatmul.mubr.f32.gmra.mrb[58].mxu1 %v2705_v30  ;;  %4971 = vmatmul.mubr.f32.gmra.mrb[88].mxu0 %v3163_v61  ;;  %v2361_v37 = vrot.slane %v10095_v52, 1  ;;  %v2362_v40 = vrot.slane %v10097_v50, 1  ;;  %v11884_v47 = vrot.slane %v9967_v5, 2  ;;  %v11885_v0 = vrot.slane %v9965_v43, 2  ;;  %v10133_v12 = vld [vmem:[#allocation3 + $0x50] sm:$0x3] }
 0x2e6   :  { %4400 = vmatprep.mubr.f32.mxu1 %v2714_v42  ;;  %4975 = vmatprep.mubr.f32.mxu0 %v3172_v54  ;;  %v10135_v35 = vld [vmem:[#allocation3 + $0x60] sm:$0xfe]  ;;  %v10139_v56 = vld [vmem:[#allocation3 + $0x70] sm:$0x1]  ;;  %v10141_v36 = vld [vmem:[#allocation3 + $0x68] sm:$0xfc]  ;;  %v7152_v54 = vpack.c.bf16 %v10115_v22, %v10110_v9  ;;  %v2717_v9 = vsel %vm1709_vm5, %v2715_v20, %v2716_v27  ;;  %v3175_v22 = vsel %vm1854_vm6, %v3173_v45, %v3174_v8 }
 0x2e7   :  { %v3169_v33 = vsel %vm1854_vm6, %v11885_v0, %v11884_v47  ;;  %v10143_v5 = vld [vmem:[#allocation3 + $0x78] sm:$0x3]  ;;  %v11886_v43 = vld [vmem:[#allocation14_spill] sm:$0xff]  ;;  %v11888_v30 = vld [vmem:[#allocation13_spill] sm:$0xff]  ;;  %v3184_v47 = vsel %vm1854_vm6, %v3182_v59, %v3183_v15  ;;  %v1867_v28 = vrot.slane %v10131_v48, 2  ;;  %v1868_v46 = vrot.slane %v10133_v12, 2 }
 0x2e8   :  { %v11887_v29 = vrot.slane %v11886_v43, 2  ;;  %v11889_v61 = vrot.slane %v11888_v30, 2  ;;  %v3972_v53 = vld [vmem:[%s11712_s5 + $0x490] sm:$0xff]  ;;  %v3973_v49 = vld [vmem:[%s11712_s5 + $0x498] sm:$0xff]  ;;  %v10158_v25 = vld [vmem:[#allocation3 + $0x88] sm:$0xfe]  ;;  %v1866_v11 = vsel %vm1854_vm6, %v1864_v19, %v1865_v51  ;;  %v2357_v7 = vsel %vm1709_vm5, %v2355_v34, %v2356_v32 }
 0x2e9   :  { %4401 = vmatmul.mubr.f32.gmra.mrb[60].mxu1 %v2711_v1  ;;  %4976 = vmatmul.mubr.f32.gmra.mrb[90].mxu0 %v3169_v33  ;;  %v10160_v10 = vld [vmem:[#allocation3 + $0x98] sm:$0x1]  ;;  %v10162_v1 = vld [vmem:[#allocation3 + $0x60] sm:$0xfc]  ;;  %v10188_v60 = vld [vmem:[#allocation3 + $0x90] sm:$0x1]  ;;  %v2354_v41 = vsel %vm1709_vm5, %v2352_v3, %v2353_v4  ;;  %v1872_v23 = vsel %vm1854_vm6, %v1870_v58, %v1871_v17  ;;  %v2363_v13 = vsel %vm1709_vm5, %v2361_v37, %v2362_v40 }
 0x2ea   :  { %4405 = vmatprep.mubr.f32.mxu1 %v2720_v63  ;;  %4980 = vmatprep.mubr.f32.mxu0 %v3178_v57  ;;  %v1860_v42 = vsel %vm1854_vm6, %v11889_v61, %v11887_v29  ;;  %v11890_v0 = vld [vmem:[#allocation16_spill] sm:$0xff]  ;;  %v11892_v63 = vld [vmem:[#allocation15_spill] sm:$0xff]  ;;  %v10184_v57 = vld [vmem:[#allocation3 + $0x70] sm:$0x3]  ;;  %v2358_v45 = vrot.slane %v10135_v35, 1  ;;  %v2359_v8 = vrot.slane %v10139_v56, 1 }
 0x2eb   :  { %v11891_v33 = vrot.slane %v11890_v0, 2  ;;  %v11893_v55 = vrot.slane %v11892_v63, 2  ;;  %v10186_v20 = vld [vmem:[#allocation3 + $0x80] sm:$0xfe]  ;;  %v10195_v16 = vld [vmem:[%s11712_s5 + $0x410] sm:$0xff]  ;;  %v10200_v27 = vld [vmem:[%s11712_s5 + $0x418] sm:$0xff]  ;;  %v7154_v63 = vpack.c.bf16 %v3973_v49, %v3972_v53 }
 0x2ec   :  { %v1876_v59 = vrot.slane %v10141_v36, 2  ;;  %v1877_v15 = vrot.slane %v10143_v5, 2  ;;  %v10211_v30 = vld [vmem:[%s11712_s5 + $0x4a0] sm:$0xff]  ;;  %v10216_v61 = vld [vmem:[%s11712_s5 + $0x4a8] sm:$0xff]  ;;  %v10224_v43 = vld [vmem:[#allocation3 + $0x98] sm:$0x3] }
 0x2ed   :  { %v1857_v44 = vsel %vm1854_vm6, %v11893_v55, %v11891_v33  ;;  %4406 = vmatmul.mubr.f32.gmra.mrb[62].mxu1 %v2717_v9  ;;  %4981 = vmatmul.mubr.f32.gmra.mrb[92].mxu0 %v3175_v22  ;;  %v1874_v22 = vrot.slane %v10184_v57, 2  ;;  %v2365_v33 = vrot.slane %v10188_v60, 1  ;;  %v10222_v55 = vld [vmem:[#allocation3 + $0x88] sm:$0xfc]  ;;  %v10235_v9 = vld [vmem:[#allocation3 + $0xb8] sm:$0x1]  ;;  %v7158_v53 = vpack.c.bf16 %v10216_v61, %v10211_v30 }
 0x2ee   :  { %4985 = vmatprep.mubr.f32.mxu0 %v3184_v47  ;;  %4475 = vmatprep.mubr.f32.mxu1 %v1860_v42  ;;  %v10226_v29 = vld [vmem:[#allocation3 + $0xa8] sm:$0xfe]  ;;  %v3181_v42 = vsel %vm1854_vm6, %v3179_v2, %v3180_v24  ;;  %v7156_v47 = vpack.c.bf16 %v10200_v27, %v10195_v16  ;;  %v10239_v49 = vld [vmem:[#allocation3 + $0x80] sm:$0xfc]  ;;  %v10241_v0 = vld [vmem:[#allocation3 + $0x90] sm:$0x3]  ;;  %v1863_v2 = vsel %vm1854_vm6, %v1861_v26, %v1862_v14 }
 0x2ef   :  { %v10258_v24 = vld [vmem:[#allocation3 + $0xa0] sm:$0xfe]  ;;  %v10262_v39 = vld [vmem:[#allocation3 + $0xa8] sm:$0xfc]  ;;  %v10287_v62 = vld [vmem:[#allocation3 + $0xb8] sm:$0x3] }
 0x2f0   :  { %v10282_v38 = vld [vmem:[%s11712_s5 + $0x420] sm:$0xff]  ;;  %v3959_v18 = vld [vmem:[%s11712_s5 + $0x428] sm:$0xff]  ;;  %v10291_v21 = vld [vmem:[#allocation3 + $0xd8] sm:$0x1]  ;;  %v1882_v31 = vrot.slane %v10222_v55, 2  ;;  %v1883_v52 = vrot.slane %v10224_v43, 2 }
 0x2f1   :  { %4476 = vmatmul.mubr.f32.vlgmr.msra.gmra.mrb[64].mxu1 %v1857_v44  ;;  %4986 = vmatmul.mubr.f32.gmra.mrb[94].mxu0 %v3181_v42  ;;  %v10260_v44 = vld [vmem:[#allocation3 + $0xb0] sm:$0x1]  ;;  %v10289_v6 = vld [vmem:[#allocation3 + $0xc8] sm:$0xfe]  ;;  %v2373_v50 = vrot.slane %v10226_v29, 1  ;;  %v2374_v19 = vrot.slane %v10235_v9, 1  ;;  %v7160_v42 = vpack.c.bf16 %v3959_v18, %v10282_v38  ;;  %v1878_v38 = vsel %vm1854_vm6, %v1876_v59, %v1877_v15 }
 0x2f2   :  { %7153 = vmatpush3.bf16.msra.mxu1 %v7152_v54  ;;  %4480 = vmatprep.mubr.f32.mxu1 %v1866_v11  ;;  %v3976_v51 = vld [vmem:[%s11712_s5 + $0x4b0] sm:$0xff]  ;;  %v3977_v34 = vld [vmem:[%s11712_s5 + $0x4b8] sm:$0xff]  ;;  %v1879_v32 = vrot.slane %v10239_v49, 2  ;;  %v1880_v26 = vrot.slane %v10241_v0, 2  ;;  %v2370_v14 = vrot.slane %v10258_v24, 1  ;;  %v2371_v3 = vrot.slane %v10260_v44, 1 }
 0x2f3   :  { %5200 = vmatprep.mubr.f32.mxu0 %v2357_v7  ;;  %7155 = vmatprep.subr.bf16.mxu1 %v7154_v63  ;;  %v10310_v4 = vld [vmem:[%s11712_s5 + $0x430] sm:$0xff]  ;;  %v10315_v58 = vld [vmem:[%s11712_s5 + $0x438] sm:$0xff]  ;;  %v1888_v17 = vrot.slane %v10262_v39, 2  ;;  %v1889_v37 = vrot.slane %v10287_v62, 2  ;;  %v2379_v40 = vrot.slane %v10289_v6, 1  ;;  %v2380_v54 = vrot.slane %v10291_v21, 1 }
 0x2f4   :  { %v10324_v16 = vld [vmem:[%s11712_s5 + $0x4c0] sm:$0xff]  ;;  %v10329_v27 = vld [vmem:[%s11712_s5 + $0x4c8] sm:$0xff]  ;;  %v10333_v61 = vld [vmem:[#allocation3 + $0xb0] sm:$0x3]  ;;  %v11894_v35 = vrot.slane %v10160_v10, 1  ;;  %v11895_v5 = vrot.slane %v10158_v25, 1 }
 0x2f5   :  { %4481 = vmatmul.mubr.f32.gmra.mrb[66].mxu1 %v1863_v2  ;;  %5201 = vmatmul.mubr.f32.vlgmr.msra.gmra.mrb[96].mxu0 %v2354_v41  ;;  %v10331_v30 = vld [vmem:[#allocation3 + $0xa0] sm:$0xfc]  ;;  %v10338_v11 = vld [vmem:[#allocation3 + $0xd0] sm:$0x1]  ;;  %v10340_v7 = vld [vmem:[#allocation3 + $0xc8] sm:$0xfc]  ;;  %v7162_v41 = vpack.c.bf16 %v3977_v34, %v3976_v51  ;;  %v7166_v56 = vpack.c.bf16 %v10329_v27, %v10324_v16  ;;  %v2381_v0 = vsel %vm1709_vm5, %v2379_v40, %v2380_v54 }
 0x2f6   :  { %4485 = vmatprep.mubr.f32.mxu1 %v1872_v23  ;;  %5205 = vmatprep.mubr.f32.mxu0 %v2363_v13  ;;  %v10335_v63 = vld [vmem:[#allocation3 + $0xc0] sm:$0xfe]  ;;  %v10342_v2 = vld [vmem:[#allocation3 + $0xd8] sm:$0x3]  ;;  %v7164_v23 = vpack.c.bf16 %v10315_v58, %v10310_v4  ;;  %v1869_v13 = vsel %vm1854_vm6, %v1867_v28, %v1868_v46  ;;  %v10361_v18 = vld [vmem:[#allocation3 + $0xe8] sm:$0xfe]  ;;  %v2369_v36 = vsel %vm1709_vm5, %v11895_v5, %v11894_v35 }
 0x2f7   :  { %7157 = vmatpush3.bf16.msra.mxu1 %v7156_v47  ;;  %v2360_v47 = vsel %vm1709_vm5, %v2358_v45, %v2359_v8  ;;  %v10363_v12 = vld [vmem:[#allocation3 + $0xf8] sm:$0x1]  ;;  %v10365_v48 = vld [vmem:[#allocation3 + $0xc0] sm:$0xfc]  ;;  %v11896_v28 = vrot.slane %v10162_v1, 2  ;;  %v11897_v45 = vrot.slane %v10186_v20, 1  ;;  %v2375_v35 = vsel %vm1709_vm5, %v2373_v50, %v2374_v19 }
 0x2f8   :  { %7159 = vmatprep.subr.bf16.mxu1 %v7158_v53  ;;  %v10384_v59 = vld [vmem:[#allocation3 + $0xd0] sm:$0x3]  ;;  %v10386_v15 = vld [vmem:[#allocation3 + $0xe0] sm:$0xfe]  ;;  %v1885_v25 = vrot.slane %v10331_v30, 2  ;;  %v1886_v1 = vrot.slane %v10333_v61, 2 }
 0x2f9   :  { %4486 = vmatmul.mubr.f32.gmra.mrb[68].mxu1 %v1869_v13  ;;  %5206 = vmatmul.mubr.f32.gmra.mrb[98].mxu0 %v2360_v47  ;;  %v1875_v46 = vsel %vm1854_vm6, %v11896_v28, %v1874_v22  ;;  %v2366_v8 = vsel %vm1709_vm5, %v11897_v45, %v2365_v33  ;;  %v10388_v10 = vld [vmem:[#allocation3 + $0xf0] sm:$0x1]  ;;  %v2376_v57 = vrot.slane %v10335_v63, 1  ;;  %v2377_v60 = vrot.slane %v10338_v11, 1  ;;  %v10397_v20 = vld [vmem:[%s11712_s5 + $0x440] sm:$0xff]  ;;  %v3963_v22 = vld [vmem:[%s11712_s5 + $0x448] sm:$0xff] }
 0x2fa   :  { %4490 = vmatprep.mubr.f32.mxu1 %v1878_v38  ;;  %5210 = vmatprep.mubr.f32.mxu0 %v2369_v36  ;;  %v1894_v33 = vrot.slane %v10340_v7, 2  ;;  %v1895_v53 = vrot.slane %v10342_v2, 2  ;;  %v2385_v51 = vrot.slane %v10361_v18, 1  ;;  %v2386_v34 = vrot.slane %v10363_v12, 1  ;;  %v10409_v4 = vld [vmem:[%s11712_s5 + $0x4d0] sm:$0xff]  ;;  %v10414_v58 = vld [vmem:[%s11712_s5 + $0x4d8] sm:$0xff] }
 0x2fb   :  { %7161 = vmatpush3.bf16.msra.mxu1 %v7160_v42  ;;  %v1891_v16 = vrot.slane %v10365_v48, 2  ;;  %v1892_v27 = vrot.slane %v10384_v59, 2  ;;  %v2382_v42 = vrot.slane %v10386_v15, 1  ;;  %v2383_v13 = vrot.slane %v10388_v10, 1  ;;  %v10423_v47 = vld [vmem:[%s11712_s5 + $0x450] sm:$0xff]  ;;  %v10428_v38 = vld [vmem:[%s11712_s5 + $0x458] sm:$0xff] }
 0x2fc   :  { %7163 = vmatprep.subr.bf16.mxu1 %v7162_v41  ;;  %v1884_v41 = vsel %vm1854_vm6, %v1882_v31, %v1883_v52  ;;  %v10440_v5 = vld [vmem:[#allocation3 + $0xe8] sm:$0xfc]  ;;  %v10442_v36 = vld [vmem:[#allocation3 + $0xf8] sm:$0x3]  ;;  %v10448_v43 = vld [vmem:[#allocation3 + $0xe0] sm:$0xfc]  ;;  %v7168_v52 = vpack.c.bf16 %v3963_v22, %v10397_v20  ;;  %v7170_v50 = vpack.c.bf16 %v10414_v58, %v10409_v4  ;;  %v7172_v19 = vpack.c.bf16 %v10428_v38, %v10423_v47 }
 0x2fd   :  { %4491 = vmatmul.mubr.f32.gmra.mrb[70].mxu1 %v1875_v46  ;;  %5211 = vmatmul.mubr.f32.gmra.mrb[100].mxu0 %v2366_v8  ;;  %v10444_v28 = vld [vmem:[#allocation3 + $0x108] sm:$0xfe]  ;;  %v10446_v46 = vld [vmem:[#allocation3 + $0x118] sm:$0x1]  ;;  %v10450_v55 = vld [vmem:[#allocation3 + $0xf0] sm:$0x3]  ;;  %v2372_v45 = vsel %vm1709_vm5, %v2370_v14, %v2371_v3  ;;  %v1890_v8 = vsel %vm1854_vm6, %v1888_v17, %v1889_v37  ;;  %v1887_v38 = vsel %vm1854_vm6, %v1885_v25, %v1886_v1 }
 0x2fe   :  { %4495 = vmatprep.mubr.f32.mxu1 %v1884_v41  ;;  %5215 = vmatprep.mubr.f32.mxu0 %v2375_v35  ;;  %v10452_v9 = vld [vmem:[#allocation3 + $0x100] sm:$0xfe]  ;;  %v10454_v29 = vld [vmem:[#allocation3 + $0x110] sm:$0x1]  ;;  %v10456_v31 = vld [vmem:[#allocation3 + $0x148] sm:$0xfc]  ;;  %v2378_v41 = vsel %vm1709_vm5, %v2376_v57, %v2377_v60  ;;  %v1896_v30 = vsel %vm1854_vm6, %v1894_v33, %v1895_v53  ;;  %v2387_v61 = vsel %vm1709_vm5, %v2385_v51, %v2386_v34 }
 0x2ff   :  { %7165 = vmatpush3.bf16.msra.mxu1 %v7164_v23  ;;  %v1881_v23 = vsel %vm1854_vm6, %v1879_v32, %v1880_v26  ;;  %v10483_v49 = vld [vmem:[#allocation3 + $0x158] sm:$0x3]  ;;  %v10485_v44 = vld [vmem:[#allocation3 + $0x128] sm:$0xfe]  ;;  %v1900_v62 = vrot.slane %v10440_v5, 2  ;;  %v1901_v39 = vrot.slane %v10442_v36, 2  ;;  %v1893_v18 = vsel %vm1854_vm6, %v1891_v16, %v1892_v27 }
 0x300   :  { %7167 = vmatprep.subr.bf16.mxu1 %v7166_v56  ;;  %v10487_v24 = vld [vmem:[#allocation3 + $0x138] sm:$0x1]  ;;  %v2391_v32 = vrot.slane %v10444_v28, 1  ;;  %v2392_v21 = vrot.slane %v10446_v46, 1  ;;  %v3982_v6 = vld [vmem:[%s11712_s5 + $0x4e0] sm:$0xff]  ;;  %v3983_v26 = vld [vmem:[%s11712_s5 + $0x4e8] sm:$0xff]  ;;  %v2384_v60 = vsel %vm1709_vm5, %v2382_v42, %v2383_v13 }
 0x301   :  { %4496 = vmatmul.mubr.f32.gmra.mrb[72].mxu1 %v1881_v23  ;;  %5216 = vmatmul.mubr.f32.gmra.mrb[102].mxu0 %v2372_v45  ;;  %v1897_v14 = vrot.slane %v10448_v43, 2  ;;  %v1898_v3 = vrot.slane %v10450_v55, 2  ;;  %v2388_v17 = vrot.slane %v10452_v9, 1  ;;  %v2389_v37 = vrot.slane %v10454_v29, 1  ;;  %v10506_v40 = vld [vmem:[%s11712_s5 + $0x460] sm:$0xff]  ;;  %v10511_v54 = vld [vmem:[%s11712_s5 + $0x468] sm:$0xff] }
 0x302   :  { %4500 = vmatprep.mubr.f32.mxu1 %v1890_v8  ;;  %5220 = vmatprep.mubr.f32.mxu0 %v2381_v0  ;;  %v2820_v56 = vrot.slane %v10456_v31, 2  ;;  %v2821_v20 = vrot.slane %v10483_v49, 2  ;;  %v2397_v22 = vrot.slane %v10485_v44, 1  ;;  %v2398_v4 = vrot.slane %v10487_v24, 1  ;;  %v10520_v58 = vld [vmem:[%s11712_s5 + $0x4f0] sm:$0xff]  ;;  %v10525_v47 = vld [vmem:[%s11712_s5 + $0x4f8] sm:$0xff] }
 0x303   :  { %7169 = vmatpush3.bf16.msra.mxu1 %v7168_v52  ;;  %v10537_v35 = vld [vmem:[#allocation3 + $0x140] sm:$0xfc]  ;;  %v10539_v5 = vld [vmem:[#allocation3 + $0x150] sm:$0x3]  ;;  %v7174_v28 = vpack.c.bf16 %v3983_v26, %v3982_v6  ;;  %v10555_v11 = vld [vmem:[#allocation3 + $0x168] sm:$0xfc]  ;;  %v7176_v7 = vpack.c.bf16 %v10511_v54, %v10506_v40  ;;  %v7178_v12 = vpack.c.bf16 %v10525_v47, %v10520_v58  ;;  %v1902_v33 = vsel %vm1854_vm6, %v1900_v62, %v1901_v39 }
 0x304   :  { %v10541_v36 = vld [vmem:[#allocation3 + $0x120] sm:$0xfe]  ;;  %7171 = vmatprep.subr.bf16.mxu1 %v7170_v50  ;;  %v10553_v63 = vld [vmem:[#allocation3 + $0x130] sm:$0x1]  ;;  %v2760_v25 = vld [vmem:[#allocation3 + $0x178] sm:$0x3]  ;;  %v2393_v53 = vsel %vm1709_vm5, %v2391_v32, %v2392_v21  ;;  %v2822_v49 = vsel %vm1854_vm6, %v2820_v56, %v2821_v20  ;;  %v2399_v44 = vsel %vm1709_vm5, %v2397_v22, %v2398_v4  ;;  %v1899_v21 = vsel %vm1854_vm6, %v1897_v14, %v1898_v3 }
 0x305   :  { %4501 = vmatmul.mubr.f32.gmra.mrb[74].mxu1 %v1887_v38  ;;  %5221 = vmatmul.mubr.f32.gmra.mrb[104].mxu0 %v2378_v41  ;;  %v3251_v1 = vld [vmem:[#allocation3 + $0x188] sm:$0xfe]  ;;  %v3253_v57 = vld [vmem:[#allocation3 + $0x198] sm:$0x1]  ;;  %v10557_v2 = vld [vmem:[#allocation3 + $0x160] sm:$0xfc]  ;;  %v2390_v6 = vsel %vm1709_vm5, %v2388_v17, %v2389_v37 }
 0x306   :  { %4505 = vmatprep.mubr.f32.mxu1 %v1896_v30  ;;  %5225 = vmatprep.mubr.f32.mxu0 %v2387_v61  ;;  %v10575_v51 = vld [vmem:[#allocation3 + $0x170] sm:$0x3]  ;;  %v10577_v34 = vld [vmem:[#allocation3 + $0x180] sm:$0xfe]  ;;  %v2817_v48 = vrot.slane %v10537_v35, 2  ;;  %v2818_v59 = vrot.slane %v10539_v5, 2 }
 0x307   :  { %v10579_v46 = vld [vmem:[#allocation3 + $0x190] sm:$0x1]  ;;  %7173 = vmatpush3.bf16.msra.mxu1 %v7172_v19  ;;  %v2394_v10 = vrot.slane %v10541_v36, 1  ;;  %v2395_v15 = vrot.slane %v10553_v63, 1  ;;  %v3969_v27 = vld [vmem:[%s11712_s5 + $0x478] sm:$0xff]  ;;  %v2826_v42 = vrot.slane %v10555_v11, 2 }
 0x308   :  { %7175 = vmatprep.subr.bf16.mxu1 %v7174_v28  ;;  %v3968_v16 = vld [vmem:[%s11712_s5 + $0x470] sm:$0xff]  ;;  %v2827_v13 = vrot.slane %v2760_v25, 2  ;;  %v3317_v31 = vrot.slane %v3251_v1, 1  ;;  %v3318_v52 = vrot.slane %v3253_v57, 1  ;;  %v4034_v50 = vld [vmem:[%s11712_s5 + $0x680] sm:$0xff]  ;;  %v4035_v19 = vld [vmem:[%s11712_s5 + $0x688] sm:$0xff]  ;;  %v2819_v20 = vsel %vm1854_vm6, %v2817_v48, %v2818_v59 }
 0x309   :  { %4506 = vmatmul.mubr.f32.gmra.mrb[76].mxu1 %v1893_v18  ;;  %5226 = vmatmul.mubr.f32.gmra.mrb[106].mxu0 %v2384_v60  ;;  %v2823_v23 = vrot.slane %v10557_v2, 2  ;;  %v2824_v45 = vrot.slane %v10575_v51, 2  ;;  %v3314_v8 = vrot.slane %v10577_v34, 1  ;;  %v3315_v0 = vrot.slane %v10579_v46, 1  ;;  %v2762_v24 = vld [vmem:[#allocation3 + $0x188] sm:$0xfc] }
 0x30a   :  { %4510 = vmatprep.mubr.f32.mxu1 %v1902_v33  ;;  %5230 = vmatprep.mubr.f32.mxu0 %v2393_v53  ;;  %v2764_v62 = vld [vmem:[#allocation3 + $0x198] sm:$0x3]  ;;  %v3255_v39 = vld [vmem:[#allocation3 + $0x1a8] sm:$0xfe]  ;;  %v7180_v32 = vpack.c.bf16 %v3969_v27, %v3968_v16  ;;  %v2761_v40 = vld [vmem:[#allocation3 + $0x180] sm:$0xfc]  ;;  %v7214_v56 = vpack.c.bf16 %v4035_v19, %v4034_v50  ;;  %v2396_v29 = vsel %vm1709_vm5, %v2394_v10, %v2395_v15 }
 0x30b   :  { %7177 = vmatpush3.bf16.msra.mxu1 %v7176_v7  ;;  %v3257_v26 = vld [vmem:[#allocation3 + $0x1b8] sm:$0x1]  ;;  %v2763_v54 = vld [vmem:[#allocation3 + $0x190] sm:$0x3]  ;;  %v3254_v55 = vld [vmem:[#allocation3 + $0x1a0] sm:$0xfe]  ;;  %v2828_v9 = vsel %vm1854_vm6, %v2826_v42, %v2827_v13  ;;  %v3319_v14 = vsel %vm1709_vm5, %v3317_v31, %v3318_v52  ;;  %v2825_v33 = vsel %vm1854_vm6, %v2823_v23, %v2824_v45  ;;  %v3316_v53 = vsel %vm1709_vm5, %v3314_v8, %v3315_v0 }
 0x30c   :  { %7179 = vmatprep.subr.bf16.mxu1 %v7178_v12  ;;  %v3256_v22 = vld [vmem:[#allocation3 + $0x1b0] sm:$0x1]  ;;  %v10615_v43 = vld [vmem:[#allocation3 + $0x1a8] sm:$0xfc]  ;;  %v10620_v3 = vld [vmem:[#allocation3 + $0x1b8] sm:$0x3] }
 0x30d   :  { %4511 = vmatmul.mubr.f32.gmra.mrb[78].mxu1 %v1899_v21  ;;  %5231 = vmatmul.mubr.f32.gmra.mrb[108].mxu0 %v2390_v6  ;;  %v10622_v17 = vld [vmem:[#allocation3 + $0x1c8] sm:$0xfe]  ;;  %v3261_v37 = vld [vmem:[#allocation3 + $0x1d8] sm:$0x1]  ;;  %v2832_v4 = vrot.slane %v2762_v24, 2  ;;  %v2833_v58 = vrot.slane %v2764_v62, 2 }
 0x30e   :  { %4515 = vmatprep.mubr.f32.mxu1 %v2822_v49  ;;  %5235 = vmatprep.mubr.f32.mxu0 %v2399_v44  ;;  %v3323_v47 = vrot.slane %v3255_v39, 1  ;;  %v3324_v38 = vrot.slane %v3257_v26, 1  ;;  %v2829_v41 = vrot.slane %v2761_v40, 2  ;;  %v2830_v35 = vrot.slane %v2763_v54, 2  ;;  %v6262_v28 = vpop.f32.mrb[0].mxu1 }
 0x30f   :  { %7181 = vmatpush3.bf16.msra.mxu1 %v7180_v32  ;;  %v3320_v5 = vrot.slane %v3254_v55, 1  ;;  %v3321_v36 = vrot.slane %v3256_v22, 1  ;;  %v2838_v30 = vrot.slane %v10615_v43, 2  ;;  %v2839_v61 = vrot.slane %v10620_v3, 2  ;;  %v6263_v25 = vpop.f32.mrb[1].mxu1 }
 0x310   :  { %7215 = vmatprep.subr.bf16.mxu1 %v7214_v56  ;;  %v3329_v63 = vrot.slane %v10622_v17, 1  ;;  %v3330_v11 = vrot.slane %v3261_v37, 1  ;;  %v2765_v1 = vld [vmem:[#allocation3 + $0x1a0] sm:$0xfc]  ;;  %v2767_v57 = vld [vmem:[#allocation3 + $0x1b0] sm:$0x3]  ;;  %v10627_v7 = vadd.f32 %v6263_v25, %v6262_v28  ;;  %v2834_v51 = vsel %vm1854_vm6, %v2832_v4, %v2833_v58 }
 0x311   :  { %4516 = vmatmul.mubr.f32.gmra.mrb[80].mxu1 %v2819_v20  ;;  %5236 = vmatmul.mubr.f32.gmra.mrb[110].mxu0 %v2396_v29  ;;  %v3258_v2 = vld [vmem:[#allocation3 + $0x1c0] sm:$0xfe]  ;;  %v3260_v12 = vld [vmem:[#allocation3 + $0x1d0] sm:$0x1]  ;;  %v2770_v18 = vld [vmem:[#allocation3 + $0x1c8] sm:$0xfc]  ;;  %v3325_v59 = vsel %vm1709_vm5, %v3323_v47, %v3324_v38  ;;  %v2831_v10 = vsel %vm1854_vm6, %v2829_v41, %v2830_v35  ;;  %v3322_v15 = vsel %vm1709_vm5, %v3320_v5, %v3321_v36 }
 0x312   :  { %4520 = vmatprep.mubr.f32.mxu1 %v2828_v9  ;;  %5240 = vmatprep.mubr.f32.mxu0 %v3319_v14  ;;  %v2772_v60 = vld [vmem:[#allocation3 + $0x1d8] sm:$0x3]  ;;  %v3263_v34 = vld [vmem:[#allocation3 + $0x1e8] sm:$0xfe]  ;;  %v10632_v48 = vld [vmem:[#allocation3 + $0x1c0] sm:$0xfc]  ;;  %v2840_v39 = vsel %vm1854_vm6, %v2838_v30, %v2839_v61  ;;  %v3331_v32 = vsel %vm1709_vm5, %v3329_v63, %v3330_v11 }
 0x313   :  { %v3265_v46 = vld [vmem:[#allocation3 + $0x1f8] sm:$0x1]  ;;  %v2771_v16 = vld [vmem:[#allocation3 + $0x1d0] sm:$0x3]  ;;  %v3262_v27 = vld [vmem:[#allocation3 + $0x1e0] sm:$0xfe] }
 0x314   :  { %v3264_v42 = vld [vmem:[#allocation3 + $0x1f0] sm:$0x1]  ;;  %v2835_v13 = vrot.slane %v2765_v1, 2  ;;  %v2836_v31 = vrot.slane %v2767_v57, 2  ;;  %v3326_v52 = vrot.slane %v3258_v2, 1  ;;  %v3327_v50 = vrot.slane %v3260_v12, 1 }
 0x315   :  { %4521 = vmatmul.mubr.f32.gmra.mrb[82].mxu1 %v2825_v33  ;;  %5241 = vmatmul.mubr.f32.gmra.mrb[112].mxu0 %v3316_v53  ;;  %v2844_v19 = vrot.slane %v2770_v18, 2  ;;  %v2845_v23 = vrot.slane %v2772_v60, 2  ;;  %v3335_v45 = vrot.slane %v3263_v34, 1  ;;  %v3336_v8 = vrot.slane %v3265_v46, 1  ;;  %v2774_v62 = vld [vmem:[#allocation3 + $0x1e8] sm:$0xfc] }
 0x316   :  { %4525 = vmatprep.mubr.f32.mxu1 %v2834_v51  ;;  %5245 = vmatprep.mubr.f32.mxu0 %v3325_v59  ;;  %v2841_v0 = vrot.slane %v10632_v48, 2  ;;  %v2842_v49 = vrot.slane %v2771_v16, 2  ;;  %v3332_v44 = vrot.slane %v3262_v27, 1  ;;  %v3333_v24 = vrot.slane %v3264_v42, 1  ;;  %v2776_v21 = vld [vmem:[#allocation3 + $0x1f8] sm:$0x3] }
 0x317   :  { %v3267_v6 = vld [vmem:[#allocation3 + $0x208] sm:$0xfe]  ;;  %v3269_v26 = vld [vmem:[#allocation3 + $0x218] sm:$0x1]  ;;  %v2773_v40 = vld [vmem:[#allocation3 + $0x1e0] sm:$0xfc]  ;;  %v2837_v20 = vsel %vm1854_vm6, %v2835_v13, %v2836_v31  ;;  %v3328_v55 = vsel %vm1709_vm5, %v3326_v52, %v3327_v50  ;;  %v2846_v9 = vsel %vm1854_vm6, %v2844_v19, %v2845_v23  ;;  %v3337_v14 = vsel %vm1709_vm5, %v3335_v45, %v3336_v8 }
 0x318   :  { %v2775_v54 = vld [vmem:[#allocation3 + $0x1f0] sm:$0x3]  ;;  %v3266_v56 = vld [vmem:[#allocation3 + $0x200] sm:$0xfe]  ;;  %v2778_v43 = vld [vmem:[#allocation3 + $0x208] sm:$0xfc]  ;;  %v2843_v25 = vsel %vm1854_vm6, %v2841_v0, %v2842_v49  ;;  %v3334_v1 = vsel %vm1709_vm5, %v3332_v44, %v3333_v24 }
 0x319   :  { %4526 = vmatmul.mubr.f32.gmra.mrb[84].mxu1 %v2831_v10  ;;  %5246 = vmatmul.mubr.f32.gmra.mrb[114].mxu0 %v3322_v15  ;;  %v3268_v22 = vld [vmem:[#allocation3 + $0x210] sm:$0x1]  ;;  %v2780_v29 = vld [vmem:[#allocation3 + $0x218] sm:$0x3]  ;;  %v2850_v3 = vrot.slane %v2774_v62, 2  ;;  %v2851_v17 = vrot.slane %v2776_v21, 2 }
 0x31a   :  { %4530 = vmatprep.mubr.f32.mxu1 %v2840_v39  ;;  %5250 = vmatprep.mubr.f32.mxu0 %v3331_v32  ;;  %v3271_v37 = vld [vmem:[#allocation3 + $0x228] sm:$0xfe]  ;;  %v3273_v4 = vld [vmem:[#allocation3 + $0x238] sm:$0x1]  ;;  %v3341_v58 = vrot.slane %v3267_v6, 1  ;;  %v3342_v47 = vrot.slane %v3269_v26, 1 }
 0x31b   :  { %v2847_v38 = vrot.slane %v2773_v40, 2  ;;  %v2848_v41 = vrot.slane %v2775_v54, 2  ;;  %v3338_v35 = vrot.slane %v3266_v56, 1  ;;  %v3339_v5 = vrot.slane %v3268_v22, 1  ;;  %v2777_v63 = vld [vmem:[#allocation3 + $0x200] sm:$0xfc] }
 0x31c   :  { %v2856_v36 = vrot.slane %v2778_v43, 2  ;;  %v2857_v28 = vrot.slane %v2780_v29, 2  ;;  %v3347_v30 = vrot.slane %v3271_v37, 1  ;;  %v3348_v61 = vrot.slane %v3273_v4, 1  ;;  %v2779_v11 = vld [vmem:[#allocation3 + $0x210] sm:$0x3] }
 0x31d   :  { %4531 = vmatmul.mubr.f32.gmra.mrb[86].mxu1 %v2837_v20  ;;  %5251 = vmatmul.mubr.f32.gmra.mrb[116].mxu0 %v3328_v55  ;;  %v3270_v57 = vld [vmem:[#allocation3 + $0x220] sm:$0xfe]  ;;  %v3272_v2 = vld [vmem:[#allocation3 + $0x230] sm:$0x1]  ;;  %v2782_v12 = vld [vmem:[#allocation3 + $0x228] sm:$0xfc]  ;;  %v2852_v18 = vsel %vm1854_vm6, %v2850_v3, %v2851_v17  ;;  %v3343_v60 = vsel %vm1709_vm5, %v3341_v58, %v3342_v47  ;;  %v2849_v34 = vsel %vm1854_vm6, %v2847_v38, %v2848_v41 }
 0x31e   :  { %4535 = vmatprep.mubr.f32.mxu1 %v2846_v9  ;;  %5255 = vmatprep.mubr.f32.mxu0 %v3337_v14  ;;  %v2784_v33 = vld [vmem:[#allocation3 + $0x238] sm:$0x3]  ;;  %v3275_v53 = vld [vmem:[#allocation3 + $0x248] sm:$0xfe]  ;;  %v3340_v46 = vsel %vm1709_vm5, %v3338_v35, %v3339_v5  ;;  %v2853_v48 = vrot.slane %v2777_v63, 2  ;;  %v2854_v59 = vrot.slane %v2779_v11, 2  ;;  %v2858_v52 = vsel %vm1854_vm6, %v2856_v36, %v2857_v28 }
 0x31f   :  { %v3277_v51 = vld [vmem:[#allocation3 + $0x258] sm:$0x1]  ;;  %v3344_v10 = vrot.slane %v3270_v57, 1  ;;  %v3345_v15 = vrot.slane %v3272_v2, 1  ;;  %v2862_v16 = vrot.slane %v2782_v12, 2  ;;  %v2863_v27 = vrot.slane %v2784_v33, 2 }
 0x320   :  { %v3353_v42 = vrot.slane %v3275_v53, 1  ;;  %v3354_v13 = vrot.slane %v3277_v51, 1  ;;  %v2781_v31 = vld [vmem:[#allocation3 + $0x220] sm:$0xfc]  ;;  %v3349_v50 = vsel %vm1709_vm5, %v3347_v30, %v3348_v61  ;;  %v2783_v19 = vld [vmem:[#allocation3 + $0x230] sm:$0x3]  ;;  %v2855_v49 = vsel %vm1854_vm6, %v2853_v48, %v2854_v59 }
 0x321   :  { %4536 = vmatmul.mubr.f32.gmra.mrb[88].mxu1 %v2843_v25  ;;  %5256 = vmatmul.mubr.f32.gmra.mrb[118].mxu0 %v3334_v1  ;;  %v3274_v23 = vld [vmem:[#allocation3 + $0x240] sm:$0xfe]  ;;  %v3276_v45 = vld [vmem:[#allocation3 + $0x250] sm:$0x1]  ;;  %v1968_v8 = vld [vmem:[#allocation3 + $0x28] sm:$0xfe]  ;;  %v3346_v44 = vsel %vm1709_vm5, %v3344_v10, %v3345_v15  ;;  %v2864_v21 = vsel %vm1854_vm6, %v2862_v16, %v2863_v27 }
 0x322   :  { %4540 = vmatprep.mubr.f32.mxu1 %v2852_v18  ;;  %5260 = vmatprep.mubr.f32.mxu0 %v3343_v60  ;;  %v1970_v0 = vld [vmem:[#allocation3 + $0x38] sm:$0x1]  ;;  %v2859_v24 = vrot.slane %v2781_v31, 2  ;;  %v2860_v62 = vrot.slane %v2783_v19, 2  ;;  %v3350_v39 = vrot.slane %v3274_v23, 1  ;;  %v3351_v32 = vrot.slane %v3276_v45, 1 }
 0x323   :  { %v3355_v6 = vsel %vm1709_vm5, %v3353_v42, %v3354_v13  ;;  %v2034_v26 = vrot.slane %v1968_v8, 1  ;;  %v2035_v40 = vrot.slane %v1970_v0, 1  ;;  %v1967_v54 = vld [vmem:[#allocation3 + $0x20] sm:$0xfe]  ;;  %v1969_v56 = vld [vmem:[#allocation3 + $0x30] sm:$0x1] }
 0x324   :  { %v1972_v20 = vld [vmem:[#allocation3 + $0x48] sm:$0xfe]  ;;  %v1974_v55 = vld [vmem:[#allocation3 + $0x58] sm:$0x1]  ;;  %v4018_v22 = vld [vmem:[%s11712_s5 + $0x600] sm:$0xff]  ;;  %v2861_v29 = vsel %vm1854_vm6, %v2859_v24, %v2860_v62  ;;  %v3352_v9 = vsel %vm1709_vm5, %v3350_v39, %v3351_v32  ;;  %v2031_v14 = vrot.slane %v1967_v54, 1 }
 0x325   :  { %4541 = vmatmul.mubr.f32.gmra.mrb[90].mxu1 %v2849_v34  ;;  %5261 = vmatmul.mubr.f32.gmra.mrb[120].mxu0 %v3340_v46  ;;  %v4019_v43 = vld [vmem:[%s11712_s5 + $0x608] sm:$0xff]  ;;  %v2032_v3 = vrot.slane %v1969_v56, 1  ;;  %v4036_v17 = vld [vmem:[%s11712_s5 + $0x690] sm:$0xff]  ;;  %v4037_v37 = vld [vmem:[%s11712_s5 + $0x698] sm:$0xff]  ;;  %v2036_v4 = vsel %vm1709_vm5, %v2034_v26, %v2035_v40  ;;  %v2040_v58 = vrot.slane %v1972_v20, 1  ;;  %v2041_v47 = vrot.slane %v1974_v55, 1 }
 0x326   :  { %4545 = vmatprep.mubr.f32.mxu1 %v2858_v52  ;;  %5265 = vmatprep.mubr.f32.mxu0 %v3349_v50  ;;  %v1971_v38 = vld [vmem:[#allocation3 + $0x40] sm:$0xfe]  ;;  %v1973_v41 = vld [vmem:[#allocation3 + $0x50] sm:$0x1]  ;;  %v7216_v35 = vpack.c.bf16 %v4019_v43, %v4018_v22  ;;  %v1976_v5 = vld [vmem:[#allocation3 + $0x68] sm:$0xfe]  ;;  %v7218_v28 = vpack.c.bf16 %v4037_v37, %v4036_v17 }
 0x327   :  { %v1978_v36 = vld [vmem:[#allocation3 + $0x78] sm:$0x1]  ;;  %v4020_v30 = vld [vmem:[%s11712_s5 + $0x610] sm:$0xff]  ;;  %v2033_v63 = vsel %vm1709_vm5, %v2031_v14, %v2032_v3  ;;  %v2037_v11 = vrot.slane %v1971_v38, 1  ;;  %v2038_v25 = vrot.slane %v1973_v41, 1  ;;  %v4038_v1 = vld [vmem:[%s11712_s5 + $0x6a0] sm:$0xff]  ;;  %v2042_v2 = vsel %vm1709_vm5, %v2040_v58, %v2041_v47 }
 0x328   :  { %v4021_v61 = vld [vmem:[%s11712_s5 + $0x618] sm:$0xff]  ;;  %v4039_v57 = vld [vmem:[%s11712_s5 + $0x6a8] sm:$0xff]  ;;  %v2046_v12 = vrot.slane %v1976_v5, 1  ;;  %v2047_v18 = vrot.slane %v1978_v36, 1  ;;  %v1975_v60 = vld [vmem:[#allocation3 + $0x60] sm:$0xfe] }
 0x329   :  { %4546 = vmatmul.mubr.f32.gmra.mrb[92].mxu1 %v2855_v49  ;;  %5266 = vmatmul.mubr.f32.gmra.mrb[122].mxu0 %v3346_v44  ;;  %v1977_v33 = vld [vmem:[#allocation3 + $0x70] sm:$0x1]  ;;  %v7220_v53 = vpack.c.bf16 %v4021_v61, %v4020_v30  ;;  %v1980_v51 = vld [vmem:[#allocation3 + $0x88] sm:$0xfe]  ;;  %v1982_v34 = vld [vmem:[#allocation3 + $0x98] sm:$0x1]  ;;  %v7222_v48 = vpack.c.bf16 %v4039_v57, %v4038_v1  ;;  %v2039_v15 = vsel %vm1709_vm5, %v2037_v11, %v2038_v25 }
 0x32a   :  { %4550 = vmatprep.mubr.f32.mxu1 %v2864_v21  ;;  %5270 = vmatprep.mubr.f32.mxu0 %v3355_v6  ;;  %v1979_v46 = vld [vmem:[#allocation3 + $0x80] sm:$0xfe]  ;;  %v4023_v10 = vld [vmem:[%s11712_s5 + $0x628] sm:$0xff]  ;;  %v2043_v16 = vrot.slane %v1975_v60, 1  ;;  %v2044_v27 = vrot.slane %v1977_v33, 1  ;;  %v4040_v13 = vld [vmem:[%s11712_s5 + $0x6b0] sm:$0xff]  ;;  %v2048_v52 = vsel %vm1709_vm5, %v2046_v12, %v2047_v18 }
 0x32b   :  { %v4022_v59 = vld [vmem:[%s11712_s5 + $0x620] sm:$0xff]  ;;  %v1981_v42 = vld [vmem:[#allocation3 + $0x90] sm:$0x1]  ;;  %v4041_v31 = vld [vmem:[%s11712_s5 + $0x6b8] sm:$0xff]  ;;  %v2052_v50 = vrot.slane %v1980_v51, 1  ;;  %v2053_v19 = vrot.slane %v1982_v34, 1 }
 0x32c   :  { %v1984_v23 = vld [vmem:[#allocation3 + $0xa8] sm:$0xfe]  ;;  %v1986_v45 = vld [vmem:[#allocation3 + $0xb8] sm:$0x1]  ;;  %v7224_v8 = vpack.c.bf16 %v4023_v10, %v4022_v59  ;;  %v2049_v0 = vrot.slane %v1979_v46, 1  ;;  %v2050_v49 = vrot.slane %v1981_v42, 1  ;;  %v7226_v24 = vpack.c.bf16 %v4041_v31, %v4040_v13 }
 0x32d   :  { %4551 = vmatmul.mubr.f32.gmra.mrb[94].mxu1 %v2861_v29  ;;  %5271 = vmatmul.mubr.f32.gmra.mrb[124].mxu0 %v3352_v9  ;;  %v1983_v44 = vld [vmem:[#allocation3 + $0xa0] sm:$0xfe]  ;;  %v4024_v62 = vld [vmem:[%s11712_s5 + $0x630] sm:$0xff]  ;;  %v4025_v39 = vld [vmem:[%s11712_s5 + $0x638] sm:$0xff]  ;;  %v2045_v32 = vsel %vm1709_vm5, %v2043_v16, %v2044_v27  ;;  %v2058_v21 = vrot.slane %v1984_v23, 1  ;;  %v2059_v6 = vrot.slane %v1986_v45, 1  ;;  %v2054_v56 = vsel %vm1709_vm5, %v2052_v50, %v2053_v19 }
 0x32e   :  { %4765 = vmatprep.mubr.f32.mxu1 %v2036_v4  ;;  %v1985_v26 = vld [vmem:[#allocation3 + $0xb0] sm:$0x1]  ;;  %v4042_v40 = vld [vmem:[%s11712_s5 + $0x6c0] sm:$0xff]  ;;  %v4043_v54 = vld [vmem:[%s11712_s5 + $0x6c8] sm:$0xff]  ;;  %v7228_v29 = vpack.c.bf16 %v4025_v39, %v4024_v62  ;;  %v2051_v17 = vsel %vm1709_vm5, %v2049_v0, %v2050_v49  ;;  %v2055_v37 = vrot.slane %v1983_v44, 1 }
 0x32f   :  { %v1988_v20 = vld [vmem:[#allocation3 + $0xc8] sm:$0xfe]  ;;  %v3281_v22 = vld [vmem:[#allocation3 + $0x278] sm:$0x1]  ;;  %v4026_v9 = vld [vmem:[%s11712_s5 + $0x640] sm:$0xff]  ;;  %v7230_v4 = vpack.c.bf16 %v4043_v54, %v4042_v40  ;;  %v2056_v41 = vrot.slane %v1985_v26, 1  ;;  %v2060_v61 = vsel %vm1709_vm5, %v2058_v21, %v2059_v6 }
 0x330   :  { %v3279_v55 = vld [vmem:[#allocation3 + $0x268] sm:$0xfe]  ;;  %v1990_v43 = vld [vmem:[#allocation3 + $0xd8] sm:$0x1]  ;;  %v3360_v3 = vrot.slane %v3281_v22, 1  ;;  %v4028_v33 = vld [vmem:[%s11712_s5 + $0x650] sm:$0xff] }
 0x331   :  { %4766 = vmatmul.mubr.f32.vlgmr.msra.gmra.mrb[96].mxu1 %v2033_v63  ;;  %v3359_v14 = vrot.slane %v3279_v55, 1  ;;  %v4027_v58 = vld [vmem:[%s11712_s5 + $0x648] sm:$0xff]  ;;  %v3278_v47 = vld [vmem:[#allocation3 + $0x260] sm:$0xfe]  ;;  %v3280_v38 = vld [vmem:[#allocation3 + $0x270] sm:$0x1]  ;;  %v2057_v51 = vsel %vm1709_vm5, %v2055_v37, %v2056_v41 }
 0x332   :  { %7217 = vmatpush3.bf16.msra.mxu1 %v7216_v35  ;;  %4770 = vmatprep.mubr.f32.mxu1 %v2042_v2  ;;  %v4044_v35 = vld [vmem:[%s11712_s5 + $0x6d0] sm:$0xff]  ;;  %v4045_v5 = vld [vmem:[%s11712_s5 + $0x6d8] sm:$0xff]  ;;  %v3357_v30 = vrot.slane %v3280_v38, 1  ;;  %v2064_v63 = vrot.slane %v1988_v20, 1  ;;  %v2065_v11 = vrot.slane %v1990_v43, 1  ;;  %v7232_v12 = vpack.c.bf16 %v4027_v58, %v4026_v9  ;;  %v4047_v59 = vld [vmem:[%s11712_s5 + $0x6e8] sm:$0xff] }
 0x333   :  { %7219 = vmatprep.subr.bf16.mxu1 %v7218_v28  ;;  %v3361_v36 = vsel %vm1709_vm5, %v3359_v14, %v3360_v3  ;;  %v3356_v28 = vrot.slane %v3278_v47, 1  ;;  %v1987_v25 = vld [vmem:[#allocation3 + $0xc0] sm:$0xfe]  ;;  %v1989_v1 = vld [vmem:[#allocation3 + $0xd0] sm:$0x1]  ;;  %v7234_v60 = vpack.c.bf16 %v4045_v5, %v4044_v35  ;;  %v4049_v39 = vld [vmem:[%s11712_s5 + $0x6f8] sm:$0xff] }
 0x334   :  { %5275 = vmatprep.mubr.f32.mxu0 %v3361_v36  ;;  %v1992_v57 = vld [vmem:[#allocation3 + $0xe8] sm:$0xfe]  ;;  %v1994_v2 = vld [vmem:[#allocation3 + $0xf8] sm:$0x1]  ;;  %v2061_v34 = vrot.slane %v1987_v25, 1  ;;  %v2062_v46 = vrot.slane %v1989_v1, 1 }
 0x335   :  { %4771 = vmatmul.mubr.f32.gmra.mrb[98].mxu1 %v2039_v15  ;;  %v3358_v18 = vsel %vm1709_vm5, %v3356_v28, %v3357_v30  ;;  %v10742_v10 = vld [vmem:[#allocation3] sm:$0xff]  ;;  %v2066_v15 = vsel %vm1709_vm5, %v2064_v63, %v2065_v11  ;;  %v2070_v16 = vrot.slane %v1992_v57, 1  ;;  %v2071_v27 = vrot.slane %v1994_v2, 1  ;;  %v1993_v13 = vld [vmem:[#allocation3 + $0xf0] sm:$0x1]  ;;  %v6265_v9 = vpop.f32.mrb[2].mxu1 }
 0x336   :  { %4775 = vmatprep.mubr.f32.mxu1 %v2048_v52  ;;  %7221 = vmatpush3.bf16.msra.mxu1 %v7220_v53  ;;  %v4029_v53 = vld [vmem:[%s11712_s5 + $0x658] sm:$0xff]  ;;  %v1991_v42 = vld [vmem:[#allocation3 + $0xe0] sm:$0xfe]  ;;  %v1996_v31 = vld [vmem:[#allocation3 + $0x108] sm:$0xfe]  ;;  %v2063_v0 = vsel %vm1709_vm5, %v2061_v34, %v2062_v46  ;;  %v2068_v44 = vrot.slane %v1993_v13, 1 }
 0x337   :  { %7223 = vmatprep.subr.bf16.mxu1 %v7222_v48  ;;  %5276 = vmatmul.mubr.f32.gmra.mrb[126].mxu0 %v3358_v18  ;;  %v4046_v48 = vld [vmem:[%s11712_s5 + $0x6e0] sm:$0xff]  ;;  %v1998_v52 = vld [vmem:[#allocation3 + $0x118] sm:$0x1]  ;;  %v7236_v50 = vpack.c.bf16 %v4029_v53, %v4028_v33  ;;  %v2067_v49 = vrot.slane %v1991_v42, 1  ;;  %v4048_v62 = vld [vmem:[%s11712_s5 + $0x6f0] sm:$0xff]  ;;  %v2076_v21 = vrot.slane %v1996_v31, 1 }
 0x338   :  { %5918 = vmatprep.mubr.f32.mxu0 %v10742_v10  ;;  %v1995_v19 = vld [vmem:[#allocation3 + $0x100] sm:$0xfe]  ;;  %v7238_v23 = vpack.c.bf16 %v4047_v59, %v4046_v48  ;;  %v2077_v6 = vrot.slane %v1998_v52, 1  ;;  %v2930_v26 = vld [vmem:[#allocation3 + $0x168] sm:$0xfe]  ;;  %v7242_v22 = vpack.c.bf16 %v4049_v39, %v4048_v62  ;;  %v4032_v43 = vld [vmem:[%s11712_s5 + $0x670] sm:$0xff] }
 0x339   :  { %4776 = vmatmul.mubr.f32.gmra.mrb[100].mxu1 %v2045_v32  ;;  %v4030_v45 = vld [vmem:[%s11712_s5 + $0x660] sm:$0xff]  ;;  %v2072_v32 = vsel %vm1709_vm5, %v2070_v16, %v2071_v27  ;;  %v2932_v40 = vld [vmem:[#allocation3 + $0x178] sm:$0x1]  ;;  %v6502_v14 = vpop.f32.mrb[32].mxu0  ;;  %v2069_v3 = vsel %vm1709_vm5, %v2067_v49, %v2068_v44  ;;  %v6266_v58 = vpop.f32.mrb[3].mxu1  ;;  %v2996_v41 = vrot.slane %v2930_v26, 1 }
 0x33a   :  { %4780 = vmatprep.mubr.f32.mxu1 %v2054_v56  ;;  %7225 = vmatpush3.bf16.msra.mxu1 %v7224_v8  ;;  %v4031_v8 = vld [vmem:[%s11712_s5 + $0x668] sm:$0xff]  ;;  %v2073_v56 = vrot.slane %v1995_v19, 1  ;;  %v2929_v55 = vld [vmem:[#allocation3 + $0x160] sm:$0xfe]  ;;  %v6503_v47 = vpop.f32.mrb[33].mxu0  ;;  %v2078_v38 = vsel %vm1709_vm5, %v2076_v21, %v2077_v6  ;;  %v2997_v35 = vrot.slane %v2932_v40, 1  ;;  %v10774_v5 = vadd.f32 %v6266_v58, %v6265_v9 }
 0x33b   :  { %7227 = vmatprep.subr.bf16.mxu1 %v7226_v24  ;;  %v1997_v24 = vld [vmem:[#allocation3 + $0x110] sm:$0x1]  ;;  %v7240_v54 = vpack.c.bf16 %v4031_v8, %v4030_v45  ;;  %v4098_v37 = vld [vmem:[%s11712_s5 + $0x880] sm:$0xff]  ;;  %v10776_v36 = vadd.f32 %v6503_v47, %v6502_v14  ;;  %v2934_v28 = vld [vmem:[#allocation3 + $0x188] sm:$0xfe]  ;;  %v2993_v63 = vrot.slane %v2929_v55, 1 }
 0x33c   :  { %v2074_v20 = vrot.slane %v1997_v24, 1  ;;  %v2936_v30 = vld [vmem:[#allocation3 + $0x198] sm:$0x1]  ;;  %v6268_v1 = vpop.f32.mrb[4].mxu1  ;;  %v6505_v57 = vpop.f32.mrb[34].mxu0  ;;  %v2998_v53 = vsel %vm1709_vm5, %v2996_v41, %v2997_v35 }
 0x33d   :  { %4781 = vmatmul.mubr.f32.gmra.mrb[102].mxu1 %v2051_v17  ;;  %v2931_v17 = vld [vmem:[#allocation3 + $0x170] sm:$0x1]  ;;  %v6506_v33 = vpop.f32.mrb[35].mxu0  ;;  %v3003_v34 = vrot.slane %v2936_v30, 1  ;;  %v2938_v59 = vld [vmem:[#allocation3 + $0x1a8] sm:$0xfe] }
 0x33e   :  { %4785 = vmatprep.mubr.f32.mxu1 %v2060_v61  ;;  %7229 = vmatpush3.bf16.msra.mxu1 %v7228_v29  ;;  %v4033_v29 = vld [vmem:[%s11712_s5 + $0x678] sm:$0xff]  ;;  %v2994_v11 = vrot.slane %v2931_v17, 1  ;;  %v2075_v2 = vsel %vm1709_vm5, %v2073_v56, %v2074_v20  ;;  %v2935_v18 = vld [vmem:[#allocation3 + $0x190] sm:$0x1]  ;;  %v10782_v48 = vadd.f32 %v6506_v33, %v6505_v57  ;;  %v6508_v13 = vpop.f32.mrb[36].mxu0  ;;  %v3008_v8 = vrot.slane %v2938_v59, 1 }
 0x33f   :  { %7231 = vmatprep.subr.bf16.mxu1 %v7230_v4  ;;  %v4099_v4 = vld [vmem:[%s11712_s5 + $0x888] sm:$0xff]  ;;  %v7244_v61 = vpack.c.bf16 %v4033_v29, %v4032_v43  ;;  %v3000_v27 = vrot.slane %v2935_v18, 1  ;;  %v2937_v52 = vld [vmem:[#allocation3 + $0x1a0] sm:$0xfe]  ;;  %v2944_v62 = vld [vmem:[#allocation3 + $0x1d8] sm:$0x1] }
 0x340   :  { %v7278_v25 = vpack.c.bf16 %v4099_v4, %v4098_v37  ;;  %v2995_v31 = vsel %vm1709_vm5, %v2993_v63, %v2994_v11  ;;  %v2942_v24 = vld [vmem:[#allocation3 + $0x1c8] sm:$0xfe]  ;;  %v3005_v39 = vrot.slane %v2937_v52, 1  ;;  %v2941_v21 = vld [vmem:[#allocation3 + $0x1c0] sm:$0xfe]  ;;  %v3015_v9 = vrot.slane %v2944_v62, 1 }
 0x341   :  { %4786 = vmatmul.mubr.f32.gmra.mrb[104].mxu1 %v2057_v51  ;;  %v3002_v51 = vrot.slane %v2934_v28, 1  ;;  %v2943_v6 = vld [vmem:[#allocation3 + $0x1d0] sm:$0x1]  ;;  %v2946_v56 = vld [vmem:[#allocation3 + $0x1e8] sm:$0xfe]  ;;  %v3014_v29 = vrot.slane %v2942_v24, 1 }
 0x342   :  { %4790 = vmatprep.mubr.f32.mxu1 %v2066_v15  ;;  %7233 = vmatpush3.bf16.msra.mxu1 %v7232_v12  ;;  %v2933_v12 = vld [vmem:[#allocation3 + $0x180] sm:$0xfe]  ;;  %v2940_v15 = vld [vmem:[#allocation3 + $0x1b8] sm:$0x1]  ;;  %v3011_v17 = vrot.slane %v2941_v21, 1  ;;  %v3012_v37 = vrot.slane %v2943_v6, 1 }
 0x343   :  { %7235 = vmatprep.subr.bf16.mxu1 %v7234_v60  ;;  %v6269_v60 = vpop.f32.mrb[5].mxu1  ;;  %v2999_v16 = vrot.slane %v2933_v12, 1  ;;  %v3004_v45 = vsel %vm1709_vm5, %v3002_v51, %v3003_v34  ;;  %v2948_v20 = vld [vmem:[#allocation3 + $0x1f8] sm:$0x1]  ;;  %v3020_v4 = vrot.slane %v2946_v56, 1  ;;  %v3016_v63 = vsel %vm1709_vm5, %v3014_v29, %v3015_v9 }
 0x344   :  { %v10780_v46 = vadd.f32 %v6269_v60, %v6268_v1  ;;  %v6271_v42 = vpop.f32.mrb[6].mxu1  ;;  %v3021_v58 = vrot.slane %v2948_v20, 1  ;;  %v2945_v35 = vld [vmem:[#allocation3 + $0x1e0] sm:$0xfe]  ;;  %v2947_v28 = vld [vmem:[#allocation3 + $0x1f0] sm:$0x1] }
 0x345   :  { %4791 = vmatmul.mubr.f32.gmra.mrb[106].mxu1 %v2063_v0  ;;  %v6272_v19 = vpop.f32.mrb[7].mxu1  ;;  %v3009_v0 = vrot.slane %v2940_v15, 1  ;;  %v2950_v11 = vld [vmem:[#allocation3 + $0x208] sm:$0xfe]  ;;  %v3018_v12 = vrot.slane %v2947_v28, 1 }
 0x346   :  { %4795 = vmatprep.mubr.f32.mxu1 %v2072_v32  ;;  %7237 = vmatpush3.bf16.msra.mxu1 %v7236_v50  ;;  %v2939_v50 = vld [vmem:[#allocation3 + $0x1b0] sm:$0x1]  ;;  %v10786_v49 = vadd.f32 %v6272_v19, %v6271_v42  ;;  %v6274_v26 = vpop.f32.mrb[8].mxu1  ;;  %v2949_v18 = vld [vmem:[#allocation3 + $0x200] sm:$0xfe]  ;;  %v3026_v51 = vrot.slane %v2950_v11, 1 }
 0x347   :  { %7239 = vmatprep.subr.bf16.mxu1 %v7238_v23  ;;  %v6509_v23 = vpop.f32.mrb[37].mxu0  ;;  %v3006_v32 = vrot.slane %v2939_v50, 1  ;;  %v6275_v55 = vpop.f32.mrb[9].mxu1  ;;  %v3010_v43 = vsel %vm1709_vm5, %v3008_v8, %v3009_v0  ;;  %v2951_v59 = vld [vmem:[#allocation3 + $0x210] sm:$0x1]  ;;  %v3023_v50 = vrot.slane %v2949_v18, 1 }
 0x348   :  { %v10788_v44 = vadd.f32 %v6509_v23, %v6508_v13  ;;  %v6511_v40 = vpop.f32.mrb[38].mxu0  ;;  %v10792_v14 = vadd.f32 %v6275_v55, %v6274_v26  ;;  %v6277_v47 = vpop.f32.mrb[10].mxu1  ;;  %v2954_v42 = vld [vmem:[#allocation3 + $0x228] sm:$0xfe]  ;;  %v2956_v13 = vld [vmem:[#allocation3 + $0x238] sm:$0x1] }
 0x349   :  { %4796 = vmatmul.mubr.f32.gmra.mrb[108].mxu1 %v2069_v3  ;;  %v3007_v41 = vsel %vm1709_vm5, %v3005_v39, %v3006_v32  ;;  %v6278_v30 = vpop.f32.mrb[11].mxu1  ;;  %v3024_v8 = vrot.slane %v2951_v59, 1  ;;  %v3032_v0 = vrot.slane %v2954_v42, 1  ;;  %v3033_v24 = vrot.slane %v2956_v13, 1  ;;  %v2953_v21 = vld [vmem:[#allocation3 + $0x220] sm:$0xfe] }
 0x34a   :  { %4800 = vmatprep.mubr.f32.mxu1 %v2078_v38  ;;  %7241 = vmatpush3.bf16.msra.mxu1 %v7240_v54  ;;  %v3001_v54 = vsel %vm1709_vm5, %v2999_v16, %v3000_v27  ;;  %v10798_v1 = vadd.f32 %v6278_v30, %v6277_v47  ;;  %v6280_v60 = vpop.f32.mrb[12].mxu1  ;;  %v3022_v27 = vsel %vm1709_vm5, %v3020_v4, %v3021_v58  ;;  %v2955_v6 = vld [vmem:[#allocation3 + $0x230] sm:$0x1]  ;;  %v2960_v56 = vld [vmem:[#allocation3 + $0x258] sm:$0x1]  ;;  %v2257_v13 = vld [vmem:[#allocation3 + $0x48] sm:$0xff] }
 0x34b   :  { %7243 = vmatprep.subr.bf16.mxu1 %v7242_v22  ;;  %v6512_v22 = vpop.f32.mrb[39].mxu0  ;;  %v6281_v15 = vpop.f32.mrb[13].mxu1  ;;  %v3030_v29 = vrot.slane %v2955_v6, 1  ;;  %v2957_v9 = vld [vmem:[#allocation3 + $0x240] sm:$0xfe]  ;;  %v3034_v4 = vsel %vm1709_vm5, %v3032_v0, %v3033_v24  ;;  %v3039_v47 = vrot.slane %v2960_v56, 1 }
 0x34c   :  { %v10794_v3 = vadd.f32 %v6512_v22, %v6511_v40  ;;  %v6514_v38 = vpop.f32.mrb[40].mxu0  ;;  %v6283_v19 = vpop.f32.mrb[14].mxu1  ;;  %v3025_v22 = vsel %vm1709_vm5, %v3023_v50, %v3024_v8  ;;  %v4084_v8 = vld [vmem:[%s11712_s5 + $0x810] sm:$0xff]  ;;  %v4085_v0 = vld [vmem:[%s11712_s5 + $0x818] sm:$0xff]  ;;  %v2259_v56 = vld [vmem:[#allocation3 + $0x68] sm:$0xff] }
 0x34d   :  { %4801 = vmatmul.mubr.f32.gmra.mrb[110].mxu1 %v2075_v2  ;;  %v3017_v2 = vrot.slane %v2945_v35, 1  ;;  %v6284_v62 = vpop.f32.mrb[15].mxu1 }
 0x34e   :  { %4805 = vmatprep.mubr.f32.mxu1 %v2998_v53  ;;  %7245 = vmatpush3.bf16.msra.mxu1 %v7244_v61  ;;  %v6515_v61 = vpop.f32.mrb[41].mxu0  ;;  %v3013_v53 = vsel %vm1709_vm5, %v3011_v17, %v3012_v37  ;;  %v10810_v26 = vadd.f32 %v6284_v62, %v6283_v19 }
 0x34f   :  { %7279 = vmatprep.subr.bf16.mxu1 %v7278_v25  ;;  %v2952_v25 = vld [vmem:[#allocation3 + $0x218] sm:$0x1]  ;;  %v10800_v57 = vadd.f32 %v6515_v61, %v6514_v38  ;;  %v6517_v33 = vpop.f32.mrb[42].mxu0  ;;  %v2959_v38 = vld [vmem:[#allocation3 + $0x250] sm:$0x1] }
 0x350   :  { %v3027_v34 = vrot.slane %v2952_v25, 1  ;;  %v6518_v16 = vpop.f32.mrb[43].mxu0  ;;  %v6286_v20 = vpop.f32.mrb[16].mxu1  ;;  %v3036_v11 = vrot.slane %v2959_v38, 1 }
 0x351   :  { %4806 = vmatmul.mubr.f32.gmra.mrb[112].mxu1 %v2995_v31  ;;  %v10804_v31 = vadd.f32 %v6281_v15, %v6280_v60  ;;  %v10806_v52 = vadd.f32 %v6518_v16, %v6517_v33  ;;  %v6520_v23 = vpop.f32.mrb[44].mxu0  ;;  %v6287_v17 = vpop.f32.mrb[17].mxu1  ;;  %v4082_v33 = vld [vmem:[%s11712_s5 + $0x800] sm:$0xff]  ;;  %v4100_v15 = vld [vmem:[%s11712_s5 + $0x890] sm:$0xff]  ;;  %v4101_v16 = vld [vmem:[%s11712_s5 + $0x898] sm:$0xff] }
 0x352   :  { %4810 = vmatprep.mubr.f32.mxu1 %v3004_v45  ;;  %v3019_v45 = vsel %vm1709_vm5, %v3017_v2, %v3018_v12  ;;  %v6521_v39 = vpop.f32.mrb[45].mxu0  ;;  %v3028_v32 = vsel %vm1709_vm5, %v3026_v51, %v3027_v34 }
 0x353   :  { %v10812_v40 = vadd.f32 %v6521_v39, %v6520_v23  ;;  %v6523_v55 = vpop.f32.mrb[46].mxu0  ;;  %v2256_v39 = vld [vmem:[#allocation3 + $0x40] sm:$0xff] }
 0x354   :  { %v6524_v37 = vpop.f32.mrb[47].mxu0  ;;  %v6289_v28 = vpop.f32.mrb[18].mxu1 }
 0x355   :  { %4811 = vmatmul.mubr.f32.gmra.mrb[114].mxu1 %v3001_v54  ;;  %v2958_v54 = vld [vmem:[#allocation3 + $0x248] sm:$0xfe]  ;;  %v10818_v35 = vadd.f32 %v6524_v37, %v6523_v55  ;;  %v6526_v30 = vpop.f32.mrb[48].mxu0  ;;  %v6290_v25 = vpop.f32.mrb[19].mxu1 }
 0x356   :  { %4815 = vmatprep.mubr.f32.mxu1 %v3010_v43  ;;  %v3029_v43 = vrot.slane %v2953_v21, 1  ;;  %v3038_v58 = vrot.slane %v2958_v54, 1  ;;  %v6527_v2 = vpop.f32.mrb[49].mxu0  ;;  %v10822_v18 = vadd.f32 %v6290_v25, %v6289_v28  ;;  %v4103_v21 = vld [vmem:[%s11712_s5 + $0x8a8] sm:$0xff] }
 0x357   :  { %v10824_v60 = vadd.f32 %v6527_v2, %v6526_v30  ;;  %v2261_v30 = vld [vmem:[#allocation3 + $0x88] sm:$0xff]  ;;  %v4088_v2 = vld [vmem:[%s11712_s5 + $0x830] sm:$0xff] }
 0x358   :  { %v3031_v61 = vsel %vm1709_vm5, %v3029_v43, %v3030_v29  ;;  %v3040_v12 = vsel %vm1709_vm5, %v3038_v58, %v3039_v47  ;;  %v6292_v51 = vpop.f32.mrb[20].mxu1  ;;  %v6529_v34 = vpop.f32.mrb[50].mxu0  ;;  %v4086_v29 = vld [vmem:[%s11712_s5 + $0x820] sm:$0xff]  ;;  %v4104_v58 = vld [vmem:[%s11712_s5 + $0x8b0] sm:$0xff]  ;;  %v4105_v47 = vld [vmem:[%s11712_s5 + $0x8b8] sm:$0xff] }
 0x359   :  { %4816 = vmatmul.mubr.f32.gmra.mrb[116].mxu1 %v3007_v41  ;;  %v10816_v41 = vadd.f32 %v6287_v17, %v6286_v20  ;;  %v6530_v42 = vpop.f32.mrb[51].mxu0  ;;  %v7290_v25 = vpack.c.bf16 %v4105_v47, %v4104_v58  ;;  %v2264_v47 = vld [vmem:[#allocation3 + $0xc0] sm:$0xff] }
 0x35a   :  { %4820 = vmatprep.mubr.f32.mxu1 %v3016_v63  ;;  %v3035_v63 = vrot.slane %v2957_v9, 1  ;;  %v10841_v19 = vadd.f32 %v6530_v42, %v6529_v34  ;;  %v4087_v9 = vld [vmem:[%s11712_s5 + $0x828] sm:$0xff]  ;;  %v4106_v34 = vld [vmem:[%s11712_s5 + $0x8c0] sm:$0xff] }
 0x35c   :  { %v3037_v59 = vsel %vm1709_vm5, %v3035_v63, %v3036_v11  ;;  %v6532_v62 = vpop.f32.mrb[52].mxu0  ;;  %v7288_v11 = vpack.c.bf16 %v4087_v9, %v4086_v29 }
 0x35d   :  { %4821 = vmatmul.mubr.f32.gmra.mrb[118].mxu1 %v3013_v53  ;;  %v4083_v53 = vld [vmem:[%s11712_s5 + $0x808] sm:$0xff]  ;;  %v6533_v54 = vpop.f32.mrb[53].mxu0 }
 0x35e   :  { %4825 = vmatprep.mubr.f32.mxu1 %v3022_v27  ;;  %v6293_v27 = vpop.f32.mrb[21].mxu1  ;;  %v7280_v23 = vpack.c.bf16 %v4083_v53, %v4082_v33  ;;  %v10857_v55 = vadd.f32 %v6533_v54, %v6532_v62 }
 0x35f   :  { %v10839_v50 = vadd.f32 %v6293_v27, %v6292_v51  ;;  %v6295_v24 = vpop.f32.mrb[22].mxu1  ;;  %v2260_v51 = vld [vmem:[#allocation3 + $0x80] sm:$0xff]  ;;  %v2263_v27 = vld [vmem:[#allocation3 + $0xa8] sm:$0xff] }
 0x360   :  { %v6296_v6 = vpop.f32.mrb[23].mxu1  ;;  %v6535_v37 = vpop.f32.mrb[54].mxu0 }
 0x361   :  { %4826 = vmatmul.mubr.f32.gmra.mrb[120].mxu1 %v3019_v45  ;;  %v7282_v45 = vpack.c.bf16 %v4101_v16, %v4100_v15  ;;  %v10855_v20 = vadd.f32 %v6296_v6, %v6295_v24  ;;  %v6298_v17 = vpop.f32.mrb[24].mxu1  ;;  %v6536_v28 = vpop.f32.mrb[55].mxu0 }
 0x362   :  { %4830 = vmatprep.mubr.f32.mxu1 %v3028_v32  ;;  %v4102_v32 = vld [vmem:[%s11712_s5 + $0x8a0] sm:$0xff]  ;;  %v6299_v38 = vpop.f32.mrb[25].mxu1  ;;  %v10873_v63 = vadd.f32 %v6536_v28, %v6535_v37  ;;  %v4093_v37 = vld [vmem:[%s11712_s5 + $0x858] sm:$0xff]  ;;  %v4111_v28 = vld [vmem:[%s11712_s5 + $0x8e8] sm:$0xff] }
 0x363   :  { %v7286_v43 = vpack.c.bf16 %v4103_v21, %v4102_v32  ;;  %v4108_v32 = vld [vmem:[%s11712_s5 + $0x8d0] sm:$0xff]  ;;  %v4109_v21 = vld [vmem:[%s11712_s5 + $0x8d8] sm:$0xff] }
 0x364   :  { %v7298_v9 = vpack.c.bf16 %v4109_v21, %v4108_v32 }
 0x365   :  { %4831 = vmatmul.mubr.f32.gmra.mrb[122].mxu1 %v3025_v22  ;;  %v7284_v22 = vpack.c.bf16 %v4085_v0, %v4084_v8  ;;  %v6301_v33 = vpop.f32.mrb[26].mxu1  ;;  %v6538_v53 = vpop.f32.mrb[56].mxu0  ;;  %v4090_v8 = vld [vmem:[%s11712_s5 + $0x840] sm:$0xff]  ;;  %v4091_v0 = vld [vmem:[%s11712_s5 + $0x848] sm:$0xff] }
 0x366   :  { %4835 = vmatprep.mubr.f32.mxu1 %v3034_v4  ;;  %v2258_v4 = vld [vmem:[#allocation3 + $0x60] sm:$0xff]  ;;  %v6302_v15 = vpop.f32.mrb[27].mxu1  ;;  %v6539_v16 = vpop.f32.mrb[57].mxu0  ;;  %v7296_v29 = vpack.c.bf16 %v4091_v0, %v4090_v8 }
 0x367   :  { %v10887_v42 = vadd.f32 %v6302_v15, %v6301_v33 }
 0x369   :  { %4836 = vmatmul.mubr.f32.gmra.mrb[124].mxu1 %v3031_v61  ;;  %v10871_v61 = vadd.f32 %v6299_v38, %v6298_v17  ;;  %v4092_v17 = vld [vmem:[%s11712_s5 + $0x850] sm:$0xff]  ;;  %v4110_v38 = vld [vmem:[%s11712_s5 + $0x8e0] sm:$0xff] }
 0x36a   :  { %4840 = vmatprep.mubr.f32.mxu1 %v3040_v12  ;;  %v4089_v12 = vld [vmem:[%s11712_s5 + $0x838] sm:$0xff] }
 0x36b   :  { %v6304_v24 = vpop.f32.mrb[28].mxu1  ;;  %v6541_v62 = vpop.f32.mrb[58].mxu0 }
 0x36c   :  { %v6305_v6 = vpop.f32.mrb[29].mxu1  ;;  %v6542_v54 = vpop.f32.mrb[59].mxu0 }
 0x36d   :  { %4841 = vmatmul.mubr.f32.gmra.mrb[126].mxu1 %v3037_v59  ;;  %v4107_v59 = vld [vmem:[%s11712_s5 + $0x8c8] sm:$0xff] }
 0x36e   :  { %5055 = vmatprep.mubr.f32.mxu1 %v2257_v13  ;;  %v10889_v13 = vadd.f32 %v6539_v16, %v6538_v53  ;;  %v7300_v53 = vpack.c.bf16 %v4093_v37, %v4092_v17  ;;  %v2268_v17 = vld [vmem:[#allocation3 + $0x100] sm:$0xff] }
 0x371   :  { %5056 = vmatmul.mubr.f32.vlgmr.msra.gmra.mrb[128].mxu1 %v2256_v39  ;;  %v2262_v39 = vld [vmem:[#allocation3 + $0xa0] sm:$0xff]  ;;  %v6544_v58 = vpop.f32.mrb[60].mxu0 }
 0x372   :  { %7281 = vmatpush3.bf16.msra.mxu1 %v7280_v23  ;;  %5060 = vmatprep.mubr.f32.mxu1 %v2259_v56  ;;  %v7292_v23 = vpack.c.bf16 %v4089_v12, %v4088_v2  ;;  %v2265_v56 = vld [vmem:[#allocation3 + $0xc8] sm:$0xff]  ;;  %v10922_v2 = vld [vmem:[%s11713_s6] ss:$0 sm:$0xff] }
 0x373   :  { %7283 = vmatprep.subr.bf16.mxu1 %v7282_v45  ;;  %v7294_v45 = vpack.c.bf16 %v4107_v59, %v4106_v34  ;;  %v4094_v34 = vld [vmem:[%s11712_s5 + $0x860] sm:$0xff]  ;;  %v4095_v59 = vld [vmem:[%s11712_s5 + $0x868] sm:$0xff]  ;;  %v4188_v8 = vadd.f32 %v10627_v7, %v10922_v2 }
 0x374   :  { %v7304_v21 = vpack.c.bf16 %v4095_v59, %v4094_v34  ;;  %v3219_v34 = vld [vmem:[#allocation3 + $0x188] sm:$0xff]  ;;  %v4198_v59 = vadd.f32 %v10780_v46, %v10922_v2 }
 0x375   :  { %5061 = vmatmul.mubr.f32.gmra.mrb[130].mxu1 %v2258_v4  ;;  %v6307_v4 = vpop.f32.mrb[30].mxu1 }
 0x376   :  { %5065 = vmatprep.mubr.f32.mxu1 %v2261_v30  ;;  %7285 = vmatpush3.bf16.msra.mxu1 %v7284_v22  ;;  %v10903_v22 = vadd.f32 %v6305_v6, %v6304_v24  ;;  %v6308_v30 = vpop.f32.mrb[31].mxu1  ;;  %v4096_v6 = vld [vmem:[%s11712_s5 + $0x870] sm:$0xff] }
 0x377   :  { %7287 = vmatprep.subr.bf16.mxu1 %v7286_v43  ;;  %v10905_v43 = vadd.f32 %v6542_v54, %v6541_v62  ;;  %v10924_v12 = vadd.f32 %v6308_v30, %v6307_v4  ;;  %v6342_v15 = vpop.f32.mrb[32].mxu1  ;;  %v2269_v62 = vld [vmem:[#allocation3 + $0x108] sm:$0xff]  ;;  %v4097_v54 = vld [vmem:[%s11712_s5 + $0x878] sm:$0xff] }
 0x378   :  { %v6343_v0 = vpop.f32.mrb[33].mxu1 }
 0x379   :  { %5066 = vmatmul.mubr.f32.gmra.mrb[132].mxu1 %v2260_v51  ;;  %v7302_v51 = vpack.c.bf16 %v4111_v28, %v4110_v38 }
 0x37a   :  { %5070 = vmatprep.mubr.f32.mxu1 %v2263_v27  ;;  %7289 = vmatpush3.bf16.msra.mxu1 %v7288_v11  ;;  %v6545_v11 = vpop.f32.mrb[61].mxu0  ;;  %v2266_v27 = vld [vmem:[#allocation3 + $0xe0] sm:$0xff] }
 0x37b   :  { %7291 = vmatprep.subr.bf16.mxu1 %v7290_v25  ;;  %v2267_v25 = vld [vmem:[#allocation3 + $0xe8] sm:$0xff]  ;;  %v10926_v33 = vadd.f32 %v6545_v11, %v6544_v58  ;;  %v6547_v16 = vpop.f32.mrb[62].mxu0  ;;  %v7308_v58 = vpack.c.bf16 %v4097_v54, %v4096_v6 }
 0x37c   :  { %v6548_v24 = vpop.f32.mrb[63].mxu0 }
 0x37d   :  { %5071 = vmatmul.mubr.f32.gmra.mrb[134].mxu1 %v2262_v39  ;;  %v6344_v39 = vadd.f32 %v6343_v0, %v6342_v15  ;;  %v10942_v32 = vadd.f32 %v6548_v24, %v6547_v16  ;;  %v3221_v24 = vld [vmem:[#allocation3 + $0x1a8] sm:$0xff] }
 0x37e   :  { %5075 = vmatprep.mubr.f32.mxu1 %v2265_v56  ;;  %7293 = vmatpush3.bf16.msra.mxu1 %v7292_v23  ;;  %v4112_v23 = vld [vmem:[%s11712_s5 + $0x8f0] sm:$0xff] }
 0x37f   :  { %7295 = vmatprep.subr.bf16.mxu1 %v7294_v45  ;;  %v4113_v45 = vld [vmem:[%s11712_s5 + $0x8f8] sm:$0xff]  ;;  %v10950_v56 = vadd.f32 %v6344_v39, %v4188_v8 }
 0x380   :  { %v7306_v7 = vpack.c.bf16 %v4113_v45, %v4112_v23  ;;  %v3218_v45 = vld [vmem:[#allocation3 + $0x180] sm:$0xff] }
 0x381   :  { %5076 = vmatmul.mubr.f32.gmra.mrb[136].mxu1 %v2264_v47  ;;  %v4193_v47 = vadd.f32 %v10774_v5, %v10922_v2 }
 0x382   :  { %5080 = vmatprep.mubr.f32.mxu1 %v2267_v25  ;;  %7297 = vmatpush3.bf16.msra.mxu1 %v7296_v29  ;;  %v6345_v29 = vpop.f32.mrb[34].mxu1 }
 0x383   :  { %7299 = vmatprep.subr.bf16.mxu1 %v7298_v9  ;;  %v6662_v9 = vpop.f32.mrb[64].mxu0  ;;  %v6346_v37 = vpop.f32.mrb[35].mxu1 }
 0x384   :  { %v6663_v4 = vpop.f32.mrb[65].mxu0  ;;  %v6347_v38 = vadd.f32 %v6346_v37, %v6345_v29  ;;  %v6348_v11 = vpop.f32.mrb[36].mxu1  ;;  %v4208_v37 = vadd.f32 %v10792_v14, %v10922_v2 }
 0x385   :  { %5081 = vmatmul.mubr.f32.gmra.mrb[138].mxu1 %v2266_v27  ;;  %v10954_v28 = vadd.f32 %v6663_v4, %v6662_v9  ;;  %v6665_v25 = vpop.f32.mrb[66].mxu0 }
 0x386   :  { %5085 = vmatprep.mubr.f32.mxu1 %v2269_v62  ;;  %7301 = vmatpush3.bf16.msra.mxu1 %v7300_v53  ;;  %v10957_v30 = vadd.f32 %v6347_v38, %v4193_v47  ;;  %v6349_v53 = vpop.f32.mrb[37].mxu1  ;;  %v4203_v62 = vadd.f32 %v10786_v49, %v10922_v2 }
 0x387   :  { %7303 = vmatprep.subr.bf16.mxu1 %v7302_v51  ;;  %v6666_v51 = vpop.f32.mrb[67].mxu0  ;;  %v6350_v5 = vadd.f32 %v6349_v53, %v6348_v11  ;;  %v6351_v27 = vpop.f32.mrb[38].mxu1  ;;  %v3222_v11 = vld [vmem:[#allocation3 + $0x1c0] sm:$0xff] }
 0x388   :  { %v10962_v15 = vadd.f32 %v6666_v51, %v6665_v25  ;;  %v6668_v23 = vpop.f32.mrb[68].mxu0  ;;  %v6352_v8 = vpop.f32.mrb[39].mxu1  ;;  %v3225_v51 = vld [vmem:[#allocation3 + $0x1e8] sm:$0xff] }
 0x389   :  { %5086 = vmatmul.mubr.f32.gmra.mrb[140].mxu1 %v2268_v17  ;;  %v10964_v16 = vadd.f32 %v6350_v5, %v4198_v59  ;;  %v6669_v0 = vpop.f32.mrb[69].mxu0  ;;  %v6353_v39 = vadd.f32 %v6352_v8, %v6351_v27  ;;  %v3223_v17 = vld [vmem:[#allocation3 + $0x1c8] sm:$0xff] }
 0x38a   :  { %5090 = vmatprep.mubr.f32.mxu1 %v10742_v10  ;;  %7305 = vmatpush3.bf16.msra.mxu1 %v7304_v21  ;;  %v10968_v21 = vadd.f32 %v6669_v0, %v6668_v23 }
 0x38b   :  { %7307 = vmatprep.subr.bf16.mxu1 %v7306_v7  ;;  %v10970_v46 = vadd.f32 %v6353_v39, %v4203_v62  ;;  %v3220_v7 = vld [vmem:[#allocation3 + $0x1a0] sm:$0xff]  ;;  %v4218_v62 = vadd.f32 %v10804_v31, %v10922_v2 }
 0x38d   :  { %5091 = vmatmul.mubr.f32.gmra.mrb[142].mxu1 %v10742_v10 }
 0x38e   :  { %5095 = vmatprep.mubr.f32.mxu1 %v3219_v34  ;;  %7309 = vmatpush3.bf16.msra.mxu1 %v7308_v58  ;;  %v6671_v54 = vpop.f32.mrb[70].mxu0  ;;  %v4213_v34 = vadd.f32 %v10798_v1, %v10922_v2 }
 0x38f   :  { %v6354_v6 = vpop.f32.mrb[40].mxu1  ;;  %v6672_v9 = vpop.f32.mrb[71].mxu0 }
 0x390   :  { %v6355_v29 = vpop.f32.mrb[41].mxu1  ;;  %v10974_v58 = vadd.f32 %v6672_v9, %v6671_v54 }
 0x391   :  { %5096 = vmatmul.mubr.f32.gmra.mrb[144].mxu1 %v3218_v45  ;;  %v6356_v4 = vadd.f32 %v6355_v29, %v6354_v6  ;;  %v3224_v45 = vld [vmem:[#allocation3 + $0x1e0] sm:$0xff] }
 0x392   :  { %5100 = vmatprep.mubr.f32.mxu1 %v3221_v24  ;;  %11898 = vst [vmem:[#allocation20_spill] sm:$0xff] %v10974_v58  ;;  %v6674_v38 = vpop.f32.mrb[72].mxu0  ;;  %v3227_v24 = vld [vmem:[#allocation3 + $0x208] sm:$0xff]  ;;  %v3226_v29 = vld [vmem:[#allocation3 + $0x200] sm:$0xff] }
 0x393   :  { %v10976_v49 = vadd.f32 %v6356_v4, %v4208_v37  ;;  %v6357_v47 = vpop.f32.mrb[42].mxu1  ;;  %v6675_v53 = vpop.f32.mrb[73].mxu0  ;;  %v3229_v37 = vld [vmem:[#allocation3 + $0x228] sm:$0xff]  ;;  %v4223_v4 = vadd.f32 %v10810_v26, %v10922_v2 }
 0x394   :  { %v6358_v25 = vpop.f32.mrb[43].mxu1  ;;  %v10980_v5 = vadd.f32 %v6675_v53, %v6674_v38  ;;  %v3228_v53 = vld [vmem:[#allocation3 + $0x220] sm:$0xff]  ;;  %v2433_v26 = vld [vmem:[#allocation3 + $0x48] sm:$0xfc] }
 0x395   :  { %5101 = vmatmul.mubr.f32.gmra.mrb[146].mxu1 %v3220_v7  ;;  %v6359_v59 = vadd.f32 %v6358_v25, %v6357_v47 }
 0x396   :  { %5105 = vmatprep.mubr.f32.mxu1 %v3223_v17  ;;  %11899 = vst [vmem:[#allocation19_spill] sm:$0xff] %v10980_v5 }
 0x397   :  { %v10982_v14 = vadd.f32 %v6359_v59, %v4213_v34  ;;  %v3231_v59 = vld [vmem:[#allocation3 + $0x248] sm:$0xff] }
 0x398   :  { %v6360_v27 = vpop.f32.mrb[44].mxu1 }
 0x399   :  { %5106 = vmatmul.mubr.f32.gmra.mrb[148].mxu1 %v3222_v11  ;;  %v6677_v23 = vpop.f32.mrb[74].mxu0  ;;  %v6361_v8 = vpop.f32.mrb[45].mxu1 }
 0x39a   :  { %5110 = vmatprep.mubr.f32.mxu1 %v3225_v51  ;;  %v6678_v0 = vpop.f32.mrb[75].mxu0  ;;  %v6362_v39 = vadd.f32 %v6361_v8, %v6360_v27  ;;  %v4228_v27 = vadd.f32 %v10816_v41, %v10922_v2  ;;  %v2435_v8 = vld [vmem:[#allocation3 + $0x58] sm:$0x3]  ;;  %v4233_v41 = vadd.f32 %v10822_v18, %v10922_v2 }
 0x39b   :  { %v10986_v6 = vadd.f32 %v6678_v0, %v6677_v23  ;;  %v3230_v0 = vld [vmem:[#allocation3 + $0x240] sm:$0xff] }
 0x39c   :  { %v10988_v1 = vadd.f32 %v6362_v39, %v4218_v62 }
 0x39d   :  { %5111 = vmatmul.mubr.f32.gmra.mrb[150].mxu1 %v3224_v45  ;;  %11900 = vst [vmem:[#allocation22_spill] sm:$0xff] %v10986_v6  ;;  %v6363_v54 = vpop.f32.mrb[46].mxu1  ;;  %v6680_v7 = vpop.f32.mrb[76].mxu0 }
 0x39e   :  { %5115 = vmatprep.mubr.f32.mxu1 %v3227_v24  ;;  %v6364_v9 = vpop.f32.mrb[47].mxu1  ;;  %v6681_v17 = vpop.f32.mrb[77].mxu0 }
 0x39f   :  { %v6365_v47 = vadd.f32 %v6364_v9, %v6363_v54  ;;  %v10992_v38 = vadd.f32 %v6681_v17, %v6680_v7  ;;  %v2432_v54 = vld [vmem:[#allocation3 + $0x40] sm:$0xfc]  ;;  %v2434_v7 = vld [vmem:[#allocation3 + $0x50] sm:$0x3]  ;;  %v2499_v17 = vrot.slane %v2433_v26, 2 }
 0x3a1   :  { %5116 = vmatmul.mubr.f32.gmra.mrb[152].mxu1 %v3226_v29  ;;  %11901 = vst [vmem:[#allocation21_spill] sm:$0xff] %v10992_v38  ;;  %v10994_v31 = vadd.f32 %v6365_v47, %v4223_v4  ;;  %v6366_v11 = vpop.f32.mrb[48].mxu1 }
 0x3a2   :  { %5120 = vmatprep.mubr.f32.mxu1 %v3229_v37  ;;  %v6367_v51 = vpop.f32.mrb[49].mxu1  ;;  %v2500_v37 = vrot.slane %v2435_v8, 2 }
 0x3a3   :  { %v6368_v23 = vadd.f32 %v6367_v51, %v6366_v11  ;;  %v2437_v11 = vld [vmem:[#allocation3 + $0x68] sm:$0xfc]  ;;  %v2497_v51 = vrot.slane %v2434_v7, 2 }
 0x3a4   :  { %v6683_v25 = vpop.f32.mrb[78].mxu0  ;;  %v2501_v18 = vsel %vm1854_vm6, %v2499_v17, %v2500_v37  ;;  %v2441_v7 = vld [vmem:[#allocation3 + $0x88] sm:$0xfc]  ;;  %v2440_v17 = vld [vmem:[#allocation3 + $0x80] sm:$0xfc] }
 0x3a5   :  { %v6684_v34 = vpop.f32.mrb[79].mxu0  ;;  %5121 = vmatmul.mubr.f32.gmra.mrb[154].mxu1 %v3228_v53  ;;  %v11000_v24 = vadd.f32 %v6368_v23, %v4228_v27  ;;  %v2496_v53 = vrot.slane %v2432_v54, 2  ;;  %v2436_v23 = vld [vmem:[#allocation3 + $0x60] sm:$0xfc]  ;;  %v2442_v37 = vld [vmem:[#allocation3 + $0x90] sm:$0x3] }
 0x3a6   :  { %v10998_v45 = vadd.f32 %v6684_v34, %v6683_v25  ;;  %5125 = vmatprep.mubr.f32.mxu1 %v3231_v59  ;;  %v2439_v25 = vld [vmem:[#allocation3 + $0x78] sm:$0x3] }
 0x3a7   :  { %v6369_v62 = vpop.f32.mrb[50].mxu1 }
 0x3a8   :  { %11902 = vst [vmem:[#allocation24_spill] sm:$0xff] %v10998_v45  ;;  %v6686_v39 = vpop.f32.mrb[80].mxu0  ;;  %v6370_v29 = vpop.f32.mrb[51].mxu1 }
 0x3a9   :  { %v6687_v9 = vpop.f32.mrb[81].mxu0  ;;  %5126 = vmatmul.mubr.f32.gmra.mrb[156].mxu1 %v3230_v0  ;;  %v6371_v4 = vadd.f32 %v6370_v29, %v6369_v62  ;;  %v2438_v0 = vld [vmem:[#allocation3 + $0x70] sm:$0x3]  ;;  %v2505_v62 = vrot.slane %v2437_v11, 2  ;;  %v4238_v29 = vadd.f32 %v10839_v50, %v10922_v2 }
 0x3aa   :  { %v11004_v47 = vadd.f32 %v6687_v9, %v6686_v39  ;;  %5130 = vmatprep.mubr.f32.mxu1 %v10742_v10  ;;  %v2506_v39 = vrot.slane %v2439_v25, 2 }
 0x3ab   :  { %v11007_v34 = vadd.f32 %v6371_v4, %v4233_v41  ;;  %v6372_v59 = vpop.f32.mrb[52].mxu1  ;;  %v2443_v41 = vld [vmem:[#allocation3 + $0x98] sm:$0x3]  ;;  %v2502_v4 = vrot.slane %v2436_v23, 2 }
 0x3ac   :  { %11903 = vst [vmem:[#allocation23_spill] sm:$0xff] %v11004_v47  ;;  %v6689_v27 = vpop.f32.mrb[82].mxu0  ;;  %v6373_v26 = vpop.f32.mrb[53].mxu1  ;;  %v2503_v47 = vrot.slane %v2438_v0, 2  ;;  %v2507_v50 = vsel %vm1854_vm6, %v2505_v62, %v2506_v39  ;;  %v2444_v62 = vld [vmem:[#allocation3 + $0xa0] sm:$0xfc] }
 0x3ad   :  { %v6690_v8 = vpop.f32.mrb[83].mxu0  ;;  %5131 = vmatmul.mubr.f32.gmra.mrb[158].mxu1 %v10742_v10  ;;  %v6374_v9 = vadd.f32 %v6373_v26, %v6372_v59  ;;  %v2498_v10 = vsel %vm1854_vm6, %v2496_v53, %v2497_v51  ;;  %v2511_v59 = vrot.slane %v2441_v7, 2  ;;  %v4243_v26 = vadd.f32 %v10855_v20, %v10922_v2  ;;  %v2446_v39 = vld [vmem:[#allocation3 + $0xb0] sm:$0x3] }
 0x3ae   :  { %v11013_v54 = vadd.f32 %v6690_v8, %v6689_v27  ;;  %5345 = vmatprep.mubr.f32.mxu1 %v2501_v18  ;;  %v2512_v27 = vrot.slane %v2443_v41, 2  ;;  %v2445_v8 = vld [vmem:[#allocation3 + $0xa8] sm:$0xfc]  ;;  %v2447_v18 = vld [vmem:[#allocation3 + $0xb8] sm:$0x3]  ;;  %v2509_v53 = vrot.slane %v2442_v37, 2 }
 0x3af   :  { %v11015_v45 = vadd.f32 %v6374_v9, %v4238_v29  ;;  %v2508_v29 = vrot.slane %v2440_v17, 2 }
 0x3b0   :  { %11904 = vst [vmem:[#allocation26_spill] sm:$0xff] %v11013_v54  ;;  %v6375_v38 = vpop.f32.mrb[54].mxu1  ;;  %v6692_v6 = vpop.f32.mrb[84].mxu0  ;;  %v2513_v20 = vsel %vm1854_vm6, %v2511_v59, %v2512_v27  ;;  %v2448_v59 = vld [vmem:[#allocation3 + $0xc0] sm:$0xfc] }
 0x3b1   :  { %v6376_v11 = vpop.f32.mrb[55].mxu1  ;;  %v6693_v25 = vpop.f32.mrb[85].mxu0  ;;  %5346 = vmatmul.mubr.f32.vlgmr.msra.gmra.mrb[160].mxu1 %v2498_v10  ;;  %v2504_v10 = vsel %vm1854_vm6, %v2502_v4, %v2503_v47  ;;  %v2515_v47 = vrot.slane %v2446_v39, 2  ;;  %v2450_v27 = vld [vmem:[#allocation3 + $0xd0] sm:$0x3] }
 0x3b2   :  { %v6377_v23 = vadd.f32 %v6376_v11, %v6375_v38  ;;  %v11021_v0 = vadd.f32 %v6693_v25, %v6692_v6  ;;  %5350 = vmatprep.mubr.f32.mxu1 %v2507_v50  ;;  %v2517_v6 = vrot.slane %v2445_v8, 2  ;;  %v2518_v38 = vrot.slane %v2447_v18, 2  ;;  %v2449_v25 = vld [vmem:[#allocation3 + $0xc8] sm:$0xfc]  ;;  %v2451_v50 = vld [vmem:[#allocation3 + $0xd8] sm:$0x3] }
 0x3b3   :  { %v4248_v11 = vadd.f32 %v10871_v61, %v10922_v2 }
 0x3b4   :  { %11905 = vst [vmem:[#allocation28_spill] sm:$0xff] %v11021_v0  ;;  %v11023_v51 = vadd.f32 %v6377_v23, %v4243_v26  ;;  %v6378_v9 = vpop.f32.mrb[56].mxu1  ;;  %v6695_v54 = vpop.f32.mrb[86].mxu0  ;;  %v2514_v26 = vrot.slane %v2444_v62, 2  ;;  %v2519_v61 = vsel %vm1854_vm6, %v2517_v6, %v2518_v38  ;;  %v2457_v38 = vld [vmem:[#allocation3 + $0x108] sm:$0xfc] }
 0x3b5   :  { %v6379_v7 = vpop.f32.mrb[57].mxu1  ;;  %v6696_v41 = vpop.f32.mrb[87].mxu0  ;;  %5351 = vmatmul.mubr.f32.gmra.mrb[162].mxu1 %v2504_v10  ;;  %v2510_v10 = vsel %vm1854_vm6, %v2508_v29, %v2509_v53  ;;  %v2521_v29 = vrot.slane %v2450_v27, 2  ;;  %v2452_v53 = vld [vmem:[#allocation3 + $0xe0] sm:$0xfc] }
 0x3b6   :  { %v6380_v17 = vadd.f32 %v6379_v7, %v6378_v9  ;;  %v11029_v37 = vadd.f32 %v6696_v41, %v6695_v54  ;;  %5355 = vmatprep.mubr.f32.mxu1 %v2513_v20  ;;  %v2523_v54 = vrot.slane %v2449_v25, 2  ;;  %v2524_v9 = vrot.slane %v2451_v50, 2  ;;  %v2453_v41 = vld [vmem:[#allocation3 + $0xe8] sm:$0xfc]  ;;  %v2455_v20 = vld [vmem:[#allocation3 + $0xf8] sm:$0x3] }
 0x3b7   :  { %v4253_v7 = vadd.f32 %v10887_v42, %v10922_v2  ;;  %v2516_v6 = vsel %vm1854_vm6, %v2514_v26, %v2515_v47  ;;  %v2459_v25 = vld [vmem:[#allocation3 + $0x118] sm:$0x3] }
 0x3b8   :  { %11906 = vst [vmem:[#allocation27_spill] sm:$0xff] %v11029_v37  ;;  %v11031_v4 = vadd.f32 %v6380_v17, %v4248_v11  ;;  %v6381_v23 = vpop.f32.mrb[58].mxu1  ;;  %v6698_v0 = vpop.f32.mrb[88].mxu0  ;;  %v2520_v11 = vrot.slane %v2448_v59, 2  ;;  %v2454_v17 = vld [vmem:[#allocation3 + $0xf0] sm:$0x3]  ;;  %v4258_v59 = vadd.f32 %v10903_v22, %v10922_v2 }
 0x3b9   :  { %v6382_v8 = vpop.f32.mrb[59].mxu1  ;;  %v6699_v18 = vpop.f32.mrb[89].mxu0  ;;  %5356 = vmatmul.mubr.f32.gmra.mrb[164].mxu1 %v2510_v10  ;;  %v2536_v26 = vrot.slane %v2459_v25, 2 }
 0x3ba   :  { %v6383_v62 = vadd.f32 %v6382_v8, %v6381_v23  ;;  %v11037_v39 = vadd.f32 %v6699_v18, %v6698_v0  ;;  %5360 = vmatprep.mubr.f32.mxu1 %v2519_v61  ;;  %v2525_v0 = vsel %vm1854_vm6, %v2523_v54, %v2524_v9  ;;  %v2529_v23 = vrot.slane %v2453_v41, 2  ;;  %v2461_v54 = vld [vmem:[#allocation3 + $0x128] sm:$0xfc]  ;;  %v2463_v9 = vld [vmem:[#allocation3 + $0x138] sm:$0x3] }
 0x3bb   :  { %v2530_v8 = vrot.slane %v2455_v20, 2  ;;  %v2526_v61 = vrot.slane %v2452_v53, 2  ;;  %v4263_v53 = vadd.f32 %v10924_v12, %v10922_v2  ;;  %v2541_v25 = vrot.slane %v2461_v54, 2 }
 0x3bc   :  { %11907 = vst [vmem:[#allocation29_spill] sm:$0xff] %v11037_v39  ;;  %v11039_v37 = vadd.f32 %v6383_v62, %v4253_v7  ;;  %v6384_v10 = vpop.f32.mrb[60].mxu1  ;;  %v6701_v5 = vpop.f32.mrb[90].mxu0  ;;  %v2527_v7 = vrot.slane %v2454_v17, 2  ;;  %v2535_v62 = vrot.slane %v2457_v38, 2 }
 0x3bd   :  { %v6385_v50 = vpop.f32.mrb[61].mxu1  ;;  %v6702_v42 = vpop.f32.mrb[91].mxu0  ;;  %5361 = vmatmul.mubr.f32.gmra.mrb[166].mxu1 %v2516_v6  ;;  %v2522_v6 = vsel %vm1854_vm6, %v2520_v11, %v2521_v29  ;;  %v2531_v22 = vsel %vm1854_vm6, %v2529_v23, %v2530_v8  ;;  %v2462_v11 = vld [vmem:[#allocation3 + $0x130] sm:$0x3] }
 0x3be   :  { %v6386_v27 = vadd.f32 %v6385_v50, %v6384_v10  ;;  %v11045_v18 = vadd.f32 %v6702_v42, %v6701_v5  ;;  %5365 = vmatprep.mubr.f32.mxu1 %v2525_v0  ;;  %v2456_v5 = vld [vmem:[#allocation3 + $0x100] sm:$0xfc]  ;;  %v2458_v10 = vld [vmem:[#allocation3 + $0x110] sm:$0x3]  ;;  %v2542_v50 = vrot.slane %v2463_v9, 2  ;;  %v2537_v2 = vsel %vm1854_vm6, %v2535_v62, %v2536_v26 }
 0x3bf   :  { %v2460_v42 = vld [vmem:[#allocation3 + $0x120] sm:$0xfc]  ;;  %v2532_v23 = vrot.slane %v2456_v5, 2  ;;  %v2533_v8 = vrot.slane %v2458_v10, 2  ;;  %v2539_v54 = vrot.slane %v2462_v11, 2 }
 0x3c0   :  { %11908 = vst [vmem:[#allocation25_spill] sm:$0xff] %v11045_v18  ;;  %v11047_v47 = vadd.f32 %v6386_v27, %v4258_v59  ;;  %v6387_v39 = vpop.f32.mrb[62].mxu1  ;;  %v6704_v58 = vpop.f32.mrb[92].mxu0  ;;  %v2528_v27 = vsel %vm1854_vm6, %v2526_v61, %v2527_v7  ;;  %v3395_v9 = vld [vmem:[#allocation3 + $0x188] sm:$0xfc] }
 0x3c1   :  { %v6388_v41 = vpop.f32.mrb[63].mxu1  ;;  %v6705_v20 = vpop.f32.mrb[93].mxu0  ;;  %5366 = vmatmul.mubr.f32.gmra.mrb[168].mxu1 %v2522_v6  ;;  %v2534_v5 = vsel %vm1854_vm6, %v2532_v23, %v2533_v8  ;;  %v3394_v10 = vld [vmem:[#allocation3 + $0x180] sm:$0xfc] }
 0x3c2   :  { %v6389_v17 = vadd.f32 %v6388_v41, %v6387_v39  ;;  %v11053_v38 = vadd.f32 %v6705_v20, %v6704_v58  ;;  %5370 = vmatprep.mubr.f32.mxu1 %v2531_v22  ;;  %v2538_v39 = vrot.slane %v2460_v42, 2  ;;  %v3397_v41 = vld [vmem:[#allocation3 + $0x198] sm:$0x3]  ;;  %v2543_v20 = vsel %vm1854_vm6, %v2541_v25, %v2542_v50  ;;  %v3399_v25 = vld [vmem:[#allocation3 + $0x1a8] sm:$0xfc] }
 0x3c3   :  { %v3462_v26 = vrot.slane %v3397_v41, 2  ;;  %v3401_v50 = vld [vmem:[#allocation3 + $0x1b8] sm:$0x3] }
 0x3c4   :  { %v11055_v29 = vadd.f32 %v6389_v17, %v4263_v53  ;;  %v6422_v0 = vpop.f32.mrb[64].mxu1  ;;  %v6707_v59 = vpop.f32.mrb[94].mxu0  ;;  %v3396_v53 = vld [vmem:[#allocation3 + $0x190] sm:$0x3]  ;;  %v2540_v11 = vsel %vm1854_vm6, %v2538_v39, %v2539_v54  ;;  %v3468_v39 = vrot.slane %v3401_v50, 2 }
 0x3c5   :  { %v6423_v6 = vpop.f32.mrb[65].mxu1  ;;  %v6708_v18 = vpop.f32.mrb[95].mxu0  ;;  %5371 = vmatmul.mubr.f32.gmra.mrb[170].mxu1 %v2528_v27  ;;  %v3459_v27 = vrot.slane %v3396_v53, 2 }
 0x3c6   :  { %v6424_v12 = vadd.f32 %v6423_v6, %v6422_v0  ;;  %v11059_v58 = vadd.f32 %v6708_v18, %v6707_v59  ;;  %5375 = vmatprep.mubr.f32.mxu1 %v2537_v2  ;;  %v3461_v18 = vrot.slane %v3395_v9, 2  ;;  %v3458_v59 = vrot.slane %v3394_v10, 2  ;;  %v3398_v2 = vld [vmem:[#allocation3 + $0x1a0] sm:$0xfc] }
 0x3c8   :  { %v4478_v22 = vadd.f32 %v6424_v12, %v10950_v56  ;;  %v6425_v61 = vpop.f32.mrb[66].mxu1  ;;  %v6822_v7 = vpop.f32.mrb[96].mxu0  ;;  %v3400_v12 = vld [vmem:[#allocation3 + $0x1b0] sm:$0x3] }
 0x3c9   :  { %v6426_v17 = vpop.f32.mrb[67].mxu1  ;;  %v6823_v62 = vpop.f32.mrb[97].mxu0  ;;  %5376 = vmatmul.mubr.f32.gmra.mrb[172].mxu1 %v2534_v5  ;;  %v3465_v10 = vrot.slane %v3400_v12, 2 }
 0x3ca   :  { %v6427_v0 = vadd.f32 %v6426_v17, %v6425_v61  ;;  %v11064_v42 = vadd.f32 %v6823_v62, %v6822_v7  ;;  %5380 = vmatprep.mubr.f32.mxu1 %v2543_v20  ;;  %v11068_v56 = vadd.f32 %v10776_v36, %v4478_v22  ;;  %v3463_v20 = vsel %vm1854_vm6, %v3461_v18, %v3462_v26  ;;  %v3403_v36 = vld [vmem:[#allocation3 + $0x1c8] sm:$0xfc]  ;;  %v3405_v22 = vld [vmem:[#allocation3 + $0x1d8] sm:$0x3]  ;;  %v3402_v18 = vld [vmem:[#allocation3 + $0x1c0] sm:$0xfc] }
 0x3cb   :  { %v3467_v61 = vrot.slane %v3399_v25, 2  ;;  %v3404_v26 = vld [vmem:[#allocation3 + $0x1d0] sm:$0x3]  ;;  %v3470_v12 = vrot.slane %v3402_v18, 2  ;;  %v3413_v18 = vld [vmem:[#allocation3 + $0x218] sm:$0x3] }
 0x3cc   :  { %v4483_v23 = vadd.f32 %v6427_v0, %v10957_v30  ;;  %v6428_v8 = vpop.f32.mrb[68].mxu1  ;;  %v6825_v6 = vpop.f32.mrb[98].mxu0  ;;  %v3464_v30 = vrot.slane %v3398_v2, 2  ;;  %v3460_v0 = vsel %vm1854_vm6, %v3458_v59, %v3459_v27  ;;  %v3409_v2 = vld [vmem:[#allocation3 + $0x1f8] sm:$0x3]  ;;  %v3471_v59 = vrot.slane %v3404_v26, 2 }
 0x3cd   :  { %v6429_v9 = vpop.f32.mrb[69].mxu1  ;;  %v6826_v41 = vpop.f32.mrb[99].mxu0  ;;  %5381 = vmatmul.mubr.f32.gmra.mrb[174].mxu1 %v2540_v11  ;;  %v3469_v50 = vsel %vm1854_vm6, %v3467_v61, %v3468_v39  ;;  %v3406_v61 = vld [vmem:[#allocation3 + $0x1e0] sm:$0xfc]  ;;  %v3408_v39 = vld [vmem:[#allocation3 + $0x1f0] sm:$0x3] }
 0x3ce   :  { %v6430_v54 = vadd.f32 %v6429_v9, %v6428_v8  ;;  %v11072_v7 = vadd.f32 %v6826_v41, %v6825_v6  ;;  %5385 = vmatprep.mubr.f32.mxu1 %v3463_v20  ;;  %v11075_v5 = vadd.f32 %v10782_v48, %v4483_v23  ;;  %v3473_v8 = vrot.slane %v3403_v36, 2  ;;  %v3407_v23 = vld [vmem:[#allocation3 + $0x1e8] sm:$0xfc] }
 0x3cf   :  { %v3474_v6 = vrot.slane %v3405_v22, 2  ;;  %v3476_v26 = vrot.slane %v3406_v61, 2  ;;  %v3417_v61 = vld [vmem:[#allocation3 + $0x238] sm:$0x3] }
 0x3d0   :  { %v4488_v53 = vadd.f32 %v6430_v54, %v10964_v16  ;;  %v6431_v17 = vpop.f32.mrb[70].mxu1  ;;  %v6828_v62 = vpop.f32.mrb[100].mxu0  ;;  %v3466_v54 = vsel %vm1854_vm6, %v3464_v30, %v3465_v10  ;;  %v3477_v30 = vrot.slane %v3408_v39, 2 }
 0x3d1   :  { %v6432_v11 = vpop.f32.mrb[71].mxu1  ;;  %v6829_v25 = vpop.f32.mrb[101].mxu0  ;;  %5386 = vmatmul.mubr.f32.gmra.mrb[176].mxu1 %v3460_v0  ;;  %v3480_v0 = vrot.slane %v3409_v2, 2 }
 0x3d2   :  { %v6433_v9 = vadd.f32 %v6432_v11, %v6431_v17  ;;  %v11080_v48 = vadd.f32 %v6829_v25, %v6828_v62  ;;  %5390 = vmatprep.mubr.f32.mxu1 %v3469_v50  ;;  %v11083_v16 = vadd.f32 %v10788_v44, %v4488_v53  ;;  %v3475_v17 = vsel %vm1854_vm6, %v3473_v8, %v3474_v6  ;;  %v3411_v53 = vld [vmem:[#allocation3 + $0x208] sm:$0xfc]  ;;  %v3410_v8 = vld [vmem:[#allocation3 + $0x200] sm:$0xfc]  ;;  %v3412_v6 = vld [vmem:[#allocation3 + $0x210] sm:$0x3] }
 0x3d3   :  { %v3479_v62 = vrot.slane %v3407_v23, 2  ;;  %v3482_v39 = vrot.slane %v3410_v8, 2 }
 0x3d4   :  { %v4493_v27 = vadd.f32 %v6433_v9, %v10970_v46  ;;  %v6434_v41 = vpop.f32.mrb[72].mxu1  ;;  %v6831_v20 = vpop.f32.mrb[102].mxu0  ;;  %v3472_v9 = vsel %vm1854_vm6, %v3470_v12, %v3471_v59  ;;  %v3483_v12 = vrot.slane %v3412_v6, 2  ;;  %v3414_v59 = vld [vmem:[#allocation3 + $0x220] sm:$0xfc] }
 0x3d5   :  { %v6435_v36 = vpop.f32.mrb[73].mxu1  ;;  %v6832_v22 = vpop.f32.mrb[103].mxu0  ;;  %5391 = vmatmul.mubr.f32.gmra.mrb[178].mxu1 %v3466_v54  ;;  %v3486_v54 = vrot.slane %v3413_v18, 2 }
 0x3d6   :  { %v6436_v11 = vadd.f32 %v6435_v36, %v6434_v41  ;;  %v11088_v44 = vadd.f32 %v6832_v22, %v6831_v20  ;;  %5395 = vmatprep.mubr.f32.mxu1 %v3475_v17  ;;  %v11091_v46 = vadd.f32 %v10794_v3, %v4493_v27  ;;  %v3481_v41 = vsel %vm1854_vm6, %v3479_v62, %v3480_v0  ;;  %v3415_v27 = vld [vmem:[#allocation3 + $0x228] sm:$0xfc]  ;;  %v3416_v22 = vld [vmem:[#allocation3 + $0x230] sm:$0x3] }
 0x3d7   :  { %v3485_v20 = vrot.slane %v3411_v53, 2  ;;  %v3478_v62 = vsel %vm1854_vm6, %v3476_v26, %v3477_v30  ;;  %v3419_v0 = vld [vmem:[#allocation3 + $0x248] sm:$0xfc]  ;;  %v3421_v53 = vld [vmem:[#allocation3 + $0x258] sm:$0x3] }
 0x3d8   :  { %v4498_v10 = vadd.f32 %v6436_v11, %v10976_v49  ;;  %v6437_v25 = vpop.f32.mrb[74].mxu1  ;;  %v6834_v50 = vpop.f32.mrb[104].mxu0  ;;  %v3498_v26 = vrot.slane %v3421_v53, 2 }
 0x3d9   :  { %v6438_v23 = vpop.f32.mrb[75].mxu1  ;;  %v6835_v2 = vpop.f32.mrb[105].mxu0  ;;  %5396 = vmatmul.mubr.f32.gmra.mrb[180].mxu1 %v3472_v9 }
 0x3da   :  { %v6439_v36 = vadd.f32 %v6438_v23, %v6437_v25  ;;  %v11096_v3 = vadd.f32 %v6835_v2, %v6834_v50  ;;  %5400 = vmatprep.mubr.f32.mxu1 %v3481_v41  ;;  %v11099_v49 = vadd.f32 %v10800_v57, %v4498_v10  ;;  %v3487_v50 = vsel %vm1854_vm6, %v3485_v20, %v3486_v54  ;;  %v3423_v20 = vld [vmem:[#allocation3 + $0x268] sm:$0xfc]  ;;  %v3425_v54 = vld [vmem:[#allocation3 + $0x278] sm:$0x3] }
 0x3db   :  { %v3491_v23 = vrot.slane %v3415_v27, 2  ;;  %v3492_v57 = vrot.slane %v3417_v61, 2  ;;  %v3489_v2 = vrot.slane %v3416_v22, 2  ;;  %v3497_v41 = vrot.slane %v3419_v0, 2  ;;  %v3422_v22 = vld [vmem:[#allocation3 + $0x260] sm:$0xfc] }
 0x3dc   :  { %11909 = vst [vmem:[#allocation17_spill] sm:$0xff] %v11096_v3  ;;  %v4503_v17 = vadd.f32 %v6439_v36, %v10982_v14  ;;  %v6440_v11 = vpop.f32.mrb[76].mxu1  ;;  %v6837_v9 = vpop.f32.mrb[106].mxu0  ;;  %v3488_v14 = vrot.slane %v3414_v59, 2  ;;  %v3503_v0 = vrot.slane %v3423_v20, 2  ;;  %v3504_v53 = vrot.slane %v3425_v54, 2 }
 0x3dd   :  { %v6441_v18 = vpop.f32.mrb[77].mxu1  ;;  %v6838_v25 = vpop.f32.mrb[107].mxu0  ;;  %5401 = vmatmul.mubr.f32.gmra.mrb[182].mxu1 %v3478_v62  ;;  %v3484_v62 = vsel %vm1854_vm6, %v3482_v39, %v3483_v12  ;;  %v3424_v39 = vld [vmem:[#allocation3 + $0x270] sm:$0x3] }
 0x3de   :  { %v6442_v10 = vadd.f32 %v6441_v18, %v6440_v11  ;;  %v11104_v8 = vadd.f32 %v6838_v25, %v6837_v9  ;;  %5405 = vmatprep.mubr.f32.mxu1 %v3487_v50  ;;  %v11107_v6 = vadd.f32 %v10806_v52, %v4503_v17  ;;  %v3493_v11 = vsel %vm1854_vm6, %v3491_v23, %v3492_v57  ;;  %v3418_v9 = vld [vmem:[#allocation3 + $0x240] sm:$0xfc]  ;;  %v3420_v52 = vld [vmem:[#allocation3 + $0x250] sm:$0x3] }
 0x3df   :  { %v3490_v25 = vsel %vm1854_vm6, %v3488_v14, %v3489_v2  ;;  %v3494_v23 = vrot.slane %v3418_v9, 2  ;;  %v3495_v57 = vrot.slane %v3420_v52, 2 }
 0x3e0   :  { %v4508_v30 = vadd.f32 %v6442_v10, %v10988_v1  ;;  %v6443_v36 = vpop.f32.mrb[78].mxu1  ;;  %v6840_v3 = vpop.f32.mrb[108].mxu0 }
 0x3e1   :  { %v6444_v27 = vpop.f32.mrb[79].mxu1  ;;  %v6841_v61 = vpop.f32.mrb[109].mxu0  ;;  %5406 = vmatmul.mubr.f32.gmra.mrb[184].mxu1 %v3484_v62  ;;  %v3500_v62 = vrot.slane %v3422_v22, 2 }
 0x3e2   :  { %v6445_v17 = vadd.f32 %v6444_v27, %v6443_v36  ;;  %v11112_v59 = vadd.f32 %v6841_v61, %v6840_v3  ;;  %5410 = vmatprep.mubr.f32.mxu1 %v3493_v11  ;;  %v11115_v1 = vadd.f32 %v10812_v40, %v4508_v30  ;;  %v3499_v3 = vsel %vm1854_vm6, %v3497_v41, %v3498_v26 }
 0x3e3   :  { %v3501_v30 = vrot.slane %v3424_v39, 2  ;;  %v3496_v61 = vsel %vm1854_vm6, %v3494_v23, %v3495_v57 }
 0x3e4   :  { %v4513_v12 = vadd.f32 %v6445_v17, %v10994_v31  ;;  %v6446_v18 = vpop.f32.mrb[80].mxu1  ;;  %v6843_v50 = vpop.f32.mrb[110].mxu0  ;;  %v3505_v31 = vsel %vm1854_vm6, %v3503_v0, %v3504_v53 }
 0x3e5   :  { %v6447_v10 = vpop.f32.mrb[81].mxu1  ;;  %5411 = vmatmul.mubr.f32.gmra.mrb[186].mxu1 %v3490_v25  ;;  %v6844_v36 = vpop.f32.mrb[111].mxu0  ;;  %v3502_v52 = vsel %vm1854_vm6, %v3500_v62, %v3501_v30  ;;  %v7510_v25 = vld [vmem:[#allocation3] sm:$0xff] }
 0x3e6   :  { %v6448_v27 = vadd.f32 %v6447_v10, %v6446_v18  ;;  %5415 = vmatprep.mubr.f32.mxu1 %v3499_v3  ;;  %v11120_v40 = vadd.f32 %v6844_v36, %v6843_v50  ;;  %v11123_v20 = vadd.f32 %v10818_v35, %v4513_v12 }
 0x3e8   :  { %v4518_v14 = vadd.f32 %v6448_v27, %v11000_v24  ;;  %v6449_v2 = vpop.f32.mrb[82].mxu1  ;;  %v6846_v54 = vpop.f32.mrb[112].mxu0 }
 0x3e9   :  { %v6450_v11 = vpop.f32.mrb[83].mxu1  ;;  %v6847_v41 = vpop.f32.mrb[113].mxu0  ;;  %5416 = vmatmul.mubr.f32.gmra.mrb[188].mxu1 %v3496_v61 }
 0x3ea   :  { %v6451_v26 = vadd.f32 %v6450_v11, %v6449_v2  ;;  %v11128_v9 = vadd.f32 %v6847_v41, %v6846_v54  ;;  %5420 = vmatprep.mubr.f32.mxu1 %v3505_v31  ;;  %v11132_v35 = vadd.f32 %v10824_v60, %v4518_v14 }
 0x3ec   :  { %v4523_v17 = vadd.f32 %v6451_v26, %v11007_v34  ;;  %v6452_v22 = vpop.f32.mrb[84].mxu1  ;;  %v6849_v24 = vpop.f32.mrb[114].mxu0 }
 0x3ed   :  { %v6453_v0 = vpop.f32.mrb[85].mxu1  ;;  %v6850_v53 = vpop.f32.mrb[115].mxu0  ;;  %5421 = vmatmul.mubr.f32.gmra.mrb[190].mxu1 %v3502_v52 }
 0x3ee   :  { %v6454_v39 = vadd.f32 %v6453_v0, %v6452_v22  ;;  %v11135_v12 = vadd.f32 %v6850_v53, %v6849_v24  ;;  %v11138_v18 = vadd.f32 %v10841_v19, %v4523_v17  ;;  %6131 = vmatprep.mubr.f32.mxu1 %v7510_v25 }
 0x3f0   :  { %v4528_v50 = vadd.f32 %v6454_v39, %v11015_v45  ;;  %v6455_v23 = vpop.f32.mrb[86].mxu1  ;;  %v6852_v60 = vpop.f32.mrb[116].mxu0 }
 0x3f1   :  { %v6456_v57 = vpop.f32.mrb[87].mxu1  ;;  %v6853_v10 = vpop.f32.mrb[117].mxu0 }
 0x3f2   :  { %v6457_v34 = vadd.f32 %v6456_v57, %v6455_v23  ;;  %v11141_v3 = vadd.f32 %v6853_v10, %v6852_v60  ;;  %v11144_v36 = vadd.f32 %v10857_v55, %v4528_v50 }
 0x3f4   :  { %v4533_v62 = vadd.f32 %v6457_v34, %v11023_v51  ;;  %v6458_v27 = vpop.f32.mrb[88].mxu1  ;;  %v6855_v30 = vpop.f32.mrb[118].mxu0 }
 0x3f5   :  { %v6459_v19 = vpop.f32.mrb[89].mxu1  ;;  %v6856_v31 = vpop.f32.mrb[119].mxu0 }
 0x3f6   :  { %v6460_v14 = vadd.f32 %v6459_v19, %v6458_v27  ;;  %v11147_v2 = vadd.f32 %v6856_v31, %v6855_v30  ;;  %v11150_v45 = vadd.f32 %v10873_v63, %v4533_v62 }
 0x3f8   :  { %v4538_v54 = vadd.f32 %v6460_v14, %v11031_v4  ;;  %v6461_v61 = vpop.f32.mrb[90].mxu1  ;;  %v6858_v11 = vpop.f32.mrb[120].mxu0 }
 0x3f9   :  { %v6462_v41 = vpop.f32.mrb[91].mxu1  ;;  %v6859_v26 = vpop.f32.mrb[121].mxu0 }
 0x3fa   :  { %v6463_v55 = vadd.f32 %v6462_v41, %v6461_v61  ;;  %v11153_v52 = vadd.f32 %v6859_v26, %v6858_v11  ;;  %v11156_v51 = vadd.f32 %v10889_v13, %v4538_v54 }
 0x3fc   :  { %v4543_v17 = vadd.f32 %v6463_v55, %v11039_v37  ;;  %v6464_v22 = vpop.f32.mrb[92].mxu1  ;;  %v6861_v24 = vpop.f32.mrb[122].mxu0 }
 0x3fd   :  { %v6465_v0 = vpop.f32.mrb[93].mxu1  ;;  %v6862_v53 = vpop.f32.mrb[123].mxu0 }
 0x3fe   :  { %v6466_v63 = vadd.f32 %v6465_v0, %v6464_v22  ;;  %v11159_v39 = vadd.f32 %v6862_v53, %v6861_v24  ;;  %v11162_v4 = vadd.f32 %v10905_v43, %v4543_v17 }
 0x400   :  { %v4548_v25 = vadd.f32 %v6466_v63, %v11047_v47  ;;  %v6467_v50 = vpop.f32.mrb[94].mxu1  ;;  %v6864_v23 = vpop.f32.mrb[124].mxu0 }
 0x401   :  { %v6468_v60 = vpop.f32.mrb[95].mxu1  ;;  %v6865_v57 = vpop.f32.mrb[125].mxu0 }
 0x402   :  { %v6469_v13 = vadd.f32 %v6468_v60, %v6467_v50  ;;  %v11165_v10 = vadd.f32 %v6865_v57, %v6864_v23  ;;  %v11168_v37 = vadd.f32 %v10926_v33, %v4548_v25  ;;  %v11910_v25 = vld [vmem:[#allocation20_spill] sm:$0xff]  ;;  %v11911_v57 = vld [vmem:[#allocation19_spill] sm:$0xff] }
 0x404   :  { %v4553_v34 = vadd.f32 %v6469_v13, %v11055_v29  ;;  %v6582_v62 = vpop.f32.mrb[96].mxu1 }
 0x405   :  { %v6583_v27 = vpop.f32.mrb[97].mxu1 }
 0x406   :  { %v6584_v30 = vadd.f32 %v6583_v27, %v6582_v62  ;;  %v11172_v43 = vadd.f32 %v10942_v32, %v4553_v34  ;;  %v11912_v27 = vld [vmem:[#allocation22_spill] sm:$0xff] }
 0x408   :  { %v4768_v47 = vadd.f32 %v6584_v30, %v11068_v56  ;;  %v6585_v19 = vpop.f32.mrb[98].mxu1 }
 0x409   :  { %v6586_v31 = vpop.f32.mrb[99].mxu1 }
 0x40a   :  { %v6587_v14 = vadd.f32 %v6586_v31, %v6585_v19  ;;  %v11176_v54 = vadd.f32 %v10954_v28, %v4768_v47  ;;  %v6867_v22 = vpop.f32.mrb[126].mxu0 }
 0x40b   :  { %v6868_v24 = vpop.f32.mrb[127].mxu0 }
 0x40c   :  { %v4773_v61 = vadd.f32 %v6587_v14, %v11075_v5  ;;  %v6588_v33 = vpop.f32.mrb[100].mxu1  ;;  %v11187_v5 = vadd.f32 %v6868_v24, %v6867_v22 }
 0x40d   :  { %v6589_v11 = vpop.f32.mrb[101].mxu1 }
 0x40e   :  { %v6590_v41 = vadd.f32 %v6589_v11, %v6588_v33  ;;  %v11180_v29 = vadd.f32 %v10962_v15, %v4773_v61 }
 0x410   :  { %v4778_v26 = vadd.f32 %v6590_v41, %v11083_v16  ;;  %v6591_v32 = vpop.f32.mrb[102].mxu1 }
 0x411   :  { %v6592_v55 = vpop.f32.mrb[103].mxu1 }
 0x412   :  { %v6593_v17 = vadd.f32 %v6592_v55, %v6591_v32  ;;  %v11184_v56 = vadd.f32 %v10968_v21, %v4778_v26 }
 0x414   :  { %v4783_v28 = vadd.f32 %v6593_v17, %v11091_v46  ;;  %v6594_v0 = vpop.f32.mrb[104].mxu1 }
 0x415   :  { %v6595_v53 = vpop.f32.mrb[105].mxu1 }
 0x416   :  { %v6596_v63 = vadd.f32 %v6595_v53, %v6594_v0  ;;  %v11190_v15 = vadd.f32 %v11910_v25, %v4783_v28 }
 0x418   :  { %v4788_v16 = vadd.f32 %v6596_v63, %v11099_v49  ;;  %v6597_v50 = vpop.f32.mrb[106].mxu1  ;;  %v11913_v49 = vld [vmem:[#allocation21_spill] sm:$0xff] }
 0x419   :  { %v6598_v23 = vpop.f32.mrb[107].mxu1 }
 0x41a   :  { %v6599_v60 = vadd.f32 %v6598_v23, %v6597_v50  ;;  %v11194_v21 = vadd.f32 %v11911_v57, %v4788_v16 }
 0x41c   :  { %v4793_v13 = vadd.f32 %v6599_v60, %v11107_v6  ;;  %v6600_v34 = vpop.f32.mrb[108].mxu1  ;;  %v11914_v6 = vld [vmem:[#allocation24_spill] sm:$0xff] }
 0x41d   :  { %v6601_v46 = vpop.f32.mrb[109].mxu1 }
 0x41e   :  { %v6602_v62 = vadd.f32 %v6601_v46, %v6600_v34  ;;  %v11198_v30 = vadd.f32 %v11912_v27, %v4793_v13 }
 0x420   :  { %v4798_v47 = vadd.f32 %v6602_v62, %v11115_v1  ;;  %v6603_v19 = vpop.f32.mrb[110].mxu1  ;;  %v11915_v1 = vld [vmem:[#allocation23_spill] sm:$0xff] }
 0x421   :  { %v6604_v31 = vpop.f32.mrb[111].mxu1 }
 0x422   :  { %v6605_v14 = vadd.f32 %v6604_v31, %v6603_v19  ;;  %v11202_v61 = vadd.f32 %v11913_v49, %v4798_v47 }
 0x424   :  { %v4803_v33 = vadd.f32 %v6605_v14, %v11123_v20  ;;  %v6606_v11 = vpop.f32.mrb[112].mxu1  ;;  %v11916_v20 = vld [vmem:[#allocation26_spill] sm:$0xff] }
 0x425   :  { %v6607_v41 = vpop.f32.mrb[113].mxu1 }
 0x426   :  { %v6608_v26 = vadd.f32 %v6607_v41, %v6606_v11  ;;  %v11206_v32 = vadd.f32 %v11914_v6, %v4803_v33 }
 0x428   :  { %v4808_v55 = vadd.f32 %v6608_v26, %v11132_v35  ;;  %v6609_v17 = vpop.f32.mrb[114].mxu1  ;;  %v11917_v35 = vld [vmem:[#allocation28_spill] sm:$0xff] }
 0x429   :  { %v6610_v22 = vpop.f32.mrb[115].mxu1 }
 0x42a   :  { %v6611_v24 = vadd.f32 %v6610_v22, %v6609_v17  ;;  %v11210_v28 = vadd.f32 %v11915_v1, %v4808_v55 }
 0x42c   :  { %v4813_v0 = vadd.f32 %v6611_v24, %v11138_v18  ;;  %v6612_v53 = vpop.f32.mrb[116].mxu1  ;;  %v11918_v18 = vld [vmem:[#allocation27_spill] sm:$0xff] }
 0x42d   :  { %v6613_v63 = vpop.f32.mrb[117].mxu1 }
 0x42e   :  { %v6614_v25 = vadd.f32 %v6613_v63, %v6612_v53  ;;  %v11214_v16 = vadd.f32 %v11916_v20, %v4813_v0 }
 0x430   :  { %v4818_v50 = vadd.f32 %v6614_v25, %v11144_v36  ;;  %v6615_v23 = vpop.f32.mrb[118].mxu1  ;;  %v11919_v36 = vld [vmem:[#allocation29_spill] sm:$0xff] }
 0x431   :  { %v6616_v60 = vpop.f32.mrb[119].mxu1 }
 0x432   :  { %v6617_v57 = vadd.f32 %v6616_v60, %v6615_v23  ;;  %v11218_v13 = vadd.f32 %v11917_v35, %v4818_v50 }
 0x434   :  { %v4823_v34 = vadd.f32 %v6617_v57, %v11150_v45  ;;  %v6618_v46 = vpop.f32.mrb[120].mxu1  ;;  %v11920_v45 = vld [vmem:[#allocation25_spill] sm:$0xff] }
 0x435   :  { %v6619_v62 = vpop.f32.mrb[121].mxu1 }
 0x436   :  { %v6620_v27 = vadd.f32 %v6619_v62, %v6618_v46  ;;  %v11222_v47 = vadd.f32 %v11918_v18, %v4823_v34 }
 0x438   :  { %v4828_v19 = vadd.f32 %v6620_v27, %v11156_v51  ;;  %v6621_v31 = vpop.f32.mrb[122].mxu1 }
 0x439   :  { %v6622_v14 = vpop.f32.mrb[123].mxu1 }
 0x43a   :  { %v6623_v49 = vadd.f32 %v6622_v14, %v6621_v31  ;;  %v11226_v33 = vadd.f32 %v11919_v36, %v4828_v19 }
 0x43c   :  { %v4833_v11 = vadd.f32 %v6623_v49, %v11162_v4  ;;  %v6624_v41 = vpop.f32.mrb[124].mxu1 }
 0x43d   :  { %v6625_v26 = vpop.f32.mrb[125].mxu1 }
 0x43e   :  { %v6626_v6 = vadd.f32 %v6625_v26, %v6624_v41  ;;  %v11230_v55 = vadd.f32 %v11920_v45, %v4833_v11 }
 0x440   :  { %v4838_v17 = vadd.f32 %v6626_v6, %v11168_v37  ;;  %v6627_v22 = vpop.f32.mrb[126].mxu1 }
 0x441   :  { %v6628_v24 = vpop.f32.mrb[127].mxu1 }
 0x442   :  { %v6629_v1 = vadd.f32 %v6628_v24, %v6627_v22  ;;  %v11234_v51 = vadd.f32 %v11053_v38, %v4838_v17 }
 0x444   :  { %v4843_v0 = vadd.f32 %v6629_v1, %v11172_v43  ;;  %v6742_v53 = vpop.f32.mrb[128].mxu1 }
 0x445   :  { %v6743_v63 = vpop.f32.mrb[129].mxu1 }
 0x446   :  { %v6744_v25 = vadd.f32 %v6743_v63, %v6742_v53  ;;  %v11238_v4 = vadd.f32 %v11059_v58, %v4843_v0 }
 0x448   :  { %v5058_v20 = vadd.f32 %v6744_v25, %v11176_v54  ;;  %v6745_v50 = vpop.f32.mrb[130].mxu1 }
 0x449   :  { %v6746_v23 = vpop.f32.mrb[131].mxu1 }
 0x44a   :  { %v6747_v60 = vadd.f32 %v6746_v23, %v6745_v50  ;;  %v11242_v37 = vadd.f32 %v11064_v42, %v5058_v20 }
 0x44c   :  { %v5063_v57 = vadd.f32 %v6747_v60, %v11180_v29  ;;  %v6748_v38 = vpop.f32.mrb[132].mxu1 }
 0x44d   :  { %v6749_v35 = vpop.f32.mrb[133].mxu1 }
 0x44e   :  { %v6750_v34 = vadd.f32 %v6749_v35, %v6748_v38  ;;  %v11246_v43 = vadd.f32 %v11072_v7, %v5063_v57 }
 0x450   :  { %v5068_v46 = vadd.f32 %v6750_v34, %v11184_v56  ;;  %v6751_v58 = vpop.f32.mrb[134].mxu1  ;;  %v11921_v56 = vld [vmem:[#allocation17_spill] sm:$0xff] }
 0x451   :  { %v6752_v62 = vpop.f32.mrb[135].mxu1 }
 0x452   :  { %v6753_v27 = vadd.f32 %v6752_v62, %v6751_v58  ;;  %v11250_v54 = vadd.f32 %v11080_v48, %v5068_v46 }
 0x454   :  { %v5073_v18 = vadd.f32 %v6753_v27, %v11190_v15  ;;  %v6754_v42 = vpop.f32.mrb[136].mxu1 }
 0x455   :  { %v6755_v19 = vpop.f32.mrb[137].mxu1 }
 0x456   :  { %v6756_v31 = vadd.f32 %v6755_v19, %v6754_v42  ;;  %v11254_v29 = vadd.f32 %v11088_v44, %v5073_v18 }
 0x458   :  { %v5078_v14 = vadd.f32 %v6756_v31, %v11194_v21  ;;  %v6757_v7 = vpop.f32.mrb[138].mxu1 }
 0x459   :  { %v6758_v49 = vpop.f32.mrb[139].mxu1 }
 0x45a   :  { %v6759_v36 = vadd.f32 %v6758_v49, %v6757_v7  ;;  %v11258_v11 = vadd.f32 %v11921_v56, %v5078_v14 }
 0x45c   :  { %v5083_v41 = vadd.f32 %v6759_v36, %v11198_v30  ;;  %v6760_v48 = vpop.f32.mrb[140].mxu1 }
 0x45d   :  { %v6761_v26 = vpop.f32.mrb[141].mxu1 }
 0x45e   :  { %v6762_v6 = vadd.f32 %v6761_v26, %v6760_v48  ;;  %v11262_v15 = vadd.f32 %v11104_v8, %v5083_v41 }
 0x460   :  { %v5088_v45 = vadd.f32 %v6762_v6, %v11202_v61  ;;  %v6763_v44 = vpop.f32.mrb[142].mxu1 }
 0x461   :  { %v6764_v17 = vpop.f32.mrb[143].mxu1 }
 0x462   :  { %v6765_v22 = vadd.f32 %v6764_v17, %v6763_v44  ;;  %v11266_v21 = vadd.f32 %v11112_v59, %v5088_v45 }
 0x464   :  { %v5093_v24 = vadd.f32 %v6765_v22, %v11206_v32  ;;  %v6766_v1 = vpop.f32.mrb[144].mxu1 }
 0x465   :  { %v6767_v0 = vpop.f32.mrb[145].mxu1 }
 0x466   :  { %v6768_v53 = vadd.f32 %v6767_v0, %v6766_v1  ;;  %v11270_v30 = vadd.f32 %v11120_v40, %v5093_v24 }
 0x468   :  { %v5098_v63 = vadd.f32 %v6768_v53, %v11210_v28  ;;  %v6769_v8 = vpop.f32.mrb[146].mxu1 }
 0x469   :  { %v6770_v25 = vpop.f32.mrb[147].mxu1 }
 0x46a   :  { %v6771_v20 = vadd.f32 %v6770_v25, %v6769_v8  ;;  %v11274_v61 = vadd.f32 %v11128_v9, %v5098_v63 }
 0x46c   :  { %v5103_v50 = vadd.f32 %v6771_v20, %v11214_v16  ;;  %v6772_v59 = vpop.f32.mrb[148].mxu1 }
 0x46d   :  { %v6773_v23 = vpop.f32.mrb[149].mxu1 }
 0x46e   :  { %v6774_v60 = vadd.f32 %v6773_v23, %v6772_v59  ;;  %v11278_v32 = vadd.f32 %v11135_v12, %v5103_v50 }
 0x470   :  { %v5108_v57 = vadd.f32 %v6774_v60, %v11218_v13  ;;  %v6775_v40 = vpop.f32.mrb[150].mxu1 }
 0x471   :  { %v6776_v38 = vpop.f32.mrb[151].mxu1 }
 0x472   :  { %v6777_v35 = vadd.f32 %v6776_v38, %v6775_v40  ;;  %v11282_v28 = vadd.f32 %v11141_v3, %v5108_v57 }
 0x474   :  { %v5113_v34 = vadd.f32 %v6777_v35, %v11222_v47  ;;  %v6778_v9 = vpop.f32.mrb[152].mxu1 }
 0x475   :  { %v6779_v46 = vpop.f32.mrb[153].mxu1 }
 0x476   :  { %v6780_v58 = vadd.f32 %v6779_v46, %v6778_v9  ;;  %v11286_v16 = vadd.f32 %v11147_v2, %v5113_v34 }
 0x478   :  { %v5118_v62 = vadd.f32 %v6780_v58, %v11226_v33  ;;  %v6781_v12 = vpop.f32.mrb[154].mxu1 }
 0x479   :  { %v6782_v27 = vpop.f32.mrb[155].mxu1 }
 0x47a   :  { %v6783_v18 = vadd.f32 %v6782_v27, %v6781_v12  ;;  %v11290_v13 = vadd.f32 %v11153_v52, %v5118_v62 }
 0x47c   :  { %v5123_v42 = vadd.f32 %v6783_v18, %v11230_v55  ;;  %v6784_v3 = vpop.f32.mrb[156].mxu1 }
 0x47d   :  { %v6785_v19 = vpop.f32.mrb[157].mxu1 }
 0x47e   :  { %v6786_v31 = vadd.f32 %v6785_v19, %v6784_v3  ;;  %v11294_v47 = vadd.f32 %v11159_v39, %v5123_v42 }
 0x480   :  { %v5128_v14 = vadd.f32 %v6786_v31, %v11234_v51  ;;  %v6787_v2 = vpop.f32.mrb[158].mxu1  ;;  %v11308_v51 = vld [vmem:[%s11714_s7] ss:$0 sm:$0xff] }
 0x481   :  { %v6788_v7 = vpop.f32.mrb[159].mxu1 }
 0x482   :  { %v6789_v49 = vadd.f32 %v6788_v7, %v6787_v2  ;;  %v11298_v33 = vadd.f32 %v11165_v10, %v5128_v14 }
 0x484   :  { %v5133_v36 = vadd.f32 %v6789_v49, %v11238_v4  ;;  %v6902_v52 = vpop.f32.mrb[160].mxu1 }
 0x485   :  { %v6903_v56 = vpop.f32.mrb[161].mxu1 }
 0x486   :  { %v11302_v55 = vadd.f32 %v11187_v5, %v5133_v36  ;;  %v6904_v41 = vadd.f32 %v6903_v56, %v6902_v52 }
 0x488   :  { %v5348_v48 = vadd.f32 %v6904_v41, %v11242_v37  ;;  %v6905_v39 = vpop.f32.mrb[162].mxu1 }
 0x489   :  { %v6906_v26 = vpop.f32.mrb[163].mxu1 }
 0x48a   :  { %v5426_v6 = vmax.f32 %v5348_v48, 0.0  ;;  %v6907_v10 = vadd.f32 %v6906_v26, %v6905_v39 }
 0x48c   :  { %v5353_v4 = vadd.f32 %v6907_v10, %v11246_v43  ;;  %v6908_v45 = vpop.f32.mrb[164].mxu1  ;;  %v5449_v44 = vmul.f32 %v11308_v51, %v5426_v6 }
 0x48d   :  { %v6909_v5 = vpop.f32.mrb[165].mxu1 }
 0x48e   :  { %v5427_v17 = vmax.f32 %v5353_v4, 0.0  ;;  %v6910_v22 = vadd.f32 %v6909_v5, %v6908_v45  ;;  %v5466_v37 = vsel %vm5465_vm7, %v5449_v44, 0.0 }
 0x48f   :  { %5467 = vadd.xlane.f32.xlu0 %v5466_v37 }
 0x490   :  { %v5358_v24 = vadd.f32 %v6910_v22, %v11250_v54  ;;  %v6911_v1 = vpop.f32.mrb[166].mxu1  ;;  %v5450_v0 = vmul.f32 %v11308_v51, %v5427_v17 }
 0x491   :  { %v6912_v53 = vpop.f32.mrb[167].mxu1 }
 0x492   :  { %v5428_v63 = vmax.f32 %v5358_v24, 0.0  ;;  %v6913_v8 = vadd.f32 %v6912_v53, %v6911_v1  ;;  %v5469_v25 = vsel %vm5465_vm7, %v5450_v0, 0.0 }
 0x493   :  { %5470 = vadd.xlane.f32.xlu1 %v5469_v25 }
 0x494   :  { %v5363_v43 = vadd.f32 %v6913_v8, %v11254_v29  ;;  %v6914_v20 = vpop.f32.mrb[168].mxu1  ;;  %v5451_v50 = vmul.f32 %v11308_v51, %v5428_v63 }
 0x495   :  { %v6915_v59 = vpop.f32.mrb[169].mxu1 }
 0x496   :  { %v5429_v23 = vmax.f32 %v5363_v43, 0.0  ;;  %v6916_v60 = vadd.f32 %v6915_v59, %v6914_v20  ;;  %v5472_v57 = vsel %vm5465_vm7, %v5451_v50, 0.0 }
 0x497   :  { %5473 = vadd.xlane.f32.xlu1 %v5472_v57 }
 0x498   :  { %v5368_v54 = vadd.f32 %v6916_v60, %v11258_v11  ;;  %v6917_v40 = vpop.f32.mrb[170].mxu1  ;;  %v5452_v38 = vmul.f32 %v11308_v51, %v5429_v23 }
 0x499   :  { %v6918_v35 = vpop.f32.mrb[171].mxu1 }
 0x49a   :  { %v5430_v34 = vmax.f32 %v5368_v54, 0.0  ;;  %v6919_v9 = vadd.f32 %v6918_v35, %v6917_v40  ;;  %v5475_v46 = vsel %vm5465_vm7, %v5452_v38, 0.0 }
 0x49b   :  { %5476 = vadd.xlane.f32.xlu1 %v5475_v46 }
 0x49c   :  { %v5373_v29 = vadd.f32 %v6919_v9, %v11262_v15  ;;  %v6920_v58 = vpop.f32.mrb[172].mxu1  ;;  %v5453_v62 = vmul.f32 %v11308_v51, %v5430_v34 }
 0x49d   :  { %v6921_v12 = vpop.f32.mrb[173].mxu1 }
 0x49e   :  { %v5431_v27 = vmax.f32 %v5373_v29, 0.0  ;;  %v6922_v18 = vadd.f32 %v6921_v12, %v6920_v58  ;;  %v5478_v42 = vsel %vm5465_vm7, %v5453_v62, 0.0 }
 0x49f   :  { %5479 = vadd.xlane.f32.xlu1 %v5478_v42 }
 0x4a0   :  { %v5378_v11 = vadd.f32 %v6922_v18, %v11266_v21  ;;  %v6923_v3 = vpop.f32.mrb[174].mxu1  ;;  %v5454_v19 = vmul.f32 %v11308_v51, %v5431_v27 }
 0x4a1   :  { %v6924_v31 = vpop.f32.mrb[175].mxu1 }
 0x4a2   :  { %v5432_v14 = vmax.f32 %v5378_v11, 0.0  ;;  %v6925_v2 = vadd.f32 %v6924_v31, %v6923_v3  ;;  %v5481_v7 = vsel %vm5465_vm7, %v5454_v19, 0.0 }
 0x4a3   :  { %5482 = vadd.xlane.f32.xlu1 %v5481_v7 }
 0x4a4   :  { %v5383_v15 = vadd.f32 %v6925_v2, %v11270_v30  ;;  %v6926_v49 = vpop.f32.mrb[176].mxu1  ;;  %v5455_v36 = vmul.f32 %v11308_v51, %v5432_v14 }
 0x4a5   :  { %v6927_v52 = vpop.f32.mrb[177].mxu1 }
 0x4a6   :  { %v5433_v56 = vmax.f32 %v5383_v15, 0.0  ;;  %v6928_v41 = vadd.f32 %v6927_v52, %v6926_v49  ;;  %v5484_v48 = vsel %vm5465_vm7, %v5455_v36, 0.0  ;;  %v5677_v15 = vld [vmem:[%s11716_s9 + $0x8] sm:$0xff]  ;;  %v5676_v36 = vld [vmem:[%s11716_s9] sm:$0xff] }
 0x4a7   :  { %5485 = vadd.xlane.f32.xlu1 %v5484_v48  ;;  %v5685_v49 = vld [vmem:[%s11716_s9 + $0x48] sm:$0xff] }
 0x4a8   :  { %v5388_v21 = vadd.f32 %v6928_v41, %v11274_v61  ;;  %v6929_v39 = vpop.f32.mrb[178].mxu1  ;;  %v5456_v26 = vmul.f32 %v11308_v51, %v5433_v56  ;;  %v5693_v56 = vld [vmem:[%s11716_s9 + $0x88] sm:$0xff] }
 0x4a9   :  { %v6930_v6 = vpop.f32.mrb[179].mxu1  ;;  %v5701_v41 = vld [vmem:[%s11716_s9 + $0xc8] sm:$0xff] }
 0x4aa   :  { %v5434_v10 = vmax.f32 %v5388_v21, 0.0  ;;  %v6931_v4 = vadd.f32 %v6930_v6, %v6929_v39  ;;  %v5487_v45 = vsel %vm5465_vm7, %v5456_v26, 0.0  ;;  %v7314_v48 = vpack.c.bf16 %v5701_v41, %v5693_v56  ;;  %v5692_v21 = vld [vmem:[%s11716_s9 + $0x80] sm:$0xff]  ;;  %v5683_v6 = vld [vmem:[%s11716_s9 + $0x38] sm:$0xff] }
 0x4ab   :  { %5488 = vadd.xlane.f32.xlu1 %v5487_v45  ;;  %v5700_v39 = vld [vmem:[%s11716_s9 + $0xc0] sm:$0xff] }
 0x4ac   :  { %v5393_v30 = vadd.f32 %v6931_v4, %v11278_v32  ;;  %v6932_v44 = vpop.f32.mrb[180].mxu1  ;;  %v5457_v5 = vmul.f32 %v11308_v51, %v5434_v10  ;;  %v7316_v26 = vpack.c.bf16 %v5700_v39, %v5692_v21  ;;  %v5691_v10 = vld [vmem:[%s11716_s9 + $0x78] sm:$0xff]  ;;  %v5709_v4 = vld [vmem:[%s11716_s9 + $0x108] sm:$0xff] }
 0x4ad   :  { %v6933_v17 = vpop.f32.mrb[181].mxu1  ;;  %v7358_v45 = vpack.c.bf16 %v5691_v10, %v5683_v6 }
 0x4ae   :  { %v5435_v22 = vmax.f32 %v5393_v30, 0.0  ;;  %v6934_v37 = vadd.f32 %v6933_v17, %v6932_v44  ;;  %v5490_v24 = vsel %vm5465_vm7, %v5457_v5, 0.0  ;;  %v5717_v30 = vld [vmem:[%s11716_s9 + $0x148] sm:$0xff]  ;;  %v5682_v44 = vld [vmem:[%s11716_s9 + $0x30] sm:$0xff] }
 0x4af   :  { %5491 = vadd.xlane.f32.xlu0 %v5490_v24  ;;  %v5690_v5 = vld [vmem:[%s11716_s9 + $0x70] sm:$0xff]  ;;  %v7318_v17 = vpack.c.bf16 %v5717_v30, %v5709_v4  ;;  %v5716_v24 = vld [vmem:[%s11716_s9 + $0x140] sm:$0xff]  ;;  %7359 = vmatprep.subr.bf16.mxu1 %v7358_v45 }
 0x4b0   :  { %v5398_v61 = vadd.f32 %v6934_v37, %v11282_v28  ;;  %v6935_v1 = vpop.f32.mrb[182].mxu1  ;;  %v5458_v0 = vmul.f32 %v11308_v51, %v5435_v22  ;;  %v7360_v22 = vpack.c.bf16 %v5690_v5, %v5682_v44  ;;  %v5708_v37 = vld [vmem:[%s11716_s9 + $0x100] sm:$0xff] }
 0x4b1   :  { %v6936_v53 = vpop.f32.mrb[183].mxu1 }
 0x4b2   :  { %v5436_v63 = vmax.f32 %v5398_v61, 0.0  ;;  %v6937_v8 = vadd.f32 %v6936_v53, %v6935_v1  ;;  %v5493_v25 = vsel %vm5465_vm7, %v5458_v0, 0.0  ;;  %v5699_v61 = vld [vmem:[%s11716_s9 + $0xb8] sm:$0xff]  ;;  %v7320_v1 = vpack.c.bf16 %v5716_v24, %v5708_v37  ;;  %v5725_v53 = vld [vmem:[%s11716_s9 + $0x188] sm:$0xff]  ;;  %7361 = vmatpush1.bf16.msra.mxu1 %v7360_v22 }
 0x4b3   :  { %5494 = vadd.xlane.f32.xlu0 %v5493_v25  ;;  %v5707_v0 = vld [vmem:[%s11716_s9 + $0xf8] sm:$0xff] }
 0x4b4   :  { %v5403_v32 = vadd.f32 %v6937_v8, %v11286_v16  ;;  %v6938_v43 = vpop.f32.mrb[184].mxu1  ;;  %v5459_v20 = vmul.f32 %v11308_v51, %v5436_v63  ;;  %v5733_v63 = vld [vmem:[%s11716_s9 + $0x1c8] sm:$0xff]  ;;  %v7362_v8 = vpack.c.bf16 %v5707_v0, %v5699_v61 }
 0x4b5   :  { %v6939_v50 = vpop.f32.mrb[185].mxu1  ;;  %v7322_v25 = vpack.c.bf16 %v5733_v63, %v5725_v53 }
 0x4b6   :  { %v5437_v59 = vmax.f32 %v5403_v32, 0.0  ;;  %v6940_v23 = vadd.f32 %v6939_v50, %v6938_v43  ;;  %v5496_v60 = vsel %vm5465_vm7, %v5459_v20, 0.0  ;;  %v5698_v32 = vld [vmem:[%s11716_s9 + $0xb0] sm:$0xff]  ;;  %v5724_v20 = vld [vmem:[%s11716_s9 + $0x180] sm:$0xff]  ;;  %7363 = vmatprep.subr.bf16.mxu1 %v7362_v8 }
 0x4b7   :  { %5497 = vadd.xlane.f32.xlu0 %v5496_v60  ;;  %v5706_v43 = vld [vmem:[%s11716_s9 + $0xf0] sm:$0xff]  ;;  %v5723_v60 = vld [vmem:[%s11716_s9 + $0x178] sm:$0xff] }
 0x4b8   :  { %v5408_v28 = vadd.f32 %v6940_v23, %v11290_v13  ;;  %v6941_v57 = vpop.f32.mrb[186].mxu1  ;;  %v5460_v54 = vmul.f32 %v11308_v51, %v5437_v59  ;;  %v7364_v50 = vpack.c.bf16 %v5706_v43, %v5698_v32  ;;  %v5732_v59 = vld [vmem:[%s11716_s9 + $0x1c0] sm:$0xff]  ;;  %v5715_v23 = vld [vmem:[%s11716_s9 + $0x138] sm:$0xff] }
 0x4b9   :  { %v6942_v40 = vpop.f32.mrb[187].mxu1 }
 0x4ba   :  { %v5438_v38 = vmax.f32 %v5408_v28, 0.0  ;;  %v6943_v35 = vadd.f32 %v6942_v40, %v6941_v57  ;;  %v5499_v34 = vsel %vm5465_vm7, %v5460_v54, 0.0  ;;  %v7324_v28 = vpack.c.bf16 %v5732_v59, %v5724_v20  ;;  %v5714_v54 = vld [vmem:[%s11716_s9 + $0x130] sm:$0xff]  ;;  %7365 = vmatpush1.bf16.msra.mxu1 %v7364_v50 }
 0x4bb   :  { %5500 = vadd.xlane.f32.xlu0 %v5499_v34  ;;  %v7366_v57 = vpack.c.bf16 %v5723_v60, %v5715_v23  ;;  %v5722_v40 = vld [vmem:[%s11716_s9 + $0x170] sm:$0xff] }
 0x4bc   :  { %v5413_v16 = vadd.f32 %v6943_v35, %v11294_v47  ;;  %v6944_v9 = vpop.f32.mrb[188].mxu1  ;;  %v5461_v46 = vmul.f32 %v11308_v51, %v5438_v38  ;;  %v5731_v38 = vld [vmem:[%s11716_s9 + $0x1b8] sm:$0xff]  ;;  %v7368_v34 = vpack.c.bf16 %v5722_v40, %v5714_v54 }
 0x4bd   :  { %v6945_v29 = vpop.f32.mrb[189].mxu1  ;;  %v5739_v35 = vld [vmem:[%s11716_s9 + $0x1f8] sm:$0xff]  ;;  %7367 = vmatprep.subr.bf16.mxu1 %v7366_v57 }
 0x4be   :  { %v5439_v58 = vmax.f32 %v5413_v16, 0.0  ;;  %v6946_v62 = vadd.f32 %v6945_v29, %v6944_v9  ;;  %v5502_v12 = vsel %vm5465_vm7, %v5461_v46, 0.0  ;;  %v5679_v16 = vld [vmem:[%s11716_s9 + $0x18] sm:$0xff]  ;;  %v7370_v46 = vpack.c.bf16 %v5739_v35, %v5731_v38  ;;  %v5730_v29 = vld [vmem:[%s11716_s9 + $0x1b0] sm:$0xff]  ;;  %7369 = vmatpush1.bf16.msra.mxu1 %v7368_v34 }
 0x4bf   :  { %5503 = vadd.xlane.f32.xlu0 %v5502_v12  ;;  %v5687_v9 = vld [vmem:[%s11716_s9 + $0x58] sm:$0xff] }
 0x4c0   :  { %v5418_v13 = vadd.f32 %v6946_v62, %v11298_v33  ;;  %v6947_v27 = vpop.f32.mrb[190].mxu1  ;;  %v5462_v18 = vmul.f32 %v11308_v51, %v5439_v58  ;;  %v5738_v58 = vld [vmem:[%s11716_s9 + $0x1f0] sm:$0xff]  ;;  %v7326_v62 = vpack.c.bf16 %v5687_v9, %v5679_v16  ;;  %7371 = vmatprep.subr.bf16.mxu1 %v7370_v46 }
 0x4c1   :  { %v6948_v42 = vpop.f32.mrb[191].mxu1  ;;  %v7372_v12 = vpack.c.bf16 %v5738_v58, %v5730_v29 }
 0x4c2   :  { %v5440_v11 = vmax.f32 %v5418_v13, 0.0  ;;  %v6949_v3 = vadd.f32 %v6948_v42, %v6947_v27  ;;  %v5505_v19 = vsel %vm5465_vm7, %v5462_v18, 0.0 }
 0x4c3   :  { %5506 = vadd.xlane.f32.xlu0 %v5505_v19  ;;  %7373 = vmatpush1.bf16.msra.mxu1 %v7372_v12 }
 0x4c4   :  { %v5423_v47 = vadd.f32 %v6949_v3, %v11302_v55  ;;  %v5463_v31 = vmul.f32 %v11308_v51, %v5440_v11  ;;  %v7310_v55 = vpack.c.bf16 %v5685_v49, %v5677_v15  ;;  %v11462_v11 = vstv %s11715_s8 }
 0x4c6   :  { %v5441_v14 = vmax.f32 %v5423_v47, 0.0  ;;  %v5508_v2 = vsel %vm5465_vm7, %v5463_v31, 0.0  ;;  %7311 = vmatprep.subr.bf16.mxu0 %v7310_v55 }
 0x4c7   :  { %5509 = vadd.xlane.f32.xlu0 %v5508_v2 }
 0x4c8   :  { %v5464_v7 = vmul.f32 %v11308_v51, %v5441_v14  ;;  %v5684_v51 = vld [vmem:[%s11716_s9 + $0x40] sm:$0xff] }
 0x4c9   :  { %v7312_v52 = vpack.c.bf16 %v5684_v51, %v5676_v36 }
 0x4ca   :  { %v5511_v33 = vsel %vm5465_vm7, %v5464_v7, 0.0 }
 0x4cb   :  { %5512 = vadd.xlane.f32.xlu0 %v5511_v33  ;;  %7313 = vmatpush1.bf16.msra.mxu0 %v7312_v52 }
 0x4cc   :  { %7315 = vmatprep.subr.bf16.mxu0 %v7314_v48 }
 0x4cf   :  { %7317 = vmatpush1.bf16.msra.mxu0 %v7316_v26 }
 0x4d0   :  { %7319 = vmatprep.subr.bf16.mxu0 %v7318_v17 }
 0x4d3   :  { %7321 = vmatpush1.bf16.msra.mxu0 %v7320_v1 }
 0x4d4   :  { %7323 = vmatprep.subr.bf16.mxu0 %v7322_v25 }
 0x4d7   :  { %7325 = vmatpush1.bf16.msra.mxu0 %v7324_v28 }
 0x4d8   :  { %7327 = vmatprep.subr.bf16.mxu0 %v7326_v62 }
 0x51c   :  { %v5468_v3 = vpop.xlane.xlu0 %5467 }
 0x51d   :  { %v11465_v19 = vadd.f32 %v11462_v11, %v5468_v3 }
 0x51f   :  { %v5548_v2 = vand.u32 2147483647, %v11465_v19 }
 0x520   :  { %v5471_v13 = vpop.xlane.xlu1 %5470 }
 0x521   :  { %v11468_v31 = vadd.f32 %v11462_v11, %v5471_v13  ;;  %v5564_v52 = vsub.f32 0.0, %v5548_v2 }
 0x523   :  { %v5549_v33 = vand.u32 2147483647, %v11468_v31  ;;  %v5580_v4 = vmul.f32 1.442695, %v5564_v52 }
 0x524   :  { %v5474_v27 = vpop.xlane.xlu1 %5473 }
 0x525   :  { %v11471_v14 = vadd.f32 %v11462_v11, %v5474_v27  ;;  %v5565_v48 = vsub.f32 0.0, %v5549_v33  ;;  %7444 = vpow2.f32 %v5580_v4 }
 0x527   :  { %v5550_v49 = vand.u32 2147483647, %v11471_v14  ;;  %v5582_v5 = vmul.f32 1.442695, %v5565_v48 }
 0x528   :  { %v5477_v18 = vpop.xlane.xlu1 %5476 }
 0x529   :  { %v11475_v7 = vadd.f32 %v11462_v11, %v5477_v18  ;;  %v5566_v39 = vsub.f32 0.0, %v5550_v49  ;;  %7446 = vpow2.f32 %v5582_v5 }
 0x52b   :  { %v5551_v56 = vand.u32 2147483647, %v11475_v7  ;;  %v5584_v24 = vmul.f32 1.442695, %v5566_v39 }
 0x52c   :  { %v5480_v42 = vpop.xlane.xlu1 %5479 }
 0x52d   :  { %v11480_v55 = vadd.f32 %v11462_v11, %v5480_v42  ;;  %v5567_v45 = vsub.f32 0.0, %v5551_v56  ;;  %7448 = vpow2.f32 %v5584_v24 }
 0x52f   :  { %v5552_v26 = vand.u32 2147483647, %v11480_v55  ;;  %v5586_v63 = vmul.f32 1.442695, %v5567_v45  ;;  %v7445_v13 = vpop.eup %7444 }
 0x530   :  { %v5483_v47 = vpop.xlane.xlu1 %5482  ;;  %v5612_v33 = vadd.f32 1.0, %v7445_v13 }
 0x531   :  { %v11483_v51 = vadd.f32 %v11462_v11, %v5483_v47  ;;  %v5568_v61 = vsub.f32 0.0, %v5552_v26  ;;  %7450 = vpow2.f32 %v5586_v63 }
 0x533   :  { %v5553_v6 = vand.u32 2147483647, %v11483_v51  ;;  %v5588_v50 = vmul.f32 1.442695, %v5568_v61  ;;  %v7447_v42 = vpop.eup %7446 }
 0x534   :  { %v5486_v36 = vpop.xlane.xlu1 %5485  ;;  %v5613_v52 = vadd.f32 1.0, %v7447_v42 }
 0x535   :  { %v11496_v17 = vadd.f32 %v11462_v11, %v5486_v36  ;;  %v5569_v0 = vsub.f32 0.0, %v5553_v6  ;;  %7452 = vpow2.f32 %v5588_v50 }
 0x537   :  { %v5554_v32 = vand.u32 2147483647, %v11496_v17  ;;  %v5590_v60 = vmul.f32 1.442695, %v5569_v0  ;;  %v7449_v47 = vpop.eup %7448 }
 0x538   :  { %v5489_v30 = vpop.xlane.xlu1 %5488  ;;  %v5614_v48 = vadd.f32 1.0, %v7449_v47 }
 0x539   :  { %v11503_v53 = vadd.f32 %v11462_v11, %v5489_v30  ;;  %v5570_v54 = vsub.f32 0.0, %v5554_v32  ;;  %7454 = vpow2.f32 %v5590_v60 }
 0x53b   :  { %v5555_v28 = vand.u32 2147483647, %v11503_v53  ;;  %v5592_v58 = vmul.f32 1.442695, %v5570_v54  ;;  %v7451_v36 = vpop.eup %7450 }
 0x53c   :  { %v5492_v15 = vpop.xlane.xlu0 %5491  ;;  %v5615_v4 = vadd.f32 1.0, %v7451_v36 }
 0x53d   :  { %v11487_v41 = vadd.f32 %v11462_v11, %v5492_v15  ;;  %v5571_v9 = vsub.f32 0.0, %v5555_v28 }
 0x53f   :  { %v5556_v44 = vand.u32 2147483647, %v11487_v41  ;;  %v5594_v3 = vmul.f32 1.442695, %v5571_v9  ;;  %v7453_v39 = vpop.eup %7452 }
 0x540   :  { %v5495_v21 = vpop.xlane.xlu0 %5494  ;;  %v5616_v24 = vadd.f32 1.0, %v7453_v39  ;;  %v11923_v39 = vld [vmem:[#allocation10_spill] sm:$0xff] }
 0x541   :  { %v11492_v10 = vadd.f32 %v11462_v11, %v5495_v21  ;;  %v5572_v8 = vsub.f32 0.0, %v5556_v44 }
 0x543   :  { %v5557_v22 = vand.u32 2147483647, %v11492_v10  ;;  %v5596_v57 = vmul.f32 1.442695, %v5572_v8  ;;  %v7455_v6 = vpop.eup %7454 }
 0x544   :  { %v5498_v37 = vpop.xlane.xlu0 %5497  ;;  %v5617_v0 = vadd.f32 1.0, %v7455_v6 }
 0x545   :  { %v11500_v1 = vadd.f32 %v11462_v11, %v5498_v37  ;;  %v5573_v43 = vsub.f32 0.0, %v5557_v22  ;;  %7456 = vpow2.f32 %v5596_v57 }
 0x547   :  { %v5558_v25 = vand.u32 2147483647, %v11500_v1  ;;  %v5598_v40 = vmul.f32 1.442695, %v5573_v43 }
 0x548   :  { %v5501_v20 = vpop.xlane.xlu0 %5500 }
 0x549   :  { %v5574_v59 = vsub.f32 0.0, %v5558_v25  ;;  %v11508_v23 = vadd.f32 %v11462_v11, %v5501_v20  ;;  %7458 = vpow2.f32 %v5598_v40 }
 0x54b   :  { %v5559_v38 = vand.u32 2147483647, %v11508_v23  ;;  %v5600_v34 = vmul.f32 1.442695, %v5574_v59 }
 0x54c   :  { %v5504_v35 = vpop.xlane.xlu0 %5503 }
 0x54d   :  { %v11513_v16 = vadd.f32 %v11462_v11, %v5504_v35  ;;  %v5575_v46 = vsub.f32 0.0, %v5559_v38  ;;  %7460 = vpow2.f32 %v5600_v34 }
 0x54f   :  { %v5560_v29 = vand.u32 2147483647, %v11513_v16  ;;  %v5602_v62 = vmul.f32 1.442695, %v5575_v46  ;;  %v7457_v44 = vpop.eup %7456  ;;  %v11922_v46 = vlaneseq }
 0x550   :  { %v5507_v12 = vpop.xlane.xlu0 %5506  ;;  %v5620_v8 = vadd.f32 1.0, %v7457_v44 }
 0x551   :  { %v5576_v27 = vsub.f32 0.0, %v5560_v29  ;;  %v11517_v18 = vadd.f32 %v11462_v11, %v5507_v12  ;;  %7462 = vpow2.f32 %v5602_v62  ;;  %v5757_v29 = vand.u32 127, %v11922_v46 }
 0x552   :  { %7464 = vpow2.f32 %v5592_v58 }
 0x553   :  { %v5604_v2 = vmul.f32 1.442695, %v5576_v27  ;;  %v5561_v15 = vand.u32 2147483647, %v11517_v18  ;;  %v7459_v37 = vpop.eup %7458  ;;  %v5762_v12 = vadd.s32 4294967288, %v5757_v29  ;;  %v5769_v13 = vadd.s32 4294967280, %v5757_v29 }
 0x554   :  { %v5510_v49 = vpop.xlane.xlu0 %5509  ;;  %v5621_v43 = vadd.f32 1.0, %v7459_v37  ;;  %v5783_v47 = vadd.s32 4294967264, %v5757_v29 }
 0x555   :  { %7466 = vpow2.f32 %v5604_v2  ;;  %v11521_v56 = vadd.f32 %v11462_v11, %v5510_v49  ;;  %v5577_v21 = vsub.f32 0.0, %v5561_v15  ;;  %v5790_v2 = vadd.s32 4294967256, %v5757_v29 }
 0x556   :  { %7468 = vpow2.f32 %v5594_v3  ;;  %v5776_v3 = vadd.s32 4294967272, %v5757_v29  ;;  %v5797_v15 = vadd.s32 4294967248, %v5757_v29  ;;  %v5804_v49 = vadd.s32 4294967240, %v5757_v29 }
 0x557   :  { %v5562_v26 = vand.u32 2147483647, %v11521_v56  ;;  %7470 = vlog2.f32 %v5612_v33  ;;  %v5606_v45 = vmul.f32 1.442695, %v5577_v21  ;;  %v7461_v61 = vpop.eup %7460  ;;  %v11533_v6 = vsub.s32 %v5762_v12, %v11923_v39 }
 0x558   :  { %v5513_v30 = vpop.xlane.xlu0 %5512  ;;  %7472 = vlog2.f32 %v5613_v52  ;;  %v5622_v50 = vadd.f32 1.0, %v7461_v61  ;;  %v11537_v44 = vsub.s32 %v5769_v13, %v11923_v39  ;;  %v11546_v61 = vsub.s32 %v5790_v2, %v11923_v39 }
 0x559   :  { %v5578_v5 = vsub.f32 0.0, %v5562_v26  ;;  %v11525_v22 = vadd.f32 %v11462_v11, %v5513_v30  ;;  %7474 = vlog2.f32 %v5614_v48  ;;  %v11530_v26 = vsub.s32 %v5757_v29, %v11923_v39 }
 0x55a   :  { %7476 = vpow2.f32 %v5606_v45  ;;  %v5533_v30 = vmax.f32 %v11468_v31, 0.0  ;;  %v5543_v13 = vmax.f32 %v11508_v23, 0.0  ;;  %v5544_v2 = vmax.f32 %v11513_v16, 0.0 }
 0x55b   :  { %v5608_v63 = vmul.f32 1.442695, %v5578_v5  ;;  %7478 = vlog2.f32 %v5615_v4  ;;  %v5563_v25 = vand.u32 2147483647, %v11525_v22  ;;  %v7463_v32 = vpop.eup %7462  ;;  %v11540_v5 = vsub.s32 %v5776_v3, %v11923_v39 }
 0x55c   :  { %v7465_v20 = vpop.eup %7464  ;;  %v5623_v28 = vadd.f32 1.0, %v7463_v32  ;;  %v5534_v32 = vmax.f32 %v11471_v14, 0.0  ;;  %v5541_v14 = vmax.f32 %v11492_v10, 0.0 }
 0x55d   :  { %7480 = vpow2.f32 %v5608_v63  ;;  %v5579_v59 = vsub.f32 0.0, %v5563_v25  ;;  %v5618_v38 = vadd.f32 1.0, %v7465_v20  ;;  %v11552_v63 = vsub.s32 %v5804_v49, %v11923_v39 }
 0x55e   :  { %7482 = vlog2.f32 %v5616_v24  ;;  %v11543_v24 = vsub.s32 %v5783_v47, %v11923_v39 }
 0x55f   :  { %v7467_v11 = vpop.eup %7466  ;;  %7484 = vlog2.f32 %v5617_v0  ;;  %v5610_v57 = vmul.f32 1.442695, %v5579_v59  ;;  %v11549_v0 = vsub.s32 %v5797_v15, %v11923_v39  ;;  %v5536_v59 = vmax.f32 %v11480_v55, 0.0 }
 0x560   :  { %v7469_v60 = vpop.eup %7468  ;;  %7486 = vlog2.f32 %v5620_v8  ;;  %v5624_v54 = vadd.f32 1.0, %v7467_v11  ;;  %v5532_v8 = vmax.f32 %v11465_v19, 0.0  ;;  %v5537_v11 = vmax.f32 %v11483_v51, 0.0 }
 0x561   :  { %7488 = vlog2.f32 %v5621_v43  ;;  %v7471_v40 = vpop.eup %7470  ;;  %v5619_v34 = vadd.f32 1.0, %v7469_v60  ;;  %v5535_v43 = vmax.f32 %v11475_v7, 0.0 }
 0x562   :  { %7490 = vlog2.f32 %v5622_v50  ;;  %v7473_v35 = vpop.eup %7472  ;;  %v5629_v45 = vmul.f32 0.6931472, %v7471_v40  ;;  %v5538_v40 = vmax.f32 %v11496_v17, 0.0 }
 0x563   :  { %7492 = vpow2.f32 %v5610_v57  ;;  %v7475_v9 = vpop.eup %7474  ;;  %v5631_v48 = vmul.f32 0.6931472, %v7473_v35  ;;  %v5540_v35 = vmax.f32 %v11487_v41, 0.0 }
 0x564   :  { %7494 = vlog2.f32 %v5623_v28  ;;  %v7477_v58 = vpop.eup %7476  ;;  %v5633_v50 = vmul.f32 0.6931472, %v7475_v9  ;;  %v5660_v57 = vadd.f32 %v5629_v45, %v5532_v8  ;;  %v5542_v9 = vmax.f32 %v11500_v1, 0.0 }
 0x565   :  { %7496 = vlog2.f32 %v5624_v54  ;;  %v7479_v62 = vpop.eup %7478  ;;  %v5625_v27 = vadd.f32 1.0, %v7477_v58  ;;  %v11555_v25 = vadd.f32 %v5631_v48, %v5533_v30  ;;  %v5545_v1 = vmax.f32 %v11517_v18, 0.0 }
 0x566   :  { %7498 = vlog2.f32 %v5618_v38  ;;  %v5635_v54 = vmul.f32 0.6931472, %v7479_v62  ;;  %v5662_v58 = vadd.f32 %v5633_v50, %v5534_v32  ;;  %v5761_v23 = vrot.slane %v5660_v57, %v11530_v26 }
 0x567   :  { %v7481_v42 = vpop.eup %7480  ;;  %7500 = vlog2.f32 %v5619_v34  ;;  %v5766_v55 = vrot.slane %v11555_v25, %v11533_v6  ;;  %v5539_v45 = vmax.f32 %v11503_v53, 0.0 }
 0x568   :  { %v7483_v33 = vpop.eup %7482  ;;  %7502 = vlog2.f32 %v5625_v27  ;;  %v5626_v36 = vadd.f32 1.0, %v7481_v42  ;;  %v5663_v41 = vadd.f32 %v5635_v54, %v5535_v43  ;;  %v5773_v16 = vrot.slane %v5662_v58, %v11537_v44 }
 0x569   :  { %v7485_v52 = vpop.eup %7484  ;;  %v5637_v17 = vmul.f32 0.6931472, %v7483_v33  ;;  %v5768_v50 = vsel %vm5767_vm8, %v5766_v55, %v5761_v23 }
 0x56a   :  { %v7487_v21 = vpop.eup %7486  ;;  %7504 = vlog2.f32 %v5626_v36  ;;  %v5639_v62 = vmul.f32 0.6931472, %v7485_v52  ;;  %v5780_v25 = vrot.slane %v5663_v41, %v11540_v5  ;;  %v5702_v41 = vld [vmem:[%s11716_s9 + $0xd0] sm:$0xff] }
 0x56b   :  { %v7489_v4 = vpop.eup %7488  ;;  %v5645_v51 = vmul.f32 0.6931472, %v7487_v21  ;;  %v5664_v52 = vadd.f32 %v5637_v17, %v5536_v59 }
 0x56c   :  { %v7491_v37 = vpop.eup %7490  ;;  %v5647_v19 = vmul.f32 0.6931472, %v7489_v4  ;;  %v5665_v48 = vadd.f32 %v5639_v62, %v5537_v11  ;;  %v5546_v4 = vmax.f32 %v11521_v56, 0.0 }
 0x56d   :  { %v7493_v31 = vpop.eup %7492  ;;  %v5649_v7 = vmul.f32 0.6931472, %v7491_v37  ;;  %v5668_v49 = vadd.f32 %v5645_v51, %v5540_v35  ;;  %v5787_v53 = vrot.slane %v5664_v52, %v11543_v24  ;;  %v5734_v52 = vld [vmem:[%s11716_s9 + $0x1d0] sm:$0xff] }
 0x56e   :  { %v7495_v20 = vpop.eup %7494  ;;  %v5627_v60 = vadd.f32 1.0, %v7493_v31  ;;  %v5669_v10 = vadd.f32 %v5647_v19, %v5541_v14 }
 0x56f   :  { %v7497_v28 = vpop.eup %7496  ;;  %v5651_v46 = vmul.f32 0.6931472, %v7495_v20  ;;  %v5670_v47 = vadd.f32 %v5649_v7, %v5542_v9  ;;  %v5814_v43 = vrot.slane %v5668_v49, %v11530_v26  ;;  %v5775_v26 = vsel %vm5774_vm9, %v5773_v16, %v5768_v50  ;;  %v5703_v7 = vld [vmem:[%s11716_s9 + $0xd8] sm:$0xff]  ;;  %v5705_v16 = vld [vmem:[%s11716_s9 + $0xe8] sm:$0xff]  ;;  %v5712_v50 = vld [vmem:[%s11716_s9 + $0x120] sm:$0xff] }
 0x570   :  { %v7499_v38 = vpop.eup %7498  ;;  %7506 = vlog2.f32 %v5627_v60  ;;  %v5653_v12 = vmul.f32 0.6931472, %v7497_v28  ;;  %v5818_v30 = vrot.slane %v5669_v10, %v11533_v6  ;;  %v5794_v6 = vrot.slane %v5665_v48, %v11546_v61  ;;  %v5681_v48 = vld [vmem:[%s11716_s9 + $0x28] sm:$0xff] }
 0x571   :  { %v7501_v34 = vpop.eup %7500  ;;  %v5641_v3 = vmul.f32 0.6931472, %v7499_v38  ;;  %v5671_v33 = vadd.f32 %v5651_v46, %v5543_v13  ;;  %v5823_v31 = vrot.slane %v5670_v47, %v11537_v44  ;;  %v5547_v60 = vmax.f32 %v11525_v22, 0.0  ;;  %v5678_v22 = vld [vmem:[%s11716_s9 + $0x10] sm:$0xff]  ;;  %v5719_v13 = vld [vmem:[%s11716_s9 + $0x158] sm:$0xff] }
 0x572   :  { %v7503_v29 = vpop.eup %7502  ;;  %v5643_v15 = vmul.f32 0.6931472, %v7501_v34  ;;  %v5672_v21 = vadd.f32 %v5653_v12, %v5544_v2  ;;  %v5819_v11 = vsel %vm5767_vm8, %v5818_v30, %v5814_v43  ;;  %v5694_v12 = vld [vmem:[%s11716_s9 + $0x90] sm:$0xff]  ;;  %v5688_v30 = vld [vmem:[%s11716_s9 + $0x60] sm:$0xff]  ;;  %v5721_v43 = vld [vmem:[%s11716_s9 + $0x168] sm:$0xff] }
 0x573   :  { %v5655_v27 = vmul.f32 0.6931472, %v7503_v29  ;;  %v5666_v18 = vadd.f32 %v5641_v3, %v5538_v40  ;;  %v5828_v56 = vrot.slane %v5671_v33, %v11540_v5  ;;  %v5824_v57 = vsel %vm5774_vm9, %v5823_v31, %v5819_v11  ;;  %v5710_v47 = vld [vmem:[%s11716_s9 + $0x110] sm:$0xff] }
 0x574   :  { %v7505_v42 = vpop.eup %7504  ;;  %v5667_v32 = vadd.f32 %v5643_v15, %v5539_v45  ;;  %v5833_v59 = vrot.slane %v5672_v21, %v11543_v24  ;;  %v5782_v40 = vsel %vm5781_vm10, %v5780_v25, %v5775_v26  ;;  %v5718_v2 = vld [vmem:[%s11716_s9 + $0x150] sm:$0xff]  ;;  %v5735_v15 = vld [vmem:[%s11716_s9 + $0x1d8] sm:$0xff]  ;;  %v5689_v21 = vld [vmem:[%s11716_s9 + $0x68] sm:$0xff] }
 0x575   :  { %v5657_v36 = vmul.f32 0.6931472, %v7505_v42  ;;  %v5673_v37 = vadd.f32 %v5655_v27, %v5545_v1  ;;  %v5801_v5 = vrot.slane %v5666_v18, %v11549_v0  ;;  %v5829_v24 = vsel %vm5781_vm10, %v5828_v56, %v5824_v57  ;;  %v7511_v42 = vld [vmem:[#allocation3] sm:$0xff]  ;;  %v5727_v1 = vld [vmem:[%s11716_s9 + $0x198] sm:$0xff] }
 0x576   :  { %v5808_v19 = vrot.slane %v5667_v32, %v11552_v63  ;;  %v5789_v35 = vsel %vm5788_vm11, %v5787_v53, %v5782_v40  ;;  %v5834_v14 = vsel %vm5788_vm11, %v5833_v59, %v5829_v24  ;;  %v7332_v27 = vpack.c.bf16 %v5702_v41, %v5694_v12  ;;  %v5680_v45 = vld [vmem:[%s11716_s9 + $0x20] sm:$0xff]  ;;  %v5713_v32 = vld [vmem:[%s11716_s9 + $0x128] sm:$0xff] }
 0x577   :  { %v5674_v8 = vadd.f32 %v5657_v36, %v5546_v4  ;;  %v5838_v44 = vrot.slane %v5673_v37, %v11546_v61  ;;  %v5686_v61 = vld [vmem:[%s11716_s9 + $0x50] sm:$0xff]  ;;  %v5796_v34 = vsel %vm5795_vm12, %v5794_v6, %v5789_v35  ;;  %v7336_v49 = vpack.c.bf16 %v5718_v2, %v5710_v47  ;;  %v5697_v37 = vld [vmem:[%s11716_s9 + $0xa8] sm:$0xff]  ;;  %v5704_v25 = vld [vmem:[%s11716_s9 + $0xe0] sm:$0xff] }
 0x578   :  { %v5803_v9 = vsel %vm5802_vm13, %v5801_v5, %v5796_v34  ;;  %v7328_v29 = vpack.c.bf16 %v5686_v61, %v5678_v22  ;;  %v7338_v33 = vpack.c.bf16 %v5735_v15, %v5727_v1  ;;  %v5726_v36 = vld [vmem:[%s11716_s9 + $0x190] sm:$0xff]  ;;  %v7342_v23 = vpack.c.bf16 %v5689_v21, %v5681_v48  ;;  %v5720_v53 = vld [vmem:[%s11716_s9 + $0x160] sm:$0xff]  ;;  %v5729_v6 = vld [vmem:[%s11716_s9 + $0x1a8] sm:$0xff] }
 0x579   :  { %v5843_v54 = vrot.slane %v5674_v8, %v11549_v0  ;;  %v5695_v0 = vld [vmem:[%s11716_s9 + $0x98] sm:$0xff]  ;;  %v5839_v55 = vsel %vm5795_vm12, %v5838_v44, %v5834_v14  ;;  %v5810_v58 = vsel %vm5809_vm14, %v5808_v19, %v5803_v9  ;;  %v7340_v4 = vpack.c.bf16 %v5734_v52, %v5726_v36  ;;  %v5696_v8 = vld [vmem:[%s11716_s9 + $0xa0] sm:$0xff]  ;;  %v5737_v59 = vld [vmem:[%s11716_s9 + $0x1e8] sm:$0xff] }
 0x57a   :  { %v7507_v20 = vpop.eup %7506  ;;  %v7330_v62 = vpack.c.bf16 %v5703_v7, %v5695_v0  ;;  %v7344_v18 = vpack.c.bf16 %v5688_v30, %v5680_v45  ;;  %v7346_v31 = vpack.c.bf16 %v5705_v16, %v5697_v37  ;;  %v7348_v56 = vpack.c.bf16 %v5704_v25, %v5696_v8 }
 0x57b   :  { %v5659_v28 = vmul.f32 0.6931472, %v7507_v20  ;;  %v5844_v46 = vsel %vm5802_vm13, %v5843_v54, %v5839_v55  ;;  %v7350_v20 = vpack.c.bf16 %v5721_v43, %v5713_v32  ;;  %v7352_v11 = vpack.c.bf16 %v5720_v53, %v5712_v50 }
 0x57c   :  { %v7354_v44 = vpack.c.bf16 %v5737_v59, %v5729_v6  ;;  %v7540_v14 = vmov 1983009808  }
 0x57d   :  { %v5675_v38 = vadd.f32 %v5659_v28, %v5547_v60  ;;  %v5728_v60 = vld [vmem:[%s11716_s9 + $0x1a0] sm:$0xff]  ;;  %v6157_v0 = vunpack.c.l.s4 %v7540_v14 }
 0x57e   :  { %v5736_v28 = vld [vmem:[%s11716_s9 + $0x1e0] sm:$0xff] }
 0x57f   :  { %v5848_v51 = vrot.slane %v5675_v38, %v11552_v63  ;;  %v5711_v63 = vld [vmem:[%s11716_s9 + $0x118] sm:$0xff]  ;;  %v7356_v26 = vpack.c.bf16 %v5736_v28, %v5728_v60  ;;  %v6158_v7 = vunpack.c.0.s8 %v6157_v0  ;;  %s7541_s9 = smov [#allocation7]  }
 0x580   :  { %v7334_v3 = vpack.c.bf16 %v5719_v13, %v5711_v63  ;;  %s6198_s30 = sshll.u32 %s7541_s9, 4  ;;  %s6199_s30 = int_to_ptr.vmem [resolvable:$true] %s6198_s30 }
 0x581   :  { %v5849_v17 = vsel %vm5809_vm14, %v5848_v51, %v5844_v46  ;;  %v6161_v9 = vsub.s32 %v6158_v7, %v11923_v39  ;;  %s7512_s13 = scalar_lea.vmem %s6199_s30, 256  ;;  %p7517_p1 = scmp.lt.s32.totalorder %s6199_s30, %s6199_s30 }
 0x582   :  { %v5851_v10 = vsel %vm5850_vm15, %v5849_v17, %v5810_v58  ;;  %p7513_p0 = scmp.ne.s32.totalorder %s6199_s30, %s7512_s13  ;;  %p7518_p2 = scmp.lt.s32.totalorder %s7512_s13, %s7512_s13 }
 0x583   :  { %6226 = vmatmul.mubr.msk.f32.vlgmr.msra.gmra.mrb[128].mxu0 %vm5465_vm7, %v5851_v10  ;;  %6229 = vmatmul.mubr.msk.f32.vlgmr.msra.gmra.mrb[192].mxu1 %vm5465_vm7, %v5851_v10 }
 0x584   :  { %7329 = vmatpush1.bf16.msra.mxu0 %v7328_v29  ;;  %5989 = vmatprep.mubr.f32.mxu0 %v7511_v42  ;;  %p7519_p3 = por %p7518_p2, %p7517_p1 }
 0x585   :  { %7331 = vmatprep.subr.bf16.mxu0 %v7330_v62 }
 0x586   :  { %p7520_p4 = pnand %p7519_p3, %p7513_p0 }
 0x588   :  { %7333 = vmatpush1.bf16.msra.mxu0 %v7332_v27 }
 0x589   :  { %7335 = vmatprep.subr.bf16.mxu0 %v7334_v3 }
 0x58c   :  { %7337 = vmatpush1.bf16.msra.mxu0 %v7336_v49 }
 0x58d   :  { %7339 = vmatprep.subr.bf16.mxu0 %v7338_v33 }
 0x590   :  { %7341 = vmatpush1.bf16.msra.mxu0 %v7340_v4 }
 0x591   :  { %7343 = vmatprep.subr.bf16.mxu0 %v7342_v23 }
 0x593   :  { %6227 = vmatmul.mubr.msk.f32.vlgmr.msra.gmra.mrb[130].mxu0 %vm5465_vm7, %v5851_v10 }
 0x594   :  { %7345 = vmatpush1.bf16.msra.mxu0 %v7344_v18  ;;  %6060 = vmatprep.mubr.f32.mxu0 %v7511_v42 }
 0x595   :  { %7347 = vmatprep.subr.bf16.mxu0 %v7346_v31 }
 0x598   :  { %7349 = vmatpush1.bf16.msra.mxu0 %v7348_v56 }
 0x599   :  { %7351 = vmatprep.subr.bf16.mxu0 %v7350_v20 }
 0x59c   :  { %7353 = vmatpush1.bf16.msra.mxu0 %v7352_v11 }
 0x59d   :  { %7355 = vmatprep.subr.bf16.mxu0 %v7354_v44 }
 0x5a0   :  { %7357 = vmatpush1.bf16.msra.mxu0 %v7356_v26 }
 0x5a3   :  { %6228 = vmatmul.mubr.msk.f32.vlgmr.msra.gmra.mrb[132].mxu0 %vm5465_vm7, %v5851_v10 }
 0x656   :  { %v5920_v5 = vpop.f32.mrb[128].mxu0  ;;  %v6133_v57 = vpop.f32.mrb[192].mxu1 }
 0x657   :  { %v6138_v54 = vmax.f32 %v5920_v5, 0.1  ;;  %v6144_v40 = vmax.f32 %v6133_v57, 0.1  ;;  %v5922_v19 = vpop.f32.mrb[129].mxu0  ;;  %v6135_v24 = vpop.f32.mrb[193].mxu1 }
 0x658   :  { %v6139_v38 = vmax.f32 %v5922_v19, 0.1  ;;  %v6145_v22 = vmax.f32 %v6135_v24, 0.1 }
 0x65a   :  { %v6154_v61 = vcombine.low %v6138_v54, %v6139_v38  ;;  %v6172_v35 = vcombine.low %v6144_v40, %v6145_v22 }
 0x65c   :  { %v6162_v58 = vrot.slane %v6154_v61, %v6161_v9  ;;  %v6186_v27 = vrot.slane %v6172_v35, %v6161_v9 }
 0x666   :  { %v5991_v34 = vpop.f32.mrb[130].mxu0 }
 0x667   :  { %v6140_v55 = vmax.f32 %v5991_v34, 0.1  ;;  %v5993_v51 = vpop.f32.mrb[131].mxu0 }
 0x668   :  { %v6141_v46 = vmax.f32 %v5993_v51, 0.1 }
 0x66a   :  { %v6155_v29 = vcombine.low %v6140_v55, %v6141_v46 }
 0x66c   :  { %v6169_v17 = vrot.slane %v6155_v29, %v6161_v9 }
 0x66e   :  { %v6170_v62 = vcombine.low %v6162_v58, %v6169_v17 }
 0x670   :  { %6190 = vst [vmem:[#allocation7] sm:$0xff] %v6170_v62 }
 0x676   :  { %v6062_v12 = vpop.f32.mrb[132].mxu0 }
 0x677   :  { %v6142_v41 = vmax.f32 %v6062_v12, 0.1  ;;  %v6064_v10 = vpop.f32.mrb[133].mxu0 }
 0x678   :  { %v6143_v63 = vmax.f32 %v6064_v10, 0.1 }
 0x67a   :  { %v6171_v13 = vcombine.low %v6142_v41, %v6143_v63 }
 0x67c   :  { %v6179_v42 = vrot.slane %v6171_v13, %v6161_v9 }
 0x67e   :  { %v6187_v3 = vcombine.low %v6179_v42, %v6186_v27 }
 0x680   :  { %6191 = vst [vmem:[#allocation7 + $0x8] sm:$0xff] %v6187_v3 }
 0x681   :  { %7523 = shalt.err (!%p7520_p4)
}
 0x682   :  { %s7524_s16 = scalar_lea.hbm %s11717_s10, 256 }
 0x683   :  { %p7525_p5 = scmp.ne.s32.totalorder %s11717_s10, %s7524_s16  ;;  %p7528_p6 = scmp.lt.u32.totalorder %s7524_s16, %s11717_s10 }
 0x685   :  { %p7530_p7 = pnand %p7528_p6, %p7525_p5 }
 0x687   :  { %7533 = shalt.err (!%p7530_p7)
}
 0x688   :  { %6201 = dma.vmem_to_hbm [thread:$0]  %s6199_s30, 256, %s11717_s10, [#allocation8]  }
 0x689   :  { %7534 = dma.done.wait [#allocation8], 256  }
 0x68a   :  { %7535 = vsyncadd [#allocation8], 4294967040 }
 0x68b   :  { %6205 = vsyncpa [#allocation8], 1 }

</bundles_post_ra>
